<compile_context>
chip_gen: v6e
topology: v6e:2x2x1
jax: 0.10.0
libtpu: 0.0.40
codegen_flags: <defaults>
</compile_context>

<pallas_src>
import functools
import math

import jax
import jax.numpy as jnp
from jax.experimental import pallas as pl
from jax.experimental.pallas import tpu as pltpu

LN_EPS = 1e-5   # torch.nn.LayerNorm default
LANE = 128      # TPU lane width


def _round_up(x, m):
    return (x + m - 1) // m * m


# ----------------------------------------------------------------------------
# Fused decoder kernel: L transformer blocks + linear head.
# Grid = (batch blocks, layers).  TB sequences per batch block.
# ----------------------------------------------------------------------------
def decoder_kernel(x_ref, pos_ref,
                   ln1g_ref, ln1b_ref, wqkv_ref, wproj_ref, bproj_ref,
                   ln2g_ref, ln2b_ref, wfc1_ref, bfc1_ref, wfc2_ref, bfc2_ref,
                   headw_ref, headb_ref,
                   o_ref,
                   x_scratch, attn_scratch,
                   *, num_head, seq_len, head_dim_padded):
    l = pl.program_id(1)
    num_layers = pl.num_programs(1)

    M, C = x_scratch.shape            # M = TB * T
    T = seq_len
    TB = M // T
    H = num_head
    Dp = head_dim_padded              # per-head width padded to 128 lanes
    Ppad = o_ref.shape[-1]

    # ---- init: fuse pos-embedding add + f32 cast, flatten batch into rows ----
    @pl.when(l == 0)
    def _():
        xb = x_ref[...].astype(jnp.float32) + pos_ref[...]   # (TB, T, C) + (T, C)
        x_scratch[...] = xb.reshape(M, C)

    x = x_scratch[...]                                        # (M, C) f32 residual

    # ---- LayerNorm 1 ----
    mu = jnp.mean(x, axis=-1, keepdims=True)
    xc = x - mu
    var = jnp.mean(xc * xc, axis=-1, keepdims=True)
    xn = xc * jax.lax.rsqrt(var + LN_EPS)
    xn = xn * ln1g_ref[0] + ln1b_ref[0]

    # ---- Multi-head self-attention ----
    # Fused QKV matmul; wqkv columns are [Q_h | K_h | V_h] per head, each
    # padded to Dp=128 lanes (scale 1/sqrt(D) folded into Q columns at init).
    qkv = jnp.dot(xn.astype(jnp.bfloat16), wqkv_ref[0],
                  preferred_element_type=jnp.float32)         # (M, H*3*Dp)

    for b in range(TB):               # per-sequence (softmax must not cross seqs)
        r0 = b * T
        for h in range(H):
            c0 = h * 3 * Dp           # 128-lane aligned column offsets
            qh = qkv[r0:r0 + T, c0:c0 + Dp].astype(jnp.bfloat16)
            kh = qkv[r0:r0 + T, c0 + Dp:c0 + 2 * Dp].astype(jnp.bfloat16)
            vh = qkv[r0:r0 + T, c0 + 2 * Dp:c0 + 3 * Dp].astype(jnp.bfloat16)
            s = jax.lax.dot_general(qh, kh, (((1,), (1,)), ((), ())),
                                    preferred_element_type=jnp.float32)  # (T, T)
            s = s - jnp.max(s, axis=-1, keepdims=True)
            p = jnp.exp(s)
            p = p * pl.reciprocal(jnp.sum(p, axis=-1, keepdims=True), approx=True)
            pv = jnp.dot(p.astype(jnp.bfloat16), vh,
                         preferred_element_type=jnp.float32)             # (T, Dp)
            # lane-aligned write into the shared attention scratch
            attn_scratch[r0:r0 + T, h * Dp:(h + 1) * Dp] = pv.astype(jnp.bfloat16)

    # Single projection matmul over all heads/sequences (padded rows of wproj
    # are zero, so the Dp>D padding contributes nothing).
    proj = jnp.dot(attn_scratch[...], wproj_ref[0],
                   preferred_element_type=jnp.float32)        # (M, C)
    x = x + proj + bproj_ref[0]

    # ---- LayerNorm 2 + MLP ----
    mu2 = jnp.mean(x, axis=-1, keepdims=True)
    xc2 = x - mu2
    var2 = jnp.mean(xc2 * xc2, axis=-1, keepdims=True)
    xn2 = xc2 * jax.lax.rsqrt(var2 + LN_EPS)
    xn2 = xn2 * ln2g_ref[0] + ln2b_ref[0]
    h1 = jnp.dot(xn2.astype(jnp.bfloat16), wfc1_ref[0],
                 preferred_element_type=jnp.float32) + bfc1_ref[0]
    # TODO(synk): timm's Block uses exact (erf) GELU; tanh approximation used
    # here since erf lowering in Mosaic is not guaranteed.
    g = 0.5 * h1 * (1.0 + jnp.tanh(
        0.7978845608028654 * (h1 + 0.044715 * h1 * h1 * h1)))
    h2 = jnp.dot(g.astype(jnp.bfloat16), wfc2_ref[0],
                 preferred_element_type=jnp.float32) + bfc2_ref[0]

    x_new = x + h2
    x_scratch[...] = x_new                                    # stays resident in VMEM

    # ---- Final layer: linear head, lane-dense (Ppad multiple of 128) output ----
    @pl.when(l == num_layers - 1)
    def _():
        patches = jnp.dot(x_new.astype(jnp.bfloat16), headw_ref[...],
                          preferred_element_type=jnp.float32) + headb_ref[...]
        o_ref[...] = patches.reshape(TB, T, Ppad).astype(o_ref.dtype)


# ----------------------------------------------------------------------------
# Batch block selection: largest divisor of B whose activation footprint fits
# a modest VMEM budget (weights are streamed separately and double-buffered).
# ----------------------------------------------------------------------------
def _pick_batch_block(B, T, C, H, Dp, Ppad, act_budget_bytes=8 << 20):
    per_seq = T * (C * 4 * 3 + H * Dp * 2 + Ppad * 4 * 2)
    tb_cap = max(1, act_budget_bytes // max(per_seq, 1))
    for cand in range(min(B, tb_cap), 0, -1):
        if B % cand == 0:
            return cand
    return 1


# ----------------------------------------------------------------------------
# pallas_call wrapper
# ----------------------------------------------------------------------------
def run_decoder(x, pos, params, *, batch_block=None, core_parallel_batch=False):
    """x: (B, T, C) f32, pos: (T, C) f32 -> (B, T, Ppad) f32 (lane-padded head)."""
    B, T, C = x.shape
    H = params["num_head"]
    Dp = params["head_dim_padded"]
    weight_keys = ("ln1g", "ln1b", "wqkv", "wproj", "bproj",
                   "ln2g", "ln2b", "wfc1", "bfc1", "wfc2", "bfc2")
    weights = [params[k] for k in weight_keys]       # each stacked (L, ...)
    L = weights[2].shape[0]
    Ppad = params["head_w"].shape[1]

    TB = batch_block if batch_block is not None else _pick_batch_block(
        B, T, C, H, Dp, Ppad)
    assert B % TB == 0

    in_specs = [
        pl.BlockSpec((TB, T, C), lambda b, l: (b, 0, 0)),     # activations
        pl.BlockSpec((T, C), lambda b, l: (0, 0)),            # pos embedding
    ]
    for w in weights:                                          # per-layer weights
        in_specs.append(pl.BlockSpec((1,) + w.shape[1:], lambda b, l: (l, 0, 0)))
    in_specs.append(pl.BlockSpec(params["head_w"].shape, lambda b, l: (0, 0)))
    in_specs.append(pl.BlockSpec(params["head_b"].shape, lambda b, l: (0, 0)))

    # Explicit VMEM budget: 2x double-buffered per-layer weight set + batched
    # activation scratch + resident x/out blocks; capped under v7x's 64 MiB.
    per_layer_w = sum(math.prod(w.shape[1:]) * w.dtype.itemsize for w in weights)
    fixed = (2 * TB * T * C * 4            # double-buffered x blocks
             + T * C * 4                   # pos embedding
             + 2 * TB * T * Ppad * 4       # double-buffered out blocks
             + params["head_w"].size * 2 + params["head_b"].size * 4
             + TB * T * C * 4              # residual scratch (f32)
             + TB * T * H * Dp * 2)        # attention scratch (bf16)
    est = 2 * per_layer_w + fixed
    vmem_limit = int(min(max(2 * est, 32 << 20), 56 << 20))

    # On v7x pass core_parallel_batch=True to shard the batch axis across the
    # two TensorCores; layer axis must stay "arbitrary" (residual accumulator).
    batch_sem = pltpu.CORE_PARALLEL if core_parallel_batch else "parallel"

    kernel = functools.partial(decoder_kernel, num_head=H, seq_len=T,
                               head_dim_padded=Dp)
    return pl.pallas_call(
        kernel,
        out_shape=jax.ShapeDtypeStruct((B, T, Ppad), jnp.float32),
        grid=(B // TB, L),
        in_specs=in_specs,
        out_specs=pl.BlockSpec((TB, T, Ppad), lambda b, l: (b, 0, 0)),
        scratch_shapes=[pltpu.VMEM((TB * T, C), jnp.float32),
                        pltpu.VMEM((TB * T, H * Dp), jnp.bfloat16)],
        compiler_params=pltpu.CompilerParams(
            dimension_semantics=(batch_sem, "arbitrary"),
            vmem_limit_bytes=vmem_limit),
    )(x, pos, *weights, params["head_w"], params["head_b"])


# ----------------------------------------------------------------------------
# Plain-JAX glue (gather, rearranges) and full forward
# ----------------------------------------------------------------------------
def take_indexes(sequences, indexes):
    # sequences: (T, B, C), indexes: (T, B) -> out[t, b, c] = seq[idx[t, b], b, c]
    idx = jnp.broadcast_to(indexes[:, :, None], sequences.shape)
    return jnp.take_along_axis(sequences, idx, axis=0)


def patch2img(patches, c, p1, p2, h, w):
    # '(h w) b (c p1 p2) -> b c (h p1) (w p2)'
    n, b, _ = patches.shape
    x = patches.reshape(h, w, b, c, p1, p2)
    x = jnp.transpose(x, (2, 3, 0, 4, 1, 5))
    return x.reshape(b, c, h * p1, w * p2)


def mae_decoder_forward(features, backward_indexes, params, *,
                        image_width, image_height, image_channels,
                        patch_width, patch_height):
    T, B, C = features.shape
    P = image_channels * patch_width * patch_height

    bi = jnp.concatenate(
        [jnp.zeros((1, B), backward_indexes.dtype), backward_indexes + 1], axis=0)
    mask_tok = jnp.broadcast_to(params["mask_token"], (bi.shape[0] - T, B, C))
    feats = jnp.concatenate([features, mask_tok], axis=0)            # (N+1, B, C)
    feats = take_indexes(feats, bi)
    # Pos-embedding add is fused into the kernel's l==0 init branch.
    x = jnp.transpose(feats, (1, 0, 2))                              # (B, N+1, C)
    pos = params["pos_embedding"][:, 0, :]                           # (N+1, C)

    patches_pad = run_decoder(x, pos, params)                        # (B, N+1, Ppad)
    patches = patches_pad[:, 1:, :P]                                 # drop cls + pad
    patches = jnp.transpose(patches, (1, 0, 2))                      # (N, B, P)

    mask = jnp.zeros_like(patches)
    mask = mask.at[T - 1:].set(1.0)
    mask = take_indexes(mask, bi[1:] - 1)

    h = image_height // patch_height
    w = image_width // patch_width
    img = patch2img(patches, image_channels, patch_height, patch_width, h, w)
    mask_img = patch2img(mask, image_channels, patch_height, patch_width, h, w)
    return img, mask_img


# ----------------------------------------------------------------------------
# Deterministic parameter construction (PyTorch weight conventions, then
# rearranged / padded / stacked into kernel-friendly layouts; matmul weights
# in bf16, attention scale folded into Q, per-head blocks padded to 128 lanes).
# ----------------------------------------------------------------------------
def init_params(key, emb_dim, num_layer, num_head, num_patches, patch_dim):
    C = emb_dim
    H = num_head
    D = C // H
    Dp = _round_up(D, LANE)
    hidden = 4 * C
    scale = float(D) ** -0.5
    keys = jax.random.split(key, 3 + num_layer)
    params = {"num_head": H, "patch_dim": patch_dim, "head_dim_padded": Dp}

    params["mask_token"] = 0.02 * jax.random.truncated_normal(
        keys[0], -2.0, 2.0, (1, 1, C), jnp.float32)
    params["pos_embedding"] = 0.02 * jax.random.truncated_normal(
        keys[1], -2.0, 2.0, (num_patches + 1, 1, C), jnp.float32)

    # Head (torch nn.Linear: weight (P, C), bias (P,)), padded to multiple-of-128 outputs.
    kh1, kh2 = jax.random.split(keys[2])
    head_w_t = jax.random.normal(kh1, (patch_dim, C), jnp.float32) / jnp.sqrt(C)
    head_b = 0.01 * jax.random.normal(kh2, (patch_dim,), jnp.float32)
    ppad = _round_up(patch_dim, LANE)
    hw = jnp.zeros((C, ppad), jnp.float32).at[:, :patch_dim].set(head_w_t.T)
    hb = jnp.zeros((1, ppad), jnp.float32).at[:, :patch_dim].set(head_b[None, :])
    params["head_w"] = hw.astype(jnp.bfloat16)
    params["head_b"] = hb                                            # f32 bias

    ln1g, ln1b, wqkv, wproj, bproj = [], [], [], [], []
    ln2g, ln2b, wfc1, bfc1, wfc2, bfc2 = [], [], [], [], [], []
    for l in range(num_layer):
        lk = jax.random.split(keys[3 + l], 6)
        wqkv_t = jax.random.normal(lk[0], (3 * C, C), jnp.float32) / jnp.sqrt(C)
        wproj_t = jax.random.normal(lk[1], (C, C), jnp.float32) / jnp.sqrt(C)
        wfc1_t = jax.random.normal(lk[2], (hidden, C), jnp.float32) / jnp.sqrt(C)
        bfc1_l = 0.01 * jax.random.normal(lk[3], (1, hidden), jnp.float32)
        wfc2_t = jax.random.normal(lk[4], (C, hidden), jnp.float32) / jnp.sqrt(hidden)
        bfc2_l = 0.01 * jax.random.normal(lk[5], (1, C), jnp.float32)

        # (C, in) -> (in, out) layouts; per-head Q/K/V padded to Dp lanes;
        # 1/sqrt(D) folded into Q columns.
        Wq = wqkv_t[:C].T * scale           # (C, C), cols head-major
        Wk = wqkv_t[C:2 * C].T
        Wv = wqkv_t[2 * C:].T
        wqkv_pad = jnp.zeros((C, H * 3 * Dp), jnp.float32)
        for h in range(H):
            c0 = h * 3 * Dp
            wqkv_pad = wqkv_pad.at[:, c0:c0 + D].set(Wq[:, h * D:(h + 1) * D])
            wqkv_pad = wqkv_pad.at[:, c0 + Dp:c0 + Dp + D].set(Wk[:, h * D:(h + 1) * D])
            wqkv_pad = wqkv_pad.at[:, c0 + 2 * Dp:c0 + 2 * Dp + D].set(Wv[:, h * D:(h + 1) * D])

        Wp = wproj_t.T                      # (in=C, out=C), rows in concat-head order
        wproj_pad = jnp.zeros((H * Dp, C), jnp.float32)
        for h in range(H):
            wproj_pad = wproj_pad.at[h * Dp:h * Dp + D, :].set(Wp[h * D:(h + 1) * D, :])

        ln1g.append(jnp.ones((1, C), jnp.float32))
        ln1b.append(jnp.zeros((1, C), jnp.float32))
        wqkv.append(wqkv_pad.astype(jnp.bfloat16))
        wproj.append(wproj_pad.astype(jnp.bfloat16))
        bproj.append(jnp.zeros((1, C), jnp.float32))
        ln2g.append(jnp.ones((1, C), jnp.float32))
        ln2b.append(jnp.zeros((1, C), jnp.float32))
        wfc1.append(wfc1_t.T.astype(jnp.bfloat16))      # (C, 4C)
        bfc1.append(bfc1_l)
        wfc2.append(wfc2_t.T.astype(jnp.bfloat16))      # (4C, C)
        bfc2.append(bfc2_l)

    params.update(
        ln1g=jnp.stack(ln1g), ln1b=jnp.stack(ln1b),
        wqkv=jnp.stack(wqkv), wproj=jnp.stack(wproj), bproj=jnp.stack(bproj),
        ln2g=jnp.stack(ln2g), ln2b=jnp.stack(ln2b),
        wfc1=jnp.stack(wfc1), bfc1=jnp.stack(bfc1),
        wfc2=jnp.stack(wfc2), bfc2=jnp.stack(bfc2),
    )
    return params


# ----------------------------------------------------------------------------
if __name__ == "__main__":
    # Small config consistent with the module's constructor.
    IMG_W = IMG_H = 16
    PATCH_W = PATCH_H = 2
    CHANNELS = 1
    EMB = 32
    LAYERS = 2
    HEADS = 4
    B = 2
    N_PATCHES = (IMG_W // PATCH_W) * (IMG_H // PATCH_H)   # 64
    PATCH_DIM = CHANNELS * PATCH_W * PATCH_H              # 4
    T_VIS = 17                                            # 16 visible patches + cls token

    root = jax.random.PRNGKey(0)
    k_par, k_feat, k_idx = jax.random.split(root, 3)

    params = init_params(k_par, EMB, LAYERS, HEADS, N_PATCHES, PATCH_DIM)

    features = jax.random.normal(k_feat, (T_VIS, B, EMB), jnp.float32)
    idx_keys = jax.random.split(k_idx, B)
    backward_indexes = jnp.stack(
        [jax.random.permutation(idx_keys[i], N_PATCHES) for i in range(B)],
        axis=1).astype(jnp.int32)                         # (N_PATCHES, B)

    img, mask = mae_decoder_forward(
        features, backward_indexes, params,
        image_width=IMG_W, image_height=IMG_H, image_channels=CHANNELS,
        patch_width=PATCH_W, patch_height=PATCH_H)

    img = jax.block_until_ready(img)
    mask = jax.block_until_ready(mask)
    assert img.shape == (B, CHANNELS, IMG_H, IMG_W)
    assert mask.shape == (B, CHANNELS, IMG_H, IMG_W)
    print("KERNEL_OK")
</pallas_src>

<mosaic_0001>
module attributes {stable_mosaic.version = 11 : i64} {
  func.func @decoder_kernel(%arg0: i32, %arg1: i32, %arg2: memref<2x65x32xf32, #tpu.memory_space<vmem>>, %arg3: memref<65x32xf32, #tpu.memory_space<vmem>>, %arg4: memref<1x1x32xf32, #tpu.memory_space<vmem>>, %arg5: memref<1x1x32xf32, #tpu.memory_space<vmem>>, %arg6: memref<1x32x1536xbf16, #tpu.memory_space<vmem>>, %arg7: memref<1x512x32xbf16, #tpu.memory_space<vmem>>, %arg8: memref<1x1x32xf32, #tpu.memory_space<vmem>>, %arg9: memref<1x1x32xf32, #tpu.memory_space<vmem>>, %arg10: memref<1x1x32xf32, #tpu.memory_space<vmem>>, %arg11: memref<1x32x128xbf16, #tpu.memory_space<vmem>>, %arg12: memref<1x1x128xf32, #tpu.memory_space<vmem>>, %arg13: memref<1x128x32xbf16, #tpu.memory_space<vmem>>, %arg14: memref<1x1x32xf32, #tpu.memory_space<vmem>>, %arg15: memref<32x128xbf16, #tpu.memory_space<vmem>>, %arg16: memref<1x128xf32, #tpu.memory_space<vmem>>, %arg17: memref<2x65x128xf32, #tpu.memory_space<vmem>>, %arg18: memref<130x32xf32, #tpu.memory_space<vmem>>, %arg19: memref<130x512xbf16, #tpu.memory_space<vmem>>) attributes {dimension_semantics = [#tpu.dimension_semantics<parallel>, #tpu.dimension_semantics<arbitrary>], iteration_bounds = array<i64: 1, 2>, scalar_prefetch = 0 : i64, scratch_operands = 2 : i64, tpu.core_type = #tpu.core_type<tc>, window_params = [{transform_indices = @transform_0, window_bounds = array<i64: 2, 65, 32>}, {pipeline_mode = #tpu.pipeline_mode<synchronous>, transform_indices = @transform_1, window_bounds = array<i64: 65, 32>}, {transform_indices = @transform_2, window_bounds = array<i64: 1, 1, 32>}, {transform_indices = @transform_3, window_bounds = array<i64: 1, 1, 32>}, {transform_indices = @transform_4, window_bounds = array<i64: 1, 32, 1536>}, {transform_indices = @transform_5, window_bounds = array<i64: 1, 512, 32>}, {transform_indices = @transform_6, window_bounds = array<i64: 1, 1, 32>}, {transform_indices = @transform_7, window_bounds = array<i64: 1, 1, 32>}, {transform_indices = @transform_8, window_bounds = array<i64: 1, 1, 32>}, {transform_indices = @transform_9, window_bounds = array<i64: 1, 32, 128>}, {transform_indices = @transform_10, window_bounds = array<i64: 1, 1, 128>}, {transform_indices = @transform_11, window_bounds = array<i64: 1, 128, 32>}, {transform_indices = @transform_12, window_bounds = array<i64: 1, 1, 32>}, {pipeline_mode = #tpu.pipeline_mode<synchronous>, transform_indices = @transform_13, window_bounds = array<i64: 32, 128>}, {pipeline_mode = #tpu.pipeline_mode<synchronous>, transform_indices = @transform_14, window_bounds = array<i64: 1, 128>}, {transform_indices = @transform_15, window_bounds = array<i64: 2, 65, 128>}]} {
    %c0_i32 = arith.constant 0 : i32
    %0 = arith.cmpi eq, %arg1, %c0_i32 : i32
    %1 = arith.extui %0 : i1 to i32
    %c0_i32_0 = arith.constant 0 : i32
    %2 = arith.cmpi ne, %1, %c0_i32_0 : i32
    scf.if %2 {
      %c0_101 = arith.constant 0 : index
      %c0_102 = arith.constant 0 : index
      %c0_103 = arith.constant 0 : index
      %267 = vector.load %arg2[%c0_101, %c0_102, %c0_103] : memref<2x65x32xf32, #tpu.memory_space<vmem>>, vector<2x65x32xf32>
      %c0_104 = arith.constant 0 : index
      %c0_105 = arith.constant 0 : index
      %268 = vector.load %arg3[%c0_104, %c0_105] : memref<65x32xf32, #tpu.memory_space<vmem>>, vector<65x32xf32>
      %269 = vector.shape_cast %268 : vector<65x32xf32> to vector<1x65x32xf32>
      %270 = vector.broadcast %269 : vector<1x65x32xf32> to vector<2x65x32xf32>
      %271 = arith.addf %267, %270 : vector<2x65x32xf32>
      %272 = vector.shape_cast %271 : vector<2x65x32xf32> to vector<130x32xf32>
      %c0_106 = arith.constant 0 : index
      %c0_107 = arith.constant 0 : index
      %273 = vector.load %arg18[%c0_106, %c0_107] : memref<130x32xf32, #tpu.memory_space<vmem>>, vector<130x32xf32>
      tpu.vector_store %arg18[%c0_106, %c0_107], %272 {strides = array<i32>} : memref<130x32xf32, #tpu.memory_space<vmem>>, vector<130x32xf32>,
    } else {
    }
    %c0 = arith.constant 0 : index
    %c0_1 = arith.constant 0 : index
    %3 = vector.load %arg18[%c0, %c0_1] : memref<130x32xf32, #tpu.memory_space<vmem>>, vector<130x32xf32>
    %cst = arith.constant dense<0.000000e+00> : vector<130xf32>
    %4 = vector.multi_reduction <add>, %3, %cst [1] : vector<130x32xf32> to vector<130xf32>
    %5 = vector.shape_cast %4 : vector<130xf32> to vector<130x1xf32>
    %cst_2 = arith.constant 3.200000e+01 : f32
    %6 = vector.broadcast %cst_2 : f32 to vector<130x1xf32>
    %7 = arith.divf %5, %6 : vector<130x1xf32>
    %8 = vector.broadcast %7 : vector<130x1xf32> to vector<130x32xf32>
    %9 = arith.subf %3, %8 : vector<130x32xf32>
    %10 = arith.mulf %9, %9 : vector<130x32xf32>
    %cst_3 = arith.constant dense<0.000000e+00> : vector<130xf32>
    %11 = vector.multi_reduction <add>, %10, %cst_3 [1] : vector<130x32xf32> to vector<130xf32>
    %12 = vector.shape_cast %11 : vector<130xf32> to vector<130x1xf32>
    %cst_4 = arith.constant 3.200000e+01 : f32
    %13 = vector.broadcast %cst_4 : f32 to vector<130x1xf32>
    %14 = arith.divf %12, %13 : vector<130x1xf32>
    %cst_5 = arith.constant 9.99999974E-6 : f32
    %15 = vector.broadcast %cst_5 : f32 to vector<130x1xf32>
    %16 = arith.addf %14, %15 : vector<130x1xf32>
    %17 = math.rsqrt %16 : vector<130x1xf32>
    %18 = vector.broadcast %17 : vector<130x1xf32> to vector<130x32xf32>
    %19 = arith.mulf %9, %18 : vector<130x32xf32>
    %c0_6 = arith.constant 0 : index
    %c0_7 = arith.constant 0 : index
    %c0_8 = arith.constant 0 : index
    %20 = vector.load %arg4[%c0_6, %c0_7, %c0_8] : memref<1x1x32xf32, #tpu.memory_space<vmem>>, vector<1x1x32xf32>
    %21 = vector.shape_cast %20 : vector<1x1x32xf32> to vector<1x32xf32>
    %22 = vector.broadcast %21 : vector<1x32xf32> to vector<130x32xf32>
    %23 = arith.mulf %19, %22 : vector<130x32xf32>
    %c0_9 = arith.constant 0 : index
    %c0_10 = arith.constant 0 : index
    %c0_11 = arith.constant 0 : index
    %24 = vector.load %arg5[%c0_9, %c0_10, %c0_11] : memref<1x1x32xf32, #tpu.memory_space<vmem>>, vector<1x1x32xf32>
    %25 = vector.shape_cast %24 : vector<1x1x32xf32> to vector<1x32xf32>
    %26 = vector.broadcast %25 : vector<1x32xf32> to vector<130x32xf32>
    %27 = arith.addf %23, %26 : vector<130x32xf32>
    %28 = arith.truncf %27 : vector<130x32xf32> to vector<130x32xbf16>
    %c0_12 = arith.constant 0 : index
    %c0_13 = arith.constant 0 : index
    %c0_14 = arith.constant 0 : index
    %29 = vector.load %arg6[%c0_12, %c0_13, %c0_14] : memref<1x32x1536xbf16, #tpu.memory_space<vmem>>, vector<1x32x1536xbf16>
    %30 = vector.shape_cast %29 : vector<1x32x1536xbf16> to vector<32x1536xbf16>
    %cst_15 = arith.constant dense<0.000000e+00> : vector<130x1536xf32>
    %31 = tpu.matmul %28, %30, %cst_15 {dimension_numbers = #tpu.dot_dimension_numbers<[1], [0], [0], [1], [0, 0, 1, 1], [], []>} : vector<130x32xbf16>, vector<32x1536xbf16>, vector<130x1536xf32> -> vector<130x1536xf32>
    %32 = vector.extract_strided_slice %31 {offsets = [0, 0], sizes = [65, 128], strides = [1, 1]} : vector<130x1536xf32> to vector<65x128xf32>
    %33 = arith.truncf %32 : vector<65x128xf32> to vector<65x128xbf16>
    %34 = vector.extract_strided_slice %31 {offsets = [0, 128], sizes = [65, 128], strides = [1, 1]} : vector<130x1536xf32> to vector<65x128xf32>
    %35 = arith.truncf %34 : vector<65x128xf32> to vector<65x128xbf16>
    %36 = vector.extract_strided_slice %31 {offsets = [0, 256], sizes = [65, 128], strides = [1, 1]} : vector<130x1536xf32> to vector<65x128xf32>
    %37 = arith.truncf %36 : vector<65x128xf32> to vector<65x128xbf16>
    %cst_16 = arith.constant dense<0.000000e+00> : vector<65x65xf32>
    %38 = tpu.matmul %33, %35, %cst_16 {dimension_numbers = #tpu.dot_dimension_numbers<[1], [1], [0], [0], [0, 0, 1, 0], [], []>} : vector<65x128xbf16>, vector<65x128xbf16>, vector<65x65xf32> -> vector<65x65xf32>
    %cst_17 = arith.constant dense<0xFF800000> : vector<65xf32>
    %39 = vector.multi_reduction <maximumf>, %38, %cst_17 [1] : vector<65x65xf32> to vector<65xf32>
    %40 = vector.shape_cast %39 : vector<65xf32> to vector<65x1xf32>
    %41 = vector.broadcast %40 : vector<65x1xf32> to vector<65x65xf32>
    %42 = arith.subf %38, %41 : vector<65x65xf32>
    %43 = math.exp %42 : vector<65x65xf32>
    %cst_18 = arith.constant dense<0.000000e+00> : vector<65xf32>
    %44 = vector.multi_reduction <add>, %43, %cst_18 [1] : vector<65x65xf32> to vector<65xf32>
    %45 = vector.shape_cast %44 : vector<65xf32> to vector<65x1xf32>
    %46 = tpu.reciprocal %45 {approx = true} : vector<65x1xf32> -> vector<65x1xf32>
    %47 = vector.broadcast %46 : vector<65x1xf32> to vector<65x65xf32>
    %48 = arith.mulf %43, %47 : vector<65x65xf32>
    %49 = arith.truncf %48 : vector<65x65xf32> to vector<65x65xbf16>
    %cst_19 = arith.constant dense<0.000000e+00> : vector<65x128xf32>
    %50 = tpu.matmul %49, %37, %cst_19 {dimension_numbers = #tpu.dot_dimension_numbers<[1], [0], [0], [1], [0, 0, 1, 1], [], []>} : vector<65x65xbf16>, vector<65x128xbf16>, vector<65x128xf32> -> vector<65x128xf32>
    %51 = arith.truncf %50 : vector<65x128xf32> to vector<65x128xbf16>
    %c0_20 = arith.constant 0 : index
    %c0_21 = arith.constant 0 : index
    %52 = vector.load %arg19[%c0_20, %c0_21] : memref<130x512xbf16, #tpu.memory_space<vmem>>, vector<65x128xbf16>
    tpu.vector_store %arg19[%c0_20, %c0_21], %51 {strides = array<i32>} : memref<130x512xbf16, #tpu.memory_space<vmem>>, vector<65x128xbf16>,
    %53 = vector.extract_strided_slice %31 {offsets = [0, 384], sizes = [65, 128], strides = [1, 1]} : vector<130x1536xf32> to vector<65x128xf32>
    %54 = arith.truncf %53 : vector<65x128xf32> to vector<65x128xbf16>
    %55 = vector.extract_strided_slice %31 {offsets = [0, 512], sizes = [65, 128], strides = [1, 1]} : vector<130x1536xf32> to vector<65x128xf32>
    %56 = arith.truncf %55 : vector<65x128xf32> to vector<65x128xbf16>
    %57 = vector.extract_strided_slice %31 {offsets = [0, 640], sizes = [65, 128], strides = [1, 1]} : vector<130x1536xf32> to vector<65x128xf32>
    %58 = arith.truncf %57 : vector<65x128xf32> to vector<65x128xbf16>
    %cst_22 = arith.constant dense<0.000000e+00> : vector<65x65xf32>
    %59 = tpu.matmul %54, %56, %cst_22 {dimension_numbers = #tpu.dot_dimension_numbers<[1], [1], [0], [0], [0, 0, 1, 0], [], []>} : vector<65x128xbf16>, vector<65x128xbf16>, vector<65x65xf32> -> vector<65x65xf32>
    %cst_23 = arith.constant dense<0xFF800000> : vector<65xf32>
    %60 = vector.multi_reduction <maximumf>, %59, %cst_23 [1] : vector<65x65xf32> to vector<65xf32>
    %61 = vector.shape_cast %60 : vector<65xf32> to vector<65x1xf32>
    %62 = vector.broadcast %61 : vector<65x1xf32> to vector<65x65xf32>
    %63 = arith.subf %59, %62 : vector<65x65xf32>
    %64 = math.exp %63 : vector<65x65xf32>
    %cst_24 = arith.constant dense<0.000000e+00> : vector<65xf32>
    %65 = vector.multi_reduction <add>, %64, %cst_24 [1] : vector<65x65xf32> to vector<65xf32>
    %66 = vector.shape_cast %65 : vector<65xf32> to vector<65x1xf32>
    %67 = tpu.reciprocal %66 {approx = true} : vector<65x1xf32> -> vector<65x1xf32>
    %68 = vector.broadcast %67 : vector<65x1xf32> to vector<65x65xf32>
    %69 = arith.mulf %64, %68 : vector<65x65xf32>
    %70 = arith.truncf %69 : vector<65x65xf32> to vector<65x65xbf16>
    %cst_25 = arith.constant dense<0.000000e+00> : vector<65x128xf32>
    %71 = tpu.matmul %70, %58, %cst_25 {dimension_numbers = #tpu.dot_dimension_numbers<[1], [0], [0], [1], [0, 0, 1, 1], [], []>} : vector<65x65xbf16>, vector<65x128xbf16>, vector<65x128xf32> -> vector<65x128xf32>
    %72 = arith.truncf %71 : vector<65x128xf32> to vector<65x128xbf16>
    %c0_26 = arith.constant 0 : index
    %c128 = arith.constant 128 : index
    %73 = vector.load %arg19[%c0_26, %c128] : memref<130x512xbf16, #tpu.memory_space<vmem>>, vector<65x128xbf16>
    tpu.vector_store %arg19[%c0_26, %c128], %72 {strides = array<i32>} : memref<130x512xbf16, #tpu.memory_space<vmem>>, vector<65x128xbf16>,
    %74 = vector.extract_strided_slice %31 {offsets = [0, 768], sizes = [65, 128], strides = [1, 1]} : vector<130x1536xf32> to vector<65x128xf32>
    %75 = arith.truncf %74 : vector<65x128xf32> to vector<65x128xbf16>
    %76 = vector.extract_strided_slice %31 {offsets = [0, 896], sizes = [65, 128], strides = [1, 1]} : vector<130x1536xf32> to vector<65x128xf32>
    %77 = arith.truncf %76 : vector<65x128xf32> to vector<65x128xbf16>
    %78 = vector.extract_strided_slice %31 {offsets = [0, 1024], sizes = [65, 128], strides = [1, 1]} : vector<130x1536xf32> to vector<65x128xf32>
    %79 = arith.truncf %78 : vector<65x128xf32> to vector<65x128xbf16>
    %cst_27 = arith.constant dense<0.000000e+00> : vector<65x65xf32>
    %80 = tpu.matmul %75, %77, %cst_27 {dimension_numbers = #tpu.dot_dimension_numbers<[1], [1], [0], [0], [0, 0, 1, 0], [], []>} : vector<65x128xbf16>, vector<65x128xbf16>, vector<65x65xf32> -> vector<65x65xf32>
    %cst_28 = arith.constant dense<0xFF800000> : vector<65xf32>
    %81 = vector.multi_reduction <maximumf>, %80, %cst_28 [1] : vector<65x65xf32> to vector<65xf32>
    %82 = vector.shape_cast %81 : vector<65xf32> to vector<65x1xf32>
    %83 = vector.broadcast %82 : vector<65x1xf32> to vector<65x65xf32>
    %84 = arith.subf %80, %83 : vector<65x65xf32>
    %85 = math.exp %84 : vector<65x65xf32>
    %cst_29 = arith.constant dense<0.000000e+00> : vector<65xf32>
    %86 = vector.multi_reduction <add>, %85, %cst_29 [1] : vector<65x65xf32> to vector<65xf32>
    %87 = vector.shape_cast %86 : vector<65xf32> to vector<65x1xf32>
    %88 = tpu.reciprocal %87 {approx = true} : vector<65x1xf32> -> vector<65x1xf32>
    %89 = vector.broadcast %88 : vector<65x1xf32> to vector<65x65xf32>
    %90 = arith.mulf %85, %89 : vector<65x65xf32>
    %91 = arith.truncf %90 : vector<65x65xf32> to vector<65x65xbf16>
    %cst_30 = arith.constant dense<0.000000e+00> : vector<65x128xf32>
    %92 = tpu.matmul %91, %79, %cst_30 {dimension_numbers = #tpu.dot_dimension_numbers<[1], [0], [0], [1], [0, 0, 1, 1], [], []>} : vector<65x65xbf16>, vector<65x128xbf16>, vector<65x128xf32> -> vector<65x128xf32>
    %93 = arith.truncf %92 : vector<65x128xf32> to vector<65x128xbf16>
    %c0_31 = arith.constant 0 : index
    %c256 = arith.constant 256 : index
    %94 = vector.load %arg19[%c0_31, %c256] : memref<130x512xbf16, #tpu.memory_space<vmem>>, vector<65x128xbf16>
    tpu.vector_store %arg19[%c0_31, %c256], %93 {strides = array<i32>} : memref<130x512xbf16, #tpu.memory_space<vmem>>, vector<65x128xbf16>,
    %95 = vector.extract_strided_slice %31 {offsets = [0, 1152], sizes = [65, 128], strides = [1, 1]} : vector<130x1536xf32> to vector<65x128xf32>
    %96 = arith.truncf %95 : vector<65x128xf32> to vector<65x128xbf16>
    %97 = vector.extract_strided_slice %31 {offsets = [0, 1280], sizes = [65, 128], strides = [1, 1]} : vector<130x1536xf32> to vector<65x128xf32>
    %98 = arith.truncf %97 : vector<65x128xf32> to vector<65x128xbf16>
    %99 = vector.extract_strided_slice %31 {offsets = [0, 1408], sizes = [65, 128], strides = [1, 1]} : vector<130x1536xf32> to vector<65x128xf32>
    %100 = arith.truncf %99 : vector<65x128xf32> to vector<65x128xbf16>
    %cst_32 = arith.constant dense<0.000000e+00> : vector<65x65xf32>
    %101 = tpu.matmul %96, %98, %cst_32 {dimension_numbers = #tpu.dot_dimension_numbers<[1], [1], [0], [0], [0, 0, 1, 0], [], []>} : vector<65x128xbf16>, vector<65x128xbf16>, vector<65x65xf32> -> vector<65x65xf32>
    %cst_33 = arith.constant dense<0xFF800000> : vector<65xf32>
    %102 = vector.multi_reduction <maximumf>, %101, %cst_33 [1] : vector<65x65xf32> to vector<65xf32>
    %103 = vector.shape_cast %102 : vector<65xf32> to vector<65x1xf32>
    %104 = vector.broadcast %103 : vector<65x1xf32> to vector<65x65xf32>
    %105 = arith.subf %101, %104 : vector<65x65xf32>
    %106 = math.exp %105 : vector<65x65xf32>
    %cst_34 = arith.constant dense<0.000000e+00> : vector<65xf32>
    %107 = vector.multi_reduction <add>, %106, %cst_34 [1] : vector<65x65xf32> to vector<65xf32>
    %108 = vector.shape_cast %107 : vector<65xf32> to vector<65x1xf32>
    %109 = tpu.reciprocal %108 {approx = true} : vector<65x1xf32> -> vector<65x1xf32>
    %110 = vector.broadcast %109 : vector<65x1xf32> to vector<65x65xf32>
    %111 = arith.mulf %106, %110 : vector<65x65xf32>
    %112 = arith.truncf %111 : vector<65x65xf32> to vector<65x65xbf16>
    %cst_35 = arith.constant dense<0.000000e+00> : vector<65x128xf32>
    %113 = tpu.matmul %112, %100, %cst_35 {dimension_numbers = #tpu.dot_dimension_numbers<[1], [0], [0], [1], [0, 0, 1, 1], [], []>} : vector<65x65xbf16>, vector<65x128xbf16>, vector<65x128xf32> -> vector<65x128xf32>
    %114 = arith.truncf %113 : vector<65x128xf32> to vector<65x128xbf16>
    %c0_36 = arith.constant 0 : index
    %c384 = arith.constant 384 : index
    %115 = vector.load %arg19[%c0_36, %c384] : memref<130x512xbf16, #tpu.memory_space<vmem>>, vector<65x128xbf16>
    tpu.vector_store %arg19[%c0_36, %c384], %114 {strides = array<i32>} : memref<130x512xbf16, #tpu.memory_space<vmem>>, vector<65x128xbf16>,
    %116 = vector.extract_strided_slice %31 {offsets = [65, 0], sizes = [65, 128], strides = [1, 1]} : vector<130x1536xf32> to vector<65x128xf32>
    %117 = arith.truncf %116 : vector<65x128xf32> to vector<65x128xbf16>
    %118 = vector.extract_strided_slice %31 {offsets = [65, 128], sizes = [65, 128], strides = [1, 1]} : vector<130x1536xf32> to vector<65x128xf32>
    %119 = arith.truncf %118 : vector<65x128xf32> to vector<65x128xbf16>
    %120 = vector.extract_strided_slice %31 {offsets = [65, 256], sizes = [65, 128], strides = [1, 1]} : vector<130x1536xf32> to vector<65x128xf32>
    %121 = arith.truncf %120 : vector<65x128xf32> to vector<65x128xbf16>
    %cst_37 = arith.constant dense<0.000000e+00> : vector<65x65xf32>
    %122 = tpu.matmul %117, %119, %cst_37 {dimension_numbers = #tpu.dot_dimension_numbers<[1], [1], [0], [0], [0, 0, 1, 0], [], []>} : vector<65x128xbf16>, vector<65x128xbf16>, vector<65x65xf32> -> vector<65x65xf32>
    %cst_38 = arith.constant dense<0xFF800000> : vector<65xf32>
    %123 = vector.multi_reduction <maximumf>, %122, %cst_38 [1] : vector<65x65xf32> to vector<65xf32>
    %124 = vector.shape_cast %123 : vector<65xf32> to vector<65x1xf32>
    %125 = vector.broadcast %124 : vector<65x1xf32> to vector<65x65xf32>
    %126 = arith.subf %122, %125 : vector<65x65xf32>
    %127 = math.exp %126 : vector<65x65xf32>
    %cst_39 = arith.constant dense<0.000000e+00> : vector<65xf32>
    %128 = vector.multi_reduction <add>, %127, %cst_39 [1] : vector<65x65xf32> to vector<65xf32>
    %129 = vector.shape_cast %128 : vector<65xf32> to vector<65x1xf32>
    %130 = tpu.reciprocal %129 {approx = true} : vector<65x1xf32> -> vector<65x1xf32>
    %131 = vector.broadcast %130 : vector<65x1xf32> to vector<65x65xf32>
    %132 = arith.mulf %127, %131 : vector<65x65xf32>
    %133 = arith.truncf %132 : vector<65x65xf32> to vector<65x65xbf16>
    %cst_40 = arith.constant dense<0.000000e+00> : vector<65x128xf32>
    %134 = tpu.matmul %133, %121, %cst_40 {dimension_numbers = #tpu.dot_dimension_numbers<[1], [0], [0], [1], [0, 0, 1, 1], [], []>} : vector<65x65xbf16>, vector<65x128xbf16>, vector<65x128xf32> -> vector<65x128xf32>
    %135 = arith.truncf %134 : vector<65x128xf32> to vector<65x128xbf16>
    %c65 = arith.constant 65 : index
    %c0_41 = arith.constant 0 : index
    %136 = vector.load %arg19[%c65, %c0_41] : memref<130x512xbf16, #tpu.memory_space<vmem>>, vector<65x128xbf16>
    tpu.vector_store %arg19[%c65, %c0_41], %135 {strides = array<i32>} : memref<130x512xbf16, #tpu.memory_space<vmem>>, vector<65x128xbf16>,
    %137 = vector.extract_strided_slice %31 {offsets = [65, 384], sizes = [65, 128], strides = [1, 1]} : vector<130x1536xf32> to vector<65x128xf32>
    %138 = arith.truncf %137 : vector<65x128xf32> to vector<65x128xbf16>
    %139 = vector.extract_strided_slice %31 {offsets = [65, 512], sizes = [65, 128], strides = [1, 1]} : vector<130x1536xf32> to vector<65x128xf32>
    %140 = arith.truncf %139 : vector<65x128xf32> to vector<65x128xbf16>
    %141 = vector.extract_strided_slice %31 {offsets = [65, 640], sizes = [65, 128], strides = [1, 1]} : vector<130x1536xf32> to vector<65x128xf32>
    %142 = arith.truncf %141 : vector<65x128xf32> to vector<65x128xbf16>
    %cst_42 = arith.constant dense<0.000000e+00> : vector<65x65xf32>
    %143 = tpu.matmul %138, %140, %cst_42 {dimension_numbers = #tpu.dot_dimension_numbers<[1], [1], [0], [0], [0, 0, 1, 0], [], []>} : vector<65x128xbf16>, vector<65x128xbf16>, vector<65x65xf32> -> vector<65x65xf32>
    %cst_43 = arith.constant dense<0xFF800000> : vector<65xf32>
    %144 = vector.multi_reduction <maximumf>, %143, %cst_43 [1] : vector<65x65xf32> to vector<65xf32>
    %145 = vector.shape_cast %144 : vector<65xf32> to vector<65x1xf32>
    %146 = vector.broadcast %145 : vector<65x1xf32> to vector<65x65xf32>
    %147 = arith.subf %143, %146 : vector<65x65xf32>
    %148 = math.exp %147 : vector<65x65xf32>
    %cst_44 = arith.constant dense<0.000000e+00> : vector<65xf32>
    %149 = vector.multi_reduction <add>, %148, %cst_44 [1] : vector<65x65xf32> to vector<65xf32>
    %150 = vector.shape_cast %149 : vector<65xf32> to vector<65x1xf32>
    %151 = tpu.reciprocal %150 {approx = true} : vector<65x1xf32> -> vector<65x1xf32>
    %152 = vector.broadcast %151 : vector<65x1xf32> to vector<65x65xf32>
    %153 = arith.mulf %148, %152 : vector<65x65xf32>
    %154 = arith.truncf %153 : vector<65x65xf32> to vector<65x65xbf16>
    %cst_45 = arith.constant dense<0.000000e+00> : vector<65x128xf32>
    %155 = tpu.matmul %154, %142, %cst_45 {dimension_numbers = #tpu.dot_dimension_numbers<[1], [0], [0], [1], [0, 0, 1, 1], [], []>} : vector<65x65xbf16>, vector<65x128xbf16>, vector<65x128xf32> -> vector<65x128xf32>
    %156 = arith.truncf %155 : vector<65x128xf32> to vector<65x128xbf16>
    %c65_46 = arith.constant 65 : index
    %c128_47 = arith.constant 128 : index
    %157 = vector.load %arg19[%c65_46, %c128_47] : memref<130x512xbf16, #tpu.memory_space<vmem>>, vector<65x128xbf16>
    tpu.vector_store %arg19[%c65_46, %c128_47], %156 {strides = array<i32>} : memref<130x512xbf16, #tpu.memory_space<vmem>>, vector<65x128xbf16>,
    %158 = vector.extract_strided_slice %31 {offsets = [65, 768], sizes = [65, 128], strides = [1, 1]} : vector<130x1536xf32> to vector<65x128xf32>
    %159 = arith.truncf %158 : vector<65x128xf32> to vector<65x128xbf16>
    %160 = vector.extract_strided_slice %31 {offsets = [65, 896], sizes = [65, 128], strides = [1, 1]} : vector<130x1536xf32> to vector<65x128xf32>
    %161 = arith.truncf %160 : vector<65x128xf32> to vector<65x128xbf16>
    %162 = vector.extract_strided_slice %31 {offsets = [65, 1024], sizes = [65, 128], strides = [1, 1]} : vector<130x1536xf32> to vector<65x128xf32>
    %163 = arith.truncf %162 : vector<65x128xf32> to vector<65x128xbf16>
    %cst_48 = arith.constant dense<0.000000e+00> : vector<65x65xf32>
    %164 = tpu.matmul %159, %161, %cst_48 {dimension_numbers = #tpu.dot_dimension_numbers<[1], [1], [0], [0], [0, 0, 1, 0], [], []>} : vector<65x128xbf16>, vector<65x128xbf16>, vector<65x65xf32> -> vector<65x65xf32>
    %cst_49 = arith.constant dense<0xFF800000> : vector<65xf32>
    %165 = vector.multi_reduction <maximumf>, %164, %cst_49 [1] : vector<65x65xf32> to vector<65xf32>
    %166 = vector.shape_cast %165 : vector<65xf32> to vector<65x1xf32>
    %167 = vector.broadcast %166 : vector<65x1xf32> to vector<65x65xf32>
    %168 = arith.subf %164, %167 : vector<65x65xf32>
    %169 = math.exp %168 : vector<65x65xf32>
    %cst_50 = arith.constant dense<0.000000e+00> : vector<65xf32>
    %170 = vector.multi_reduction <add>, %169, %cst_50 [1] : vector<65x65xf32> to vector<65xf32>
    %171 = vector.shape_cast %170 : vector<65xf32> to vector<65x1xf32>
    %172 = tpu.reciprocal %171 {approx = true} : vector<65x1xf32> -> vector<65x1xf32>
    %173 = vector.broadcast %172 : vector<65x1xf32> to vector<65x65xf32>
    %174 = arith.mulf %169, %173 : vector<65x65xf32>
    %175 = arith.truncf %174 : vector<65x65xf32> to vector<65x65xbf16>
    %cst_51 = arith.constant dense<0.000000e+00> : vector<65x128xf32>
    %176 = tpu.matmul %175, %163, %cst_51 {dimension_numbers = #tpu.dot_dimension_numbers<[1], [0], [0], [1], [0, 0, 1, 1], [], []>} : vector<65x65xbf16>, vector<65x128xbf16>, vector<65x128xf32> -> vector<65x128xf32>
    %177 = arith.truncf %176 : vector<65x128xf32> to vector<65x128xbf16>
    %c65_52 = arith.constant 65 : index
    %c256_53 = arith.constant 256 : index
    %178 = vector.load %arg19[%c65_52, %c256_53] : memref<130x512xbf16, #tpu.memory_space<vmem>>, vector<65x128xbf16>
    tpu.vector_store %arg19[%c65_52, %c256_53], %177 {strides = array<i32>} : memref<130x512xbf16, #tpu.memory_space<vmem>>, vector<65x128xbf16>,
    %179 = vector.extract_strided_slice %31 {offsets = [65, 1152], sizes = [65, 128], strides = [1, 1]} : vector<130x1536xf32> to vector<65x128xf32>
    %180 = arith.truncf %179 : vector<65x128xf32> to vector<65x128xbf16>
    %181 = vector.extract_strided_slice %31 {offsets = [65, 1280], sizes = [65, 128], strides = [1, 1]} : vector<130x1536xf32> to vector<65x128xf32>
    %182 = arith.truncf %181 : vector<65x128xf32> to vector<65x128xbf16>
    %183 = vector.extract_strided_slice %31 {offsets = [65, 1408], sizes = [65, 128], strides = [1, 1]} : vector<130x1536xf32> to vector<65x128xf32>
    %184 = arith.truncf %183 : vector<65x128xf32> to vector<65x128xbf16>
    %cst_54 = arith.constant dense<0.000000e+00> : vector<65x65xf32>
    %185 = tpu.matmul %180, %182, %cst_54 {dimension_numbers = #tpu.dot_dimension_numbers<[1], [1], [0], [0], [0, 0, 1, 0], [], []>} : vector<65x128xbf16>, vector<65x128xbf16>, vector<65x65xf32> -> vector<65x65xf32>
    %cst_55 = arith.constant dense<0xFF800000> : vector<65xf32>
    %186 = vector.multi_reduction <maximumf>, %185, %cst_55 [1] : vector<65x65xf32> to vector<65xf32>
    %187 = vector.shape_cast %186 : vector<65xf32> to vector<65x1xf32>
    %188 = vector.broadcast %187 : vector<65x1xf32> to vector<65x65xf32>
    %189 = arith.subf %185, %188 : vector<65x65xf32>
    %190 = math.exp %189 : vector<65x65xf32>
    %cst_56 = arith.constant dense<0.000000e+00> : vector<65xf32>
    %191 = vector.multi_reduction <add>, %190, %cst_56 [1] : vector<65x65xf32> to vector<65xf32>
    %192 = vector.shape_cast %191 : vector<65xf32> to vector<65x1xf32>
    %193 = tpu.reciprocal %192 {approx = true} : vector<65x1xf32> -> vector<65x1xf32>
    %194 = vector.broadcast %193 : vector<65x1xf32> to vector<65x65xf32>
    %195 = arith.mulf %190, %194 : vector<65x65xf32>
    %196 = arith.truncf %195 : vector<65x65xf32> to vector<65x65xbf16>
    %cst_57 = arith.constant dense<0.000000e+00> : vector<65x128xf32>
    %197 = tpu.matmul %196, %184, %cst_57 {dimension_numbers = #tpu.dot_dimension_numbers<[1], [0], [0], [1], [0, 0, 1, 1], [], []>} : vector<65x65xbf16>, vector<65x128xbf16>, vector<65x128xf32> -> vector<65x128xf32>
    %198 = arith.truncf %197 : vector<65x128xf32> to vector<65x128xbf16>
    %c65_58 = arith.constant 65 : index
    %c384_59 = arith.constant 384 : index
    %199 = vector.load %arg19[%c65_58, %c384_59] : memref<130x512xbf16, #tpu.memory_space<vmem>>, vector<65x128xbf16>
    tpu.vector_store %arg19[%c65_58, %c384_59], %198 {strides = array<i32>} : memref<130x512xbf16, #tpu.memory_space<vmem>>, vector<65x128xbf16>,
    %c0_60 = arith.constant 0 : index
    %c0_61 = arith.constant 0 : index
    %200 = vector.load %arg19[%c0_60, %c0_61] : memref<130x512xbf16, #tpu.memory_space<vmem>>, vector<130x512xbf16>
    %c0_62 = arith.constant 0 : index
    %c0_63 = arith.constant 0 : index
    %c0_64 = arith.constant 0 : index
    %201 = vector.load %arg7[%c0_62, %c0_63, %c0_64] : memref<1x512x32xbf16, #tpu.memory_space<vmem>>, vector<1x512x32xbf16>
    %202 = vector.shape_cast %201 : vector<1x512x32xbf16> to vector<512x32xbf16>
    %cst_65 = arith.constant dense<0.000000e+00> : vector<130x32xf32>
    %203 = tpu.matmul %200, %202, %cst_65 {dimension_numbers = #tpu.dot_dimension_numbers<[1], [0], [0], [1], [0, 0, 1, 1], [], []>} : vector<130x512xbf16>, vector<512x32xbf16>, vector<130x32xf32> -> vector<130x32xf32>
    %204 = arith.addf %3, %203 : vector<130x32xf32>
    %c0_66 = arith.constant 0 : index
    %c0_67 = arith.constant 0 : index
    %c0_68 = arith.constant 0 : index
    %205 = vector.load %arg8[%c0_66, %c0_67, %c0_68] : memref<1x1x32xf32, #tpu.memory_space<vmem>>, vector<1x1x32xf32>
    %206 = vector.shape_cast %205 : vector<1x1x32xf32> to vector<1x32xf32>
    %207 = vector.broadcast %206 : vector<1x32xf32> to vector<130x32xf32>
    %208 = arith.addf %204, %207 : vector<130x32xf32>
    %cst_69 = arith.constant dense<0.000000e+00> : vector<130xf32>
    %209 = vector.multi_reduction <add>, %208, %cst_69 [1] : vector<130x32xf32> to vector<130xf32>
    %210 = vector.shape_cast %209 : vector<130xf32> to vector<130x1xf32>
    %cst_70 = arith.constant 3.200000e+01 : f32
    %211 = vector.broadcast %cst_70 : f32 to vector<130x1xf32>
    %212 = arith.divf %210, %211 : vector<130x1xf32>
    %213 = vector.broadcast %212 : vector<130x1xf32> to vector<130x32xf32>
    %214 = arith.subf %208, %213 : vector<130x32xf32>
    %215 = arith.mulf %214, %214 : vector<130x32xf32>
    %cst_71 = arith.constant dense<0.000000e+00> : vector<130xf32>
    %216 = vector.multi_reduction <add>, %215, %cst_71 [1] : vector<130x32xf32> to vector<130xf32>
    %217 = vector.shape_cast %216 : vector<130xf32> to vector<130x1xf32>
    %cst_72 = arith.constant 3.200000e+01 : f32
    %218 = vector.broadcast %cst_72 : f32 to vector<130x1xf32>
    %219 = arith.divf %217, %218 : vector<130x1xf32>
    %cst_73 = arith.constant 9.99999974E-6 : f32
    %220 = vector.broadcast %cst_73 : f32 to vector<130x1xf32>
    %221 = arith.addf %219, %220 : vector<130x1xf32>
    %222 = math.rsqrt %221 : vector<130x1xf32>
    %223 = vector.broadcast %222 : vector<130x1xf32> to vector<130x32xf32>
    %224 = arith.mulf %214, %223 : vector<130x32xf32>
    %c0_74 = arith.constant 0 : index
    %c0_75 = arith.constant 0 : index
    %c0_76 = arith.constant 0 : index
    %225 = vector.load %arg9[%c0_74, %c0_75, %c0_76] : memref<1x1x32xf32, #tpu.memory_space<vmem>>, vector<1x1x32xf32>
    %226 = vector.shape_cast %225 : vector<1x1x32xf32> to vector<1x32xf32>
    %227 = vector.broadcast %226 : vector<1x32xf32> to vector<130x32xf32>
    %228 = arith.mulf %224, %227 : vector<130x32xf32>
    %c0_77 = arith.constant 0 : index
    %c0_78 = arith.constant 0 : index
    %c0_79 = arith.constant 0 : index
    %229 = vector.load %arg10[%c0_77, %c0_78, %c0_79] : memref<1x1x32xf32, #tpu.memory_space<vmem>>, vector<1x1x32xf32>
    %230 = vector.shape_cast %229 : vector<1x1x32xf32> to vector<1x32xf32>
    %231 = vector.broadcast %230 : vector<1x32xf32> to vector<130x32xf32>
    %232 = arith.addf %228, %231 : vector<130x32xf32>
    %233 = arith.truncf %232 : vector<130x32xf32> to vector<130x32xbf16>
    %c0_80 = arith.constant 0 : index
    %c0_81 = arith.constant 0 : index
    %c0_82 = arith.constant 0 : index
    %234 = vector.load %arg11[%c0_80, %c0_81, %c0_82] : memref<1x32x128xbf16, #tpu.memory_space<vmem>>, vector<1x32x128xbf16>
    %235 = vector.shape_cast %234 : vector<1x32x128xbf16> to vector<32x128xbf16>
    %cst_83 = arith.constant dense<0.000000e+00> : vector<130x128xf32>
    %236 = tpu.matmul %233, %235, %cst_83 {dimension_numbers = #tpu.dot_dimension_numbers<[1], [0], [0], [1], [0, 0, 1, 1], [], []>} : vector<130x32xbf16>, vector<32x128xbf16>, vector<130x128xf32> -> vector<130x128xf32>
    %c0_84 = arith.constant 0 : index
    %c0_85 = arith.constant 0 : index
    %c0_86 = arith.constant 0 : index
    %237 = vector.load %arg12[%c0_84, %c0_85, %c0_86] : memref<1x1x128xf32, #tpu.memory_space<vmem>>, vector<1x1x128xf32>
    %238 = vector.shape_cast %237 : vector<1x1x128xf32> to vector<1x128xf32>
    %239 = vector.broadcast %238 : vector<1x128xf32> to vector<130x128xf32>
    %240 = arith.addf %236, %239 : vector<130x128xf32>
    %cst_87 = arith.constant 5.000000e-01 : f32
    %241 = vector.broadcast %cst_87 : f32 to vector<130x128xf32>
    %242 = arith.mulf %241, %240 : vector<130x128xf32>
    %cst_88 = arith.constant 4.471500e-02 : f32
    %243 = vector.broadcast %cst_88 : f32 to vector<130x128xf32>
    %244 = arith.mulf %243, %240 : vector<130x128xf32>
    %245 = arith.mulf %244, %240 : vector<130x128xf32>
    %246 = arith.mulf %245, %240 : vector<130x128xf32>
    %247 = arith.addf %240, %246 : vector<130x128xf32>
    %cst_89 = arith.constant 0.797884583 : f32
    %248 = vector.broadcast %cst_89 : f32 to vector<130x128xf32>
    %249 = arith.mulf %248, %247 : vector<130x128xf32>
    %250 = math.tanh %249 : vector<130x128xf32>
    %cst_90 = arith.constant 1.000000e+00 : f32
    %251 = vector.broadcast %cst_90 : f32 to vector<130x128xf32>
    %252 = arith.addf %251, %250 : vector<130x128xf32>
    %253 = arith.mulf %242, %252 : vector<130x128xf32>
    %254 = arith.truncf %253 : vector<130x128xf32> to vector<130x128xbf16>
    %c0_91 = arith.constant 0 : index
    %c0_92 = arith.constant 0 : index
    %c0_93 = arith.constant 0 : index
    %255 = vector.load %arg13[%c0_91, %c0_92, %c0_93] : memref<1x128x32xbf16, #tpu.memory_space<vmem>>, vector<1x128x32xbf16>
    %256 = vector.shape_cast %255 : vector<1x128x32xbf16> to vector<128x32xbf16>
    %cst_94 = arith.constant dense<0.000000e+00> : vector<130x32xf32>
    %257 = tpu.matmul %254, %256, %cst_94 {dimension_numbers = #tpu.dot_dimension_numbers<[1], [0], [0], [1], [0, 0, 1, 1], [], []>} : vector<130x128xbf16>, vector<128x32xbf16>, vector<130x32xf32> -> vector<130x32xf32>
    %c0_95 = arith.constant 0 : index
    %c0_96 = arith.constant 0 : index
    %c0_97 = arith.constant 0 : index
    %258 = vector.load %arg14[%c0_95, %c0_96, %c0_97] : memref<1x1x32xf32, #tpu.memory_space<vmem>>, vector<1x1x32xf32>
    %259 = vector.shape_cast %258 : vector<1x1x32xf32> to vector<1x32xf32>
    %260 = vector.broadcast %259 : vector<1x32xf32> to vector<130x32xf32>
    %261 = arith.addf %257, %260 : vector<130x32xf32>
    %262 = arith.addf %208, %261 : vector<130x32xf32>
    %c0_98 = arith.constant 0 : index
    %c0_99 = arith.constant 0 : index
    %263 = vector.load %arg18[%c0_98, %c0_99] : memref<130x32xf32, #tpu.memory_space<vmem>>, vector<130x32xf32>
    tpu.vector_store %arg18[%c0_98, %c0_99], %262 {strides = array<i32>} : memref<130x32xf32, #tpu.memory_space<vmem>>, vector<130x32xf32>,
    %c1_i32 = arith.constant 1 : i32
    %264 = arith.cmpi eq, %arg1, %c1_i32 : i32
    %265 = arith.extui %264 : i1 to i32
    %c0_i32_100 = arith.constant 0 : i32
    %266 = arith.cmpi ne, %265, %c0_i32_100 : i32
    scf.if %266 {
      %267 = arith.truncf %262 : vector<130x32xf32> to vector<130x32xbf16>
      %c0_101 = arith.constant 0 : index
      %c0_102 = arith.constant 0 : index
      %268 = vector.load %arg15[%c0_101, %c0_102] : memref<32x128xbf16, #tpu.memory_space<vmem>>, vector<32x128xbf16>
      %cst_103 = arith.constant dense<0.000000e+00> : vector<130x128xf32>
      %269 = tpu.matmul %267, %268, %cst_103 {dimension_numbers = #tpu.dot_dimension_numbers<[1], [0], [0], [1], [0, 0, 1, 1], [], []>} : vector<130x32xbf16>, vector<32x128xbf16>, vector<130x128xf32> -> vector<130x128xf32>
      %c0_104 = arith.constant 0 : index
      %c0_105 = arith.constant 0 : index
      %270 = vector.load %arg16[%c0_104, %c0_105] : memref<1x128xf32, #tpu.memory_space<vmem>>, vector<1x128xf32>
      %271 = vector.broadcast %270 : vector<1x128xf32> to vector<130x128xf32>
      %272 = arith.addf %269, %271 : vector<130x128xf32>
      %273 = vector.shape_cast %272 : vector<130x128xf32> to vector<2x65x128xf32>
      %c0_106 = arith.constant 0 : index
      %c0_107 = arith.constant 0 : index
      %c0_108 = arith.constant 0 : index
      %274 = vector.load %arg17[%c0_106, %c0_107, %c0_108] : memref<2x65x128xf32, #tpu.memory_space<vmem>>, vector<2x65x128xf32>
      tpu.vector_store %arg17[%c0_106, %c0_107, %c0_108], %273 {strides = array<i32>} : memref<2x65x128xf32, #tpu.memory_space<vmem>>, vector<2x65x128xf32>,
    } else {
    }
    return
  }
  func.func @transform_0(%arg0: i32, %arg1: i32) -> (i32, i32, i32) {
    %c0_i32 = arith.constant 0 : i32
    %c0_i32_0 = arith.constant 0 : i32
    %c0_i32_1 = arith.constant 0 : i32
    return %arg0, %c0_i32, %c0_i32_0 : i32, i32, i32
  }
  func.func @transform_1(%arg0: i32, %arg1: i32) -> (i32, i32) {
    %c0_i32 = arith.constant 0 : i32
    %c0_i32_0 = arith.constant 0 : i32
    %c0_i32_1 = arith.constant 0 : i32
    return %c0_i32, %c0_i32_0 : i32, i32
  }
  func.func @transform_2(%arg0: i32, %arg1: i32) -> (i32, i32, i32) {
    %c0_i32 = arith.constant 0 : i32
    %c0_i32_0 = arith.constant 0 : i32
    %c0_i32_1 = arith.constant 0 : i32
    return %arg1, %c0_i32, %c0_i32_0 : i32, i32, i32
  }
  func.func @transform_3(%arg0: i32, %arg1: i32) -> (i32, i32, i32) {
    %c0_i32 = arith.constant 0 : i32
    %c0_i32_0 = arith.constant 0 : i32
    %c0_i32_1 = arith.constant 0 : i32
    return %arg1, %c0_i32, %c0_i32_0 : i32, i32, i32
  }
  func.func @transform_4(%arg0: i32, %arg1: i32) -> (i32, i32, i32) {
    %c0_i32 = arith.constant 0 : i32
    %c0_i32_0 = arith.constant 0 : i32
    %c0_i32_1 = arith.constant 0 : i32
    return %arg1, %c0_i32, %c0_i32_0 : i32, i32, i32
  }
  func.func @transform_5(%arg0: i32, %arg1: i32) -> (i32, i32, i32) {
    %c0_i32 = arith.constant 0 : i32
    %c0_i32_0 = arith.constant 0 : i32
    %c0_i32_1 = arith.constant 0 : i32
    return %arg1, %c0_i32, %c0_i32_0 : i32, i32, i32
  }
  func.func @transform_6(%arg0: i32, %arg1: i32) -> (i32, i32, i32) {
    %c0_i32 = arith.constant 0 : i32
    %c0_i32_0 = arith.constant 0 : i32
    %c0_i32_1 = arith.constant 0 : i32
    return %arg1, %c0_i32, %c0_i32_0 : i32, i32, i32
  }
  func.func @transform_7(%arg0: i32, %arg1: i32) -> (i32, i32, i32) {
    %c0_i32 = arith.constant 0 : i32
    %c0_i32_0 = arith.constant 0 : i32
    %c0_i32_1 = arith.constant 0 : i32
    return %arg1, %c0_i32, %c0_i32_0 : i32, i32, i32
  }
  func.func @transform_8(%arg0: i32, %arg1: i32) -> (i32, i32, i32) {
    %c0_i32 = arith.constant 0 : i32
    %c0_i32_0 = arith.constant 0 : i32
    %c0_i32_1 = arith.constant 0 : i32
    return %arg1, %c0_i32, %c0_i32_0 : i32, i32, i32
  }
  func.func @transform_9(%arg0: i32, %arg1: i32) -> (i32, i32, i32) {
    %c0_i32 = arith.constant 0 : i32
    %c0_i32_0 = arith.constant 0 : i32
    %c0_i32_1 = arith.constant 0 : i32
    return %arg1, %c0_i32, %c0_i32_0 : i32, i32, i32
  }
  func.func @transform_10(%arg0: i32, %arg1: i32) -> (i32, i32, i32) {
    %c0_i32 = arith.constant 0 : i32
    %c0_i32_0 = arith.constant 0 : i32
    %c0_i32_1 = arith.constant 0 : i32
    return %arg1, %c0_i32, %c0_i32_0 : i32, i32, i32
  }
  func.func @transform_11(%arg0: i32, %arg1: i32) -> (i32, i32, i32) {
    %c0_i32 = arith.constant 0 : i32
    %c0_i32_0 = arith.constant 0 : i32
    %c0_i32_1 = arith.constant 0 : i32
    return %arg1, %c0_i32, %c0_i32_0 : i32, i32, i32
  }
  func.func @transform_12(%arg0: i32, %arg1: i32) -> (i32, i32, i32) {
    %c0_i32 = arith.constant 0 : i32
    %c0_i32_0 = arith.constant 0 : i32
    %c0_i32_1 = arith.constant 0 : i32
    return %arg1, %c0_i32, %c0_i32_0 : i32, i32, i32
  }
  func.func @transform_13(%arg0: i32, %arg1: i32) -> (i32, i32) {
    %c0_i32 = arith.constant 0 : i32
    %c0_i32_0 = arith.constant 0 : i32
    %c0_i32_1 = arith.constant 0 : i32
    return %c0_i32, %c0_i32_0 : i32, i32
  }
  func.func @transform_14(%arg0: i32, %arg1: i32) -> (i32, i32) {
    %c0_i32 = arith.constant 0 : i32
    %c0_i32_0 = arith.constant 0 : i32
    %c0_i32_1 = arith.constant 0 : i32
    return %c0_i32, %c0_i32_0 : i32, i32
  }
  func.func @transform_15(%arg0: i32, %arg1: i32) -> (i32, i32, i32) {
    %c0_i32 = arith.constant 0 : i32
    %c0_i32_0 = arith.constant 0 : i32
    %c0_i32_1 = arith.constant 0 : i32
    return %arg0, %c0_i32, %c0_i32_0 : i32, i32, i32
  }
}

</mosaic_0001>

<bundles_post_ra>
// kernel: tpu_custom_call.1
= control target key start
LH: loop header
LB: loop body
LE: loop exit
PB: predicated region body
PF: predicated region fallthrough
CT: control target
= control target key end

     0   :  { %s12653_s18 = smov 0   ;;  %s12655_s19 = smov 0   ;;  %s16131_s0 = inlined_call_operand.vmem [shape: f32[2,65,32], index: 0, kind: input, shape index: {}]   ;;  %s16132_s1 = inlined_call_operand.vmem [shape: f32[65,32], index: 1, kind: input, shape index: {}]   ;;  %s16133_s2 = inlined_call_operand.vmem [shape: f32[2,1,32], index: 2, kind: input, shape index: {}]   ;;  %s16134_s3 = inlined_call_operand.vmem [shape: f32[2,1,32], index: 3, kind: input, shape index: {}]   ;;  %s16135_s4 = inlined_call_operand.vmem [shape: bf16[2,32,1536], index: 4, kind: input, shape index: {}]   ;;  %s16136_s5 = inlined_call_operand.vmem [shape: bf16[2,512,32], index: 5, kind: input, shape index: {}]   ;;  %s16137_s6 = inlined_call_operand.vmem [shape: f32[2,1,32], index: 6, kind: input, shape index: {}]   ;;  %s16138_s7 = inlined_call_operand.vmem [shape: f32[2,1,32], index: 7, kind: input, shape index: {}]   ;;  %s16139_s8 = inlined_call_operand.vmem [shape: f32[2,1,32], index: 8, kind: input, shape index: {}]   ;;  %s16140_s9 = inlined_call_operand.vmem [shape: bf16[2,32,128], index: 9, kind: input, shape index: {}]   ;;  %s16141_s10 = inlined_call_operand.vmem [shape: f32[2,1,128], index: 10, kind: input, shape index: {}]   ;;  %s16142_s11 = inlined_call_operand.vmem [shape: bf16[2,128,32], index: 11, kind: input, shape index: {}]   ;;  %s16143_s12 = inlined_call_operand.vmem [shape: f32[2,1,32], index: 12, kind: input, shape index: {}]   ;;  %s16144_s13 = inlined_call_operand.vmem [shape: bf16[32,128], index: 13, kind: input, shape index: {}]   ;;  %s16145_s14 = inlined_call_operand.vmem [shape: f32[1,128], index: 14, kind: input, shape index: {}]   ;;  %s16146_s15 = inlined_call_operand.vmem [shape: f32[2,65,128], index: 15, kind: output, shape index: {}]  }
   0x1   :  { %16194 = sst [smem:[#allocation77_spill]] %s16134_s3  ;;  %s12657_s20 = smov 0  }
   0x2   :  { %16195 = sst [smem:[#allocation78_spill]] %s16136_s5 }
   0x3   :  { %16196 = sst [smem:[#allocation79_spill]] %s16144_s13 }
   0x4   :  { %16197 = sst [smem:[#allocation80_spill]] %s16145_s14 }
   0x5   :  { %16198 = sst [smem:[#allocation81_spill]] %s16146_s15 }
   0x6 LB: > { %16199 = sst [smem:[#allocation4_spill]] %s12560_s19  ;;  %s34_s21 = sadd.s32 1, %s12560_s19  ;;  %s12564_s20 = sphi %s12657_s20, %s25_s20   ;;  %s12560_s19 = sphi %s12655_s19, %s16416_s19   ;;  %s12556_s18 = sphi %s12653_s18, %s16415_s18  }
   0x7   : > { %16200 = sst [smem:[#allocation5_spill]] %s12564_s20  ;;  %p10597_p0 = scmp.ge.s32.totalorder %s12564_s20, 1 }
   0x8   : > { %p35_p1 = scmp.ge.s32.totalorder %s34_s21, 2  ;;  %p547_p2 = scmp.lt.s32.totalorder %s12564_s20, 3 }
   0xa   : > { %s16418_s21 = smov (%p35_p1, %s34_s21), 0  ;;  %p548_p3 = pnand %p10597_p0, %p547_p2 }
   0xb   : > { %16201 = sst [smem:[#allocation6_spill]] %s16418_s21 }
   0xc   : > { %551 = sbr.rel (%p548_p3) target bundleno = 3222 (0xc96), region = 80 }
  0x11   : > { %p645_p4 = scmp.lt.s32.totalorder %s12556_s18, 1  ;;  %s16203_s5 = sld [smem:[#allocation78_spill]] }
  0x12   : > { %p10605_p5 = scmp.ne.s32.totalorder %s12556_s18, 0 }
  0x13   : > { %s12675_s22 = scalar_select %p645_p4, %s12556_s18, 1 }
  0x15   : > { %s11971_s29 = smul.u32 192, %s12675_s22  ;;  %s10941_s30 = sshll.u32 %s12675_s22, 8 }
  0x16   : > { %s669_s3 = scalar_lea.vmem %s16139_s8, %s12675_s22  ;;  %s10942_s16 = sshll.u32 %s12675_s22, 4 }
  0x17   : > { %s12690_s23 = scalar_lea.vmem %s16203_s5, %s10941_s30  ;;  %s12699_s14 = scalar_lea.vmem %s16135_s4, %s11971_s29 }
  0x18   : > { %s12713_s5 = scalar_lea.vmem %s16140_s9, %s10942_s16  ;;  %s677_s15 = scalar_lea.vmem %s16141_s10, %s12675_s22 }
  0x19   : > { %s10943_s20 = sshll.u32 %s12675_s22, 6  ;;  %s685_s13 = scalar_lea.vmem %s16143_s12, %s12675_s22 }
  0x1a   : > { %s12727_s28 = scalar_lea.vmem %s16142_s11, %s10943_s20  ;;  %697 = sbr.rel (%p10605_p5) target bundleno = 144 (0x90), region = 84 }
  0x1f   : > { %v698_v0 = vld [vmem:[%s16131_s0] sm:$0xff]  ;;  %v765_v2 = vlaneseq  ;;  %v699_v3 = vld [vmem:[%s16131_s0 + $0x8] sm:$0xff]  ;;  %v12566_v5 = vmov 1966171168   ;;  %v700_v8 = vld [vmem:[%s16131_s0 + $0x10] sm:$0xff]  ;;  %vm2389_vm0 = vcmask 261120  }
  0x20   : > { %v716_v1 = vld [vmem:[%s16132_s1] sm:$0xff]  ;;  %v763_v6 = vunpack.c.l.s4 %v12566_v5  ;;  %v12742_v7 = vld [vmem:[%s16132_s1 + $0x8] sm:$0xff]  ;;  %v12750_v9 = vld [vmem:[%s16132_s1 + $0x10] sm:$0xff]  ;;  %vm2406_vm1 = vcmask 254976  }
  0x21   : > { %v725_v4 = vadd.f32 %v716_v1, %v698_v0  ;;  %v766_v10 = vshrl.u32 %v765_v2, 7  ;;  %v726_v11 = vadd.f32 %v12742_v7, %v699_v3  ;;  %v727_v12 = vadd.f32 %v12750_v9, %v700_v8  ;;  %v701_v13 = vld [vmem:[%s16131_s0 + $0x18] sm:$0xff]  ;;  %v702_v15 = vld [vmem:[%s16131_s0 + $0x20] sm:$0xff]  ;;  %v703_v20 = vld [vmem:[%s16131_s0 + $0x28] sm:$0xff] }
  0x22   : > { %v12760_v14 = vld [vmem:[%s16132_s1 + $0x18] sm:$0xff]  ;;  %v764_v17 = vunpack.c.0.s8 %v763_v6  ;;  %v12769_v19 = vld [vmem:[%s16132_s1 + $0x20] sm:$0xff]  ;;  %v12777_v21 = vld [vmem:[%s16132_s1 + $0x28] sm:$0xff] }
  0x23   : > { %v761_v16 = vcombine.high %v725_v4, %v725_v4  ;;  %v728_v18 = vadd.f32 %v12760_v14, %v701_v13  ;;  %v810_v22 = vcombine.high %v726_v11, %v726_v11  ;;  %v859_v23 = vcombine.high %v727_v12, %v727_v12  ;;  %v704_v26 = vld [vmem:[%s16131_s0 + $0x30] sm:$0xff]  ;;  %v705_v28 = vld [vmem:[%s16131_s0 + $0x38] sm:$0xff]  ;;  %v707_v33 = vld [vmem:[%s16131_s0 + $0x48] sm:$0xff] }
  0x24   : > { %v12780_v24 = vadd.f32 %v12769_v19, %v702_v15  ;;  %v12783_v25 = vadd.f32 %v12777_v21, %v703_v20  ;;  %v12791_v27 = vld [vmem:[%s16132_s1 + $0x30] sm:$0xff]  ;;  %v12796_v29 = vsub.s32 %v764_v17, %v766_v10  ;;  %v12804_v32 = vld [vmem:[%s16132_s1 + $0x38] sm:$0xff]  ;;  %v12816_v37 = vadd.f32 %v716_v1, %v707_v33 }
  0x25   : > { %v908_v30 = vcombine.high %v728_v18, %v728_v18  ;;  %v12799_v31 = vadd.f32 %v12791_v27, %v704_v26  ;;  %v12814_v36 = vadd.f32 %v12804_v32, %v705_v28 }
  0x26   : > { %v957_v34 = vcombine.high %v12780_v24, %v12780_v24  ;;  %v1006_v35 = vcombine.high %v12783_v25, %v12783_v25  ;;  %v768_v38 = vrot.slane %v725_v4, %v12796_v29  ;;  %v775_v39 = vrot.slane %v761_v16, %v12796_v29 }
  0x27   : > { %v817_v40 = vrot.slane %v726_v11, %v12796_v29  ;;  %v824_v41 = vrot.slane %v810_v22, %v12796_v29  ;;  %v866_v42 = vrot.slane %v727_v12, %v12796_v29  ;;  %v873_v43 = vrot.slane %v859_v23, %v12796_v29 }
  0x28   : > { %v915_v44 = vrot.slane %v728_v18, %v12796_v29  ;;  %v922_v45 = vrot.slane %v908_v30, %v12796_v29  ;;  %v776_v46 = vcombine.high %v768_v38, %v768_v38  ;;  %v777_v47 = vcombine.high %v775_v39, %v775_v39 }
  0x29   : > { %v784_v48 = vrot.slane %v768_v38, %v12796_v29  ;;  %v791_v49 = vrot.slane %v775_v39, %v12796_v29  ;;  %v825_v50 = vcombine.high %v817_v40, %v817_v40  ;;  %v826_v51 = vcombine.high %v824_v41, %v824_v41 }
  0x2a   : > { %v833_v52 = vrot.slane %v817_v40, %v12796_v29  ;;  %v840_v53 = vrot.slane %v824_v41, %v12796_v29  ;;  %v798_v54 = vrot.slane %v776_v46, %v12796_v29  ;;  %v805_v55 = vrot.slane %v777_v47, %v12796_v29 }
  0x2b   : > { %v874_v56 = vcombine.high %v866_v42, %v866_v42  ;;  %v875_v57 = vcombine.high %v873_v43, %v873_v43  ;;  %v847_v58 = vrot.slane %v825_v50, %v12796_v29  ;;  %v854_v59 = vrot.slane %v826_v51, %v12796_v29 }
  0x2c   : > { %v882_v60 = vrot.slane %v866_v42, %v12796_v29  ;;  %v889_v61 = vrot.slane %v873_v43, %v12796_v29  ;;  %v1573_v62 = vcombine.low %v784_v48, %v798_v54  ;;  %v10606_v63 = vcombine.high %v784_v48, %v798_v54 }
  0x2d   : > { %v1575_v0 = vcombine.low %v791_v49, %v805_v55  ;;  %v10607_v1 = vcombine.high %v791_v49, %v805_v55  ;;  %v1622_v2 = vcombine.low %v833_v52, %v847_v58  ;;  %v10608_v3 = vcombine.high %v833_v52, %v847_v58 }
  0x2e   : > { %v1624_v4 = vcombine.low %v840_v53, %v854_v59  ;;  %v10609_v5 = vcombine.high %v840_v53, %v854_v59  ;;  %v1583_v6 = vrot.slane %v1573_v62, %v12796_v29  ;;  %v1590_v8 = vrot.slane %v10606_v63, %v12796_v29 }
  0x2f   : > { %v1597_v10 = vrot.slane %v1575_v0, %v12796_v29  ;;  %v1604_v11 = vrot.slane %v10607_v1, %v12796_v29  ;;  %v1632_v12 = vrot.slane %v1622_v2, %v12796_v29  ;;  %v1639_v13 = vrot.slane %v10608_v3, %v12796_v29 }
  0x30   : > { %v1646_v15 = vrot.slane %v1624_v4, %v12796_v29  ;;  %v1653_v16 = vrot.slane %v10609_v5, %v12796_v29  ;;  %v1605_v17 = vcombine.low %v1583_v6, %v1590_v8  ;;  %v896_v20 = vrot.slane %v874_v56, %v12796_v29 }
  0x31   : > { %v1606_v18 = vcombine.low %v1597_v10, %v1604_v11  ;;  %v903_v22 = vrot.slane %v875_v57, %v12796_v29  ;;  %v1654_v23 = vcombine.low %v1632_v12, %v1639_v13  ;;  %v923_v28 = vcombine.high %v915_v44, %v915_v44 }
  0x32   : > { %v1655_v26 = vcombine.low %v1646_v15, %v1653_v16  ;;  %v924_v30 = vcombine.high %v922_v45, %v922_v45  ;;  %v1613_v33 = vrot.slane %v1605_v17, %v12796_v29  ;;  %v1671_v39 = vcombine.low %v882_v60, %v896_v20 }
  0x33   : > { %v1620_v38 = vrot.slane %v1606_v18, %v12796_v29  ;;  %v10610_v40 = vcombine.high %v882_v60, %v896_v20  ;;  %v1662_v41 = vrot.slane %v1654_v23, %v12796_v29  ;;  %v1673_v43 = vcombine.low %v889_v61, %v903_v22 }
  0x34   : > { %v1669_v42 = vrot.slane %v1655_v26, %v12796_v29  ;;  %v10611_v46 = vcombine.high %v889_v61, %v903_v22  ;;  %v1681_v48 = vrot.slane %v1671_v39, %v12796_v29  ;;  %v931_v50 = vrot.slane %v915_v44, %v12796_v29 }
  0x35   : > { %v1621_v47 = vcombine.low %v1613_v33, %v1620_v38  ;;  %v1688_v49 = vrot.slane %v10610_v40, %v12796_v29  ;;  %v1695_v52 = vrot.slane %v1673_v43, %v12796_v29  ;;  %v938_v54 = vrot.slane %v922_v45, %v12796_v29 }
  0x36   : > { %v1670_v51 = vcombine.low %v1662_v41, %v1669_v42  ;;  %v1702_v53 = vrot.slane %v10611_v46, %v12796_v29  ;;  %v945_v56 = vrot.slane %v923_v28, %v12796_v29  ;;  %v952_v57 = vrot.slane %v924_v30, %v12796_v29 }
  0x37   : > { %2390 = vst.msk [vmem:[#allocation2] sm:$0xff] %vm2389_vm0, %v1621_v47  ;;  %v1703_v55 = vcombine.low %v1681_v48, %v1688_v49  ;;  %v964_v58 = vrot.slane %v12780_v24, %v12796_v29  ;;  %v971_v59 = vrot.slane %v957_v34, %v12796_v29  ;;  %v1013_v45 = vrot.slane %v12783_v25, %v12796_v29 }
  0x38   : > { %2391 = vst.msk [vmem:[#allocation2 + $0x8] sm:$0xff] %vm2389_vm0, %v1670_v51  ;;  %v1704_v44 = vcombine.low %v1695_v52, %v1702_v53  ;;  %v1020_v60 = vrot.slane %v1006_v35, %v12796_v29  ;;  %v1720_v62 = vcombine.low %v931_v50, %v945_v56  ;;  %v10612_v63 = vcombine.high %v931_v50, %v945_v56 }
  0x39   : > { %v1711_v61 = vrot.slane %v1703_v55, %v12796_v29  ;;  %v1722_v0 = vcombine.low %v938_v54, %v952_v57  ;;  %v10613_v2 = vcombine.high %v938_v54, %v952_v57  ;;  %v972_v3 = vcombine.high %v964_v58, %v964_v58 }
  0x3a   : > { %v1718_v1 = vrot.slane %v1704_v44, %v12796_v29  ;;  %v973_v4 = vcombine.high %v971_v59, %v971_v59  ;;  %v1730_v24 = vrot.slane %v1720_v62, %v12796_v29  ;;  %v1737_v34 = vrot.slane %v10612_v63, %v12796_v29 }
  0x3b   : > { %v1744_v5 = vrot.slane %v1722_v0, %v12796_v29  ;;  %v980_v6 = vrot.slane %v964_v58, %v12796_v29  ;;  %v1751_v35 = vrot.slane %v10613_v2, %v12796_v29  ;;  %v987_v8 = vrot.slane %v971_v59, %v12796_v29 }
  0x3c   : > { %v1719_v25 = vcombine.low %v1711_v61, %v1718_v1  ;;  %v994_v10 = vrot.slane %v972_v3, %v12796_v29  ;;  %v1752_v11 = vcombine.low %v1730_v24, %v1737_v34  ;;  %v1001_v12 = vrot.slane %v973_v4, %v12796_v29 }
  0x3d   : > { %v1021_v13 = vcombine.high %v1013_v45, %v1013_v45  ;;  %v1022_v15 = vcombine.high %v1020_v60, %v1020_v60  ;;  %v1753_v16 = vcombine.low %v1744_v5, %v1751_v35  ;;  %v1029_v20 = vrot.slane %v1013_v45, %v12796_v29 }
  0x3e   : > { %2392 = vst.msk [vmem:[#allocation2 + $0x10] sm:$0xff] %vm2389_vm0, %v1719_v25  ;;  %v1769_v17 = vcombine.low %v980_v6, %v994_v10  ;;  %v10614_v18 = vcombine.high %v980_v6, %v994_v10  ;;  %v1760_v22 = vrot.slane %v1752_v11, %v12796_v29  ;;  %v1771_v23 = vcombine.low %v987_v8, %v1001_v12 }
  0x3f   : > { %v10615_v26 = vcombine.high %v987_v8, %v1001_v12  ;;  %v1036_v28 = vrot.slane %v1020_v60, %v12796_v29  ;;  %v1767_v30 = vrot.slane %v1753_v16, %v12796_v29  ;;  %v1043_v39 = vrot.slane %v1021_v13, %v12796_v29  ;;  %v12911_v60 = vld [vmem:[%s16132_s1 + $0x40] sm:$0x1] }
  0x40   : > { %v1779_v33 = vrot.slane %v1769_v17, %v12796_v29  ;;  %v1786_v38 = vrot.slane %v10614_v18, %v12796_v29  ;;  %v1793_v40 = vrot.slane %v1771_v23, %v12796_v29  ;;  %v1050_v42 = vrot.slane %v1022_v15, %v12796_v29 }
  0x41   : > { %v1800_v41 = vrot.slane %v10615_v26, %v12796_v29  ;;  %v1055_v43 = vcombine.high %v12799_v31, %v12799_v31  ;;  %v1768_v46 = vcombine.low %v1760_v22, %v1767_v30  ;;  %v1818_v48 = vcombine.low %v1029_v20, %v1043_v39 }
  0x42   : > { %v1801_v47 = vcombine.low %v1779_v33, %v1786_v38  ;;  %v10616_v49 = vcombine.high %v1029_v20, %v1043_v39  ;;  %v1820_v51 = vcombine.low %v1036_v28, %v1050_v42  ;;  %v10617_v52 = vcombine.high %v1036_v28, %v1050_v42 }
  0x43   : > { %v1802_v50 = vcombine.low %v1793_v40, %v1800_v41  ;;  %v1062_v53 = vrot.slane %v12799_v31, %v12796_v29  ;;  %2393 = vst.msk [vmem:[#allocation2 + $0x18] sm:$0xff] %vm2389_vm0, %v1768_v46  ;;  %v1828_v55 = vrot.slane %v1818_v48, %v12796_v29  ;;  %v1069_v57 = vrot.slane %v1055_v43, %v12796_v29  ;;  %v706_v31 = vld [vmem:[%s16131_s0 + $0x40] sm:$0x1] }
  0x44   : > { %v1809_v54 = vrot.slane %v1801_v47, %v12796_v29  ;;  %v1835_v56 = vrot.slane %v10616_v49, %v12796_v29  ;;  %v1842_v44 = vrot.slane %v1820_v51, %v12796_v29  ;;  %v1849_v59 = vrot.slane %v10617_v52, %v12796_v29 }
  0x45   : > { %v1816_v58 = vrot.slane %v1802_v50, %v12796_v29  ;;  %v1070_v45 = vcombine.high %v1062_v53, %v1062_v53  ;;  %v1071_v62 = vcombine.high %v1069_v57, %v1069_v57  ;;  %v1078_v63 = vrot.slane %v1062_v53, %v12796_v29 }
  0x46   : > { %v1850_v61 = vcombine.low %v1828_v55, %v1835_v56  ;;  %v1085_v0 = vrot.slane %v1069_v57, %v12796_v29  ;;  %v1851_v2 = vcombine.low %v1842_v44, %v1849_v59  ;;  %v1104_v4 = vcombine.high %v12814_v36, %v12814_v36  ;;  %v708_v56 = vld [vmem:[%s16131_s0 + $0x50] sm:$0xff] }
  0x47   : > { %v1817_v1 = vcombine.low %v1809_v54, %v1816_v58  ;;  %v1092_v3 = vrot.slane %v1070_v45, %v12796_v29  ;;  %v1099_v34 = vrot.slane %v1071_v62, %v12796_v29  ;;  %v1111_v5 = vrot.slane %v12814_v36, %v12796_v29 }
  0x48   : > { %v1858_v24 = vrot.slane %v1850_v61, %v12796_v29  ;;  %v733_v6 = vadd.f32 %v12911_v60, %v706_v31  ;;  %v1865_v25 = vrot.slane %v1851_v2, %v12796_v29  ;;  %v1118_v10 = vrot.slane %v1104_v4, %v12796_v29 }
  0x49   : > { %2394 = vst.msk [vmem:[#allocation2 + $0x20] sm:$0xff] %vm2389_vm0, %v1817_v1  ;;  %v1867_v35 = vcombine.low %v1078_v63, %v1092_v3  ;;  %v10618_v8 = vcombine.high %v1078_v63, %v1092_v3  ;;  %v1869_v11 = vcombine.low %v1085_v0, %v1099_v34  ;;  %v10619_v12 = vcombine.high %v1085_v0, %v1099_v34  ;;  %v709_v3 = vld [vmem:[%s16131_s0 + $0x58] sm:$0xff] }
  0x4a   : > { %v1119_v13 = vcombine.high %v1111_v5, %v1111_v5  ;;  %v1127_v15 = vrot.slane %v1111_v5, %v12796_v29  ;;  %v1866_v16 = vcombine.low %v1858_v24, %v1865_v25  ;;  %v1120_v18 = vcombine.high %v1118_v10, %v1118_v10 }
  0x4b   : > { %v1877_v17 = vrot.slane %v1867_v35, %v12796_v29  ;;  %v1884_v36 = vrot.slane %v10618_v8, %v12796_v29  ;;  %v1891_v20 = vrot.slane %v1869_v11, %v12796_v29  ;;  %v1898_v22 = vrot.slane %v10619_v12, %v12796_v29 }
  0x4c   : > { %v1134_v23 = vrot.slane %v1118_v10, %v12796_v29  ;;  %v1141_v26 = vrot.slane %v1119_v13, %v12796_v29  ;;  %2395 = vst.msk [vmem:[#allocation2 + $0x28] sm:$0xff] %vm2389_vm0, %v1866_v16  ;;  %v1148_v30 = vrot.slane %v1120_v18, %v12796_v29  ;;  %v1159_v33 = vrot.slane %v733_v6, %v12796_v29 }
  0x4d   : > { %v1899_v28 = vcombine.low %v1877_v17, %v1884_v36  ;;  %v1167_v38 = vcombine.high %v12816_v37, %v12816_v37  ;;  %v1900_v39 = vcombine.low %v1891_v20, %v1898_v22  ;;  %v1174_v42 = vrot.slane %v12816_v37, %v12796_v29 }
  0x4e   : > { %v1916_v40 = vcombine.low %v1127_v15, %v1141_v26  ;;  %v10620_v41 = vcombine.high %v1127_v15, %v1141_v26  ;;  %v1918_v46 = vcombine.low %v1134_v23, %v1148_v30  ;;  %v10621_v47 = vcombine.high %v1134_v23, %v1148_v30 }
  0x4f   : > { %v1907_v43 = vrot.slane %v1899_v28, %v12796_v29  ;;  %v1166_v48 = vrot.slane %v1159_v33, %v12796_v29  ;;  %v1914_v49 = vrot.slane %v1900_v39, %v12796_v29  ;;  %v1181_v52 = vrot.slane %v1167_v38, %v12796_v29 }
  0x50   : > { %v1926_v50 = vrot.slane %v1916_v40, %v12796_v29  ;;  %v1933_v51 = vrot.slane %v10620_v41, %v12796_v29  ;;  %v1940_v53 = vrot.slane %v1918_v46, %v12796_v29  ;;  %v1947_v54 = vrot.slane %v10621_v47, %v12796_v29 }
  0x51   : > { %v1182_v55 = vcombine.high %v1174_v42, %v1174_v42  ;;  %v1190_v37 = vrot.slane %v1174_v42, %v12796_v29  ;;  %v1915_v57 = vcombine.low %v1907_v43, %v1914_v49  ;;  %v1183_v44 = vcombine.high %v1181_v52, %v1181_v52 }
  0x52   : > { %v1948_v58 = vcombine.low %v1926_v50, %v1933_v51  ;;  %v1197_v59 = vrot.slane %v1181_v52, %v12796_v29  ;;  %v1949_v45 = vcombine.low %v1940_v53, %v1947_v54  ;;  %v735_v2 = vadd.f32 %v12742_v7, %v708_v56 }
  0x53   : > { %v1204_v31 = vrot.slane %v1182_v55, %v12796_v29  ;;  %v1212_v61 = vcombine.high %v1190_v37, %v1190_v37  ;;  %v1965_v62 = vcombine.low %v1166_v48, %v1190_v37  ;;  %2396 = vst.msk [vmem:[#allocation2 + $0x30] sm:$0xff] %vm2389_vm0, %v1915_v57  ;;  %v1211_v0 = vrot.slane %v1183_v44, %v12796_v29  ;;  %v710_v57 = vld [vmem:[%s16131_s0 + $0x60] sm:$0xff] }
  0x54   : > { %v1956_v63 = vrot.slane %v1948_v58, %v12796_v29  ;;  %v1213_v1 = vcombine.high %v1197_v59, %v1197_v59  ;;  %v1963_v4 = vrot.slane %v1949_v45, %v12796_v29  ;;  %v1216_v35 = vcombine.high %v735_v2, %v735_v2 }
  0x55   : > { %v1214_v24 = vcombine.high %v1204_v31, %v1204_v31  ;;  %v1966_v34 = vcombine.low %v1204_v31, %v1212_v61  ;;  %v1975_v5 = vrot.slane %v1965_v62, %v12796_v29  ;;  %v1215_v25 = vcombine.high %v1211_v0, %v1211_v0 }
  0x56   : > { %v1968_v6 = vcombine.low %v1211_v0, %v1213_v1  ;;  %v1223_v8 = vrot.slane %v735_v2, %v12796_v29  ;;  %v1964_v10 = vcombine.low %v1956_v63, %v1963_v4  ;;  %v736_v7 = vadd.f32 %v12750_v9, %v709_v3  ;;  %v711_v0 = vld [vmem:[%s16131_s0 + $0x68] sm:$0xff] }
  0x57   : > { %v1967_v11 = vcombine.low %v1214_v24, %v1197_v59  ;;  %v1982_v12 = vrot.slane %v1966_v34, %v12796_v29  ;;  %v1230_v15 = vrot.slane %v1216_v35, %v12796_v29  ;;  %v737_v3 = vadd.f32 %v12760_v14, %v710_v57  ;;  %v712_v24 = vld [vmem:[%s16131_s0 + $0x70] sm:$0xff] }
  0x58   : > { %v1996_v13 = vrot.slane %v1968_v6, %v12796_v29  ;;  %v1231_v16 = vcombine.high %v1223_v8, %v1223_v8  ;;  %v1239_v17 = vrot.slane %v1223_v8, %v12796_v29  ;;  %2397 = vst.msk [vmem:[#allocation2 + $0x38] sm:$0xff] %vm2389_vm0, %v1964_v10  ;;  %v1265_v20 = vcombine.high %v736_v7, %v736_v7 }
  0x59   : > { %v1989_v36 = vrot.slane %v1967_v11, %v12796_v29  ;;  %v1997_v18 = vcombine.low %v1975_v5, %v1982_v12  ;;  %v1272_v22 = vrot.slane %v736_v7, %v12796_v29  ;;  %v1232_v23 = vcombine.high %v1230_v15, %v1230_v15 }
  0x5a   : > { %v1246_v26 = vrot.slane %v1230_v15, %v12796_v29  ;;  %v1253_v9 = vrot.slane %v1231_v16, %v12796_v29  ;;  %v1261_v28 = vcombine.high %v1239_v17, %v1239_v17  ;;  %v2014_v38 = vcombine.low %v1215_v25, %v1239_v17 }
  0x5b   : > { %v1998_v30 = vcombine.low %v1989_v36, %v1996_v13  ;;  %v2005_v33 = vrot.slane %v1997_v18, %v12796_v29  ;;  %v1279_v39 = vrot.slane %v1265_v20, %v12796_v29  ;;  %v1260_v40 = vrot.slane %v1232_v23, %v12796_v29 }
  0x5c   : > { %v1262_v41 = vcombine.high %v1246_v26, %v1246_v26  ;;  %v1263_v42 = vcombine.high %v1253_v9, %v1253_v9  ;;  %v2015_v43 = vcombine.low %v1253_v9, %v1261_v28  ;;  %v2024_v47 = vrot.slane %v2014_v38, %v12796_v29 }
  0x5d   : > { %v2012_v46 = vrot.slane %v1998_v30, %v12796_v29  ;;  %v1280_v48 = vcombine.high %v1272_v22, %v1272_v22  ;;  %v1281_v49 = vcombine.high %v1279_v39, %v1279_v39  ;;  %v1264_v53 = vcombine.high %v1260_v40, %v1260_v40 }
  0x5e   : > { %v2016_v50 = vcombine.low %v1263_v42, %v1246_v26  ;;  %v2017_v51 = vcombine.low %v1260_v40, %v1262_v41  ;;  %v2031_v52 = vrot.slane %v2015_v43, %v12796_v29  ;;  %v1288_v55 = vrot.slane %v1272_v22, %v12796_v29 }
  0x5f   : > { %v2013_v54 = vcombine.low %v2005_v33, %v2012_v46  ;;  %v1295_v37 = vrot.slane %v1279_v39, %v12796_v29  ;;  %v1302_v56 = vrot.slane %v1280_v48, %v12796_v29  ;;  %v1309_v45 = vrot.slane %v1281_v49, %v12796_v29 }
  0x60   : > { %v2038_v58 = vrot.slane %v2016_v50, %v12796_v29  ;;  %v2045_v44 = vrot.slane %v2017_v51, %v12796_v29  ;;  %v2046_v59 = vcombine.low %v2024_v47, %v2031_v52  ;;  %v1310_v31 = vcombine.high %v1288_v55, %v1288_v55 }
  0x61   : > { %2398 = vst.msk [vmem:[#allocation2 + $0x40] sm:$0xff] %vm2389_vm0, %v2013_v54  ;;  %v1311_v61 = vcombine.high %v1295_v37, %v1295_v37  ;;  %v1312_v62 = vcombine.high %v1302_v56, %v1302_v56  ;;  %v2063_v63 = vcombine.low %v1264_v53, %v1288_v55  ;;  %v1313_v4 = vcombine.high %v1309_v45, %v1309_v45 }
  0x62   : > { %v2047_v1 = vcombine.low %v2038_v58, %v2045_v44  ;;  %v2054_v2 = vrot.slane %v2046_v59, %v12796_v29  ;;  %v2064_v34 = vcombine.low %v1302_v56, %v1310_v31  ;;  %v1314_v8 = vcombine.high %v737_v3, %v737_v3 }
  0x63   : > { %v2065_v5 = vcombine.low %v1312_v62, %v1295_v37  ;;  %v2066_v6 = vcombine.low %v1309_v45, %v1311_v61  ;;  %v2073_v25 = vrot.slane %v2063_v63, %v12796_v29  ;;  %v1321_v10 = vrot.slane %v737_v3, %v12796_v29 }
  0x64   : > { %v2061_v35 = vrot.slane %v2047_v1, %v12796_v29  ;;  %v738_v11 = vadd.f32 %v12769_v19, %v711_v0  ;;  %v2080_v12 = vrot.slane %v2064_v34, %v12796_v29  ;;  %v739_v13 = vadd.f32 %v12777_v21, %v712_v24 }
  0x65   : > { %v2087_v14 = vrot.slane %v2065_v5, %v12796_v29  ;;  %v2094_v7 = vrot.slane %v2066_v6, %v12796_v29  ;;  %v1328_v16 = vrot.slane %v1314_v8, %v12796_v29  ;;  %v1329_v17 = vcombine.high %v1321_v10, %v1321_v10 }
  0x66   : > { %v2062_v15 = vcombine.low %v2054_v2, %v2061_v35  ;;  %v1337_v36 = vrot.slane %v1321_v10, %v12796_v29  ;;  %v2095_v18 = vcombine.low %v2073_v25, %v2080_v12  ;;  %v1363_v22 = vcombine.high %v738_v11, %v738_v11  ;;  %v713_v2 = vld [vmem:[%s16131_s0 + $0x78] sm:$0xff] }
  0x67   : > { %v2096_v20 = vcombine.low %v2087_v14, %v2094_v7  ;;  %v1370_v23 = vrot.slane %v738_v11, %v12796_v29  ;;  %v1330_v19 = vcombine.high %v1328_v16, %v1328_v16  ;;  %v1344_v26 = vrot.slane %v1328_v16, %v12796_v29 }
  0x68   : > { %2399 = vst.msk [vmem:[#allocation2 + $0x48] sm:$0xff] %vm2389_vm0, %v2062_v15  ;;  %v1351_v9 = vrot.slane %v1329_v17, %v12796_v29  ;;  %v1359_v28 = vcombine.high %v1337_v36, %v1337_v36  ;;  %v2103_v21 = vrot.slane %v2095_v18, %v12796_v29  ;;  %v2112_v33 = vcombine.low %v1313_v4, %v1337_v36 }
  0x69   : > { %v2110_v30 = vrot.slane %v2096_v20, %v12796_v29  ;;  %v1377_v38 = vrot.slane %v1363_v22, %v12796_v29  ;;  %v1358_v39 = vrot.slane %v1330_v19, %v12796_v29  ;;  %v1360_v40 = vcombine.high %v1344_v26, %v1344_v26 }
  0x6a   : > { %v1361_v41 = vcombine.high %v1351_v9, %v1351_v9  ;;  %v2113_v42 = vcombine.low %v1351_v9, %v1359_v28  ;;  %v2122_v46 = vrot.slane %v2112_v33, %v12796_v29  ;;  %v1378_v47 = vcombine.high %v1370_v23, %v1370_v23 }
  0x6b   : > { %v2111_v43 = vcombine.low %v2103_v21, %v2110_v30  ;;  %v1379_v48 = vcombine.high %v1377_v38, %v1377_v38  ;;  %v2115_v50 = vcombine.low %v1358_v39, %v1360_v40  ;;  %v1362_v52 = vcombine.high %v1358_v39, %v1358_v39 }
  0x6c   : > { %v2114_v49 = vcombine.low %v1361_v41, %v1344_v26  ;;  %v2129_v51 = vrot.slane %v2113_v42, %v12796_v29  ;;  %v1386_v53 = vrot.slane %v1370_v23, %v12796_v29  ;;  %v1393_v54 = vrot.slane %v1377_v38, %v12796_v29 }
  0x6d   : > { %2400 = vst.msk [vmem:[#allocation2 + $0x50] sm:$0xff] %vm2389_vm0, %v2111_v43  ;;  %v1400_v55 = vrot.slane %v1378_v47, %v12796_v29  ;;  %v1407_v37 = vrot.slane %v1379_v48, %v12796_v29  ;;  %v2143_v57 = vrot.slane %v2115_v50, %v12796_v29  ;;  %v1412_v44 = vcombine.high %v739_v13, %v739_v13 }
  0x6e   : > { %v2136_v56 = vrot.slane %v2114_v49, %v12796_v29  ;;  %v2144_v58 = vcombine.low %v2122_v46, %v2129_v51  ;;  %v1408_v59 = vcombine.high %v1386_v53, %v1386_v53  ;;  %v1409_v45 = vcombine.high %v1393_v54, %v1393_v54 }
  0x6f   : > { %v1410_v31 = vcombine.high %v1400_v55, %v1400_v55  ;;  %v2161_v61 = vcombine.low %v1362_v52, %v1386_v53  ;;  %v1411_v0 = vcombine.high %v1407_v37, %v1407_v37  ;;  %v1419_v1 = vrot.slane %v739_v13, %v12796_v29 }
  0x70   : > { %v2145_v62 = vcombine.low %v2136_v56, %v2143_v57  ;;  %v2152_v63 = vrot.slane %v2144_v58, %v12796_v29  ;;  %v2162_v3 = vcombine.low %v1400_v55, %v1408_v59  ;;  %v2164_v24 = vcombine.low %v1407_v37, %v1409_v45 }
  0x71   : > { %v2163_v4 = vcombine.low %v1410_v31, %v1393_v54  ;;  %v2171_v34 = vrot.slane %v2161_v61, %v12796_v29  ;;  %v1426_v6 = vrot.slane %v1412_v44, %v12796_v29  ;;  %v1427_v25 = vcombine.high %v1419_v1, %v1419_v1 }
  0x72   : > { %v2159_v5 = vrot.slane %v2145_v62, %v12796_v29  ;;  %v1435_v35 = vrot.slane %v1419_v1, %v12796_v29  ;;  %v2178_v8 = vrot.slane %v2162_v3, %v12796_v29  ;;  %v2192_v11 = vrot.slane %v2164_v24, %v12796_v29 }
  0x73   : > { %v2185_v10 = vrot.slane %v2163_v4, %v12796_v29  ;;  %v740_v12 = vadd.f32 %v12791_v27, %v713_v2  ;;  %v1428_v7 = vcombine.high %v1426_v6, %v1426_v6  ;;  %v1442_v13 = vrot.slane %v1426_v6, %v12796_v29  ;;  %v714_v27 = vld [vmem:[%s16131_s0 + $0x80] sm:$0xff] }
  0x74   : > { %v2160_v14 = vcombine.low %v2152_v63, %v2159_v5  ;;  %v1449_v15 = vrot.slane %v1427_v25, %v12796_v29  ;;  %v2193_v16 = vcombine.low %v2171_v34, %v2178_v8  ;;  %v1457_v36 = vcombine.high %v1435_v35, %v1435_v35  ;;  %v715_v34 = vld [vmem:[%s16131_s0 + $0x88] sm:$0x1] }
  0x75   : > { %v2194_v17 = vcombine.low %v2185_v10, %v2192_v11  ;;  %v2210_v18 = vcombine.low %v1411_v0, %v1435_v35  ;;  %v1456_v20 = vrot.slane %v1428_v7, %v12796_v29  ;;  %v1458_v22 = vcombine.high %v1442_v13, %v1442_v13 }
  0x76   : > { %2401 = vst.msk [vmem:[#allocation2 + $0x58] sm:$0xff] %vm2389_vm0, %v2160_v14  ;;  %v1459_v23 = vcombine.high %v1449_v15, %v1449_v15  ;;  %v1461_v19 = vcombine.high %v740_v12, %v740_v12  ;;  %v2201_v26 = vrot.slane %v2193_v16, %v12796_v29  ;;  %v2211_v28 = vcombine.low %v1449_v15, %v1457_v36 }
  0x77   : > { %v2208_v9 = vrot.slane %v2194_v17, %v12796_v29  ;;  %v2220_v21 = vrot.slane %v2210_v18, %v12796_v29  ;;  %v2213_v33 = vcombine.low %v1456_v20, %v1458_v22  ;;  %v1460_v38 = vcombine.high %v1456_v20, %v1456_v20 }
  0x78   : > { %v2212_v30 = vcombine.low %v1459_v23, %v1442_v13  ;;  %v1468_v39 = vrot.slane %v740_v12, %v12796_v29  ;;  %v2227_v41 = vrot.slane %v2211_v28, %v12796_v29  ;;  %v1475_v42 = vrot.slane %v1461_v19, %v12796_v29 }
  0x79   : > { %v2209_v40 = vcombine.low %v2201_v26, %v2208_v9  ;;  %v741_v43 = vadd.f32 %v12804_v32, %v714_v27  ;;  %v2241_v47 = vrot.slane %v2213_v33, %v12796_v29  ;;  %v742_v15 = vadd.f32 %v12911_v60, %v715_v34 }
  0x7a   : > { %v2234_v46 = vrot.slane %v2212_v30, %v12796_v29  ;;  %v1476_v48 = vcombine.high %v1468_v39, %v1468_v39  ;;  %v1484_v49 = vrot.slane %v1468_v39, %v12796_v29  ;;  %v2242_v50 = vcombine.low %v2220_v21, %v2227_v41 }
  0x7b   : > { %2402 = vst.msk [vmem:[#allocation2 + $0x60] sm:$0xff] %vm2389_vm0, %v2209_v40  ;;  %v1477_v51 = vcombine.high %v1475_v42, %v1475_v42  ;;  %v1491_v52 = vrot.slane %v1475_v42, %v12796_v29  ;;  %v1510_v53 = vcombine.high %v741_v43, %v741_v43  ;;  %v1517_v44 = vrot.slane %v741_v43, %v12796_v29 }
  0x7c   : > { %v2243_v54 = vcombine.low %v2234_v46, %v2241_v47  ;;  %v1498_v55 = vrot.slane %v1476_v48, %v12796_v29  ;;  %v1506_v37 = vcombine.high %v1484_v49, %v1484_v49  ;;  %v2259_v56 = vcombine.low %v1460_v38, %v1484_v49 }
  0x7d   : > { %v2250_v32 = vrot.slane %v2242_v50, %v12796_v29  ;;  %v1505_v57 = vrot.slane %v1477_v51, %v12796_v29  ;;  %v1507_v58 = vcombine.high %v1491_v52, %v1491_v52  ;;  %v1524_v0 = vrot.slane %v1510_v53, %v12796_v29 }
  0x7e   : > { %v2257_v59 = vrot.slane %v2243_v54, %v12796_v29  ;;  %v1508_v45 = vcombine.high %v1498_v55, %v1498_v55  ;;  %v2260_v31 = vcombine.low %v1498_v55, %v1506_v37  ;;  %v2269_v61 = vrot.slane %v2259_v56, %v12796_v29 }
  0x7f   : > { %v2262_v62 = vcombine.low %v1505_v57, %v1507_v58  ;;  %v1509_v63 = vcombine.high %v1505_v57, %v1505_v57  ;;  %v1525_v1 = vcombine.high %v1517_v44, %v1517_v44  ;;  %v1533_v24 = vrot.slane %v1517_v44, %v12796_v29 }
  0x80   : > { %v2258_v2 = vcombine.low %v2250_v32, %v2257_v59  ;;  %v2261_v3 = vcombine.low %v1508_v45, %v1491_v52  ;;  %v2276_v4 = vrot.slane %v2260_v31, %v12796_v29  ;;  %v1526_v6 = vcombine.high %v1524_v0, %v1524_v0 }
  0x81   : > { %v2290_v5 = vrot.slane %v2262_v62, %v12796_v29  ;;  %v1540_v25 = vrot.slane %v1524_v0, %v12796_v29  ;;  %v1547_v35 = vrot.slane %v1525_v1, %v12796_v29  ;;  %v1555_v11 = vcombine.high %v1533_v24, %v1533_v24 }
  0x82   : > { %2403 = vst.msk [vmem:[#allocation2 + $0x68] sm:$0xff] %vm2389_vm0, %v2258_v2  ;;  %v2283_v8 = vrot.slane %v2261_v3, %v12796_v29  ;;  %v2291_v10 = vcombine.low %v2269_v61, %v2276_v4  ;;  %v2308_v12 = vcombine.low %v1509_v63, %v1533_v24  ;;  %v1554_v14 = vrot.slane %v1526_v6, %v12796_v29 }
  0x83   : > { %v1556_v7 = vcombine.high %v1540_v25, %v1540_v25  ;;  %v1557_v13 = vcombine.high %v1547_v35, %v1547_v35  ;;  %v2309_v36 = vcombine.low %v1547_v35, %v1555_v11  ;;  %v1565_v19 = vrot.slane %v742_v15, %v12796_v29 }
  0x84   : > { %v2292_v16 = vcombine.low %v2283_v8, %v2290_v5  ;;  %v2299_v17 = vrot.slane %v2291_v10, %v12796_v29  ;;  %v2318_v18 = vrot.slane %v2308_v12, %v12796_v29  ;;  %v1558_v23 = vcombine.high %v1554_v14, %v1554_v14 }
  0x85   : > { %v2310_v20 = vcombine.low %v1557_v13, %v1540_v25  ;;  %v2311_v22 = vcombine.low %v1554_v14, %v1556_v7  ;;  %v2325_v26 = vrot.slane %v2309_v36, %v12796_v29  ;;  %v1572_v60 = vrot.slane %v1565_v19, %v12796_v29 }
  0x86   : > { %v2306_v27 = vrot.slane %v2292_v16, %v12796_v29 }
  0x87   : > { %v2332_v9 = vrot.slane %v2310_v20, %v12796_v29  ;;  %v2339_v28 = vrot.slane %v2311_v22, %v12796_v29  ;;  %v2340_v30 = vcombine.low %v2318_v18, %v2325_v26  ;;  %v2357_v38 = vcombine.low %v1558_v23, %v1572_v60 }
  0x88   : > { %v2307_v21 = vcombine.low %v2299_v17, %v2306_v27 }
  0x89   : > { %v2341_v33 = vcombine.low %v2332_v9, %v2339_v28  ;;  %v2348_v39 = vrot.slane %v2340_v30, %v12796_v29  ;;  %v2364_v41 = vrot.slane %v2357_v38, %v12796_v29 }
  0x8a   : > { %2404 = vst.msk [vmem:[#allocation2 + $0x70] sm:$0xff] %vm2389_vm0, %v2307_v21 }
  0x8b   : > { %v2355_v40 = vrot.slane %v2341_v33, %v12796_v29  ;;  %v2371_v43 = vrot.slane %v2364_v41, %v12796_v29 }
  0x8d   : > { %v2356_v42 = vcombine.low %v2348_v39, %v2355_v40  ;;  %2407 = vst.msk [vmem:[#allocation2 + $0x80] sm:$0x3] %vm2406_vm1, %v2371_v43 }
  0x8f   : > { %2405 = vst.msk [vmem:[#allocation2 + $0x78] sm:$0xff] %vm2389_vm0, %v2356_v42 }
  0x90 PF: > { %v2408_v46 = vld [vmem:[#allocation2] sm:$0xff]  ;;  %vm2425_vm2 = vcmask 261120   ;;  %v2410_v47 = vld [vmem:[#allocation2 + $0x10] sm:$0xff]  ;;  %v2409_v48 = vld [vmem:[#allocation2 + $0x8] sm:$0xff]  ;;  %vm2474_vm3 = vcmask 254976   ;;  %s16204_s16 = scalar_lea.vmem %s16133_s2, %s12675_s22  ;;  %s16205_s21 = sld [smem:[#allocation77_spill]] }
  0x91   : > { %v2426_v49 = vsel %vm2425_vm2, %v2408_v46, 0.0  ;;  %v2432_v50 = vsel %vm2425_vm2, %v2410_v47, 0.0  ;;  %v2411_v51 = vld [vmem:[#allocation2 + $0x18] sm:$0xff]  ;;  %v2429_v52 = vsel %vm2425_vm2, %v2409_v48, 0.0  ;;  %v13094_v29 = vld [vmem:[#allocation2 + $0x20] sm:$0xff]  ;;  %v13096_v54 = vld [vmem:[#allocation2 + $0x28] sm:$0xff]  ;;  %s16409_s26 = scalar_lea.vmem %s16137_s6, %s12675_s22  ;;  %s16410_s20 = scalar_lea.vmem %s16138_s7, %s12675_s22 }
  0x92   : > { %2427 = vadd.xlane.f32.xlu0 %v2426_v49  ;;  %2433 = vadd.xlane.f32.xlu1 %v2432_v50  ;;  %v2435_v53 = vsel %vm2425_vm2, %v2411_v51, 0.0  ;;  %v13098_v55 = vld [vmem:[#allocation2 + $0x30] sm:$0xff]  ;;  %v13100_v37 = vld [vmem:[#allocation2 + $0x38] sm:$0xff]  ;;  %v13102_v56 = vld [vmem:[#allocation2 + $0x40] sm:$0xff]  ;;  %v2438_v58 = vsel %vm2425_vm2, %v13094_v29, 0.0  ;;  %v2441_v44 = vsel %vm2425_vm2, %v13096_v54, 0.0 }
  0x93   : > { %v13104_v32 = vld [vmem:[#allocation2 + $0x48] sm:$0xff]  ;;  %v13106_v57 = vld [vmem:[#allocation2 + $0x50] sm:$0xff]  ;;  %v13112_v59 = vld [vmem:[#allocation2 + $0x58] sm:$0xff]  ;;  %v2444_v0 = vsel %vm2425_vm2, %v13098_v55, 0.0  ;;  %v2447_v1 = vsel %vm2425_vm2, %v13100_v37, 0.0  ;;  %v2450_v2 = vsel %vm2425_vm2, %v13102_v56, 0.0 }
  0x94   : > { %v13114_v45 = vld [vmem:[#allocation2 + $0x60] sm:$0xff]  ;;  %v13116_v31 = vld [vmem:[#allocation2 + $0x68] sm:$0xff]  ;;  %v13118_v61 = vld [vmem:[#allocation2 + $0x70] sm:$0xff]  ;;  %v2453_v3 = vsel %vm2425_vm2, %v13104_v32, 0.0  ;;  %v2456_v4 = vsel %vm2425_vm2, %v13106_v57, 0.0  ;;  %v2459_v24 = vsel %vm2425_vm2, %v13112_v59, 0.0 }
  0x95   : > { %v13122_v63 = vld [vmem:[#allocation2 + $0x80] sm:$0x3]  ;;  %v2462_v34 = vsel %vm2425_vm2, %v13114_v45, 0.0  ;;  %v2465_v5 = vsel %vm2425_vm2, %v13116_v31, 0.0  ;;  %v2468_v6 = vsel %vm2425_vm2, %v13118_v61, 0.0  ;;  %vm12569_vm4 = vmmov 0  }
  0x96   : > { %2430 = vadd.xlane.f32.xlu0 %v2429_v52  ;;  %2436 = vadd.xlane.f32.xlu1 %v2435_v53  ;;  %v13120_v62 = vld [vmem:[#allocation2 + $0x78] sm:$0xff]  ;;  %v2475_v35 = vsel %vm2474_vm3, %v13122_v63, 0.0  ;;  %s16206_s19 = scalar_lea.vmem %s16205_s21, %s12675_s22  ;;  %vm3811_vm5 = vcmask 1040384   ;;  %vm4942_vm6 = vsmask.f32 7424  ;;  %vm3690_vm7 = vcmask 531456  }
  0x97   : > { %v2471_v25 = vsel %vm2425_vm2, %v13120_v62, 0.0  ;;  %vm3715_vm8 = vcmask 524288   ;;  %vm3935_vm9 = vsmask.f32 256  ;;  %vm5451_vm11 = vcmask 1043456   ;;  %p10906_p6 = scmp.ne.s32.totalorder %s12556_s18, 1 }
  0x98   : > { %vm14916_vm10 = vmand %vm3811_vm5, %vm3935_vm9  ;;  %vm5452_vm12 = vsmask.f32 7938  ;;  %vm5365_vm14 = vsmask.f32 4368 }
  0x99   : > { %vm15153_vm13 = vmand %vm5451_vm11, %vm5452_vm12 }
  0x9a   : > { %2439 = vadd.xlane.f32.xlu0 %v2438_v58  ;;  %2442 = vadd.xlane.f32.xlu1 %v2441_v44  ;;  %vm15162_vm15 = vmor %vm3935_vm9, %vm5365_vm14 }
  0x9e   : > { %2445 = vadd.xlane.f32.xlu0 %v2444_v0  ;;  %2448 = vadd.xlane.f32.xlu1 %v2447_v1 }
  0xa2   : > { %2451 = vadd.xlane.f32.xlu0 %v2450_v2  ;;  %2454 = vadd.xlane.f32.xlu1 %v2453_v3 }
  0xa6   : > { %2457 = vadd.xlane.f32.xlu0 %v2456_v4  ;;  %2460 = vadd.xlane.f32.xlu1 %v2459_v24 }
  0xaa   : > { %2463 = vadd.xlane.f32.xlu0 %v2462_v34  ;;  %2466 = vadd.xlane.f32.xlu1 %v2465_v5 }
  0xae   : > { %2469 = vadd.xlane.f32.xlu0 %v2468_v6  ;;  %2472 = vadd.xlane.f32.xlu1 %v2471_v25 }
  0xb2   : > { %2476 = vadd.xlane.f32.xlu0 %v2475_v35 }
 0x11b   : > { %v2428_v8 = vpop.xlane.xlu0 %2427  ;;  %v2434_v10 = vpop.xlane.xlu1 %2433 }
 0x11c   : > { %v2479_v11 = vmul.f32 0.03125, %v2428_v8  ;;  %v2481_v12 = vmul.f32 0.03125, %v2434_v10 }
 0x11e   : > { %v13146_v14 = vsub.f32 %v2408_v46, %v2479_v11  ;;  %v13148_v7 = vsub.f32 %v2410_v47, %v2481_v12 }
 0x11f   : > { %v2431_v13 = vpop.xlane.xlu0 %2430  ;;  %v2437_v15 = vpop.xlane.xlu1 %2436 }
 0x120   : > { %v2480_v16 = vmul.f32 0.03125, %v2431_v13  ;;  %v2482_v17 = vmul.f32 0.03125, %v2437_v15  ;;  %v2513_v36 = vmul.f32 %v13146_v14, %v13146_v14  ;;  %v2515_v18 = vmul.f32 %v13148_v7, %v13148_v7 }
 0x122   : > { %v13154_v20 = vsub.f32 %v2409_v48, %v2480_v16  ;;  %v13156_v22 = vsub.f32 %v2411_v51, %v2482_v17  ;;  %v2530_v23 = vsel %vm2425_vm2, %v2513_v36, 0.0  ;;  %v2536_v26 = vsel %vm2425_vm2, %v2515_v18, 0.0 }
 0x123   : > { %2531 = vadd.xlane.f32.xlu1 %v2530_v23  ;;  %v2440_v19 = vpop.xlane.xlu0 %2439  ;;  %v2443_v27 = vpop.xlane.xlu1 %2442 }
 0x124   : > { %v2483_v9 = vmul.f32 0.03125, %v2440_v19  ;;  %v2484_v28 = vmul.f32 0.03125, %v2443_v27  ;;  %v2514_v60 = vmul.f32 %v13154_v20, %v13154_v20  ;;  %v2516_v21 = vmul.f32 %v13156_v22, %v13156_v22 }
 0x126   : > { %v13165_v30 = vsub.f32 %v13094_v29, %v2483_v9  ;;  %v13168_v33 = vsub.f32 %v13096_v54, %v2484_v28  ;;  %v2533_v38 = vsel %vm2425_vm2, %v2514_v60, 0.0  ;;  %v2539_v41 = vsel %vm2425_vm2, %v2516_v21, 0.0 }
 0x127   : > { %2537 = vadd.xlane.f32.xlu1 %v2536_v26  ;;  %2534 = vadd.xlane.f32.xlu0 %v2533_v38  ;;  %v2446_v39 = vpop.xlane.xlu0 %2445  ;;  %v2449_v40 = vpop.xlane.xlu1 %2448 }
 0x128   : > { %v2485_v42 = vmul.f32 0.03125, %v2446_v39  ;;  %v2486_v43 = vmul.f32 0.03125, %v2449_v40  ;;  %v2517_v46 = vmul.f32 %v13165_v30, %v13165_v30  ;;  %v2518_v47 = vmul.f32 %v13168_v33, %v13168_v33 }
 0x12a   : > { %v13177_v48 = vsub.f32 %v13098_v55, %v2485_v42  ;;  %v13180_v49 = vsub.f32 %v13100_v37, %v2486_v43  ;;  %v2542_v50 = vsel %vm2425_vm2, %v2517_v46, 0.0  ;;  %v2545_v53 = vsel %vm2425_vm2, %v2518_v47, 0.0  ;;  %v12003_v42 = vld [vmem:[%s12699_s14 + $0x64] ss:$48 sps:$4 sm:$0xff]   ;;  %v12005_v43 = vld [vmem:[%s12699_s14 + $0x6c] ss:$48 sps:$4 sm:$0xff]  }
 0x12b   : > { %2540 = vadd.xlane.f32.xlu0 %v2539_v41  ;;  %2543 = vadd.xlane.f32.xlu1 %v2542_v50  ;;  %v2452_v51 = vpop.xlane.xlu0 %2451  ;;  %v2455_v52 = vpop.xlane.xlu1 %2454  ;;  %v12008_v46 = vld [vmem:[%s12699_s14 + $0x68] ss:$48 sps:$4 sm:$0xff]   ;;  %v12009_v47 = vld [vmem:[%s12699_s14 + $0x4] ss:$48 sps:$4 sm:$0xff]   ;;  %v12011_v50 = vld [vmem:[%s12699_s14 + $0xc] ss:$48 sps:$4 sm:$0xff]  }
 0x12c   : > { %v2487_v29 = vmul.f32 0.03125, %v2452_v51  ;;  %v2488_v54 = vmul.f32 0.03125, %v2455_v52  ;;  %v2519_v58 = vmul.f32 %v13177_v48, %v13177_v48  ;;  %v2520_v55 = vmul.f32 %v13180_v49, %v13180_v49  ;;  %2889 = vmatprep.subr.bf16.mxu0 %v12003_v42  ;;  %3010 = vmatprep.subr.bf16.mxu1 %v12005_v43  ;;  %v12013_v51 = vld [vmem:[%s12699_s14] ss:$48 sps:$4 sm:$0xff]   ;;  %v12014_v52 = vld [vmem:[%s12699_s14 + $0x8] ss:$48 sps:$4 sm:$0xff]  }
 0x12d   : > { %3011 = vmatpush1.bf16.msra.mxu1 %v12008_v46 }
 0x12e   : > { %v13189_v44 = vsub.f32 %v13102_v56, %v2487_v29  ;;  %v13192_v37 = vsub.f32 %v13104_v32, %v2488_v54  ;;  %v2548_v0 = vsel %vm2425_vm2, %v2519_v58, 0.0  ;;  %v2551_v3 = vsel %vm2425_vm2, %v2520_v55, 0.0  ;;  %3012 = vmatprep.subr.bf16.mxu1 %v12011_v50  ;;  %v12017_v29 = vld [vmem:[%s12699_s14 + $0x74] ss:$48 sps:$4 sm:$0xff]   ;;  %v12020_v54 = vld [vmem:[%s12699_s14 + $0x7c] ss:$48 sps:$4 sm:$0xff]  }
 0x12f   : > { %2546 = vadd.xlane.f32.xlu0 %v2545_v53  ;;  %2549 = vadd.xlane.f32.xlu1 %v2548_v0  ;;  %v2458_v1 = vpop.xlane.xlu0 %2457  ;;  %v2461_v2 = vpop.xlane.xlu1 %2460  ;;  %v12567_v53 = vmov 0  }
 0x130   : > { %v2489_v4 = vmul.f32 0.03125, %v2458_v1  ;;  %v2490_v24 = vmul.f32 0.03125, %v2461_v2  ;;  %v2521_v34 = vmul.f32 %v13189_v44, %v13189_v44  ;;  %v2522_v56 = vmul.f32 %v13192_v37, %v13192_v37  ;;  %2909 = vmatprep.mubr.bf16.mxu0 %v12567_v53  ;;  %3030 = vmatprep.mubr.bf16.mxu1 %v12567_v53 }
 0x131   : > { %3013 = vmatpush1.bf16.msra.mxu1 %v12014_v52 }
 0x132   : > { %v13201_v5 = vsub.f32 %v13106_v57, %v2489_v4  ;;  %v13204_v32 = vsub.f32 %v13112_v59, %v2490_v24  ;;  %v2554_v6 = vsel %vm2425_vm2, %v2521_v34, 0.0  ;;  %v2557_v8 = vsel %vm2425_vm2, %v2522_v56, 0.0  ;;  %3252 = vmatprep.subr.bf16.mxu1 %v12020_v54 }
 0x133   : > { %2552 = vadd.xlane.f32.xlu0 %v2551_v3  ;;  %2555 = vadd.xlane.f32.xlu1 %v2554_v6  ;;  %v2464_v25 = vpop.xlane.xlu0 %2463  ;;  %v2467_v35 = vpop.xlane.xlu1 %2466 }
 0x134   : > { %v2491_v10 = vmul.f32 0.03125, %v2464_v25  ;;  %v2492_v11 = vmul.f32 0.03125, %v2467_v35  ;;  %v2523_v12 = vmul.f32 %v13201_v5, %v13201_v5  ;;  %v2524_v57 = vmul.f32 %v13204_v32, %v13204_v32 }
 0x136   : > { %v13213_v13 = vsub.f32 %v13114_v45, %v2491_v10  ;;  %v13216_v59 = vsub.f32 %v13116_v31, %v2492_v11  ;;  %v2560_v15 = vsel %vm2425_vm2, %v2523_v12, 0.0  ;;  %v2563_v36 = vsel %vm2425_vm2, %v2524_v57, 0.0 }
 0x137   : > { %2558 = vadd.xlane.f32.xlu0 %v2557_v8  ;;  %2561 = vadd.xlane.f32.xlu1 %v2560_v15  ;;  %v2470_v16 = vpop.xlane.xlu0 %2469  ;;  %v2473_v17 = vpop.xlane.xlu1 %2472 }
 0x138   : > { %v2493_v18 = vmul.f32 0.03125, %v2470_v16  ;;  %v2494_v23 = vmul.f32 0.03125, %v2473_v17  ;;  %v2525_v19 = vmul.f32 %v13213_v13, %v13213_v13  ;;  %v2526_v45 = vmul.f32 %v13216_v59, %v13216_v59 }
 0x13a   : > { %v13225_v27 = vsub.f32 %v13118_v61, %v2493_v18  ;;  %v13228_v31 = vsub.f32 %v13120_v62, %v2494_v23  ;;  %v2566_v26 = vsel %vm2425_vm2, %v2525_v19, 0.0  ;;  %v2569_v60 = vsel %vm2425_vm2, %v2526_v45, 0.0 }
 0x13b   : > { %2564 = vadd.xlane.f32.xlu0 %v2563_v36  ;;  %2567 = vadd.xlane.f32.xlu1 %v2566_v26  ;;  %v2477_v9 = vpop.xlane.xlu0 %2476  ;;  %v13262_v26 = vld [vmem:[%s16204_s16] ss:$0 sm:$0xff]  ;;  %s16411_s16 = sld [smem:[#allocation79_spill]] (!%p10906_p6) }
 0x13c   : > { %v2495_v28 = vmul.f32 0.03125, %v2477_v9  ;;  %v2527_v21 = vmul.f32 %v13225_v27, %v13225_v27  ;;  %v2528_v61 = vmul.f32 %v13228_v31, %v13228_v31 }
 0x13e   : > { %v13237_v62 = vsub.f32 %v13122_v63, %v2495_v28  ;;  %v2572_v38 = vsel %vm2425_vm2, %v2527_v21, 0.0  ;;  %v2575_v39 = vsel %vm2425_vm2, %v2528_v61, 0.0  ;;  %v12007_v63 = vld [vmem:[%s12699_s14 + $0x60] ss:$48 sps:$4 sm:$0xff]  }
 0x13f   : > { %2570 = vadd.xlane.f32.xlu0 %v2569_v60  ;;  %2573 = vadd.xlane.f32.xlu1 %v2572_v38 }
 0x140   : > { %v2529_v40 = vmul.f32 %v13237_v62, %v13237_v62  ;;  %2890 = vmatpush1.bf16.msra.mxu0 %v12007_v63 }
 0x141   : > { %2891 = vmatprep.subr.bf16.mxu0 %v12009_v47 }
 0x142   : > { %v2578_v41 = vsel %vm2474_vm3, %v2529_v40, 0.0 }
 0x143   : > { %2576 = vadd.xlane.f32.xlu0 %v2575_v39  ;;  %2579 = vadd.xlane.f32.xlu1 %v2578_v41 }
 0x144   : > { %2892 = vmatpush1.bf16.msra.mxu0 %v12013_v51 }
 0x145   : > { %3131 = vmatprep.subr.bf16.mxu0 %v12017_v29 }
 0x1ac   : > { %v2532_v58 = vpop.xlane.xlu1 %2531 }
 0x1ad   : > { %v2581_v55 = vmul.f32 0.03125, %v2532_v58  ;;  %v12015_v58 = vld [vmem:[%s12699_s14 + $0x70] ss:$48 sps:$4 sm:$0xff]  }
 0x1af   : > { %v2598_v0 = vadd.f32 1e-05, %v2581_v55  ;;  %v12018_v55 = vld [vmem:[%s12699_s14 + $0x78] ss:$48 sps:$4 sm:$0xff]  }
 0x1b0   : > { %v2538_v1 = vpop.xlane.xlu1 %2537  ;;  %v2535_v2 = vpop.xlane.xlu0 %2534 }
 0x1b1   : > { %12133 = vrsqrt.f32 %v2598_v0  ;;  %v2583_v3 = vmul.f32 0.03125, %v2538_v1  ;;  %v2582_v4 = vmul.f32 0.03125, %v2535_v2  ;;  %v12023_v2 = vld [vmem:[%s12699_s14 + $0x14] ss:$48 sps:$4 sm:$0xff]  }
 0x1b3   : > { %v2599_v24 = vadd.f32 1e-05, %v2582_v4  ;;  %v2600_v34 = vadd.f32 1e-05, %v2583_v3  ;;  %v12026_v3 = vld [vmem:[%s12699_s14 + $0x1c] ss:$48 sps:$4 sm:$0xff]  }
 0x1b4   : > { %v2544_v56 = vpop.xlane.xlu1 %2543  ;;  %v2541_v6 = vpop.xlane.xlu0 %2540 }
 0x1b5   : > { %v2584_v25 = vmul.f32 0.03125, %v2541_v6  ;;  %12135 = vrsqrt.f32 %v2599_v24  ;;  %v2585_v8 = vmul.f32 0.03125, %v2544_v56 }
 0x1b6   : > { %12137 = vrsqrt.f32 %v2600_v34 }
 0x1b7   : > { %v2601_v35 = vadd.f32 1e-05, %v2584_v25  ;;  %v2602_v15 = vadd.f32 1e-05, %v2585_v8  ;;  %v12024_v8 = vld [vmem:[%s12699_s14 + $0x18] ss:$48 sps:$4 sm:$0xff]  }
 0x1b8   : > { %v2550_v10 = vpop.xlane.xlu1 %2549  ;;  %v2547_v11 = vpop.xlane.xlu0 %2546 }
 0x1b9   : > { %v2586_v12 = vmul.f32 0.03125, %v2547_v11  ;;  %12139 = vrsqrt.f32 %v2601_v35  ;;  %v2587_v23 = vmul.f32 0.03125, %v2550_v10  ;;  %v12021_v35 = vld [vmem:[%s12699_s14 + $0x10] ss:$48 sps:$4 sm:$0xff]  }
 0x1bb   : > { %v2603_v57 = vadd.f32 1e-05, %v2586_v12  ;;  %v2604_v60 = vadd.f32 1e-05, %v2587_v23 }
 0x1bc   : > { %v2556_v16 = vpop.xlane.xlu1 %2555  ;;  %v2553_v17 = vpop.xlane.xlu0 %2552 }
 0x1bd   : > { %12141 = vrsqrt.f32 %v2603_v57  ;;  %v2588_v18 = vmul.f32 0.03125, %v2553_v17  ;;  %v12029_v17 = vld [vmem:[%s12699_s14 + $0x84] ss:$48 sps:$4 sm:$0xff]  }
 0x1be   : > { %v12134_v36 = vpop.eup %12133  ;;  %12143 = vrsqrt.f32 %v2602_v15 }
 0x1bf   : > { %v2632_v19 = vmul.f32 %v12134_v36, %v13146_v14  ;;  %v2605_v9 = vadd.f32 1e-05, %v2588_v18  ;;  %v13273_v14 = vld [vmem:[%s16206_s19] ss:$0 sm:$0xff]  ;;  %v12032_v36 = vld [vmem:[%s12699_s14 + $0x8c] ss:$48 sps:$4 sm:$0xff]  }
 0x1c0   : > { %v2562_v45 = vpop.xlane.xlu1 %2561  ;;  %v2559_v21 = vpop.xlane.xlu0 %2558  ;;  %s16412_s19 = sld [smem:[#allocation80_spill]] (!%p10906_p6) }
 0x1c1   : > { %v2656_v61 = vmul.f32 %v13262_v26, %v2632_v19  ;;  %12145 = vrsqrt.f32 %v2605_v9  ;;  %v2590_v42 = vmul.f32 0.03125, %v2559_v21  ;;  %v2591_v12 = vmul.f32 0.03125, %v2562_v45 }
 0x1c2   : > { %v12136_v28 = vpop.eup %12135  ;;  %12147 = vrsqrt.f32 %v2604_v60 }
 0x1c3   : > { %v2633_v38 = vmul.f32 %v12136_v28, %v13154_v20  ;;  %v12138_v40 = vpop.eup %12137  ;;  %v2589_v20 = vmul.f32 0.03125, %v2556_v16  ;;  %v2680_v50 = vadd.f32 %v13273_v14, %v2656_v61  ;;  %v2607_v29 = vadd.f32 1e-05, %v2590_v42 }
 0x1c4   : > { %v13266_v39 = vpop.xlane.xlu1 %2567  ;;  %v2634_v63 = vmul.f32 %v12138_v40, %v13148_v7  ;;  %v2565_v1 = vpop.xlane.xlu0 %2564 }
 0x1c5   : > { %v2657_v41 = vmul.f32 %v13262_v26, %v2633_v38  ;;  %12149 = vrsqrt.f32 %v2607_v29  ;;  %v2592_v6 = vmul.f32 0.03125, %v2565_v1  ;;  %v2593_v61 = vmul.f32 0.03125, %v13266_v39 }
 0x1c6   : > { %v12140_v43 = vpop.eup %12139  ;;  %v2658_v7 = vmul.f32 %v13262_v26, %v2634_v63 }
 0x1c7   : > { %v2635_v46 = vmul.f32 %v12140_v43, %v13156_v22  ;;  %v2681_v51 = vadd.f32 %v13273_v14, %v2657_v41  ;;  %v2606_v22 = vadd.f32 1e-05, %v2589_v20  ;;  %v2609_v15 = vadd.f32 1e-05, %v2592_v6 }
 0x1c8   : > { %v13278_v47 = vpop.xlane.xlu1 %2573  ;;  %v2682_v57 = vadd.f32 %v13273_v14, %v2658_v7  ;;  %v2571_v23 = vpop.xlane.xlu0 %2570  ;;  %v2610_v63 = vadd.f32 1e-05, %v2593_v61  ;;  %v12036_v61 = vld [vmem:[%s12699_s14 + $0x28] ss:$48 sps:$4 sm:$0xff]  }
 0x1c9   : > { %v2659_v52 = vmul.f32 %v13262_v26, %v2635_v46  ;;  %v13283_v54 = vpack.c.bf16 %v2681_v51, %v2680_v50  ;;  %12151 = vrsqrt.f32 %v2606_v22  ;;  %v2594_v28 = vmul.f32 0.03125, %v2571_v23 }
 0x1ca   : > { %v12142_v0 = vpop.eup %12141 }
 0x1cb   : > { %10648 = vmatmul.mubr.msk.bf16.vlgmr.msra.gmra.mxu0 %vm2425_vm2, %v13283_v54  ;;  %10657 = vmatmul.mubr.msk.bf16.vlgmr.msra.gmra.mxu1 %vm2425_vm2, %v13283_v54  ;;  %v12144_v24 = vpop.eup %12143  ;;  %v2637_v56 = vmul.f32 %v12142_v0, %v13168_v33  ;;  %v2683_v25 = vadd.f32 %v13273_v14, %v2659_v52  ;;  %v2611_v41 = vadd.f32 1e-05, %v2594_v28  ;;  %v12035_v28 = vld [vmem:[%s12699_s14 + $0x24] ss:$48 sps:$4 sm:$0xff]  }
 0x1cc   : > { %v2580_v4 = vpop.xlane.xlu1 %2579  ;;  %2919 = vmatprep.mubr.bf16.mxu0 %v12567_v53  ;;  %3040 = vmatprep.mubr.bf16.mxu1 %v12567_v53  ;;  %v2636_v11 = vmul.f32 %v12144_v24, %v13165_v30  ;;  %v2608_v30 = vadd.f32 1e-05, %v2591_v12 }
 0x1cd   : > { %v2597_v34 = vmul.f32 0.03125, %v2580_v4  ;;  %3132 = vmatpush1.bf16.msra.mxu0 %v12015_v58  ;;  %3253 = vmatpush1.bf16.msra.mxu1 %v12018_v55  ;;  %v2661_v33 = vmul.f32 %v13262_v26, %v2637_v56  ;;  %v13303_v16 = vpack.c.bf16 %v2683_v25, %v2682_v57  ;;  %v2595_v58 = vmul.f32 0.03125, %v13278_v47 }
 0x1ce   : > { %3133 = vmatprep.subr.bf16.mxu0 %v12023_v2  ;;  %3254 = vmatprep.subr.bf16.mxu1 %v12026_v3  ;;  %v12146_v18 = vpop.eup %12145  ;;  %v2660_v9 = vmul.f32 %v13262_v26, %v2636_v11 }
 0x1cf   : > { %v2614_v10 = vadd.f32 1e-05, %v2597_v34  ;;  %v12148_v19 = vpop.eup %12147  ;;  %v2639_v45 = vmul.f32 %v12146_v18, %v13180_v49  ;;  %v2685_v60 = vadd.f32 %v13273_v14, %v2661_v33  ;;  %v2577_v49 = vpop.xlane.xlu0 %2576 }
 0x1d0   : > { %v2638_v21 = vmul.f32 %v12148_v19, %v13177_v48  ;;  %v2684_v38 = vadd.f32 %v13273_v14, %v2660_v9  ;;  %v2596_v50 = vmul.f32 0.03125, %v2577_v49 }
 0x1d1   : > { %12153 = vrsqrt.f32 %v2614_v10  ;;  %3134 = vmatpush1.bf16.msra.mxu0 %v12021_v35  ;;  %3255 = vmatpush1.bf16.msra.mxu1 %v12024_v8  ;;  %v2663_v40 = vmul.f32 %v13262_v26, %v2639_v45  ;;  %v12030_v45 = vld [vmem:[%s12699_s14 + $0x88] ss:$48 sps:$4 sm:$0xff]  }
 0x1d2   : > { %12155 = vrsqrt.f32 %v2609_v15  ;;  %3373 = vmatprep.subr.bf16.mxu0 %v12029_v17  ;;  %3494 = vmatprep.subr.bf16.mxu1 %v12032_v36  ;;  %v13320_v42 = vpack.c.bf16 %v2685_v60, %v2684_v38  ;;  %v12150_v43 = vpop.eup %12149  ;;  %v2662_v20 = vmul.f32 %v13262_v26, %v2638_v21  ;;  %v2613_v2 = vadd.f32 1e-05, %v2596_v50  ;;  %v12038_v60 = vld [vmem:[%s12699_s14 + $0x2c] ss:$48 sps:$4 sm:$0xff]   ;;  %v12033_v21 = vld [vmem:[%s12699_s14 + $0x20] ss:$48 sps:$4 sm:$0xff]  }
 0x1d3   : > { %10649 = vmatmul.mubr.msk.bf16.gmra.mxu0 %vm2425_vm2, %v13303_v16  ;;  %10658 = vmatmul.mubr.msk.bf16.gmra.mxu1 %vm2425_vm2, %v13303_v16  ;;  %12157 = vrsqrt.f32 %v2608_v30  ;;  %v2641_v46 = vmul.f32 %v12150_v43, %v13192_v37  ;;  %v2687_v51 = vadd.f32 %v13273_v14, %v2663_v40  ;;  %v16159_v38 = vmov 0.0  }
 0x1d4   : > { %2929 = vmatprep.mubr.bf16.mxu0 %v12567_v53  ;;  %3050 = vmatprep.mubr.bf16.mxu1 %v12567_v53  ;;  %12159 = vrsqrt.f32 %v2611_v41  ;;  %v2686_v55 = vadd.f32 %v13273_v14, %v2662_v20 }
 0x1d5   : > { %12161 = vrsqrt.f32 %v2610_v63  ;;  %v2665_v1 = vmul.f32 %v13262_v26, %v2641_v46 }
 0x1d6   : > { %v12152_v48 = vpop.eup %12151  ;;  %v13337_v3 = vpack.c.bf16 %v2687_v51, %v2686_v55  ;;  %12163 = vrsqrt.f32 %v2613_v2 }
 0x1d7   : > { %v2640_v29 = vmul.f32 %v12152_v48, %v13189_v44  ;;  %v2689_v4 = vadd.f32 %v13273_v14, %v2665_v1 }
 0x1d9   : > { %v2664_v22 = vmul.f32 %v13262_v26, %v2640_v29 }
 0x1db   : > { %10650 = vmatmul.mubr.msk.bf16.gmra.mxu0 %vm2425_vm2, %v13320_v42  ;;  %10659 = vmatmul.mubr.msk.bf16.gmra.mxu1 %vm2425_vm2, %v13320_v42  ;;  %v2688_v34 = vadd.f32 %v13273_v14, %v2664_v22 }
 0x1dc   : > { %2939 = vmatprep.mubr.bf16.mxu0 %v12567_v53  ;;  %3060 = vmatprep.mubr.bf16.mxu1 %v12567_v53 }
 0x1dd   : > { %v13352_v6 = vpack.c.bf16 %v2689_v4, %v2688_v34 }
 0x1de   : > { %v12154_v39 = vpop.eup %12153 }
 0x1df   : > { %v2648_v52 = vmul.f32 %v12154_v39, %v13237_v62  ;;  %v12156_v37 = vpop.eup %12155  ;;  %v2612_v62 = vadd.f32 1e-05, %v2595_v58 }
 0x1e0   : > { %v12158_v44 = vpop.eup %12157  ;;  %v2643_v47 = vmul.f32 %v12156_v37, %v13204_v32 }
 0x1e1   : > { %v2672_v0 = vmul.f32 %v13262_v26, %v2648_v52  ;;  %v2642_v24 = vmul.f32 %v12158_v44, %v13201_v5  ;;  %12165 = vrsqrt.f32 %v2612_v62  ;;  %v12160_v25 = vpop.eup %12159 }
 0x1e2   : > { %v2667_v56 = vmul.f32 %v13262_v26, %v2643_v47  ;;  %v12162_v32 = vpop.eup %12161  ;;  %v2645_v5 = vmul.f32 %v12160_v25, %v13216_v59 }
 0x1e3   : > { %v2696_v7 = vadd.f32 %v13273_v14, %v2672_v0  ;;  %10651 = vmatmul.mubr.msk.bf16.gmra.mxu0 %vm2425_vm2, %v13337_v3  ;;  %10660 = vmatmul.mubr.msk.bf16.gmra.mxu1 %vm2425_vm2, %v13337_v3  ;;  %v2666_v35 = vmul.f32 %v13262_v26, %v2642_v24  ;;  %v2644_v10 = vmul.f32 %v12162_v32, %v13213_v13  ;;  %v12164_v33 = vpop.eup %12163 }
 0x1e4   : > { %2949 = vmatprep.mubr.bf16.mxu0 %v12567_v53  ;;  %3070 = vmatprep.mubr.bf16.mxu1 %v12567_v53  ;;  %v2691_v8 = vadd.f32 %v13273_v14, %v2667_v56  ;;  %v2669_v12 = vmul.f32 %v13262_v26, %v2645_v5  ;;  %v2647_v13 = vmul.f32 %v12164_v33, %v13228_v31 }
 0x1e5   : > { %v2690_v11 = vadd.f32 %v13273_v14, %v2666_v35  ;;  %v2668_v15 = vmul.f32 %v13262_v26, %v2644_v10  ;;  %v13591_v10 = vsel %vm3811_vm5, 65535, %v12567_v53 }
 0x1e6   : > { %v2693_v17 = vadd.f32 %v13273_v14, %v2669_v12  ;;  %v2671_v23 = vmul.f32 %v13262_v26, %v2647_v13  ;;  %16207 = vst [vmem:[#allocation7_spill] sm:$0xff] %v13591_v10 }
 0x1e7   : > { %v13366_v57 = vpack.c.bf16 %v2691_v8, %v2690_v11  ;;  %v2692_v18 = vadd.f32 %v13273_v14, %v2668_v15 }
 0x1e9   : > { %v13380_v19 = vpack.c.bf16 %v2693_v17, %v2692_v18 }
 0x1eb   : > { %10652 = vmatmul.mubr.msk.bf16.gmra.mxu0 %vm2425_vm2, %v13352_v6  ;;  %10661 = vmatmul.mubr.msk.bf16.gmra.mxu1 %vm2425_vm2, %v13352_v6 }
 0x1ec   : > { %2959 = vmatprep.mubr.bf16.mxu0 %v12567_v53  ;;  %3080 = vmatprep.mubr.bf16.mxu1 %v12567_v53 }
 0x1ee   : > { %v12166_v59 = vpop.eup %12165 }
 0x1ef   : > { %v2646_v36 = vmul.f32 %v12166_v59, %v13225_v27  ;;  %v2695_v27 = vadd.f32 %v13273_v14, %v2671_v23 }
 0x1f1   : > { %v2670_v9 = vmul.f32 %v13262_v26, %v2646_v36  ;;  %v13399_v26 = vpack.c.bf16 %v2696_v7, %v2696_v7 }
 0x1f3   : > { %10653 = vmatmul.mubr.msk.bf16.gmra.mxu0 %vm2425_vm2, %v13366_v57  ;;  %10662 = vmatmul.mubr.msk.bf16.gmra.mxu1 %vm2425_vm2, %v13366_v57  ;;  %v2694_v31 = vadd.f32 %v13273_v14, %v2670_v9  ;;  %v12027_v14 = vld [vmem:[%s12699_s14 + $0x80] ss:$48 sps:$4 sm:$0xff]  }
 0x1f4   : > { %2969 = vmatprep.mubr.bf16.mxu0 %v12567_v53  ;;  %3090 = vmatprep.mubr.bf16.mxu1 %v12567_v53 }
 0x1f5   : > { %v13391_v30 = vpack.c.bf16 %v2695_v27, %v2694_v31 }
 0x1fb   : > { %10654 = vmatmul.mubr.msk.bf16.gmra.mxu0 %vm2425_vm2, %v13380_v19  ;;  %10663 = vmatmul.mubr.msk.bf16.gmra.mxu1 %vm2425_vm2, %v13380_v19 }
 0x1fc   : > { %2979 = vmatprep.mubr.bf16.mxu0 %v12567_v53  ;;  %3100 = vmatprep.mubr.bf16.mxu1 %v12567_v53 }
 0x203   : > { %10655 = vmatmul.mubr.msk.bf16.gmra.mxu0 %vm2425_vm2, %v13391_v30  ;;  %10664 = vmatmul.mubr.msk.bf16.gmra.mxu1 %vm2425_vm2, %v13391_v30 }
 0x204   : > { %2989 = vmatprep.mubr.bf16.mxu0 %v12567_v53  ;;  %3110 = vmatprep.mubr.bf16.mxu1 %v12567_v53 }
 0x20b   : > { %10656 = vmatmul.mubr.msk.bf16.gmra.mxu0 %vm2425_vm2, %v13399_v26  ;;  %10665 = vmatmul.mubr.msk.bf16.gmra.mxu1 %vm2425_vm2, %v13399_v26 }
 0x20c   : > { %3151 = vmatprep.mubr.bf16.mxu0 %v12567_v53  ;;  %3272 = vmatprep.mubr.bf16.mxu1 %v12567_v53 }
 0x213   : > { %10666 = vmatmul.mubr.msk.bf16.vlgmr.msra.gmra.mxu0 %vm2425_vm2, %v13283_v54  ;;  %10675 = vmatmul.mubr.msk.bf16.vlgmr.msra.gmra.mxu1 %vm2425_vm2, %v13283_v54 }
 0x214   : > { %3161 = vmatprep.mubr.bf16.mxu0 %v12567_v53  ;;  %3282 = vmatprep.mubr.bf16.mxu1 %v12567_v53 }
 0x215   : > { %3374 = vmatpush1.bf16.msra.mxu0 %v12027_v14  ;;  %3495 = vmatpush1.bf16.msra.mxu1 %v12030_v45 }
 0x216   : > { %3375 = vmatprep.subr.bf16.mxu0 %v12035_v28  ;;  %3496 = vmatprep.subr.bf16.mxu1 %v12038_v60 }
 0x219   : > { %3376 = vmatpush1.bf16.msra.mxu0 %v12033_v21  ;;  %3497 = vmatpush1.bf16.msra.mxu1 %v12036_v61 }
 0x21a   : > { %11355 = vmatprep.subr.bf16.mxu0 %v16159_v38  ;;  %11385 = vmatprep.subr.bf16.mxu1 %v16159_v38 }
 0x21b   : > { %10667 = vmatmul.mubr.msk.bf16.gmra.mxu0 %vm2425_vm2, %v13303_v16  ;;  %10676 = vmatmul.mubr.msk.bf16.gmra.mxu1 %vm2425_vm2, %v13303_v16 }
 0x21c   : > { %3171 = vmatprep.mubr.bf16.mxu0 %v12567_v53  ;;  %3292 = vmatprep.mubr.bf16.mxu1 %v12567_v53 }
 0x223   : > { %10668 = vmatmul.mubr.msk.bf16.gmra.mxu0 %vm2425_vm2, %v13320_v42  ;;  %10677 = vmatmul.mubr.msk.bf16.gmra.mxu1 %vm2425_vm2, %v13320_v42 }
 0x224   : > { %3181 = vmatprep.mubr.bf16.mxu0 %v12567_v53  ;;  %3302 = vmatprep.mubr.bf16.mxu1 %v12567_v53 }
 0x22b   : > { %10669 = vmatmul.mubr.msk.bf16.gmra.mxu0 %vm2425_vm2, %v13337_v3  ;;  %10678 = vmatmul.mubr.msk.bf16.gmra.mxu1 %vm2425_vm2, %v13337_v3 }
 0x22c   : > { %3191 = vmatprep.mubr.bf16.mxu0 %v12567_v53  ;;  %3312 = vmatprep.mubr.bf16.mxu1 %v12567_v53 }
 0x233   : > { %10670 = vmatmul.mubr.msk.bf16.gmra.mxu0 %vm2425_vm2, %v13352_v6  ;;  %10679 = vmatmul.mubr.msk.bf16.gmra.mxu1 %vm2425_vm2, %v13352_v6 }
 0x234   : > { %3201 = vmatprep.mubr.bf16.mxu0 %v12567_v53  ;;  %3322 = vmatprep.mubr.bf16.mxu1 %v12567_v53 }
 0x23b   : > { %10671 = vmatmul.mubr.msk.bf16.gmra.mxu0 %vm2425_vm2, %v13366_v57  ;;  %10680 = vmatmul.mubr.msk.bf16.gmra.mxu1 %vm2425_vm2, %v13366_v57 }
 0x23c   : > { %3211 = vmatprep.mubr.bf16.mxu0 %v12567_v53  ;;  %3332 = vmatprep.mubr.bf16.mxu1 %v12567_v53 }
 0x243   : > { %10672 = vmatmul.mubr.msk.bf16.gmra.mxu0 %vm2425_vm2, %v13380_v19  ;;  %10681 = vmatmul.mubr.msk.bf16.gmra.mxu1 %vm2425_vm2, %v13380_v19 }
 0x244   : > { %3221 = vmatprep.mubr.bf16.mxu0 %v12567_v53  ;;  %3342 = vmatprep.mubr.bf16.mxu1 %v12567_v53 }
 0x24b   : > { %10673 = vmatmul.mubr.msk.bf16.gmra.mxu0 %vm2425_vm2, %v13391_v30  ;;  %10682 = vmatmul.mubr.msk.bf16.gmra.mxu1 %vm2425_vm2, %v13391_v30 }
 0x24c   : > { %3231 = vmatprep.mubr.bf16.mxu0 %v12567_v53  ;;  %3352 = vmatprep.mubr.bf16.mxu1 %v12567_v53 }
 0x253   : > { %10674 = vmatmul.mubr.msk.bf16.gmra.mxu0 %vm2425_vm2, %v13399_v26  ;;  %10683 = vmatmul.mubr.msk.bf16.gmra.mxu1 %vm2425_vm2, %v13399_v26 }
 0x254   : > { %3393 = vmatprep.mubr.bf16.mxu0 %v12567_v53  ;;  %3514 = vmatprep.mubr.bf16.mxu1 %v12567_v53 }
 0x25b   : > { %10684 = vmatmul.mubr.msk.bf16.vlgmr.msra.gmra.mxu0 %vm2425_vm2, %v13283_v54  ;;  %10693 = vmatmul.mubr.msk.bf16.vlgmr.msra.gmra.mxu1 %vm2425_vm2, %v13283_v54 }
 0x25c   : > { %3403 = vmatprep.mubr.bf16.mxu0 %v12567_v53  ;;  %3524 = vmatprep.mubr.bf16.mxu1 %v12567_v53 }
 0x263   : > { %10685 = vmatmul.mubr.msk.bf16.gmra.mxu0 %vm2425_vm2, %v13303_v16  ;;  %10694 = vmatmul.mubr.msk.bf16.gmra.mxu1 %vm2425_vm2, %v13303_v16 }
 0x264   : > { %3413 = vmatprep.mubr.bf16.mxu0 %v12567_v53  ;;  %3534 = vmatprep.mubr.bf16.mxu1 %v12567_v53 }
 0x26b   : > { %10686 = vmatmul.mubr.msk.bf16.gmra.mxu0 %vm2425_vm2, %v13320_v42  ;;  %10695 = vmatmul.mubr.msk.bf16.gmra.mxu1 %vm2425_vm2, %v13320_v42 }
 0x26c   : > { %3423 = vmatprep.mubr.bf16.mxu0 %v12567_v53  ;;  %3544 = vmatprep.mubr.bf16.mxu1 %v12567_v53 }
 0x273   : > { %10687 = vmatmul.mubr.msk.bf16.gmra.mxu0 %vm2425_vm2, %v13337_v3  ;;  %10696 = vmatmul.mubr.msk.bf16.gmra.mxu1 %vm2425_vm2, %v13337_v3 }
 0x274   : > { %3433 = vmatprep.mubr.bf16.mxu0 %v12567_v53  ;;  %3554 = vmatprep.mubr.bf16.mxu1 %v12567_v53 }
 0x27b   : > { %10688 = vmatmul.mubr.msk.bf16.gmra.mxu0 %vm2425_vm2, %v13352_v6  ;;  %10697 = vmatmul.mubr.msk.bf16.gmra.mxu1 %vm2425_vm2, %v13352_v6 }
 0x27c   : > { %3443 = vmatprep.mubr.bf16.mxu0 %v12567_v53  ;;  %3564 = vmatprep.mubr.bf16.mxu1 %v12567_v53 }
 0x283   : > { %10689 = vmatmul.mubr.msk.bf16.gmra.mxu0 %vm2425_vm2, %v13366_v57  ;;  %10698 = vmatmul.mubr.msk.bf16.gmra.mxu1 %vm2425_vm2, %v13366_v57 }
 0x284   : > { %3453 = vmatprep.mubr.bf16.mxu0 %v12567_v53  ;;  %3574 = vmatprep.mubr.bf16.mxu1 %v12567_v53 }
 0x28b   : > { %v13505_v54 = vpop.f32.mrf.mxu0  ;;  %v13507_v16 = vpop.f32.mrf.mxu1  ;;  %10690 = vmatmul.mubr.msk.bf16.gmra.mxu0 %vm2425_vm2, %v13380_v19  ;;  %10699 = vmatmul.mubr.msk.bf16.gmra.mxu1 %vm2425_vm2, %v13380_v19 }
 0x28c   : > { %3463 = vmatprep.mubr.bf16.mxu0 %v12567_v53  ;;  %3584 = vmatprep.mubr.bf16.mxu1 %v12567_v53 }
 0x28d   : > { %v13515_v40 = vpop.f32.mrf.mxu0  ;;  %v13517_v41 = vpop.f32.mrf.mxu1 }
 0x28f   : > { %v13519_v42 = vpop.f32.mrf.mxu0  ;;  %v13521_v43 = vpop.f32.mrf.mxu1 }
 0x290   : > { %v3603_v49 = vpack.c.bf16 %v13519_v42, %v13505_v54 }
 0x291   : > { %v13525_v20 = vpop.f32.mrf.mxu0  ;;  %v13527_v63 = vpop.f32.mrf.mxu1 }
 0x293   : > { %v13529_v48 = vpop.f32.mrf.mxu0  ;;  %v13531_v39 = vpop.f32.mrf.mxu1  ;;  %10691 = vmatmul.mubr.msk.bf16.gmra.mxu0 %vm2425_vm2, %v13391_v30  ;;  %10700 = vmatmul.mubr.msk.bf16.gmra.mxu1 %vm2425_vm2, %v13391_v30 }
 0x294   : > { %3473 = vmatprep.mubr.bf16.mxu0 %v12567_v53  ;;  %3594 = vmatprep.mubr.bf16.mxu1 %v12567_v53 }
 0x295   : > { %v13539_v46 = vpop.f32.mrf.mxu0  ;;  %v13541_v50 = vpop.f32.mrf.mxu1 }
 0x297   : > { %v13543_v51 = vpop.f32.mrf.mxu0  ;;  %v13545_v52 = vpop.f32.mrf.mxu1 }
 0x299   : > { %v13549_v58 = vpop.f32.mrf.mxu0  ;;  %v13551_v55 = vpop.f32.mrf.mxu1 }
 0x29b   : > { %v13553_v0 = vpop.f32.mrf.mxu0  ;;  %v13555_v1 = vpop.f32.mrf.mxu1  ;;  %10692 = vmatmul.mubr.msk.bf16.gmra.mxu0 %vm2425_vm2, %v13399_v26  ;;  %10701 = vmatmul.mubr.msk.bf16.gmra.mxu1 %vm2425_vm2, %v13399_v26 }
 0x29c   : > { %11365 = vmatprep.mubr.msk.bf16.mxu0 %vm12569_vm4, %v16159_v38  ;;  %11395 = vmatprep.mubr.msk.bf16.mxu1 %vm12569_vm4, %v16159_v38 }
 0x29d   : > { %v13565_v2 = vpop.f32.mrf.mxu0  ;;  %v13567_v3 = vpop.f32.mrf.mxu1 }
 0x29f   : > { %v13569_v37 = vpop.f32.mrf.mxu0  ;;  %v3056_v7 = vpop.f32.mrf.mxu1 }
 0x2a0   : > { %v3615_v28 = vpack.c.bf16 %v3056_v7, %v13555_v1 }
 0x2a1   : > { %v13573_v62 = vpop.f32.mrf.mxu0  ;;  %v13575_v44 = vpop.f32.mrf.mxu1 }
 0x2a3   : > { %v13577_v47 = vpop.f32.mrf.mxu0  ;;  %v3062_v4 = vpop.f32.mrf.mxu1 }
 0x2a5   : > { %v2943_v24 = vpop.f32.mrf.mxu0  ;;  %v13579_v34 = vpop.f32.mrf.mxu1 }
 0x2a7   : > { %v13581_v56 = vpop.f32.mrf.mxu0  ;;  %v3066_v6 = vpop.f32.mrf.mxu1 }
 0x2a8   : > { %v3616_v53 = vpack.c.bf16 %v3066_v6, %v3062_v4 }
 0x2a9   : > { %v2947_v35 = vpop.f32.mrf.mxu0  ;;  %v13585_v32 = vpop.f32.mrf.mxu1 }
 0x2aa   : > { %v3611_v60 = vpack.c.bf16 %v2947_v35, %v2943_v24 }
 0x2ab   : > { %v13587_v5 = vpop.f32.mrf.mxu0  ;;  %v3072_v8 = vpop.f32.mrf.mxu1 }
 0x2ac   : > { %v3617_v11 = vpack.c.bf16 %v3072_v8, %v3072_v8 }
 0x2ad   : > { %v2953_v12 = vpop.f32.mrf.mxu0  ;;  %v13593_v57 = vpop.f32.mrf.mxu1 }
 0x2ae   : > { %v3815_v33 = vand.u32 %v13591_v10, %v3617_v11  ;;  %v3612_v15 = vpack.c.bf16 %v2953_v12, %v2953_v12 }
 0x2af   : > { %v2955_v59 = vpop.f32.mrf.mxu0  ;;  %v3076_v13 = vpop.f32.mrf.mxu1 }
 0x2b0   : > { %v4927_v17 = vpack.c.bf16 %v2955_v59, %v13587_v5  ;;  %v4937_v36 = vpack.c.bf16 %v3076_v13, %v3072_v8  ;;  %11356 = vmatpush3.bf16.xpose.msra.mxu0 %v3612_v15  ;;  %11386 = vmatpush3.bf16.msra.mxu1 %v3815_v33  ;;  %v3614_v15 = vpack.c.bf16 %v13545_v52, %v13531_v39 }
 0x2b1   : > { %v2957_v18 = vpop.f32.mrf.mxu0  ;;  %v3078_v23 = vpop.f32.mrf.mxu1  ;;  %11387 = vmatprep.subr.bf16.mxu1 %v16159_v38  ;;  %11357 = vmatprep.subr.bf16.mxu0 %v16159_v38 }
 0x2b2   : > { %v4932_v19 = vpack.c.bf16 %v2957_v18, %v2953_v12  ;;  %v5465_v9 = vpack.c.bf16 %v3078_v23, %v13593_v57  ;;  %v4946_v30 = vshll.u32 %v4927_v17, 16  ;;  %v5208_v26 = vshll.u32 %v4937_v36, 16 }
 0x2b3   : > { %v2961_v27 = vpop.f32.mrf.mxu0  ;;  %v3082_v31 = vpop.f32.mrf.mxu1  ;;  %v4944_v1 = vshrl.u32 %v4927_v17, 16  ;;  %v5206_v7 = vshrl.u32 %v4937_v36, 16  ;;  %v3613_v36 = vpack.c.bf16 %v13521_v43, %v13507_v16 }
 0x2b4   : > { %11388 = vmatpush3.bf16.msra.mxu1 %v3616_v53  ;;  %v4989_v21 = vshll.u32 %v4932_v19, 16  ;;  %v5483_v61 = vshll.u32 %v5465_v9, 16  ;;  %v4948_v4 = vrot.slane %v4946_v30, 1  ;;  %v5210_v6 = vrot.slane %v5208_v26, 1 }
 0x2b5   : > { %v2963_v14 = vpop.f32.mrf.mxu0  ;;  %v3084_v45 = vpop.f32.mrf.mxu1  ;;  %11389 = vmatprep.subr.bf16.mxu1 %v16159_v38 }
 0x2b6   : > { %v4991_v18 = vrot.slane %v4989_v21, 1  ;;  %v5485_v23 = vrot.slane %v5483_v61, 1  ;;  %v4949_v26 = vor.u32 %v4948_v4, %v4944_v1 }
 0x2b7   : > { %v2965_v8 = vpop.f32.mrf.mxu0  ;;  %v3086_v11 = vpop.f32.mrf.mxu1 }
 0x2b8   : > { %v4928_v12 = vpack.c.bf16 %v2965_v8, %v2961_v27  ;;  %v4938_v33 = vpack.c.bf16 %v3086_v11, %v3082_v31  ;;  %11358 = vmatpush3.bf16.xpose.msra.mxu0 %v3611_v60  ;;  %11390 = vmatpush3.bf16.msra.mxu1 %v3615_v28  ;;  %v5211_v28 = vor.u32 %v5210_v6, %v5206_v7  ;;  %v4987_v60 = vshrl.u32 %v4932_v19, 16 }
 0x2b9   : > { %v2967_v59 = vpop.f32.mrf.mxu0  ;;  %v3088_v13 = vpop.f32.mrf.mxu1  ;;  %11391 = vmatprep.subr.bf16.mxu1 %v16159_v38  ;;  %11359 = vmatprep.subr.bf16.mxu0 %v16159_v38  ;;  %v5481_v8 = vshrl.u32 %v5465_v9, 16 }
 0x2ba   : > { %v4951_v24 = vshll.u32 %v4928_v12, 16  ;;  %v5213_v35 = vshll.u32 %v4938_v33, 16  ;;  %v4933_v53 = vpack.c.bf16 %v2967_v59, %v2963_v14  ;;  %v5466_v27 = vpack.c.bf16 %v3088_v13, %v3084_v45 }
 0x2bb   : > { %v2971_v31 = vpop.f32.mrf.mxu0  ;;  %v3092_v30 = vpop.f32.mrf.mxu1  ;;  %v3610_v14 = vpack.c.bf16 %v13573_v62, %v13565_v2  ;;  %v4992_v19 = vor.u32 %v4991_v18, %v4987_v60  ;;  %v5486_v9 = vor.u32 %v5485_v23, %v5481_v8  ;;  %v4955_v1 = vshrl.u32 %v4928_v12, 16 }
 0x2bc   : > { %v4953_v39 = vrot.slane %v4951_v24, 1  ;;  %v5215_v52 = vrot.slane %v5213_v35, 1  ;;  %11392 = vmatpush3.bf16.msra.mxu1 %v3614_v15  ;;  %v4994_v11 = vshll.u32 %v4933_v53, 16  ;;  %v5488_v25 = vshll.u32 %v5466_v27, 16 }
 0x2bd   : > { %v2973_v22 = vpop.f32.mrf.mxu0  ;;  %v3094_v17 = vpop.f32.mrf.mxu1  ;;  %11393 = vmatprep.subr.bf16.mxu1 %v16159_v38  ;;  %v5217_v7 = vshrl.u32 %v4938_v33, 16  ;;  %v4998_v8 = vshrl.u32 %v4933_v53, 16 }
 0x2be   : > { %v13612_v45 = vsel %vm4942_vm6, %v4949_v26, %v4953_v39  ;;  %v13615_v21 = vsel %vm4942_vm6, %v5211_v28, %v5215_v52  ;;  %v4996_v61 = vrot.slane %v4994_v11, 1  ;;  %v5490_v4 = vrot.slane %v5488_v25, 1 }
 0x2bf   : > { %16208 = vst [vmem:[#allocation8_spill] sm:$0xff] %v13612_v45  ;;  %16209 = vst [vmem:[#allocation9_spill] sm:$0xff] %v13615_v21  ;;  %v2975_v6 = vpop.f32.mrf.mxu0  ;;  %v3096_v15 = vpop.f32.mrf.mxu1  ;;  %v5219_v26 = vor.u32 %v5217_v7, %v5215_v52  ;;  %v5492_v11 = vshrl.u32 %v5466_v27, 16 }
 0x2c0   : > { %v4929_v59 = vpack.c.bf16 %v2975_v6, %v2971_v31  ;;  %v4939_v13 = vpack.c.bf16 %v3096_v15, %v3092_v30  ;;  %11360 = vmatpush3.bf16.xpose.msra.mxu0 %v3610_v14  ;;  %11394 = vmatpush3.bf16.msra.mxu1 %v3613_v36  ;;  %v13619_v2 = vsel %vm4942_vm6, %v4992_v19, %v4996_v61 }
 0x2c1   : > { %v2977_v16 = vpop.f32.mrf.mxu0  ;;  %v3098_v43 = vpop.f32.mrf.mxu1  ;;  %11361 = vmatprep.subr.bf16.mxu0 %v16159_v38  ;;  %16210 = vst [vmem:[#allocation10_spill] sm:$0xff] %v13619_v2  ;;  %v13622_v62 = vsel %vm4942_vm6, %v5486_v9, %v5490_v4  ;;  %11445 = vmatprep.subr.bf16.mxu1 %v16159_v38  ;;  %v4957_v30 = vor.u32 %v4955_v1, %v4953_v39 }
 0x2c2   : > { %16211 = vst [vmem:[#allocation11_spill] sm:$0xff] %v13622_v62  ;;  %v4959_v24 = vshll.u32 %v4929_v59, 16  ;;  %v5221_v25 = vshll.u32 %v4939_v13, 16  ;;  %v4934_v35 = vpack.c.bf16 %v2977_v16, %v2973_v22  ;;  %v13625_v18 = vpack.c.bf16 %v3098_v43, %v3094_v17 }
 0x2c3   : > { %v2981_v23 = vpop.f32.mrf.mxu0  ;;  %v3102_v31 = vpop.f32.mrf.mxu1  ;;  %v3609_v19 = vpack.c.bf16 %v13549_v58, %v13539_v46  ;;  %v5000_v39 = vor.u32 %v4998_v8, %v4996_v61  ;;  %v5494_v52 = vor.u32 %v5492_v11, %v5490_v4  ;;  %v3608_v43 = vpack.c.bf16 %v13525_v20, %v13515_v40 }
 0x2c4   : > { %v4961_v28 = vrot.slane %v4959_v24, 1  ;;  %v5223_v60 = vrot.slane %v5221_v25, 1  ;;  %v5002_v36 = vshll.u32 %v4934_v35, 16  ;;  %v5496_v14 = vshll.u32 %v13625_v18, 16 }
 0x2c5   : > { %v2983_v12 = vpop.f32.mrf.mxu0  ;;  %v3104_v33 = vpop.f32.mrf.mxu1  ;;  %v4963_v4 = vshrl.u32 %v4929_v59, 16  ;;  %v5225_v7 = vshrl.u32 %v4939_v13, 16 }
 0x2c6   : > { %v13631_v22 = vsel %vm4942_vm6, %v4957_v30, %v4961_v28  ;;  %v13634_v17 = vsel %vm4942_vm6, %v5219_v26, %v5223_v60  ;;  %v5004_v9 = vrot.slane %v5002_v36, 1  ;;  %v5498_v6 = vrot.slane %v5496_v14, 1 }
 0x2c7   : > { %16212 = vst [vmem:[#allocation12_spill] sm:$0xff] %v13631_v22  ;;  %16213 = vst [vmem:[#allocation13_spill] sm:$0xff] %v13634_v17  ;;  %v2985_v53 = vpop.f32.mrf.mxu0  ;;  %v3106_v27 = vpop.f32.mrf.mxu1  ;;  %v4965_v8 = vor.u32 %v4963_v4, %v4961_v28 }
 0x2c8   : > { %v4930_v15 = vpack.c.bf16 %v2985_v53, %v2981_v23  ;;  %v4940_v16 = vpack.c.bf16 %v3106_v27, %v3102_v31  ;;  %11362 = vmatpush3.bf16.xpose.msra.mxu0 %v3609_v19  ;;  %v13640_v58 = vsel %vm4942_vm6, %v5000_v39, %v5004_v9  ;;  %v13643_v61 = vsel %vm4942_vm6, %v5494_v52, %v5498_v6 }
 0x2c9   : > { %v2987_v1 = vpop.f32.mrf.mxu0  ;;  %v3108_v46 = vpop.f32.mrf.mxu1  ;;  %11363 = vmatprep.subr.bf16.mxu0 %v16159_v38  ;;  %16214 = vst [vmem:[#allocation14_spill] sm:$0xff] %v13640_v58  ;;  %16215 = vst [vmem:[#allocation15_spill] sm:$0xff] %v13643_v61  ;;  %v5006_v23 = vshrl.u32 %v4934_v35, 16  ;;  %v5500_v31 = vshrl.u32 %v13625_v18, 16  ;;  %v5227_v19 = vor.u32 %v5225_v7, %v5223_v60 }
 0x2ca   : > { %v4967_v24 = vshll.u32 %v4930_v15, 16  ;;  %v5229_v25 = vshll.u32 %v4940_v16, 16  ;;  %v4935_v30 = vpack.c.bf16 %v2987_v1, %v2983_v12  ;;  %v5468_v26 = vpack.c.bf16 %v3108_v46, %v3104_v33 }
 0x2cb   : > { %v2991_v40 = vpop.f32.mrf.mxu0  ;;  %v3112_v20 = vpop.f32.mrf.mxu1  ;;  %v5008_v27 = vor.u32 %v5006_v23, %v5004_v9  ;;  %v4971_v35 = vshrl.u32 %v4930_v15, 16  ;;  %v5233_v29 = vshrl.u32 %v4940_v16, 16  ;;  %v5502_v9 = vor.u32 %v5500_v31, %v5498_v6 }
 0x2cc   : > { %v4969_v11 = vrot.slane %v4967_v24, 1  ;;  %v13646_v36 = vpack.c.bf16 %v2991_v40, %v2991_v40  ;;  %v13648_v14 = vpack.c.bf16 %v3112_v20, %v3112_v20  ;;  %v5231_v39 = vrot.slane %v5229_v25, 1 }
 0x2cd   : > { %v5010_v52 = vshll.u32 %v4935_v30, 16  ;;  %v5504_v59 = vshll.u32 %v5468_v26, 16  ;;  %v2993_v13 = vpop.f32.mrf.mxu0  ;;  %v3114_v53 = vpop.f32.mrf.mxu1  ;;  %v5014_v33 = vshrl.u32 %v4935_v30, 16 }
 0x2ce   : > { %16216 = vst [vmem:[#allocation16_spill] sm:$0xff] %v13646_v36  ;;  %16217 = vst [vmem:[#allocation17_spill] sm:$0xff] %v13648_v14  ;;  %v4975_v18 = vshll.u32 %v13646_v36, 16  ;;  %v5237_v28 = vshll.u32 %v13648_v14, 16  ;;  %v13652_v40 = vpack.c.bf16 %v2993_v13, %v2993_v13  ;;  %v13654_v60 = vpack.c.bf16 %v3114_v53, %v3114_v53 }
 0x2cf   : > { %v5012_v12 = vrot.slane %v5010_v52, 1  ;;  %v5506_v1 = vrot.slane %v5504_v59, 1  ;;  %v2995_v46 = vpop.f32.mrf.mxu0  ;;  %v3116_v4 = vpop.f32.mrf.mxu1  ;;  %v13657_v7 = vsel %vm4942_vm6, %v4965_v8, %v4969_v11  ;;  %v4973_v15 = vor.u32 %v4971_v35, %v4969_v11 }
 0x2d0   : > { %v4977_v24 = vrot.slane %v4975_v18, 1  ;;  %16218 = vst [vmem:[#allocation18_spill] sm:$0xff] %v13652_v40  ;;  %16219 = vst [vmem:[#allocation19_spill] sm:$0xff] %v13654_v60  ;;  %11364 = vmatpush3.bf16.xpose.msra.mxu0 %v3608_v43  ;;  %v5235_v16 = vor.u32 %v5233_v29, %v5231_v39  ;;  %v5239_v25 = vrot.slane %v5237_v28, 1  ;;  %v5508_v52 = vshrl.u32 %v5468_v26, 16 }
 0x2d1   : > { %16220 = vst [vmem:[#allocation20_spill] sm:$0xff] %v13657_v7  ;;  %v2996_v23 = vpop.f32.mrf.mxu0  ;;  %v3117_v30 = vpop.f32.mrf.mxu1  ;;  %11415 = vmatprep.subr.bf16.mxu0 %v16159_v38  ;;  %v5016_v20 = vor.u32 %v5014_v33, %v5012_v12  ;;  %v5018_v59 = vshll.u32 %v13652_v40, 16  ;;  %v5512_v13 = vshll.u32 %v13654_v60, 16  ;;  %v13667_v8 = vsel %vm4942_vm6, %v5008_v27, %v5012_v12 }
 0x2d2   : > { %16221 = vst [vmem:[#allocation21_spill] sm:$0xff] %v13667_v8  ;;  %v13670_v29 = vsel %vm4942_vm6, %v4973_v15, %v4977_v24  ;;  %v13673_v6 = vsel %vm4942_vm6, %v5502_v9, %v5506_v1  ;;  %v13676_v31 = vsel %vm4942_vm6, %v5235_v16, %v5239_v25  ;;  %v5510_v26 = vor.u32 %v5508_v52, %v5506_v1 }
 0x2d3   : > { %v13662_v53 = vpop.f32.mrf.mxu0  ;;  %v13664_v43 = vpop.f32.mrf.mxu1  ;;  %16222 = vst [vmem:[#allocation22_spill] sm:$0xff] %v13670_v29  ;;  %16223 = vst [vmem:[#allocation23_spill] sm:$0xff] %v13673_v6  ;;  %v5020_v11 = vrot.slane %v5018_v59, 1  ;;  %v5514_v35 = vrot.slane %v5512_v13, 1  ;;  %v13679_v18 = vsel %vm4942_vm6, %v5227_v19, %v5231_v39 }
 0x2d4   : > { %16224 = vst [vmem:[#allocation24_spill] sm:$0xff] %v13676_v31  ;;  %16225 = vst [vmem:[#allocation25_spill] sm:$0xff] %v13679_v18 }
 0x2d5   : > { %v13681_v33 = vpop.f32.mrf.mxu0  ;;  %v13683_v28 = vpop.f32.mrf.mxu1  ;;  %v13686_v27 = vsel %vm4942_vm6, %v5016_v20, %v5020_v11  ;;  %v13689_v12 = vsel %vm4942_vm6, %v5510_v26, %v5514_v35  ;;  %v16234_v26 = vpack.c.bf16 %v13569_v37, %v13553_v0  ;;  %v16239_v37 = vpack.c.bf16 %v13581_v56, %v13577_v47 }
 0x2d6   : > { %16226 = vst [vmem:[#allocation26_spill] sm:$0xff] %v13681_v33  ;;  %16227 = vst [vmem:[#allocation27_spill] sm:$0xff] %v13686_v27 }
 0x2d7   : > { %16228 = vst [vmem:[#allocation28_spill] sm:$0xff] %v13689_v12  ;;  %v13691_v46 = vpop.f32.mrf.mxu0  ;;  %v13693_v4 = vpop.f32.mrf.mxu1  ;;  %11366 = vmatmul.mubr.bf16.vlgmr.msra.gmra.mxu0 %v3603_v49  ;;  %v16231_v49 = vpack.c.bf16 %v13543_v51, %v13529_v48 }
 0x2d8   : > { %11369 = vmatprep.mubr.msk.bf16.mxu0 %vm12569_vm4, %v16159_v38 }
 0x2d9   : > { %v13702_v39 = vpop.f32.mrf.mxu0  ;;  %v13704_v1 = vpop.f32.mrf.mxu1 }
 0x2da   : > { %16229 = vst [vmem:[#allocation29_spill] sm:$0xff] %v13702_v39 }
 0x2db   : > { %v13706_v24 = vpop.f32.mrf.mxu0  ;;  %v13708_v9 = vpop.f32.mrf.mxu1 }
 0x2dd   : > { %v13710_v15 = vpop.f32.mrf.mxu0  ;;  %v13712_v16 = vpop.f32.mrf.mxu1 }
 0x2de   : > { %16230 = vst [vmem:[#allocation30_spill] sm:$0xff] %v13710_v15 }
 0x2df   : > { %v13714_v54 = vpop.f32.mrf.mxu0  ;;  %v13716_v42 = vpop.f32.mrf.mxu1  ;;  %11370 = vmatmul.mubr.bf16.gmra.mxu0 %v16231_v49 }
 0x2e0   : > { %11373 = vmatprep.mubr.msk.bf16.mxu0 %vm12569_vm4, %v16159_v38 }
 0x2e1   : > { %v13725_v23 = vpop.f32.mrf.mxu0  ;;  %v13727_v30 = vpop.f32.mrf.mxu1 }
 0x2e2   : > { %16232 = vst [vmem:[#allocation31_spill] sm:$0xff] %v13725_v23  ;;  %v3607_v23 = vpack.c.bf16 %v13587_v5, %v13587_v5 }
 0x2e3   : > { %v13729_v20 = vpop.f32.mrf.mxu0  ;;  %v13731_v52 = vpop.f32.mrf.mxu1 }
 0x2e5   : > { %v13733_v59 = vpop.f32.mrf.mxu0  ;;  %v13735_v13 = vpop.f32.mrf.mxu1 }
 0x2e6   : > { %16233 = vst [vmem:[#allocation32_spill] sm:$0xff] %v13733_v59 }
 0x2e7   : > { %v13737_v48 = vpop.f32.mrf.mxu0  ;;  %v13739_v51 = vpop.f32.mrf.mxu1  ;;  %11374 = vmatmul.mubr.bf16.gmra.mxu0 %v16234_v26 }
 0x2e8   : > { %11377 = vmatprep.mubr.msk.bf16.mxu0 %vm12569_vm4, %v16159_v38 }
 0x2e9   : > { %v13748_v35 = vpop.f32.mrf.mxu0  ;;  %v13750_v49 = vpop.f32.mrf.mxu1 }
 0x2ea   : > { %16235 = vst [vmem:[#allocation33_spill] sm:$0xff] %v13748_v35 }
 0x2eb   : > { %v3183_v25 = vpop.f32.mrf.mxu0  ;;  %v13752_v19 = vpop.f32.mrf.mxu1 }
 0x2ec   : > { %16236 = vst [vmem:[#allocation34_spill] sm:$0xff] %v13752_v19 }
 0x2ed   : > { %v13754_v21 = vpop.f32.mrf.mxu0  ;;  %v13756_v17 = vpop.f32.mrf.mxu1 }
 0x2ee   : > { %16237 = vst [vmem:[#allocation35_spill] sm:$0xff] %v13754_v21 }
 0x2ef   : > { %v3187_v18 = vpop.f32.mrf.mxu0  ;;  %v13758_v0 = vpop.f32.mrf.mxu1  ;;  %11378 = vmatmul.mubr.bf16.gmra.mxu0 %v16239_v37 }
 0x2f0   : > { %16238 = vst [vmem:[#allocation36_spill] sm:$0xff] %v13758_v0  ;;  %11381 = vmatprep.mubr.msk.bf16.mxu0 %vm12569_vm4, %v16159_v38 }
 0x2f1   : > { %v13767_v11 = vpop.f32.mrf.mxu0  ;;  %v13769_v31 = vpop.f32.mrf.mxu1 }
 0x2f2   : > { %16240 = vst [vmem:[#allocation37_spill] sm:$0xff] %v13767_v11 }
 0x2f3   : > { %v3193_v14 = vpop.f32.mrf.mxu0  ;;  %v13771_v39 = vpop.f32.mrf.mxu1 }
 0x2f4   : > { %v3949_v33 = vpack.c.bf16 %v3193_v14, %v3193_v14 }
 0x2f5   : > { %v13775_v15 = vpop.f32.mrf.mxu0  ;;  %v13777_v47 = vpop.f32.mrf.mxu1 }
 0x2f6   : > { %16241 = vst [vmem:[#allocation38_spill] sm:$0xff] %v13775_v15  ;;  %11416 = vmatpush3.bf16.xpose.msra.mxu0 %v3949_v33  ;;  %v3948_v33 = vpack.c.bf16 %v3187_v18, %v3183_v25 }
 0x2f7   : > { %v3197_v56 = vpop.f32.mrf.mxu0  ;;  %v3318_v37 = vpop.f32.mrf.mxu1  ;;  %11382 = vmatmul.mubr.bf16.gmra.mxu0 %v3607_v23  ;;  %11417 = vmatprep.subr.bf16.mxu0 %v16159_v38 }
 0x2f8   : > { %v5470_v26 = vpack.c.bf16 %v3197_v56, %v3193_v14  ;;  %v5997_v35 = vpack.c.bf16 %v3318_v37, %v13771_v39  ;;  %11425 = vmatprep.mubr.msk.bf16.mxu0 %vm12569_vm4, %v16159_v38 }
 0x2f9   : > { %v3199_v59 = vpop.f32.mrf.mxu0  ;;  %v3320_v11 = vpop.f32.mrf.mxu1 }
 0x2fa   : > { %v5475_v5 = vpack.c.bf16 %v3199_v59, %v13775_v15  ;;  %v6002_v21 = vpack.c.bf16 %v3320_v11, %v13777_v47  ;;  %v5526_v12 = vshll.u32 %v5470_v26, 16  ;;  %v6015_v6 = vshll.u32 %v5997_v35, 16 }
 0x2fb   : > { %v3203_v10 = vpop.f32.mrf.mxu0  ;;  %v3324_v60 = vpop.f32.mrf.mxu1  ;;  %v3947_v11 = vpack.c.bf16 %v13737_v48, %v13729_v20  ;;  %v5524_v25 = vshrl.u32 %v5470_v26, 16  ;;  %v6013_v22 = vshrl.u32 %v5997_v35, 16 }
 0x2fc   : > { %v5745_v14 = vshll.u32 %v5475_v5, 16  ;;  %v6058_v56 = vshll.u32 %v6002_v21, 16  ;;  %v5528_v36 = vrot.slane %v5526_v12, 1  ;;  %v6017_v29 = vrot.slane %v6015_v6, 1 }
 0x2fd   : > { %v3205_v23 = vpop.f32.mrf.mxu0  ;;  %v3326_v61 = vpop.f32.mrf.mxu1 }
 0x2fe   : > { %11418 = vmatpush3.bf16.xpose.msra.mxu0 %v3948_v33  ;;  %v5747_v33 = vrot.slane %v5745_v14, 1  ;;  %v6060_v58 = vrot.slane %v6058_v56, 1  ;;  %v6018_v12 = vor.u32 %v6017_v29, %v6013_v22 }
 0x2ff   : > { %v3207_v37 = vpop.f32.mrf.mxu0  ;;  %v3328_v62 = vpop.f32.mrf.mxu1  ;;  %11419 = vmatprep.subr.bf16.mxu0 %v16159_v38  ;;  %v5529_v38 = vor.u32 %v5528_v36, %v5524_v25 }
 0x300   : > { %v5471_v7 = vpack.c.bf16 %v3207_v37, %v3203_v10  ;;  %v5998_v59 = vpack.c.bf16 %v3328_v62, %v3324_v60  ;;  %v5743_v62 = vshrl.u32 %v5475_v5, 16  ;;  %v6056_v60 = vshrl.u32 %v6002_v21, 16 }
 0x301   : > { %v3209_v15 = vpop.f32.mrf.mxu0  ;;  %v3330_v18 = vpop.f32.mrf.mxu1 }
 0x302   : > { %v5531_v45 = vshll.u32 %v5471_v7, 16  ;;  %v6020_v2 = vshll.u32 %v5998_v59, 16  ;;  %v5476_v8 = vpack.c.bf16 %v3209_v15, %v3205_v23  ;;  %v6003_v27 = vpack.c.bf16 %v3330_v18, %v3326_v61 }
 0x303   : > { %v3213_v40 = vpop.f32.mrf.mxu0  ;;  %v3334_v19 = vpop.f32.mrf.mxu1  ;;  %v5748_v61 = vor.u32 %v5747_v33, %v5743_v62  ;;  %v6061_v15 = vor.u32 %v6060_v58, %v6056_v60  ;;  %v6024_v18 = vshrl.u32 %v5998_v59, 16  ;;  %v3946_v33 = vpack.c.bf16 %v13714_v54, %v13706_v24 }
 0x304   : > { %v5533_v6 = vrot.slane %v5531_v45, 1  ;;  %v6022_v10 = vrot.slane %v6020_v2, 1  ;;  %v5750_v37 = vshll.u32 %v5476_v8, 16  ;;  %v6063_v20 = vshll.u32 %v6003_v27, 16 }
 0x305   : > { %v3215_v48 = vpop.f32.mrf.mxu0  ;;  %v3336_v0 = vpop.f32.mrf.mxu1  ;;  %v16243_v2 = vmov 0.0  }
 0x306   : > { %v13789_v35 = vsel %vm4942_vm6, %v6018_v12, %v6022_v10  ;;  %11420 = vmatpush3.bf16.xpose.msra.mxu0 %v3947_v11  ;;  %v13792_v26 = vsel %vm4942_vm6, %v5529_v38, %v5533_v6  ;;  %v5752_v23 = vrot.slane %v5750_v37, 1  ;;  %v6065_v36 = vrot.slane %v6063_v20, 1 }
 0x307   : > { %16242 = vst [vmem:[#allocation39_spill] sm:$0xff] %v13789_v35  ;;  %v3217_v22 = vpop.f32.mrf.mxu0  ;;  %v3338_v45 = vpop.f32.mrf.mxu1  ;;  %11421 = vmatprep.subr.bf16.mxu0 %v16243_v2  ;;  %v5535_v38 = vshrl.u32 %v5471_v7, 16  ;;  %v6026_v37 = vor.u32 %v6024_v18, %v6022_v10 }
 0x308   : > { %v5472_v21 = vpack.c.bf16 %v3217_v22, %v3213_v40  ;;  %v5999_v29 = vpack.c.bf16 %v3338_v45, %v3334_v19  ;;  %v13796_v56 = vsel %vm4942_vm6, %v6061_v15, %v6065_v36  ;;  %v13799_v11 = vsel %vm4942_vm6, %v5748_v61, %v5752_v23 }
 0x309   : > { %v3219_v5 = vpop.f32.mrf.mxu0  ;;  %v3340_v14 = vpop.f32.mrf.mxu1  ;;  %16244 = vst [vmem:[#allocation40_spill] sm:$0xff] %v13796_v56  ;;  %16245 = vst [vmem:[#allocation41_spill] sm:$0xff] %v13799_v11  ;;  %v5537_v19 = vor.u32 %v5535_v38, %v5533_v6  ;;  %v5754_v15 = vshrl.u32 %v5476_v8, 16  ;;  %v6067_v45 = vshrl.u32 %v6003_v27, 16  ;;  %v3945_v38 = vpack.c.bf16 %v13691_v46, %v13662_v53 }
 0x30a   : > { %v5539_v25 = vshll.u32 %v5472_v21, 16  ;;  %v6028_v58 = vshll.u32 %v5999_v29, 16  ;;  %v5477_v12 = vpack.c.bf16 %v3219_v5, %v3215_v48  ;;  %v6004_v62 = vpack.c.bf16 %v3340_v14, %v3336_v0 }
 0x30b   : > { %v3223_v60 = vpop.f32.mrf.mxu0  ;;  %v3344_v40 = vpop.f32.mrf.mxu1  ;;  %v5756_v54 = vor.u32 %v5754_v15, %v5752_v23  ;;  %v6069_v0 = vor.u32 %v6067_v45, %v6065_v36 }
 0x30c   : > { %v5541_v20 = vrot.slane %v5539_v25, 1  ;;  %v6030_v22 = vrot.slane %v6028_v58, 1  ;;  %v5758_v35 = vshll.u32 %v5477_v12, 16  ;;  %v6071_v61 = vshll.u32 %v6004_v62, 16 }
 0x30d   : > { %v3225_v11 = vpop.f32.mrf.mxu0  ;;  %v3346_v7 = vpop.f32.mrf.mxu1  ;;  %v5543_v58 = vshrl.u32 %v5472_v21, 16 }
 0x30e   : > { %11422 = vmatpush3.bf16.xpose.msra.mxu0 %v3946_v33  ;;  %v13804_v59 = vsel %vm4942_vm6, %v5537_v19, %v5541_v20  ;;  %v13807_v24 = vsel %vm4942_vm6, %v6026_v37, %v6030_v22  ;;  %v5760_v48 = vrot.slane %v5758_v35, 1  ;;  %v6073_v6 = vrot.slane %v6071_v61, 1 }
 0x30f   : > { %16246 = vst [vmem:[#allocation42_spill] sm:$0xff] %v13807_v24  ;;  %v3227_v10 = vpop.f32.mrf.mxu0  ;;  %v3348_v5 = vpop.f32.mrf.mxu1  ;;  %11423 = vmatprep.subr.bf16.mxu0 %v16243_v2  ;;  %v6032_v33 = vshrl.u32 %v5999_v29, 16  ;;  %v5545_v61 = vor.u32 %v5543_v58, %v5541_v20 }
 0x310   : > { %v5473_v27 = vpack.c.bf16 %v3227_v10, %v3223_v60  ;;  %v6000_v14 = vpack.c.bf16 %v3348_v5, %v3344_v40  ;;  %v13817_v35 = vsel %vm4942_vm6, %v6069_v0, %v6073_v6  ;;  %v13820_v36 = vsel %vm4942_vm6, %v5756_v54, %v5760_v48 }
 0x311   : > { %v3229_v25 = vpop.f32.mrf.mxu0  ;;  %v3350_v23 = vpop.f32.mrf.mxu1  ;;  %16247 = vst [vmem:[#allocation43_spill] sm:$0xff] %v13817_v35  ;;  %16248 = vst [vmem:[#allocation44_spill] sm:$0xff] %v13820_v36  ;;  %v5762_v60 = vshrl.u32 %v5477_v12, 16  ;;  %v6075_v40 = vshrl.u32 %v6004_v62, 16  ;;  %v6034_v10 = vor.u32 %v6032_v33, %v6030_v22 }
 0x312   : > { %v5547_v19 = vshll.u32 %v5473_v27, 16  ;;  %v6036_v37 = vshll.u32 %v6000_v14, 16  ;;  %v5478_v15 = vpack.c.bf16 %v3229_v25, %v3225_v11  ;;  %v6005_v45 = vpack.c.bf16 %v3350_v23, %v3346_v7 }
 0x313   : > { %v3233_v53 = vpop.f32.mrf.mxu0  ;;  %v3354_v46 = vpop.f32.mrf.mxu1  ;;  %v5764_v24 = vor.u32 %v5762_v60, %v5760_v48  ;;  %v6077_v56 = vor.u32 %v6075_v40, %v6073_v6  ;;  %v5551_v12 = vshrl.u32 %v5473_v27, 16  ;;  %v6040_v62 = vshrl.u32 %v6000_v14, 16 }
 0x314   : > { %v13822_v5 = vpack.c.bf16 %v3233_v53, %v3233_v53  ;;  %v13824_v18 = vpack.c.bf16 %v3354_v46, %v3354_v46  ;;  %v5549_v0 = vrot.slane %v5547_v19, 1  ;;  %v6038_v8 = vrot.slane %v6036_v37, 1 }
 0x315   : > { %v5766_v54 = vshll.u32 %v5478_v15, 16  ;;  %v6079_v36 = vshll.u32 %v6005_v45, 16  ;;  %v3235_v21 = vpop.f32.mrf.mxu0  ;;  %v3356_v29 = vpop.f32.mrf.mxu1  ;;  %v5770_v58 = vshrl.u32 %v5478_v15, 16  ;;  %v6083_v40 = vshrl.u32 %v6005_v45, 16 }
 0x316   : > { %16249 = vst [vmem:[#allocation45_spill] sm:$0xff] %v13824_v18  ;;  %v5555_v11 = vshll.u32 %v13822_v5, 16  ;;  %11424 = vmatpush3.bf16.xpose.msra.mxu0 %v3945_v38  ;;  %v6044_v22 = vshll.u32 %v13824_v18, 16  ;;  %v13829_v19 = vpack.c.bf16 %v3235_v21, %v3235_v21  ;;  %v13831_v37 = vpack.c.bf16 %v3356_v29, %v3356_v29 }
 0x317   : > { %v5768_v7 = vrot.slane %v5766_v54, 1  ;;  %v6081_v20 = vrot.slane %v6079_v36, 1  ;;  %v3237_v25 = vpop.f32.mrf.mxu0  ;;  %v3358_v23 = vpop.f32.mrf.mxu1  ;;  %11475 = vmatprep.subr.bf16.mxu0 %v16243_v2  ;;  %v5553_v48 = vor.u32 %v5551_v12, %v5549_v0  ;;  %v6042_v6 = vor.u32 %v6040_v62, %v6038_v8 }
 0x318   : > { %v5557_v33 = vrot.slane %v5555_v11, 1  ;;  %16250 = vst [vmem:[#allocation46_spill] sm:$0xff] %v13829_v19  ;;  %v6046_v27 = vrot.slane %v6044_v22, 1  ;;  %v13834_v14 = vsel %vm4942_vm6, %v5545_v61, %v5549_v0  ;;  %v5774_v53 = vshll.u32 %v13829_v19, 16 }
 0x319   : > { %v3238_v60 = vpop.f32.mrf.mxu0  ;;  %v3359_v38 = vpop.f32.mrf.mxu1  ;;  %v5772_v36 = vor.u32 %v5770_v58, %v5768_v7  ;;  %v6087_v46 = vshll.u32 %v13831_v37, 16  ;;  %v13846_v29 = vsel %vm4942_vm6, %v6077_v56, %v6081_v20  ;;  %v13849_v12 = vsel %vm4942_vm6, %v6034_v10, %v6038_v8 }
 0x31a   : > { %v13843_v21 = vsel %vm4942_vm6, %v5553_v48, %v5557_v33  ;;  %16252 = vst [vmem:[#allocation48_spill] sm:$0xff] %v13849_v12  ;;  %v13852_v61 = vsel %vm4942_vm6, %v6042_v6, %v6046_v27  ;;  %v6085_v45 = vor.u32 %v6083_v40, %v6081_v20  ;;  %v5776_v0 = vrot.slane %v5774_v53, 1 }
 0x31b   : > { %v13838_v15 = vpop.f32.mrf.mxu0  ;;  %v13840_v54 = vpop.f32.mrf.mxu1  ;;  %16253 = vst [vmem:[#allocation49_spill] sm:$0xff] %v13852_v61  ;;  %v6089_v11 = vrot.slane %v6087_v46, 1  ;;  %v13855_v62 = vsel %vm4942_vm6, %v5764_v24, %v5768_v7  ;;  %v16256_v56 = vpack.c.bf16 %v13527_v63, %v13517_v41  ;;  %v16257_v8 = vpack.c.bf16 %v13777_v47, %v13777_v47 }
 0x31c   : > { %16251 = vst [vmem:[#allocation47_spill] sm:$0xff] %v13838_v15  ;;  %16254 = vst [vmem:[#allocation50_spill] sm:$0xff] %v13855_v62  ;;  %v13873_v24 = vsel %vm4942_vm6, %v5772_v36, %v5776_v0  ;;  %v3941_v58 = vpack.c.bf16 %v13551_v55, %v13541_v50  ;;  %v4277_v6 = vpack.c.bf16 %v13769_v31, %v13756_v17 }
 0x31d   : > { %v13857_v22 = vpop.f32.mrf.mxu0  ;;  %v13859_v25 = vpop.f32.mrf.mxu1  ;;  %11426 = vmatmul.mubr.bf16.vlgmr.msra.gmra.mxu0 %v16256_v56  ;;  %v13870_v10 = vsel %vm4942_vm6, %v6085_v45, %v6089_v11  ;;  %16258 = vst [vmem:[#allocation52_spill] sm:$0xff] %v13873_v24  ;;  %v3942_v31 = vpack.c.bf16 %v13575_v44, %v13567_v3  ;;  %v4276_v46 = vpack.c.bf16 %v13750_v49, %v13735_v13 }
 0x31e   : > { %16255 = vst [vmem:[#allocation51_spill] sm:$0xff] %v13859_v25  ;;  %11476 = vmatpush3.bf16.xpose.msra.mxu0 %v16257_v8  ;;  %11429 = vmatprep.mubr.msk.bf16.mxu0 %vm12569_vm4, %v16243_v2  ;;  %v3943_v49 = vpack.c.bf16 %v13585_v32, %v13579_v34  ;;  %v4274_v3 = vpack.c.bf16 %v13704_v1, %v13683_v28 }
 0x31f   : > { %v13875_v7 = vpop.f32.mrf.mxu0  ;;  %v13877_v20 = vpop.f32.mrf.mxu1  ;;  %11477 = vmatprep.subr.bf16.mxu0 %v16243_v2 }
 0x320   : > { %16259 = vst [vmem:[#allocation53_spill] sm:$0xff] %v13875_v7 }
 0x321   : > { %v13884_v47 = vpop.f32.mrf.mxu0  ;;  %v13886_v23 = vpop.f32.mrf.mxu1 }
 0x322   : > { %16260 = vst [vmem:[#allocation54_spill] sm:$0xff] %v13886_v23 }
 0x323   : > { %v13890_v33 = vpop.f32.mrf.mxu0  ;;  %v13892_v48 = vpop.f32.mrf.mxu1 }
 0x324   : > { %16261 = vst [vmem:[#allocation55_spill] sm:$0xff] %v13890_v33 }
 0x325   : > { %v13896_v27 = vpop.f32.mrf.mxu0  ;;  %v13898_v60 = vpop.f32.mrf.mxu1  ;;  %11430 = vmatmul.mubr.bf16.gmra.mxu0 %v3941_v58 }
 0x326   : > { %16262 = vst [vmem:[#allocation56_spill] sm:$0xff] %v13898_v60  ;;  %11478 = vmatpush3.bf16.xpose.msra.mxu0 %v4277_v6  ;;  %11433 = vmatprep.mubr.msk.bf16.mxu0 %vm12569_vm4, %v16243_v2  ;;  %v4275_v6 = vpack.c.bf16 %v13727_v30, %v13712_v16  ;;  %v3944_v30 = vpack.c.bf16 %v13593_v57, %v13593_v57 }
 0x327   : > { %v13902_v38 = vpop.f32.mrf.mxu0  ;;  %v13904_v36 = vpop.f32.mrf.mxu1  ;;  %11479 = vmatprep.subr.bf16.mxu0 %v16243_v2 }
 0x328   : > { %16263 = vst [vmem:[#allocation57_spill] sm:$0xff] %v13902_v38 }
 0x329   : > { %v13909_v55 = vpop.f32.mrf.mxu0  ;;  %v13911_v17 = vpop.f32.mrf.mxu1 }
 0x32a   : > { %16264 = vst [vmem:[#allocation58_spill] sm:$0xff] %v13911_v17 }
 0x32b   : > { %v13915_v40 = vpop.f32.mrf.mxu0  ;;  %v13917_v53 = vpop.f32.mrf.mxu1 }
 0x32c   : > { %16265 = vst [vmem:[#allocation59_spill] sm:$0xff] %v13915_v40 }
 0x32d   : > { %v13921_v45 = vpop.f32.mrf.mxu0  ;;  %v13923_v0 = vpop.f32.mrf.mxu1  ;;  %11434 = vmatmul.mubr.bf16.gmra.mxu0 %v3942_v31 }
 0x32e   : > { %16266 = vst [vmem:[#allocation60_spill] sm:$0xff] %v13923_v0  ;;  %11480 = vmatpush3.bf16.xpose.msra.mxu0 %v4276_v46  ;;  %11437 = vmatprep.mubr.msk.bf16.mxu0 %vm12569_vm4, %v16243_v2 }
 0x32f   : > { %v13927_v11 = vpop.f32.mrf.mxu0  ;;  %v13929_v56 = vpop.f32.mrf.mxu1  ;;  %11481 = vmatprep.subr.bf16.mxu0 %v16243_v2 }
 0x330   : > { %16267 = vst [vmem:[#allocation61_spill] sm:$0xff] %v13927_v11 }
 0x331   : > { %v13934_v44 = vpop.f32.mrf.mxu0  ;;  %v13936_v13 = vpop.f32.mrf.mxu1 }
 0x332   : > { %16268 = vst [vmem:[#allocation62_spill] sm:$0xff] %v13936_v13 }
 0x333   : > { %v13940_v8 = vpop.f32.mrf.mxu0  ;;  %v13942_v58 = vpop.f32.mrf.mxu1 }
 0x334   : > { %16269 = vst [vmem:[#allocation63_spill] sm:$0xff] %v13940_v8 }
 0x335   : > { %v13946_v31 = vpop.f32.mrf.mxu0  ;;  %v13948_v46 = vpop.f32.mrf.mxu1  ;;  %11438 = vmatmul.mubr.bf16.gmra.mxu0 %v3943_v49 }
 0x336   : > { %16270 = vst [vmem:[#allocation64_spill] sm:$0xff] %v13948_v46  ;;  %11482 = vmatpush3.bf16.xpose.msra.mxu0 %v4275_v6  ;;  %11441 = vmatprep.mubr.msk.bf16.mxu0 %vm12569_vm4, %v16243_v2  ;;  %v16275_v46 = vpack.c.bf16 %v13693_v4, %v13664_v43 }
 0x337   : > { %v13952_v41 = vpop.f32.mrf.mxu0  ;;  %v13954_v50 = vpop.f32.mrf.mxu1  ;;  %11483 = vmatprep.subr.bf16.mxu0 %v16243_v2 }
 0x338   : > { %16271 = vst [vmem:[#allocation65_spill] sm:$0xff] %v13952_v41  ;;  %v4606_v7 = vpack.c.bf16 %v13954_v50, %v13942_v58 }
 0x339   : > { %v13959_v32 = vpop.f32.mrf.mxu0  ;;  %v13961_v16 = vpop.f32.mrf.mxu1 }
 0x33a   : > { %16272 = vst [vmem:[#allocation66_spill] sm:$0xff] %v13961_v16 }
 0x33b   : > { %v13965_v49 = vpop.f32.mrf.mxu0  ;;  %v3556_v6 = vpop.f32.mrf.mxu1 }
 0x33c   : > { %16273 = vst [vmem:[#allocation67_spill] sm:$0xff] %v13965_v49 }
 0x33d   : > { %v13969_v63 = vpop.f32.mrf.mxu0  ;;  %v13971_v62 = vpop.f32.mrf.mxu1  ;;  %11442 = vmatmul.mubr.bf16.gmra.mxu0 %v3944_v30  ;;  %v4607_v30 = vpack.c.bf16 %v3556_v6, %v3556_v6 }
 0x33e   : > { %16274 = vst [vmem:[#allocation68_spill] sm:$0xff] %v13971_v62  ;;  %11484 = vmatpush3.bf16.xpose.msra.mxu0 %v4274_v3  ;;  %11485 = vmatprep.mubr.msk.bf16.mxu0 %vm12569_vm4, %v16243_v2 }
 0x33f   : > { %v3439_v34 = vpop.f32.mrf.mxu0  ;;  %v3560_v24 = vpop.f32.mrf.mxu1  ;;  %11535 = vmatprep.subr.bf16.mxu0 %v16243_v2 }
 0x340   : > { %v6007_v57 = vpack.c.bf16 %v3439_v34, %v13965_v49  ;;  %v6534_v19 = vpack.c.bf16 %v3560_v24, %v3556_v6 }
 0x341   : > { %v3441_v23 = vpop.f32.mrf.mxu0  ;;  %v3562_v25 = vpop.f32.mrf.mxu1 }
 0x342   : > { %v6529_v28 = vpack.c.bf16 %v3441_v23, %v13969_v63  ;;  %v6539_v1 = vpack.c.bf16 %v3562_v25, %v13971_v62  ;;  %v6590_v3 = vshll.u32 %v6534_v19, 16  ;;  %v6277_v13 = vshll.u32 %v6007_v57, 16 }
 0x343   : > { %v3445_v17 = vpop.f32.mrf.mxu0  ;;  %v3566_v60 = vpop.f32.mrf.mxu1  ;;  %v6588_v4 = vshrl.u32 %v6534_v19, 16  ;;  %v6275_v11 = vshrl.u32 %v6007_v57, 16  ;;  %v16276_v19 = vpack.c.bf16 %v13716_v42, %v13708_v9 }
 0x344   : > { %v6547_v15 = vshll.u32 %v6529_v28, 16  ;;  %v6809_v24 = vshll.u32 %v6539_v1, 16  ;;  %v6592_v25 = vrot.slane %v6590_v3, 1  ;;  %v6279_v33 = vrot.slane %v6277_v13, 1 }
 0x345   : > { %v3447_v0 = vpop.f32.mrf.mxu0  ;;  %v3568_v16 = vpop.f32.mrf.mxu1  ;;  %11486 = vmatmul.mubr.bf16.vlgmr.msra.gmra.mxu0 %v16275_v46  ;;  %v6545_v3 = vshrl.u32 %v6529_v28, 16 }
 0x346   : > { %11536 = vmatpush3.bf16.xpose.msra.mxu0 %v4607_v30  ;;  %11489 = vmatprep.mubr.msk.bf16.mxu0 %vm12569_vm4, %v16243_v2  ;;  %v6549_v46 = vrot.slane %v6547_v15, 1  ;;  %v6811_v8 = vrot.slane %v6809_v24, 1  ;;  %v6593_v12 = vor.u32 %v6592_v25, %v6588_v4 }
 0x347   : > { %v3449_v23 = vpop.f32.mrf.mxu0  ;;  %v3570_v34 = vpop.f32.mrf.mxu1  ;;  %11537 = vmatprep.subr.bf16.mxu0 %v16243_v2 }
 0x348   : > { %v6008_v6 = vpack.c.bf16 %v3449_v23, %v3445_v17  ;;  %v6535_v62 = vpack.c.bf16 %v3570_v34, %v3566_v60  ;;  %v6280_v23 = vor.u32 %v6279_v33, %v6275_v11  ;;  %v6807_v34 = vshrl.u32 %v6539_v1, 16 }
 0x349   : > { %v3451_v38 = vpop.f32.mrf.mxu0  ;;  %v3572_v43 = vpop.f32.mrf.mxu1  ;;  %v6550_v15 = vor.u32 %v6549_v46, %v6545_v3 }
 0x34a   : > { %v6282_v30 = vshll.u32 %v6008_v6, 16  ;;  %v6595_v40 = vshll.u32 %v6535_v62, 16  ;;  %v6530_v41 = vpack.c.bf16 %v3451_v38, %v3447_v0  ;;  %v6540_v49 = vpack.c.bf16 %v3572_v43, %v3568_v16 }
 0x34b   : > { %v3455_v18 = vpop.f32.mrf.mxu0  ;;  %v3576_v61 = vpop.f32.mrf.mxu1  ;;  %v6812_v0 = vor.u32 %v6811_v8, %v6807_v34  ;;  %v6599_v8 = vshrl.u32 %v6535_v62, 16  ;;  %v4605_v43 = vpack.c.bf16 %v13929_v56, %v13917_v53  ;;  %v6286_v4 = vshrl.u32 %v6008_v6, 16 }
 0x34c   : > { %v6284_v17 = vrot.slane %v6282_v30, 1  ;;  %v6597_v60 = vrot.slane %v6595_v40, 1  ;;  %v6552_v50 = vshll.u32 %v6530_v41, 16  ;;  %v6814_v13 = vshll.u32 %v6540_v49, 16 }
 0x34d   : > { %v3457_v58 = vpop.f32.mrf.mxu0  ;;  %v3578_v35 = vpop.f32.mrf.mxu1  ;;  %11490 = vmatmul.mubr.bf16.gmra.mxu0 %v16276_v19  ;;  %v6818_v19 = vshrl.u32 %v6540_v49, 16 }
 0x34e   : > { %11538 = vmatpush3.bf16.xpose.msra.mxu0 %v4606_v7  ;;  %11493 = vmatprep.mubr.msk.bf16.mxu0 %vm12569_vm4, %v16243_v2  ;;  %v13993_v38 = vsel %vm4942_vm6, %v6593_v12, %v6597_v60  ;;  %v6554_v40 = vrot.slane %v6552_v50, 1  ;;  %v6816_v33 = vrot.slane %v6814_v13, 1  ;;  %v13997_v57 = vsel %vm4942_vm6, %v6280_v23, %v6284_v17 }
 0x34f   : > { %v3459_v11 = vpop.f32.mrf.mxu0  ;;  %v3580_v16 = vpop.f32.mrf.mxu1  ;;  %11539 = vmatprep.subr.bf16.mxu0 %v16243_v2  ;;  %16277 = vst [vmem:[#allocation69_spill] sm:$0xff] %v13997_v57  ;;  %v6556_v23 = vshrl.u32 %v6530_v41, 16  ;;  %v6288_v13 = vor.u32 %v6286_v4, %v6284_v17 }
 0x350   : > { %v6009_v9 = vpack.c.bf16 %v3459_v11, %v3455_v18  ;;  %v6536_v42 = vpack.c.bf16 %v3580_v16, %v3576_v61  ;;  %v14000_v1 = vsel %vm4942_vm6, %v6550_v15, %v6554_v40  ;;  %v14003_v12 = vsel %vm4942_vm6, %v6812_v0, %v6816_v33 }
 0x351   : > { %v3461_v28 = vpop.f32.mrf.mxu0  ;;  %v3582_v7 = vpop.f32.mrf.mxu1  ;;  %16278 = vst [vmem:[#allocation70_spill] sm:$0xff] %v14003_v12  ;;  %v6601_v61 = vor.u32 %v6599_v8, %v6597_v60  ;;  %v16279_v16 = vpack.c.bf16 %v13739_v51, %v13731_v52  ;;  %v6558_v53 = vor.u32 %v6556_v23, %v6554_v40  ;;  %v6820_v41 = vor.u32 %v6818_v19, %v6816_v33 }
 0x352   : > { %v6290_v24 = vshll.u32 %v6009_v9, 16  ;;  %v6603_v25 = vshll.u32 %v6536_v42, 16  ;;  %v6531_v46 = vpack.c.bf16 %v3461_v28, %v3457_v58  ;;  %v6541_v30 = vpack.c.bf16 %v3582_v7, %v3578_v35  ;;  %v16284_v58 = vld [vmem:[#allocation34_spill] sm:$0xff] }
 0x353   : > { %v3465_v3 = vpop.f32.mrf.mxu0  ;;  %v3586_v18 = vpop.f32.mrf.mxu1  ;;  %v4604_v40 = vpack.c.bf16 %v13904_v36, %v13892_v48 }
 0x354   : > { %v6292_v34 = vrot.slane %v6290_v24, 1  ;;  %v6605_v50 = vrot.slane %v6603_v25, 1  ;;  %v6560_v15 = vshll.u32 %v6531_v46, 16  ;;  %v6822_v0 = vshll.u32 %v6541_v30, 16 }
 0x355   : > { %v3467_v11 = vpop.f32.mrf.mxu0  ;;  %v3588_v62 = vpop.f32.mrf.mxu1  ;;  %11494 = vmatmul.mubr.bf16.gmra.mxu0 %v16279_v16  ;;  %v6294_v24 = vshrl.u32 %v6009_v9, 16  ;;  %v6607_v25 = vshrl.u32 %v6536_v42, 16 }
 0x356   : > { %11540 = vmatpush3.bf16.xpose.msra.mxu0 %v4605_v43  ;;  %11497 = vmatprep.mubr.msk.bf16.mxu0 %vm12569_vm4, %v16243_v2  ;;  %v14013_v35 = vsel %vm4942_vm6, %v6601_v61, %v6605_v50  ;;  %v6562_v56 = vrot.slane %v6560_v15, 1  ;;  %v6824_v6 = vrot.slane %v6822_v0, 1  ;;  %v14017_v60 = vsel %vm4942_vm6, %v6288_v13, %v6292_v34 }
 0x357   : > { %v3469_v49 = vpop.f32.mrf.mxu0  ;;  %v3590_v17 = vpop.f32.mrf.mxu1  ;;  %11541 = vmatprep.subr.bf16.mxu0 %v16243_v2  ;;  %16280 = vst [vmem:[#allocation71_spill] sm:$0xff] %v14017_v60  ;;  %v6296_v15 = vor.u32 %v6294_v24, %v6292_v34  ;;  %v6609_v48 = vor.u32 %v6607_v25, %v6605_v50 }
 0x358   : > { %v6010_v52 = vpack.c.bf16 %v3469_v49, %v3465_v3  ;;  %v6537_v51 = vpack.c.bf16 %v3590_v17, %v3586_v18  ;;  %v14024_v33 = vsel %vm4942_vm6, %v6558_v53, %v6562_v56  ;;  %v14027_v8 = vsel %vm4942_vm6, %v6820_v41, %v6824_v6  ;;  %v16283_v17 = vld [vmem:[#allocation36_spill] sm:$0xff] }
 0x359   : > { %v3471_v28 = vpop.f32.mrf.mxu0  ;;  %v3592_v7 = vpop.f32.mrf.mxu1  ;;  %16281 = vst [vmem:[#allocation72_spill] sm:$0xff] %v14027_v8  ;;  %v6564_v3 = vshrl.u32 %v6531_v46, 16  ;;  %v6826_v18 = vshrl.u32 %v6541_v30, 16  ;;  %v16285_v46 = vpack.c.bf16 %v16283_v17, %v16284_v58 }
 0x35a   : > { %v6298_v43 = vshll.u32 %v6010_v52, 16  ;;  %v6611_v4 = vshll.u32 %v6537_v51, 16  ;;  %v6532_v61 = vpack.c.bf16 %v3471_v28, %v3467_v11  ;;  %v6542_v23 = vpack.c.bf16 %v3592_v7, %v3588_v62 }
 0x35b   : > { %v3475_v13 = vpop.f32.mrf.mxu0  ;;  %v3596_v19 = vpop.f32.mrf.mxu1  ;;  %v6566_v30 = vor.u32 %v6564_v3, %v6562_v56  ;;  %v6828_v11 = vor.u32 %v6826_v18, %v6824_v6  ;;  %v6302_v62 = vshrl.u32 %v6010_v52, 16  ;;  %v6615_v50 = vshrl.u32 %v6537_v51, 16 }
 0x35c   : > { %v14029_v36 = vpack.c.bf16 %v3475_v13, %v3475_v13  ;;  %v14031_v0 = vpack.c.bf16 %v3596_v19, %v3596_v19  ;;  %v6300_v16 = vrot.slane %v6298_v43, 1  ;;  %v6613_v53 = vrot.slane %v6611_v4, 1 }
 0x35d   : > { %v6568_v41 = vshll.u32 %v6532_v61, 16  ;;  %v6830_v49 = vshll.u32 %v6542_v23, 16  ;;  %v3477_v9 = vpop.f32.mrf.mxu0  ;;  %v3598_v42 = vpop.f32.mrf.mxu1  ;;  %11498 = vmatmul.mubr.bf16.gmra.mxu0 %v16285_v46  ;;  %v6572_v7 = vshrl.u32 %v6532_v61, 16  ;;  %v6834_v19 = vshrl.u32 %v6542_v23, 16 }
 0x35e   : > { %16282 = vst [vmem:[#allocation73_spill] sm:$0xff] %v14029_v36  ;;  %v6306_v34 = vshll.u32 %v14029_v36, 16  ;;  %11542 = vmatpush3.bf16.xpose.msra.mxu0 %v4604_v40  ;;  %11501 = vmatprep.mubr.msk.bf16.mxu0 %vm12569_vm4, %v16243_v2  ;;  %v6619_v24 = vshll.u32 %v14031_v0, 16  ;;  %v14041_v56 = vpack.c.bf16 %v3477_v9, %v3477_v9  ;;  %v14043_v6 = vpack.c.bf16 %v3598_v42, %v3598_v42 }
 0x35f   : > { %v6570_v28 = vrot.slane %v6568_v41, 1  ;;  %v3479_v25 = vpop.f32.mrf.mxu0  ;;  %v3600_v43 = vpop.f32.mrf.mxu1  ;;  %11543 = vmatprep.subr.bf16.mxu0 %v16243_v2  ;;  %v6832_v58 = vrot.slane %v6830_v49, 1  ;;  %v6304_v52 = vor.u32 %v6302_v62, %v6300_v16  ;;  %v6617_v40 = vor.u32 %v6615_v50, %v6613_v53 }
 0x360   : > { %v6308_v4 = vrot.slane %v6306_v34, 1  ;;  %16286 = vst [vmem:[#allocation36_spill] sm:$0xff] %v14043_v6  ;;  %v6621_v3 = vrot.slane %v6619_v24, 1  ;;  %v14046_v51 = vsel %vm4942_vm6, %v6609_v48, %v6613_v53  ;;  %v6576_v41 = vshll.u32 %v14041_v56, 16  ;;  %v16299_v25 = vld [vmem:[#allocation12_spill] sm:$0xff] }
 0x361   : > { %v3480_v18 = vpop.f32.mrf.mxu0  ;;  %v3601_v13 = vpop.f32.mrf.mxu1  ;;  %v6574_v61 = vor.u32 %v6572_v7, %v6570_v28  ;;  %v6838_v17 = vshll.u32 %v14043_v6, 16  ;;  %v14054_v9 = vsel %vm4942_vm6, %v6566_v30, %v6570_v28  ;;  %v14060_v46 = vsel %vm4942_vm6, %v6296_v15, %v6300_v16 }
 0x362   : > { %v14051_v49 = vsel %vm4942_vm6, %v6617_v40, %v6621_v3  ;;  %v14057_v42 = vsel %vm4942_vm6, %v6304_v52, %v6308_v4  ;;  %16288 = vst [vmem:[#allocation74_spill] sm:$0xff] %v14060_v46  ;;  %v6836_v48 = vor.u32 %v6834_v19, %v6832_v58  ;;  %v6578_v53 = vrot.slane %v6576_v41, 1  ;;  %v16300_v18 = vld [vmem:[#allocation20_spill] sm:$0xff] }
 0x363   : > { %16287 = vst [vmem:[#allocation34_spill] sm:$0xff] %v14057_v42  ;;  %v6840_v62 = vrot.slane %v6838_v17, 1  ;;  %v14063_v23 = vsel %vm4942_vm6, %v6828_v11, %v6832_v58  ;;  %v16290_v34 = vpack.c.bf16 %v13771_v39, %v13771_v39  ;;  %v16291_v30 = vpack.c.bf16 %v13877_v20, %v13840_v54  ;;  %v16293_v39 = vld [vmem:[#allocation18_spill] sm:$0xff]  ;;  %v16294_v20 = vld [vmem:[#allocation27_spill] sm:$0xff] }
 0x364   : > { %16289 = vst [vmem:[#allocation75_spill] sm:$0xff] %v14063_v23  ;;  %v14074_v15 = vsel %vm4942_vm6, %v6574_v61, %v6578_v53  ;;  %v4598_v11 = vpack.c.bf16 %v13884_v47, %v13857_v22  ;;  %v5022_v50 = vshrl.u32 %v16293_v39, 16  ;;  %v4599_v54 = vpack.c.bf16 %v13909_v55, %v13896_v27  ;;  %v16295_v47 = vld [vmem:[#allocation21_spill] sm:$0xff]  ;;  %v16296_v55 = vld [vmem:[#allocation14_spill] sm:$0xff] }
 0x365   : > { %11502 = vmatmul.mubr.bf16.gmra.mxu0 %v16290_v34  ;;  %v14077_v16 = vsel %vm4942_vm6, %v6836_v48, %v6840_v62  ;;  %v4600_v22 = vpack.c.bf16 %v13934_v44, %v13921_v45  ;;  %v4601_v27 = vpack.c.bf16 %v13959_v32, %v13946_v31  ;;  %v4602_v45 = vpack.c.bf16 %v13969_v63, %v13969_v63  ;;  %v16297_v44 = vld [vmem:[#allocation10_spill] sm:$0xff]  ;;  %v16298_v32 = vld [vmem:[#allocation8_spill] sm:$0xff] }
 0x366   : > { %11544 = vmatpush3.bf16.xpose.msra.mxu0 %v16291_v30  ;;  %11545 = vmatprep.mubr.msk.bf16.mxu0 %vm12569_vm4, %v16243_v2  ;;  %16292 = vst [vmem:[#allocation76_spill] sm:$0xff] %v14077_v16  ;;  %v5559_v31 = vshrl.u32 %v13822_v5, 16  ;;  %v16301_v48 = vld [vmem:[#allocation22_spill] sm:$0xff]  ;;  %v16302_v30 = vld [vmem:[#allocation16_spill] sm:$0xff] }
 0x367   : > { %11595 = vmatprep.subr.bf16.mxu0 %v16243_v2 }
 0x36d   : > { %11546 = vmatmul.mubr.bf16.vlgmr.msra.gmra.mxu0 %v4598_v11  ;;  %v4979_v11 = vshrl.u32 %v16302_v30, 16 }
 0x36e   : > { %11596 = vmatpush3.bf16.xpose.msra.mxu0 %v5022_v50  ;;  %11549 = vmatprep.mubr.msk.bf16.mxu0 %vm12569_vm4, %v16243_v2 }
 0x36f   : > { %11597 = vmatprep.subr.bf16.mxu0 %v16243_v2 }
 0x375   : > { %11550 = vmatmul.mubr.bf16.gmra.mxu0 %v4599_v54 }
 0x376   : > { %11598 = vmatpush3.bf16.xpose.msra.mxu0 %v16294_v20  ;;  %11553 = vmatprep.mubr.msk.bf16.mxu0 %vm12569_vm4, %v16243_v2 }
 0x377   : > { %11599 = vmatprep.subr.bf16.mxu0 %v16243_v2 }
 0x37d   : > { %11554 = vmatmul.mubr.bf16.gmra.mxu0 %v4600_v22 }
 0x37e   : > { %11600 = vmatpush3.bf16.xpose.msra.mxu0 %v16295_v47  ;;  %11557 = vmatprep.mubr.msk.bf16.mxu0 %vm12569_vm4, %v16243_v2 }
 0x37f   : > { %11601 = vmatprep.subr.bf16.mxu0 %v16243_v2 }
 0x385   : > { %11558 = vmatmul.mubr.bf16.gmra.mxu0 %v4601_v27  ;;  %v6091_v27 = vshrl.u32 %v13831_v37, 16  ;;  %v16306_v37 = vld [vmem:[#allocation28_spill] sm:$0xff] }
 0x386   : > { %11602 = vmatpush3.bf16.xpose.msra.mxu0 %v16296_v55  ;;  %11561 = vmatprep.mubr.msk.bf16.mxu0 %vm12569_vm4, %v16243_v2 }
 0x387   : > { %11603 = vmatprep.subr.bf16.mxu0 %v16243_v2 }
 0x38d   : > { %11562 = vmatmul.mubr.bf16.gmra.mxu0 %v4602_v45  ;;  %v16303_v45 = vld [vmem:[#allocation11_spill] sm:$0xff] }
 0x38e   : > { %11604 = vmatpush3.bf16.xpose.msra.mxu0 %v16297_v44  ;;  %11605 = vmatprep.mubr.msk.bf16.mxu0 %vm12569_vm4, %v16243_v2  ;;  %v16305_v44 = vld [vmem:[#allocation23_spill] sm:$0xff] }
 0x38f   : > { %11655 = vmatprep.subr.bf16.mxu0 %v16243_v2 }
 0x395   : > { %11606 = vmatmul.mubr.bf16.vlgmr.msra.gmra.mxu0 %v16298_v32 }
 0x396   : > { %11656 = vmatpush3.bf16.xpose.msra.mxu0 %v5559_v31  ;;  %11609 = vmatprep.mubr.msk.bf16.mxu0 %vm12569_vm4, %v16243_v2  ;;  %v16307_v31 = vld [vmem:[#allocation43_spill] sm:$0xff] }
 0x397   : > { %v14114_v28 = vpop.f32.mrf.mxu0  ;;  %11657 = vmatprep.subr.bf16.mxu0 %v16243_v2 }
 0x398   : > { %v3691_v63 = vsel %vm3690_vm7, %v14114_v28, -inf }
 0x399   : > { %3692 = vmax.xlane.f32.xlu0 %v3691_v63  ;;  %v11367_v7 = vpop.f32.mrf.mxu0 }
 0x39b   : > { %v14119_v24 = vpop.f32.mrf.mxu0 }
 0x39c   : > { %v3694_v5 = vsel %vm3690_vm7, %v14119_v24, -inf }
 0x39d   : > { %11610 = vmatmul.mubr.bf16.gmra.mxu0 %v16299_v25  ;;  %3695 = vmax.xlane.f32.xlu1 %v3694_v5  ;;  %v11368_v43 = vpop.f32.mrf.mxu0 }
 0x39e   : > { %11658 = vmatpush3.bf16.xpose.msra.mxu0 %v13843_v21  ;;  %11613 = vmatprep.mubr.msk.bf16.mxu0 %vm12569_vm4, %v16243_v2 }
 0x39f   : > { %v14127_v58 = vpop.f32.mrf.mxu0  ;;  %11659 = vmatprep.subr.bf16.mxu0 %v16243_v2 }
 0x3a0   : > { %v3697_v4 = vsel %vm3690_vm7, %v14127_v58, -inf }
 0x3a1   : > { %3698 = vmax.xlane.f32.xlu0 %v3697_v4  ;;  %v11371_v52 = vpop.f32.mrf.mxu0 }
 0x3a2   : > { %v6623_v52 = vshrl.u32 %v14031_v0, 16 }
 0x3a3   : > { %v14132_v40 = vpop.f32.mrf.mxu0 }
 0x3a4   : > { %v3700_v3 = vsel %vm3690_vm7, %v14132_v40, -inf }
 0x3a5   : > { %11614 = vmatmul.mubr.bf16.gmra.mxu0 %v16300_v18  ;;  %3701 = vmax.xlane.f32.xlu1 %v3700_v3  ;;  %v11372_v21 = vpop.f32.mrf.mxu0  ;;  %v16310_v18 = vld [vmem:[#allocation39_spill] sm:$0xff] }
 0x3a6   : > { %11660 = vmatpush3.bf16.xpose.msra.mxu0 %v13834_v14  ;;  %11617 = vmatprep.mubr.msk.bf16.mxu0 %vm12569_vm4, %v16243_v2 }
 0x3a7   : > { %v14140_v13 = vpop.f32.mrf.mxu0  ;;  %11661 = vmatprep.subr.bf16.mxu0 %v16243_v2 }
 0x3a8   : > { %v3703_v61 = vsel %vm3690_vm7, %v14140_v13, -inf }
 0x3a9   : > { %3704 = vmax.xlane.f32.xlu0 %v3703_v61  ;;  %v11375_v19 = vpop.f32.mrf.mxu0 }
 0x3ab   : > { %v14145_v41 = vpop.f32.mrf.mxu0 }
 0x3ac   : > { %v3706_v17 = vsel %vm3690_vm7, %v14145_v41, -inf }
 0x3ad   : > { %11618 = vmatmul.mubr.bf16.gmra.mxu0 %v16301_v48  ;;  %3707 = vmax.xlane.f32.xlu1 %v3706_v17  ;;  %v11376_v14 = vpop.f32.mrf.mxu0 }
 0x3ae   : > { %11662 = vmatpush3.bf16.xpose.msra.mxu0 %v13804_v59  ;;  %11621 = vmatprep.mubr.msk.bf16.mxu0 %vm12569_vm4, %v16243_v2  ;;  %v16311_v14 = vld [vmem:[#allocation42_spill] sm:$0xff] }
 0x3af   : > { %v14153_v53 = vpop.f32.mrf.mxu0  ;;  %11663 = vmatprep.subr.bf16.mxu0 %v16243_v2 }
 0x3b0   : > { %v3709_v62 = vsel %vm3690_vm7, %v14153_v53, -inf }
 0x3b1   : > { %3710 = vmax.xlane.f32.xlu0 %v3709_v62  ;;  %v11379_v34 = vpop.f32.mrf.mxu0 }
 0x3b3   : > { %v14159_v39 = vpop.f32.mrf.mxu0 }
 0x3b4   : > { %v3712_v50 = vsel %vm3690_vm7, %v14159_v39, -inf }
 0x3b5   : > { %11622 = vmatmul.mubr.bf16.gmra.mxu0 %v4979_v11  ;;  %3713 = vmax.xlane.f32.xlu1 %v3712_v50  ;;  %v11380_v59 = vpop.f32.mrf.mxu0 }
 0x3b6   : > { %11664 = vmatpush3.bf16.xpose.msra.mxu0 %v13792_v26  ;;  %11665 = vmatprep.mubr.msk.bf16.mxu0 %vm12569_vm4, %v16243_v2  ;;  %v16304_v26 = vld [vmem:[#allocation15_spill] sm:$0xff] }
 0x3b7   : > { %v14166_v54 = vpop.f32.mrf.mxu0  ;;  %11715 = vmatprep.subr.bf16.mxu0 %v16243_v2 }
 0x3b8   : > { %v3716_v20 = vsel %vm3715_vm8, %v14166_v54, -inf }
 0x3b9   : > { %3717 = vmax.xlane.f32.xlu0 %v3716_v20  ;;  %v11383_v22 = vpop.f32.mrf.mxu0 }
 0x3bb   : > { %v3687_v47 = vpop.f32.mrf.mxu0 }
 0x3bd   : > { %v11384_v55 = vpop.f32.mrf.mxu0  ;;  %11666 = vmatmul.mubr.bf16.vlgmr.msra.gmra.mxu0 %v16303_v45 }
 0x3be   : > { %11716 = vmatpush3.bf16.xpose.msra.mxu0 %v6091_v27  ;;  %11669 = vmatprep.mubr.msk.bf16.mxu0 %vm12569_vm4, %v16243_v2 }
 0x3bf   : > { %11717 = vmatprep.subr.bf16.mxu0 %v16243_v2 }
 0x3c5   : > { %11670 = vmatmul.mubr.bf16.gmra.mxu0 %v16304_v26 }
 0x3c6   : > { %11718 = vmatpush3.bf16.xpose.msra.mxu0 %v13870_v10  ;;  %11673 = vmatprep.mubr.msk.bf16.mxu0 %vm12569_vm4, %v16243_v2  ;;  %v16308_v10 = vld [vmem:[#allocation19_spill] sm:$0xff] }
 0x3c7   : > { %11719 = vmatprep.subr.bf16.mxu0 %v16243_v2  ;;  %v5516_v32 = vshrl.u32 %v16308_v10, 16 }
 0x3cd   : > { %11674 = vmatmul.mubr.bf16.gmra.mxu0 %v16305_v44 }
 0x3ce   : > { %11720 = vmatpush3.bf16.xpose.msra.mxu0 %v13846_v29  ;;  %11677 = vmatprep.mubr.msk.bf16.mxu0 %vm12569_vm4, %v16243_v2  ;;  %v16309_v29 = vld [vmem:[#allocation40_spill] sm:$0xff] }
 0x3cf   : > { %11721 = vmatprep.subr.bf16.mxu0 %v16243_v2 }
 0x3d5   : > { %11678 = vmatmul.mubr.bf16.gmra.mxu0 %v16306_v37 }
 0x3d6   : > { %11722 = vmatpush3.bf16.xpose.msra.mxu0 %v16307_v31  ;;  %11681 = vmatprep.mubr.msk.bf16.mxu0 %vm12569_vm4, %v16243_v2  ;;  %v16314_v31 = vld [vmem:[#allocation45_spill] sm:$0xff] }
 0x3d7   : > { %11723 = vmatprep.subr.bf16.mxu0 %v16243_v2  ;;  %v6048_v10 = vshrl.u32 %v16314_v31, 16  ;;  %v6580_v31 = vshrl.u32 %v14041_v56, 16 }
 0x3dd   : > { %v14192_v63 = vpop.f32.mrf.mxu0  ;;  %11682 = vmatmul.mubr.bf16.gmra.mxu0 %v5516_v32 }
 0x3de   : > { %11724 = vmatpush3.bf16.xpose.msra.mxu0 %v16309_v29  ;;  %v4027_v7 = vsel %vm3690_vm7, %v14192_v63, -inf  ;;  %11725 = vmatprep.mubr.msk.bf16.mxu0 %vm12569_vm4, %v16243_v2 }
 0x3df   : > { %4028 = vmax.xlane.f32.xlu1 %v4027_v7  ;;  %v11427_v5 = vpop.f32.mrf.mxu0  ;;  %11775 = vmatprep.subr.bf16.mxu0 %v16243_v2 }
 0x3e1   : > { %v14200_v25 = vpop.f32.mrf.mxu0 }
 0x3e2   : > { %v4030_v43 = vsel %vm3690_vm7, %v14200_v25, -inf }
 0x3e3   : > { %4031 = vmax.xlane.f32.xlu0 %v4030_v43  ;;  %v11428_v4 = vpop.f32.mrf.mxu0 }
 0x3e5   : > { %v14205_v3 = vpop.f32.mrf.mxu0  ;;  %11726 = vmatmul.mubr.bf16.vlgmr.msra.gmra.mxu0 %v16310_v18 }
 0x3e6   : > { %11776 = vmatpush3.bf16.xpose.msra.mxu0 %v6623_v52  ;;  %v4033_v21 = vsel %vm3690_vm7, %v14205_v3, -inf  ;;  %11729 = vmatprep.mubr.msk.bf16.mxu0 %vm12569_vm4, %v16243_v2 }
 0x3e7   : > { %4034 = vmax.xlane.f32.xlu1 %v4033_v21  ;;  %v11431_v61 = vpop.f32.mrf.mxu0  ;;  %11777 = vmatprep.subr.bf16.mxu0 %v16243_v2 }
 0x3e9   : > { %v14213_v19 = vpop.f32.mrf.mxu0 }
 0x3ea   : > { %v4036_v0 = vsel %vm3690_vm7, %v14213_v19, -inf }
 0x3eb   : > { %4037 = vmax.xlane.f32.xlu0 %v4036_v0  ;;  %v11432_v17 = vpop.f32.mrf.mxu0 }
 0x3ed   : > { %v14217_v48 = vpop.f32.mrf.mxu0  ;;  %11730 = vmatmul.mubr.bf16.gmra.mxu0 %v16311_v14 }
 0x3ee   : > { %11778 = vmatpush3.bf16.xpose.msra.mxu0 %v14051_v49  ;;  %v4039_v62 = vsel %vm3690_vm7, %v14217_v48, -inf  ;;  %11733 = vmatprep.mubr.msk.bf16.mxu0 %vm12569_vm4, %v16243_v2  ;;  %v16312_v49 = vld [vmem:[#allocation48_spill] sm:$0xff] }
 0x3ef   : > { %4040 = vmax.xlane.f32.xlu1 %v4039_v62  ;;  %v11435_v34 = vpop.f32.mrf.mxu0  ;;  %11779 = vmatprep.subr.bf16.mxu0 %v16243_v2 }
 0x3f1   : > { %v14226_v30 = vpop.f32.mrf.mxu0 }
 0x3f2   : > { %v4042_v11 = vsel %vm3690_vm7, %v14226_v30, -inf }
 0x3f3   : > { %4043 = vmax.xlane.f32.xlu0 %v4042_v11  ;;  %v11436_v50 = vpop.f32.mrf.mxu0 }
 0x3f5   : > { %v14230_v59 = vpop.f32.mrf.mxu0  ;;  %11734 = vmatmul.mubr.bf16.gmra.mxu0 %v16312_v49 }
 0x3f6   : > { %11780 = vmatpush3.bf16.xpose.msra.mxu0 %v14046_v51  ;;  %v4045_v20 = vsel %vm3690_vm7, %v14230_v59, -inf  ;;  %11737 = vmatprep.mubr.msk.bf16.mxu0 %vm12569_vm4, %v16243_v2  ;;  %v16313_v51 = vld [vmem:[#allocation49_spill] sm:$0xff] }
 0x3f7   : > { %4046 = vmax.xlane.f32.xlu1 %v4045_v20  ;;  %v11439_v22 = vpop.f32.mrf.mxu0  ;;  %11781 = vmatprep.subr.bf16.mxu0 %v16243_v2 }
 0x3f9   : > { %v14239_v47 = vpop.f32.mrf.mxu0 }
 0x3fa   : > { %v4048_v27 = vsel %vm3690_vm7, %v14239_v47, -inf }
 0x3fb   : > { %4049 = vmax.xlane.f32.xlu0 %v4048_v27  ;;  %v11440_v55 = vpop.f32.mrf.mxu0 }
 0x3fd   : > { %v14243_v45 = vpop.f32.mrf.mxu0  ;;  %11738 = vmatmul.mubr.bf16.gmra.mxu0 %v16313_v51 }
 0x3fe   : > { %11782 = vmatpush3.bf16.xpose.msra.mxu0 %v14013_v35  ;;  %v4051_v26 = vsel %vm3715_vm8, %v14243_v45, -inf  ;;  %11741 = vmatprep.mubr.msk.bf16.mxu0 %vm12569_vm4, %v16243_v2 }
 0x3ff   : > { %4052 = vmax.xlane.f32.xlu1 %v4051_v26  ;;  %v11443_v44 = vpop.f32.mrf.mxu0  ;;  %11783 = vmatprep.subr.bf16.mxu0 %v16243_v2 }
 0x401   : > { %v4024_v37 = vpop.f32.mrf.mxu0 }
 0x403   : > { %v11444_v32 = vpop.f32.mrf.mxu0 }
 0x405   : > { %v14253_v29 = vpop.f32.mrf.mxu0  ;;  %11742 = vmatmul.mubr.bf16.gmra.mxu0 %v6048_v10 }
 0x406   : > { %11784 = vmatpush3.bf16.xpose.msra.mxu0 %v13993_v38  ;;  %v4356_v35 = vsel %vm3690_vm7, %v14253_v29, -inf  ;;  %11785 = vmatprep.mubr.msk.bf16.mxu0 %vm12569_vm4, %v16243_v2 }
 0x407   : > { %4357 = vmax.xlane.f32.xlu0 %v4356_v35  ;;  %v11487_v7 = vpop.f32.mrf.mxu0 }
 0x409   : > { %v14260_v5 = vpop.f32.mrf.mxu0 }
 0x40a   : > { %v4359_v43 = vsel %vm3690_vm7, %v14260_v5, -inf }
 0x40b   : > { %4360 = vmax.xlane.f32.xlu1 %v4359_v43  ;;  %v11488_v4 = vpop.f32.mrf.mxu0 }
 0x40d   : > { %v14264_v52 = vpop.f32.mrf.mxu0  ;;  %11786 = vmatmul.mubr.bf16.vlgmr.msra.gmra.mxu0 %v14000_v1 }
 0x40e   : > { %v4362_v38 = vsel %vm3690_vm7, %v14264_v52, -inf  ;;  %11789 = vmatprep.mubr.msk.bf16.mxu0 %vm12569_vm4, %v16243_v2 }
 0x40f   : > { %4363 = vmax.xlane.f32.xlu0 %v4362_v38  ;;  %v11491_v18 = vpop.f32.mrf.mxu0 }
 0x411   : > { %v14271_v21 = vpop.f32.mrf.mxu0 }
 0x412   : > { %v4365_v61 = vsel %vm3690_vm7, %v14271_v21, -inf }
 0x413   : > { %4366 = vmax.xlane.f32.xlu1 %v4365_v61  ;;  %v11492_v0 = vpop.f32.mrf.mxu0 }
 0x415   : > { %v14275_v17 = vpop.f32.mrf.mxu0  ;;  %11790 = vmatmul.mubr.bf16.gmra.mxu0 %v14024_v33 }
 0x416   : > { %11793 = vmatprep.mubr.msk.bf16.mxu0 %vm12569_vm4, %v16243_v2 }
 0x417   : > { %v11495_v1 = vpop.f32.mrf.mxu0 }
 0x419   : > { %v14280_v14 = vpop.f32.mrf.mxu0 }
 0x41b   : > { %v11496_v62 = vpop.f32.mrf.mxu0 }
 0x41d   : > { %v14282_v34 = vpop.f32.mrf.mxu0  ;;  %11794 = vmatmul.mubr.bf16.gmra.mxu0 %v14054_v9 }
 0x41e   : > { %11797 = vmatprep.mubr.msk.bf16.mxu0 %vm12569_vm4, %v16243_v2 }
 0x41f   : > { %v11499_v11 = vpop.f32.mrf.mxu0 }
 0x421   : > { %v14287_v50 = vpop.f32.mrf.mxu0 }
 0x422   : > { %v3693_v49 = vpop.xlane.xlu0 %3692 }
 0x423   : > { %v3719_v33 = vsub.f32 %v14114_v28, %v3693_v49  ;;  %v11500_v20 = vpop.f32.mrf.mxu0 }
 0x425   : > { %v3728_v22 = vmul.f32 1.442695, %v3719_v33  ;;  %v14290_v27 = vpop.f32.mrf.mxu0  ;;  %11798 = vmatmul.mubr.bf16.gmra.mxu0 %v14074_v15 }
 0x426   : > { %v3696_v55 = vpop.xlane.xlu1 %3695  ;;  %11801 = vmatprep.mubr.msk.bf16.mxu0 %vm12569_vm4, %v16243_v2 }
 0x427   : > { %12167 = vpow2.f32 %v3728_v22  ;;  %v3720_v9 = vsub.f32 %v14119_v24, %v3696_v55  ;;  %v11503_v51 = vpop.f32.mrf.mxu0  ;;  %v4368_v22 = vsel %vm3690_vm7, %v14275_v17, -inf }
 0x429   : > { %v3730_v26 = vmul.f32 1.442695, %v3720_v9  ;;  %v4353_v44 = vpop.f32.mrf.mxu0 }
 0x42a   : > { %v3699_v37 = vpop.xlane.xlu0 %3698 }
 0x42b   : > { %12169 = vpow2.f32 %v3730_v26  ;;  %v3721_v28 = vsub.f32 %v14127_v58, %v3699_v37  ;;  %v11504_v10 = vpop.f32.mrf.mxu0 }
 0x42d   : > { %v3732_v32 = vmul.f32 1.442695, %v3721_v28  ;;  %v14298_v35 = vpop.f32.mrf.mxu0  ;;  %11802 = vmatmul.mubr.bf16.gmra.mxu0 %v6580_v31  ;;  %v4371_v31 = vsel %vm3690_vm7, %v14280_v14, -inf }
 0x42e   : > { %v3702_v15 = vpop.xlane.xlu1 %3701 }
 0x42f   : > { %12171 = vpow2.f32 %v3732_v32  ;;  %v3722_v7 = vsub.f32 %v14132_v40, %v3702_v15  ;;  %v11547_v43 = vpop.f32.mrf.mxu0 }
 0x431   : > { %v3734_v24 = vmul.f32 1.442695, %v3722_v7  ;;  %v14301_v4 = vpop.f32.mrf.mxu0 }
 0x432   : > { %v3705_v38 = vpop.xlane.xlu0 %3704 }
 0x433   : > { %12173 = vpow2.f32 %v3734_v24  ;;  %v3723_v56 = vsub.f32 %v14140_v13, %v3705_v38  ;;  %v11548_v18 = vpop.f32.mrf.mxu0  ;;  %v4374_v24 = vsel %vm3690_vm7, %v14282_v34, -inf }
 0x434   : > { %v14304_v61 = vpop.eup %12167 }
 0x435   : > { %v3736_v58 = vmul.f32 1.442695, %v3723_v56  ;;  %v14306_v0 = vpop.f32.mrf.mxu0  ;;  %v3746_v1 = vsel %vm3690_vm7, %v14304_v61, 0.0 }
 0x436   : > { %v3708_v62 = vpop.xlane.xlu1 %3707  ;;  %3747 = vadd.xlane.f32.xlu0 %v3746_v1 }
 0x437   : > { %12175 = vpow2.f32 %v3736_v58  ;;  %v3724_v40 = vsub.f32 %v14145_v41, %v3708_v62  ;;  %v11551_v11 = vpop.f32.mrf.mxu0 }
 0x438   : > { %v14311_v49 = vpop.eup %12169 }
 0x439   : > { %v3738_v33 = vmul.f32 1.442695, %v3724_v40  ;;  %v14313_v20 = vpop.f32.mrf.mxu0  ;;  %v3749_v13 = vsel %vm3690_vm7, %v14311_v49, 0.0  ;;  %v4377_v40 = vsel %vm3690_vm7, %v14287_v50, -inf }
 0x43a   : > { %v3711_v55 = vpop.xlane.xlu0 %3710  ;;  %3750 = vadd.xlane.f32.xlu1 %v3749_v13  ;;  %4369 = vmax.xlane.f32.xlu0 %v4368_v22  ;;  %v4380_v22 = vsel %vm3715_vm8, %v14290_v27, -inf }
 0x43b   : > { %12177 = vpow2.f32 %v3738_v33  ;;  %v3725_v9 = vsub.f32 %v14153_v53, %v3711_v55  ;;  %v11552_v51 = vpop.f32.mrf.mxu0 }
 0x43c   : > { %v14320_v41 = vpop.eup %12171 }
 0x43d   : > { %v3740_v26 = vmul.f32 1.442695, %v3725_v9  ;;  %v14322_v44 = vpop.f32.mrf.mxu0  ;;  %v3752_v37 = vsel %vm3690_vm7, %v14320_v41, 0.0 }
 0x43e   : > { %v3714_v28 = vpop.xlane.xlu1 %3713  ;;  %3753 = vadd.xlane.f32.xlu0 %v3752_v37  ;;  %4372 = vmax.xlane.f32.xlu1 %v4371_v31 }
 0x43f   : > { %12179 = vpow2.f32 %v3740_v26  ;;  %v3726_v10 = vsub.f32 %v14159_v39, %v3714_v28  ;;  %v11555_v32 = vpop.f32.mrf.mxu0 }
 0x440   : > { %v14329_v53 = vpop.eup %12173  ;;  %v4685_v32 = vsel %vm3690_vm7, %v14298_v35, -inf }
 0x441   : > { %v3742_v15 = vmul.f32 1.442695, %v3726_v10  ;;  %v14331_v7 = vpop.f32.mrf.mxu0  ;;  %v3755_v43 = vsel %vm3690_vm7, %v14329_v53, 0.0 }
 0x442   : > { %v3718_v38 = vpop.xlane.xlu0 %3717  ;;  %3756 = vadd.xlane.f32.xlu1 %v3755_v43  ;;  %4375 = vmax.xlane.f32.xlu0 %v4374_v24 }
 0x443   : > { %12181 = vpow2.f32 %v3742_v15  ;;  %v3727_v56 = vsub.f32 %v14166_v54, %v3718_v38  ;;  %v11556_v18 = vpop.f32.mrf.mxu0 }
 0x444   : > { %v14338_v39 = vpop.eup %12175 }
 0x445   : > { %v3744_v58 = vmul.f32 1.442695, %v3727_v56  ;;  %v14340_v1 = vpop.f32.mrf.mxu0  ;;  %v3758_v62 = vsel %vm3690_vm7, %v14338_v39, 0.0  ;;  %v4688_v56 = vsel %vm3690_vm7, %v14301_v4, -inf }
 0x446   : > { %3759 = vadd.xlane.f32.xlu0 %v3758_v62  ;;  %4378 = vmax.xlane.f32.xlu1 %v4377_v40  ;;  %v4691_v62 = vsel %vm3690_vm7, %v14306_v0, -inf  ;;  %v4694_v40 = vsel %vm3690_vm7, %v14313_v20, -inf }
 0x447   : > { %12183 = vpow2.f32 %v3744_v58  ;;  %v11559_v11 = vpop.f32.mrf.mxu0 }
 0x448   : > { %v14346_v33 = vpop.eup %12177 }
 0x449   : > { %v14348_v13 = vpop.f32.mrf.mxu0  ;;  %v3761_v54 = vsel %vm3690_vm7, %v14346_v33, 0.0 }
 0x44a   : > { %3762 = vadd.xlane.f32.xlu1 %v3761_v54  ;;  %4381 = vmax.xlane.f32.xlu0 %v4380_v22 }
 0x44b   : > { %v11560_v55 = vpop.f32.mrf.mxu0 }
 0x44c   : > { %v14354_v9 = vpop.eup %12179 }
 0x44d   : > { %v14356_v51 = vpop.f32.mrf.mxu0  ;;  %v3764_v26 = vsel %vm3690_vm7, %v14354_v9, 0.0 }
 0x44e   : > { %3765 = vadd.xlane.f32.xlu1 %v3764_v26 }
 0x44f   : > { %v11563_v37 = vpop.f32.mrf.mxu0 }
 0x450   : > { %v14360_v31 = vpop.eup %12181 }
 0x451   : > { %v4682_v28 = vpop.f32.mrf.mxu0  ;;  %v3767_v10 = vsel %vm3690_vm7, %v14360_v31, 0.0 }
 0x452   : > { %3768 = vadd.xlane.f32.xlu0 %v3767_v10  ;;  %4686 = vmax.xlane.f32.xlu1 %v4685_v32 }
 0x453   : > { %v11564_v15 = vpop.f32.mrf.mxu0 }
 0x454   : > { %v14366_v43 = vpop.eup %12183 }
 0x455   : > { %v14368_v24 = vpop.f32.mrf.mxu0  ;;  %v3770_v38 = vsel %vm3715_vm8, %v14366_v43, 0.0 }
 0x456   : > { %3771 = vadd.xlane.f32.xlu1 %v3770_v38  ;;  %4689 = vmax.xlane.f32.xlu0 %v4688_v56 }
 0x457   : > { %v11607_v18 = vpop.f32.mrf.mxu0 }
 0x459   : > { %v14374_v58 = vpop.f32.mrf.mxu0 }
 0x45a   : > { %4692 = vmax.xlane.f32.xlu0 %v4691_v62  ;;  %4695 = vmax.xlane.f32.xlu1 %v4694_v40 }
 0x45b   : > { %v11608_v11 = vpop.f32.mrf.mxu0 }
 0x45d   : > { %v14380_v54 = vpop.f32.mrf.mxu0 }
 0x45f   : > { %v11611_v22 = vpop.f32.mrf.mxu0 }
 0x461   : > { %v14382_v55 = vpop.f32.mrf.mxu0 }
 0x463   : > { %v11612_v26 = vpop.f32.mrf.mxu0 }
 0x465   : > { %v14384_v37 = vpop.f32.mrf.mxu0 }
 0x466   : > { %16315 = vst [vmem:[#allocation18_spill] sm:$0xff] %v14384_v37 }
 0x467   : > { %v11615_v28 = vpop.f32.mrf.mxu0 }
 0x468   : > { %v4029_v10 = vpop.xlane.xlu1 %4028 }
 0x469   : > { %v4054_v32 = vsub.f32 %v14192_v63, %v4029_v10  ;;  %v14387_v15 = vpop.f32.mrf.mxu0 }
 0x46a   : > { %16316 = vst [vmem:[#allocation27_spill] sm:$0xff] %v14387_v15 }
 0x46b   : > { %v4063_v38 = vmul.f32 1.442695, %v4054_v32  ;;  %v11616_v56 = vpop.f32.mrf.mxu0 }
 0x46c   : > { %v4032_v18 = vpop.xlane.xlu0 %4031 }
 0x46d   : > { %12185 = vpow2.f32 %v4063_v38  ;;  %v4055_v62 = vsub.f32 %v14200_v25, %v4032_v18  ;;  %v14390_v40 = vpop.f32.mrf.mxu0 }
 0x46e   : > { %16317 = vst [vmem:[#allocation21_spill] sm:$0xff] %v14390_v40 }
 0x46f   : > { %v4065_v11 = vmul.f32 1.442695, %v4055_v62  ;;  %v11619_v22 = vpop.f32.mrf.mxu0 }
 0x470   : > { %v4035_v12 = vpop.xlane.xlu1 %4034 }
 0x471   : > { %12187 = vpow2.f32 %v4065_v11  ;;  %v4056_v26 = vsub.f32 %v14205_v3, %v4035_v12  ;;  %v14393_v28 = vpop.f32.mrf.mxu0 }
 0x472   : > { %16318 = vst [vmem:[#allocation14_spill] sm:$0xff] %v14393_v28 }
 0x473   : > { %v4067_v8 = vmul.f32 1.442695, %v4056_v26  ;;  %v11620_v63 = vpop.f32.mrf.mxu0 }
 0x474   : > { %v4038_v10 = vpop.xlane.xlu0 %4037 }
 0x475   : > { %12189 = vpow2.f32 %v4067_v8  ;;  %v4057_v32 = vsub.f32 %v14213_v19, %v4038_v10  ;;  %v14396_v56 = vpop.f32.mrf.mxu0 }
 0x477   : > { %v4069_v38 = vmul.f32 1.442695, %v4057_v32  ;;  %v11623_v25 = vpop.f32.mrf.mxu0 }
 0x478   : > { %v4041_v18 = vpop.xlane.xlu1 %4040  ;;  %v4697_v25 = vsel %vm3690_vm7, %v14322_v44, -inf }
 0x479   : > { %12191 = vpow2.f32 %v4069_v38  ;;  %v4058_v62 = vsub.f32 %v14217_v48, %v4041_v18  ;;  %v5098_v22 = vpop.f32.mrf.mxu0 }
 0x47a   : > { %v14399_v11 = vpop.eup %12185 }
 0x47b   : > { %v4071_v12 = vmul.f32 1.442695, %v4058_v62  ;;  %v11624_v3 = vpop.f32.mrf.mxu0  ;;  %v4081_v26 = vsel %vm3690_vm7, %v14399_v11, 0.0 }
 0x47c   : > { %v4044_v63 = vpop.xlane.xlu0 %4043  ;;  %4082 = vadd.xlane.f32.xlu0 %v4081_v26 }
 0x47d   : > { %12193 = vpow2.f32 %v4071_v12  ;;  %v4059_v8 = vsub.f32 %v14226_v30, %v4044_v63  ;;  %v14404_v19 = vpop.f32.mrf.mxu0  ;;  %v4700_v63 = vsel %vm3690_vm7, %v14331_v7, -inf }
 0x47e   : > { %v14406_v10 = vpop.eup %12187 }
 0x47f   : > { %v4073_v32 = vmul.f32 1.442695, %v4059_v8  ;;  %v11667_v38 = vpop.f32.mrf.mxu0  ;;  %v4084_v48 = vsel %vm3690_vm7, %v14406_v10, 0.0 }
 0x480   : > { %v4047_v18 = vpop.xlane.xlu1 %4046  ;;  %4085 = vadd.xlane.f32.xlu1 %v4084_v48  ;;  %4698 = vmax.xlane.f32.xlu0 %v4697_v25 }
 0x481   : > { %12195 = vpow2.f32 %v4073_v32  ;;  %v4060_v62 = vsub.f32 %v14230_v59, %v4047_v18  ;;  %v14413_v22 = vpop.f32.mrf.mxu0 }
 0x482   : > { %v14415_v30 = vpop.eup %12189 }
 0x483   : > { %v4075_v12 = vmul.f32 1.442695, %v4060_v62  ;;  %v11668_v3 = vpop.f32.mrf.mxu0  ;;  %v4087_v26 = vsel %vm3690_vm7, %v14415_v30, 0.0  ;;  %v4703_v62 = vsel %vm3690_vm7, %v14340_v1, -inf }
 0x484   : > { %v4050_v8 = vpop.xlane.xlu0 %4049  ;;  %4088 = vadd.xlane.f32.xlu0 %v4087_v26  ;;  %4701 = vmax.xlane.f32.xlu1 %v4700_v63 }
 0x485   : > { %12197 = vpow2.f32 %v4075_v12  ;;  %v4061_v32 = vsub.f32 %v14239_v47, %v4050_v8  ;;  %v14422_v38 = vpop.f32.mrf.mxu0 }
 0x486   : > { %v14424_v59 = vpop.eup %12191 }
 0x487   : > { %v4077_v48 = vmul.f32 1.442695, %v4061_v32  ;;  %v11671_v25 = vpop.f32.mrf.mxu0  ;;  %v4090_v18 = vsel %vm3690_vm7, %v14424_v59, 0.0 }
 0x488   : > { %v4053_v3 = vpop.xlane.xlu1 %4052  ;;  %4091 = vadd.xlane.f32.xlu1 %v4090_v18  ;;  %4704 = vmax.xlane.f32.xlu0 %v4703_v62  ;;  %v4706_v25 = vsel %vm3690_vm7, %v14348_v13, -inf }
 0x489   : > { %12199 = vpow2.f32 %v4077_v48  ;;  %v4062_v12 = vsub.f32 %v14243_v45, %v4053_v3  ;;  %v14431_v26 = vpop.f32.mrf.mxu0  ;;  %v4709_v3 = vsel %vm3715_vm8, %v14356_v51, -inf }
 0x48a   : > { %v14433_v47 = vpop.eup %12193 }
 0x48b   : > { %v4079_v63 = vmul.f32 1.442695, %v4062_v12  ;;  %v11672_v8 = vpop.f32.mrf.mxu0  ;;  %v4093_v32 = vsel %vm3690_vm7, %v14433_v47, 0.0 }
 0x48c   : > { %4094 = vadd.xlane.f32.xlu0 %v4093_v32  ;;  %4707 = vmax.xlane.f32.xlu1 %v4706_v25 }
 0x48d   : > { %12201 = vpow2.f32 %v4079_v63  ;;  %v14439_v18 = vpop.f32.mrf.mxu0 }
 0x48e   : > { %v14441_v48 = vpop.eup %12195 }
 0x48f   : > { %v11675_v45 = vpop.f32.mrf.mxu0  ;;  %v4096_v62 = vsel %vm3690_vm7, %v14441_v48, 0.0 }
 0x490   : > { %v4358_v12 = vpop.xlane.xlu0 %4357  ;;  %4097 = vadd.xlane.f32.xlu1 %v4096_v62  ;;  %4710 = vmax.xlane.f32.xlu0 %v4709_v3 }
 0x491   : > { %v4383_v8 = vsub.f32 %v14253_v29, %v4358_v12  ;;  %v14448_v23 = vpop.f32.mrf.mxu0 }
 0x492   : > { %v14450_v32 = vpop.eup %12197 }
 0x493   : > { %v4392_v63 = vmul.f32 1.442695, %v4383_v8  ;;  %v11676_v25 = vpop.f32.mrf.mxu0  ;;  %v4099_v45 = vsel %vm3690_vm7, %v14450_v32, 0.0  ;;  %v5101_v8 = vsel %vm3690_vm7, %v14368_v24, -inf }
 0x494   : > { %v4361_v16 = vpop.xlane.xlu1 %4360  ;;  %4100 = vadd.xlane.f32.xlu1 %v4099_v45 }
 0x495   : > { %12203 = vpow2.f32 %v4392_v63  ;;  %v4384_v6 = vsub.f32 %v14260_v5, %v4361_v16  ;;  %v14455_v57 = vpop.f32.mrf.mxu0 }
 0x496   : > { %v14457_v62 = vpop.eup %12199 }
 0x497   : > { %v4394_v3 = vmul.f32 1.442695, %v4384_v6  ;;  %v11679_v29 = vpop.f32.mrf.mxu0  ;;  %v4102_v12 = vsel %vm3690_vm7, %v14457_v62, 0.0 }
 0x498   : > { %v4364_v25 = vpop.xlane.xlu0 %4363  ;;  %4103 = vadd.xlane.f32.xlu0 %v4102_v12  ;;  %5102 = vmax.xlane.f32.xlu1 %v5101_v8  ;;  %v5104_v29 = vsel %vm3690_vm7, %v14374_v58, -inf }
 0x499   : > { %12205 = vpow2.f32 %v4394_v3  ;;  %v4385_v63 = vsub.f32 %v14264_v52, %v4364_v25  ;;  %v14464_v45 = vpop.f32.mrf.mxu0  ;;  %v5107_v25 = vsel %vm3690_vm7, %v14380_v54, -inf }
 0x49a   : > { %v14466_v16 = vpop.eup %12201 }
 0x49b   : > { %16319 = vst [vmem:[#allocation10_spill] sm:$0xff] %v14466_v16  ;;  %v4396_v5 = vmul.f32 1.442695, %v4385_v63  ;;  %v11680_v60 = vpop.f32.mrf.mxu0  ;;  %v4105_v6 = vsel %vm3715_vm8, %v14466_v16, 0.0 }
 0x49c   : > { %v4367_v46 = vpop.xlane.xlu1 %4366  ;;  %4106 = vadd.xlane.f32.xlu1 %v4105_v6  ;;  %5105 = vmax.xlane.f32.xlu0 %v5104_v29  ;;  %v5110_v60 = vsel %vm3690_vm7, %v14382_v55, -inf }
 0x49d   : > { %12207 = vpow2.f32 %v4396_v5  ;;  %v4386_v3 = vsub.f32 %v14271_v21, %v4367_v46  ;;  %v14473_v12 = vpop.f32.mrf.mxu0 }
 0x49f   : > { %v4398_v52 = vmul.f32 1.442695, %v4386_v3  ;;  %v11683_v8 = vpop.f32.mrf.mxu0 }
 0x4a0   : > { %5108 = vmax.xlane.f32.xlu0 %v5107_v25  ;;  %5111 = vmax.xlane.f32.xlu1 %v5110_v60  ;;  %v5113_v8 = vsel %vm3690_vm7, %v14384_v37, -inf }
 0x4a1   : > { %12209 = vpow2.f32 %v4398_v52  ;;  %v5635_v63 = vpop.f32.mrf.mxu0 }
 0x4a2   : > { %v14479_v42 = vpop.eup %12203 }
 0x4a3   : > { %16320 = vst [vmem:[#allocation8_spill] sm:$0xff] %v14479_v42  ;;  %v11684_v6 = vpop.f32.mrf.mxu0  ;;  %v4410_v46 = vsel %vm3690_vm7, %v14479_v42, 0.0 }
 0x4a4   : > { %4411 = vadd.xlane.f32.xlu0 %v4410_v46  ;;  %v5116_v6 = vsel %vm3690_vm7, %v14387_v15, -inf }
 0x4a5   : > { %v14483_v21 = vpop.f32.mrf.mxu0 }
 0x4a6   : > { %v14485_v5 = vpop.eup %12205 }
 0x4a7   : > { %16321 = vst [vmem:[#allocation12_spill] sm:$0xff] %v14485_v5  ;;  %v11727_v29 = vpop.f32.mrf.mxu0  ;;  %v4413_v3 = vsel %vm3690_vm7, %v14485_v5, 0.0 }
 0x4a8   : > { %4414 = vadd.xlane.f32.xlu1 %v4413_v3  ;;  %5114 = vmax.xlane.f32.xlu0 %v5113_v8  ;;  %v5119_v8 = vsel %vm3690_vm7, %v14390_v40, -inf }
 0x4a9   : > { %v14491_v52 = vpop.f32.mrf.mxu0 }
 0x4aa   : > { %v14493_v25 = vpop.eup %12207 }
 0x4ab   : > { %16322 = vst [vmem:[#allocation20_spill] sm:$0xff] %v14493_v25  ;;  %v11728_v60 = vpop.f32.mrf.mxu0  ;;  %v4416_v63 = vsel %vm3690_vm7, %v14493_v25, 0.0 }
 0x4ac   : > { %4417 = vadd.xlane.f32.xlu0 %v4416_v63  ;;  %5117 = vmax.xlane.f32.xlu1 %v5116_v6  ;;  %v5122_v63 = vsel %vm3690_vm7, %v14393_v28, -inf }
 0x4ad   : > { %v14499_v46 = vpop.f32.mrf.mxu0 }
 0x4ae   : > { %16323 = vst [vmem:[#allocation22_spill] sm:$0xff] %v14499_v46  ;;  %v14501_v29 = vpop.eup %12209 }
 0x4af   : > { %16324 = vst [vmem:[#allocation16_spill] sm:$0xff] %v14501_v29  ;;  %v11731_v36 = vpop.f32.mrf.mxu0  ;;  %v4419_v3 = vsel %vm3690_vm7, %v14501_v29, 0.0 }
 0x4b0   : > { %4420 = vadd.xlane.f32.xlu1 %v4419_v3  ;;  %5120 = vmax.xlane.f32.xlu0 %v5119_v8 }
 0x4b1   : > { %v14507_v60 = vpop.f32.mrf.mxu0 }
 0x4b3   : > { %v11732_v25 = vpop.f32.mrf.mxu0 }
 0x4b4   : > { %5123 = vmax.xlane.f32.xlu1 %v5122_v63 }
 0x4b5   : > { %v14511_v6 = vpop.f32.mrf.mxu0 }
 0x4b6   : > { %16325 = vst [vmem:[#allocation11_spill] sm:$0xff] %v14511_v6 }
 0x4b7   : > { %v11735_v5 = vpop.f32.mrf.mxu0 }
 0x4b9   : > { %v14513_v42 = vpop.f32.mrf.mxu0 }
 0x4ba   : > { %16326 = vst [vmem:[#allocation15_spill] sm:$0xff] %v14513_v42 }
 0x4bb   : > { %v11736_v36 = vpop.f32.mrf.mxu0 }
 0x4bd   : > { %v14515_v16 = vpop.f32.mrf.mxu0 }
 0x4be   : > { %16327 = vst [vmem:[#allocation23_spill] sm:$0xff] %v14515_v16 }
 0x4bf   : > { %v3748_v29 = vpop.xlane.xlu0 %3747  ;;  %v11739_v15 = vpop.f32.mrf.mxu0 }
 0x4c0   : > { %12211 = vrcp.f32 %v3748_v29 }
 0x4c1   : > { %v14517_v40 = vpop.f32.mrf.mxu0 }
 0x4c2   : > { %16328 = vst [vmem:[#allocation28_spill] sm:$0xff] %v14517_v40 }
 0x4c3   : > { %v3751_v3 = vpop.xlane.xlu1 %3750  ;;  %v4370_v8 = vpop.xlane.xlu0 %4369 }
 0x4c4   : > { %12213 = vrcp.f32 %v3751_v3  ;;  %v4387_v25 = vsub.f32 %v14275_v17, %v4370_v8  ;;  %v11740_v28 = vpop.f32.mrf.mxu0 }
 0x4c6   : > { %v4400_v63 = vmul.f32 1.442695, %v4387_v25  ;;  %v14520_v37 = vpop.f32.mrf.mxu0 }
 0x4c7   : > { %16329 = vst [vmem:[#allocation43_spill] sm:$0xff] %v14520_v37  ;;  %v3754_v5 = vpop.xlane.xlu0 %3753  ;;  %v4373_v6 = vpop.xlane.xlu1 %4372 }
 0x4c8   : > { %12215 = vpow2.f32 %v4400_v63  ;;  %v4388_v36 = vsub.f32 %v14280_v14, %v4373_v6  ;;  %v11743_v16 = vpop.f32.mrf.mxu0  ;;  %v16330_v63 = vld [vmem:[#allocation38_spill] sm:$0xff] }
 0x4c9   : > { %12217 = vrcp.f32 %v3754_v5  ;;  %v3954_v5 = vpack.c.bf16 %v16330_v63, %v16330_v63 }
 0x4ca   : > { %v4402_v42 = vmul.f32 1.442695, %v4388_v36  ;;  %v6167_v15 = vpop.f32.mrf.mxu0 }
 0x4cb   : > { %v3757_v40 = vpop.xlane.xlu1 %3756  ;;  %v4376_v29 = vpop.xlane.xlu0 %4375 }
 0x4cc   : > { %12219 = vpow2.f32 %v4402_v42  ;;  %v4389_v3 = vsub.f32 %v14282_v34, %v4376_v29  ;;  %v11744_v46 = vpop.f32.mrf.mxu0 }
 0x4cd   : > { %12221 = vrcp.f32 %v3757_v40  ;;  %v12212_v8 = vpop.eup %12211 }
 0x4ce   : > { %v4404_v17 = vmul.f32 1.442695, %v4389_v3  ;;  %v14524_v28 = vpop.f32.mrf.mxu0  ;;  %v3782_v42 = vmul.f32 %v12212_v8, %v14304_v61 }
 0x4cf   : > { %v3760_v25 = vpop.xlane.xlu0 %3759  ;;  %v4379_v37 = vpop.xlane.xlu1 %4378 }
 0x4d0   : > { %12223 = vpow2.f32 %v4404_v17  ;;  %v4390_v14 = vsub.f32 %v14287_v50, %v4379_v37  ;;  %v11787_v16 = vpop.f32.mrf.mxu0  ;;  %v16331_v17 = vld [vmem:[#allocation7_spill] sm:$0xff] }
 0x4d1   : > { %v12214_v6 = vpop.eup %12213  ;;  %12225 = vrcp.f32 %v3760_v25  ;;  %v4147_v16 = vand.u32 %v3954_v5, %v16331_v17  ;;  %v16333_v5 = vld [vmem:[#allocation37_spill] sm:$0xff] }
 0x4d2   : > { %v3783_v34 = vmul.f32 %v12214_v6, %v14311_v49  ;;  %v4406_v46 = vmul.f32 1.442695, %v4390_v14  ;;  %v14531_v40 = vpop.f32.mrf.mxu0  ;;  %v16332_v6 = vld [vmem:[#allocation35_spill] sm:$0xff] }
 0x4d3   : > { %v3763_v36 = vpop.xlane.xlu1 %3762  ;;  %v4382_v15 = vpop.xlane.xlu0 %4381 }
 0x4d4   : > { %12227 = vpow2.f32 %v4406_v46  ;;  %v4391_v29 = vsub.f32 %v14290_v27, %v4382_v15  ;;  %v11788_v3 = vpop.f32.mrf.mxu0  ;;  %v3791_v50 = vpack.c.bf16 %v3783_v34, %v3782_v42  ;;  %v3953_v42 = vpack.c.bf16 %v16333_v5, %v16332_v6  ;;  %v16335_v6 = vld [vmem:[#allocation32_spill] sm:$0xff]  ;;  %v16336_v5 = vld [vmem:[#allocation33_spill] sm:$0xff] }
 0x4d5   : > { %v14534_v37 = vpop.eup %12215  ;;  %12229 = vrcp.f32 %v3763_v36  ;;  %v5125_v3 = vsel %vm3715_vm8, %v14396_v56, -inf }
 0x4d6   : > { %v4408_v63 = vmul.f32 1.442695, %v4391_v29  ;;  %v14537_v61 = vpop.f32.mrf.mxu0  ;;  %11396 = vmatmul.mubr.msk.bf16.vlgmr.msra.gmra.mxu1 %vm3690_vm7, %v3791_v50  ;;  %v4422_v49 = vsel %vm3690_vm7, %v14534_v37, 0.0  ;;  %v12218_v25 = vpop.eup %12217 }
 0x4d7   : > { %11446 = vmatpush3.bf16.msra.mxu1 %v4147_v16  ;;  %v3766_v8 = vpop.xlane.xlu1 %3765  ;;  %4423 = vadd.xlane.f32.xlu0 %v4422_v49  ;;  %v3784_v50 = vmul.f32 %v12218_v25, %v14320_v41 }
 0x4d8   : > { %12231 = vpow2.f32 %v4408_v63  ;;  %v11791_v27 = vpop.f32.mrf.mxu0  ;;  %11447 = vmatprep.subr.bf16.mxu1 %v16243_v2  ;;  %11399 = vmatprep.mubr.msk.bf16.mxu1 %vm12569_vm4, %v16243_v2 }
 0x4d9   : > { %v14545_v14 = vpop.eup %12219  ;;  %12233 = vrcp.f32 %v3766_v8 }
 0x4da   : > { %v12222_v34 = vpop.eup %12221  ;;  %v14549_v46 = vpop.f32.mrf.mxu0  ;;  %v4425_v36 = vsel %vm3690_vm7, %v14545_v14, 0.0 }
 0x4db   : > { %16334 = vst [vmem:[#allocation19_spill] sm:$0xff] %v14549_v46  ;;  %11448 = vmatpush3.bf16.msra.mxu1 %v3953_v42  ;;  %v3769_v15 = vpop.xlane.xlu0 %3768  ;;  %v4687_v29 = vpop.xlane.xlu1 %4686  ;;  %4426 = vadd.xlane.f32.xlu1 %v4425_v36  ;;  %v3785_v16 = vmul.f32 %v12222_v34, %v14329_v53  ;;  %v3952_v42 = vpack.c.bf16 %v16336_v5, %v16335_v6 }
 0x4dc   : > { %12235 = vrcp.f32 %v3769_v15  ;;  %v4712_v63 = vsub.f32 %v14298_v35, %v4687_v29  ;;  %5126 = vmax.xlane.f32.xlu0 %v5125_v3  ;;  %v11792_v49 = vpop.f32.mrf.mxu0  ;;  %11449 = vmatprep.subr.bf16.mxu1 %v16243_v2 }
 0x4dd   : > { %v14559_v8 = vpop.eup %12223  ;;  %v3792_v27 = vpack.c.bf16 %v3785_v16, %v3784_v50  ;;  %v16338_v50 = vld [vmem:[#allocation30_spill] sm:$0xff]  ;;  %v16339_v16 = vld [vmem:[#allocation31_spill] sm:$0xff] }
 0x4de   : > { %v4721_v36 = vmul.f32 1.442695, %v4712_v63  ;;  %v14563_v46 = vpop.f32.mrf.mxu0  ;;  %v4428_v41 = vsel %vm3690_vm7, %v14559_v8, 0.0  ;;  %v12226_v25 = vpop.eup %12225  ;;  %v3951_v63 = vpack.c.bf16 %v16339_v16, %v16338_v50  ;;  %v16341_v16 = vld [vmem:[#allocation26_spill] sm:$0xff] }
 0x4df   : > { %16337 = vst [vmem:[#allocation40_spill] sm:$0xff] %v14563_v46  ;;  %11400 = vmatmul.mubr.msk.bf16.gmra.mxu1 %vm3690_vm7, %v3792_v27  ;;  %v3772_v53 = vpop.xlane.xlu1 %3771  ;;  %v4690_v35 = vpop.xlane.xlu0 %4689  ;;  %4429 = vadd.xlane.f32.xlu1 %v4428_v41 }
 0x4e0   : > { %12237 = vpow2.f32 %v4721_v36  ;;  %11450 = vmatpush3.bf16.msra.mxu1 %v3952_v42  ;;  %v4713_v34 = vsub.f32 %v14301_v4, %v4690_v35  ;;  %v11795_v15 = vpop.f32.mrf.mxu0  ;;  %11403 = vmatprep.mubr.msk.bf16.mxu1 %vm12569_vm4, %v16243_v2  ;;  %v5638_v4 = vsel %vm3690_vm7, %v14404_v19, -inf  ;;  %v3786_v36 = vmul.f32 %v12226_v25, %v14338_v39 }
 0x4e1   : > { %v14571_v29 = vpop.eup %12227  ;;  %12239 = vrcp.f32 %v3772_v53  ;;  %11451 = vmatprep.subr.bf16.mxu1 %v16243_v2 }
 0x4e2   : > { %v12230_v3 = vpop.eup %12229  ;;  %v4723_v49 = vmul.f32 1.442695, %v4713_v34  ;;  %v14576_v27 = vpop.f32.mrf.mxu0  ;;  %v4431_v6 = vsel %vm3690_vm7, %v14571_v29, 0.0 }
 0x4e3   : > { %16340 = vst [vmem:[#allocation39_spill] sm:$0xff] %v14576_v27  ;;  %v4693_v5 = vpop.xlane.xlu0 %4692  ;;  %v4696_v42 = vpop.xlane.xlu1 %4695  ;;  %4432 = vadd.xlane.f32.xlu0 %v4431_v6  ;;  %5639 = vmax.xlane.f32.xlu1 %v5638_v4  ;;  %v3787_v41 = vmul.f32 %v12230_v3, %v14346_v33  ;;  %v16342_v27 = vld [vmem:[#allocation29_spill] sm:$0xff] }
 0x4e4   : > { %12241 = vpow2.f32 %v4723_v49  ;;  %11452 = vmatpush3.bf16.msra.mxu1 %v3951_v63  ;;  %v4714_v53 = vsub.f32 %v14306_v0, %v4693_v5  ;;  %v4715_v35 = vsub.f32 %v14313_v20, %v4696_v42  ;;  %v11796_v34 = vpop.f32.mrf.mxu0  ;;  %v3950_v6 = vpack.c.bf16 %v16342_v27, %v16341_v16 }
 0x4e5   : > { %v14586_v15 = vpop.eup %12231  ;;  %11453 = vmatprep.subr.bf16.mxu1 %v16243_v2  ;;  %v3793_v50 = vpack.c.bf16 %v3787_v41, %v3786_v36  ;;  %v5641_v0 = vsel %vm3690_vm7, %v14413_v22, -inf  ;;  %v5647_v49 = vsel %vm3690_vm7, %v14431_v26, -inf  ;;  %v5644_v42 = vsel %vm3690_vm7, %v14422_v38, -inf }
 0x4e6   : > { %v4725_v4 = vmul.f32 1.442695, %v4714_v53  ;;  %v4727_v46 = vmul.f32 1.442695, %v4715_v35  ;;  %v14591_v39 = vpop.f32.mrf.mxu0  ;;  %v4434_v33 = vsel %vm3715_vm8, %v14586_v15, 0.0  ;;  %v12234_v25 = vpop.eup %12233 }
 0x4e7   : > { %11404 = vmatmul.mubr.msk.bf16.gmra.mxu1 %vm3690_vm7, %v3793_v50  ;;  %4435 = vadd.xlane.f32.xlu1 %v4434_v33  ;;  %v3788_v27 = vmul.f32 %v12234_v25, %v14354_v9 }
 0x4e8   : > { %12243 = vpow2.f32 %v4725_v4  ;;  %11454 = vmatpush3.bf16.msra.mxu1 %v3950_v6  ;;  %5642 = vmax.xlane.f32.xlu0 %v5641_v0  ;;  %v11799_v20 = vpop.f32.mrf.mxu0  ;;  %v5650_v4 = vsel %vm3690_vm7, %v14439_v18, -inf }
 0x4e9   : > { %v12236_v3 = vpop.eup %12235  ;;  %11407 = vmatprep.mubr.msk.bf16.mxu1 %vm12569_vm4, %v16243_v2  ;;  %11505 = vmatprep.subr.bf16.mxu1 %v16243_v2  ;;  %12245 = vpow2.f32 %v4727_v46 }
 0x4ea   : > { %v14601_v63 = vpop.f32.mrf.mxu0  ;;  %v3789_v5 = vmul.f32 %v12236_v3, %v14360_v31  ;;  %v5653_v3 = vsel %vm3690_vm7, %v14448_v23, -inf }
 0x4eb   : > { %5648 = vmax.xlane.f32.xlu1 %v5647_v49 }
 0x4ec   : > { %5645 = vmax.xlane.f32.xlu0 %v5644_v42  ;;  %v11800_v36 = vpop.f32.mrf.mxu0  ;;  %v3794_v41 = vpack.c.bf16 %v3789_v5, %v3788_v27  ;;  %v5656_v27 = vsel %vm3690_vm7, %v14455_v57, -inf  ;;  %v5659_v5 = vsel %vm3690_vm7, %v14464_v45, -inf }
 0x4ed   : > { %v14609_v53 = vpop.eup %12237 }
 0x4ee   : > { %v12240_v35 = vpop.eup %12239  ;;  %v14611_v46 = vpop.f32.mrf.mxu0  ;;  %v4739_v34 = vsel %vm3690_vm7, %v14609_v53, 0.0 }
 0x4ef   : > { %11408 = vmatmul.mubr.msk.bf16.gmra.mxu1 %vm3690_vm7, %v3794_v41  ;;  %v3790_v50 = vmul.f32 %v12240_v35, %v14366_v43 }
 0x4f0   : > { %4740 = vadd.xlane.f32.xlu0 %v4739_v34  ;;  %v11803_v9 = vpop.f32.mrf.mxu0  ;;  %11411 = vmatprep.mubr.msk.bf16.mxu1 %vm12569_vm4, %v16243_v2 }
 0x4f1   : > { %v14618_v31 = vpop.eup %12241  ;;  %v3795_v0 = vpack.c.bf16 %v3790_v50, %v3790_v50 }
 0x4f2   : > { %v6699_v16 = vpop.f32.mrf.mxu0  ;;  %v4742_v6 = vsel %vm3690_vm7, %v14618_v31, 0.0 }
 0x4f3   : > { %4743 = vadd.xlane.f32.xlu1 %v4742_v6 }
 0x4f4   : > { %5651 = vmax.xlane.f32.xlu0 %v5650_v4  ;;  %v11804_v33 = vpop.f32.mrf.mxu0 }
 0x4f5   : > { %v14625_v25 = vpop.eup %12243 }
 0x4f6   : > { %v4745_v20 = vsel %vm3690_vm7, %v14625_v25, 0.0  ;;  %v14631_v43 = vpop.eup %12245 }
 0x4f7   : > { %11412 = vmatmul.mubr.msk.bf16.gmra.mxu1 %vm3690_vm7, %v3795_v0  ;;  %5654 = vmax.xlane.f32.xlu1 %v5653_v3  ;;  %v4748_v49 = vsel %vm3690_vm7, %v14631_v43, 0.0 }
 0x4f8   : > { %4746 = vadd.xlane.f32.xlu0 %v4745_v20  ;;  %11455 = vmatprep.mubr.msk.bf16.mxu1 %vm12569_vm4, %v16243_v2 }
 0x4fb   : > { %4749 = vadd.xlane.f32.xlu1 %v4748_v49 }
 0x4fc   : > { %5657 = vmax.xlane.f32.xlu0 %v5656_v27 }
 0x4ff   : > { %5660 = vmax.xlane.f32.xlu1 %v5659_v5 }
 0x505   : > { %v4083_v42 = vpop.xlane.xlu0 %4082 }
 0x506   : > { %12247 = vrcp.f32 %v4083_v42  ;;  %v16343_v42 = vld [vmem:[#allocation67_spill] sm:$0xff] }
 0x509   : > { %v4086_v36 = vpop.xlane.xlu1 %4085  ;;  %v4699_v41 = vpop.xlane.xlu0 %4698 }
 0x50a   : > { %12249 = vrcp.f32 %v4086_v36  ;;  %v4716_v35 = vsub.f32 %v14322_v44, %v4699_v41  ;;  %v4283_v36 = vpack.c.bf16 %v16343_v42, %v16343_v42 }
 0x50c   : > { %v4729_v34 = vmul.f32 1.442695, %v4716_v35 }
 0x50d   : > { %v4089_v9 = vpop.xlane.xlu0 %4088  ;;  %v4702_v50 = vpop.xlane.xlu1 %4701 }
 0x50e   : > { %12251 = vpow2.f32 %v4729_v34  ;;  %v4717_v16 = vsub.f32 %v14331_v7, %v4702_v50 }
 0x50f   : > { %12253 = vrcp.f32 %v4089_v9 }
 0x510   : > { %v4731_v6 = vmul.f32 1.442695, %v4717_v16 }
 0x511   : > { %v4092_v4 = vpop.xlane.xlu1 %4091  ;;  %v4705_v33 = vpop.xlane.xlu0 %4704 }
 0x512   : > { %12255 = vpow2.f32 %v4731_v6  ;;  %v4718_v0 = vsub.f32 %v14340_v1, %v4705_v33 }
 0x513   : > { %12257 = vrcp.f32 %v4092_v4  ;;  %v12248_v3 = vpop.eup %12247 }
 0x514   : > { %v4733_v20 = vmul.f32 1.442695, %v4718_v0  ;;  %v4117_v7 = vmul.f32 %v12248_v3, %v14399_v11  ;;  %v16345_v3 = vld [vmem:[#allocation63_spill] sm:$0xff] }
 0x515   : > { %v4095_v49 = vpop.xlane.xlu0 %4094  ;;  %v4708_v27 = vpop.xlane.xlu1 %4707 }
 0x516   : > { %12259 = vpow2.f32 %v4733_v20  ;;  %v4719_v44 = vsub.f32 %v14348_v13, %v4708_v27  ;;  %v4476_v13 = vand.u32 %v4283_v36, %v16331_v17  ;;  %v16344_v20 = vld [vmem:[#allocation65_spill] sm:$0xff] }
 0x517   : > { %v12250_v5 = vpop.eup %12249  ;;  %12261 = vrcp.f32 %v4095_v49  ;;  %v16346_v49 = vpack.c.bf16 %v16344_v20, %v16345_v3 }
 0x518   : > { %v4118_v41 = vmul.f32 %v12250_v5, %v14406_v10  ;;  %v4735_v35 = vmul.f32 1.442695, %v4719_v44  ;;  %v5662_v5 = vsel %vm3715_vm8, %v14473_v12, -inf }
 0x519   : > { %v4098_v34 = vpop.xlane.xlu1 %4097  ;;  %v4711_v1 = vpop.xlane.xlu0 %4710 }
 0x51a   : > { %v4126_v9 = vpack.c.bf16 %v4118_v41, %v4117_v7  ;;  %12263 = vpow2.f32 %v4735_v35  ;;  %v4720_v50 = vsub.f32 %v14356_v51, %v4711_v1 }
 0x51b   : > { %v14651_v16 = vpop.eup %12251  ;;  %12265 = vrcp.f32 %v4098_v34 }
 0x51c   : > { %v4737_v6 = vmul.f32 1.442695, %v4720_v50  ;;  %11456 = vmatmul.mubr.msk.bf16.vlgmr.msra.gmra.mxu1 %vm3690_vm7, %v4126_v9  ;;  %v4751_v11 = vsel %vm3690_vm7, %v14651_v16, 0.0  ;;  %v12254_v4 = vpop.eup %12253 }
 0x51d   : > { %11506 = vmatpush3.bf16.msra.mxu1 %v4476_v13  ;;  %v4101_v10 = vpop.xlane.xlu1 %4100  ;;  %4752 = vadd.xlane.f32.xlu0 %v4751_v11  ;;  %v4119_v42 = vmul.f32 %v12254_v4, %v14415_v30  ;;  %v16348_v13 = vld [vmem:[#allocation59_spill] sm:$0xff] }
 0x51e   : > { %12267 = vpow2.f32 %v4737_v6  ;;  %11507 = vmatprep.subr.bf16.mxu1 %v16243_v2  ;;  %11459 = vmatprep.mubr.msk.bf16.mxu1 %vm12569_vm4, %v16243_v2 }
 0x51f   : > { %v14660_v51 = vpop.eup %12255  ;;  %12269 = vrcp.f32 %v4101_v10 }
 0x520   : > { %v12258_v33 = vpop.eup %12257  ;;  %v4754_v0 = vsel %vm3690_vm7, %v14660_v51, 0.0 }
 0x521   : > { %11508 = vmatpush3.bf16.msra.mxu1 %v16346_v49  ;;  %v4104_v27 = vpop.xlane.xlu0 %4103  ;;  %v5103_v44 = vpop.xlane.xlu1 %5102  ;;  %4755 = vadd.xlane.f32.xlu1 %v4754_v0  ;;  %v4120_v36 = vmul.f32 %v12258_v33, %v14424_v59  ;;  %v16347_v59 = vld [vmem:[#allocation61_spill] sm:$0xff]  ;;  %v6170_v0 = vsel %vm3690_vm7, %v14483_v21, -inf }
 0x522   : > { %12271 = vrcp.f32 %v4104_v27  ;;  %v5128_v7 = vsub.f32 %v14368_v24, %v5103_v44  ;;  %5663 = vmax.xlane.f32.xlu0 %v5662_v5  ;;  %11509 = vmatprep.subr.bf16.mxu1 %v16243_v2  ;;  %v16349_v24 = vpack.c.bf16 %v16347_v59, %v16348_v13  ;;  %v16350_v27 = vld [vmem:[#allocation57_spill] sm:$0xff]  ;;  %v16351_v44 = vld [vmem:[#allocation55_spill] sm:$0xff]  ;;  %v6179_v13 = vsel %vm3690_vm7, %v14507_v60, -inf }
 0x523   : > { %v14673_v41 = vpop.eup %12259  ;;  %v4127_v35 = vpack.c.bf16 %v4120_v36, %v4119_v42  ;;  %v16352_v5 = vpack.c.bf16 %v16350_v27, %v16351_v44 }
 0x524   : > { %v5137_v34 = vmul.f32 1.442695, %v5128_v7  ;;  %v4757_v1 = vsel %vm3690_vm7, %v14673_v41, 0.0  ;;  %v12262_v30 = vpop.eup %12261 }
 0x525   : > { %11460 = vmatmul.mubr.msk.bf16.gmra.mxu1 %vm3690_vm7, %v4127_v35  ;;  %v4107_v9 = vpop.xlane.xlu1 %4106  ;;  %v5106_v50 = vpop.xlane.xlu0 %5105  ;;  %4758 = vadd.xlane.f32.xlu1 %v4757_v1 }
 0x526   : > { %12273 = vpow2.f32 %v5137_v34  ;;  %11510 = vmatpush3.bf16.msra.mxu1 %v16349_v24  ;;  %v5129_v6 = vsub.f32 %v14374_v58, %v5106_v50  ;;  %11463 = vmatprep.mubr.msk.bf16.mxu1 %vm12569_vm4, %v16243_v2  ;;  %v4121_v58 = vmul.f32 %v12262_v30, %v14433_v47  ;;  %v16354_v50 = vld [vmem:[#allocation47_spill] sm:$0xff] }
 0x527   : > { %v14684_v11 = vpop.eup %12263  ;;  %12275 = vrcp.f32 %v4107_v9  ;;  %11511 = vmatprep.subr.bf16.mxu1 %v16243_v2 }
 0x528   : > { %v12266_v10 = vpop.eup %12265  ;;  %v5139_v4 = vmul.f32 1.442695, %v5129_v6  ;;  %v4760_v33 = vsel %vm3690_vm7, %v14684_v11, 0.0 }
 0x529   : > { %v5109_v20 = vpop.xlane.xlu0 %5108  ;;  %v5112_v3 = vpop.xlane.xlu1 %5111  ;;  %4761 = vadd.xlane.f32.xlu0 %v4760_v33  ;;  %6171 = vmax.xlane.f32.xlu1 %v6170_v0  ;;  %v4122_v49 = vmul.f32 %v12266_v10, %v14441_v48  ;;  %v16356_v33 = vld [vmem:[#allocation22_spill] sm:$0xff] }
 0x52a   : > { %12277 = vpow2.f32 %v5139_v4  ;;  %11512 = vmatpush3.bf16.msra.mxu1 %v16352_v5  ;;  %v5130_v42 = vsub.f32 %v14380_v54, %v5109_v20  ;;  %v5131_v36 = vsub.f32 %v14382_v55, %v5112_v3  ;;  %v6173_v54 = vsel %vm3690_vm7, %v14491_v52, -inf  ;;  %v16353_v55 = vld [vmem:[#allocation53_spill] sm:$0xff]  ;;  %v16357_v20 = vld [vmem:[#allocation18_spill] sm:$0xff] }
 0x52b   : > { %v14698_v7 = vpop.eup %12267  ;;  %11513 = vmatprep.subr.bf16.mxu1 %v16243_v2  ;;  %v4128_v35 = vpack.c.bf16 %v4122_v49, %v4121_v58  ;;  %v16355_v30 = vpack.c.bf16 %v16353_v55, %v16354_v50  ;;  %v6176_v0 = vsel %vm3690_vm7, %v16356_v33, -inf  ;;  %v16360_v55 = vld [vmem:[#allocation11_spill] sm:$0xff] }
 0x52c   : > { %v5141_v34 = vmul.f32 1.442695, %v5130_v42  ;;  %v5143_v1 = vmul.f32 1.442695, %v5131_v36  ;;  %v4763_v47 = vsel %vm3715_vm8, %v14698_v7, 0.0  ;;  %v12270_v48 = vpop.eup %12269  ;;  %v16358_v42 = vld [vmem:[#allocation27_spill] sm:$0xff] }
 0x52d   : > { %11464 = vmatmul.mubr.msk.bf16.gmra.mxu1 %vm3690_vm7, %v4128_v35  ;;  %v4412_v9 = vpop.xlane.xlu0 %4411  ;;  %4764 = vadd.xlane.f32.xlu1 %v4763_v47  ;;  %v4123_v24 = vmul.f32 %v12270_v48, %v14450_v32  ;;  %v6182_v50 = vsel %vm3690_vm7, %v16360_v55, -inf }
 0x52e   : > { %12279 = vpow2.f32 %v5141_v34  ;;  %11514 = vmatpush3.bf16.msra.mxu1 %v16355_v30  ;;  %6174 = vmax.xlane.f32.xlu0 %v6173_v54  ;;  %v16359_v34 = vld [vmem:[#allocation10_spill] sm:$0xff]  ;;  %v16361_v30 = vld [vmem:[#allocation21_spill] sm:$0xff] }
 0x52f   : > { %v12272_v59 = vpop.eup %12271  ;;  %12281 = vpow2.f32 %v5143_v1  ;;  %11467 = vmatprep.mubr.msk.bf16.mxu1 %vm12569_vm4, %v16243_v2  ;;  %11565 = vmatprep.subr.bf16.mxu1 %v16243_v2 }
 0x530   : > { %12283 = vrcp.f32 %v4412_v9  ;;  %v4124_v6 = vmul.f32 %v12272_v59, %v14457_v62 }
 0x531   : > { %v4415_v10 = vpop.xlane.xlu1 %4414  ;;  %v5115_v4 = vpop.xlane.xlu0 %5114  ;;  %6180 = vmax.xlane.f32.xlu1 %v6179_v13 }
 0x532   : > { %12285 = vrcp.f32 %v4415_v10  ;;  %v5132_v3 = vsub.f32 %v16357_v20, %v5115_v4  ;;  %6177 = vmax.xlane.f32.xlu0 %v6176_v0  ;;  %v4129_v58 = vpack.c.bf16 %v4124_v6, %v4123_v24  ;;  %v16362_v0 = vld [vmem:[#allocation15_spill] sm:$0xff] }
 0x533   : > { %v14719_v49 = vpop.eup %12273  ;;  %v6185_v20 = vsel %vm3690_vm7, %v16362_v0, -inf }
 0x534   : > { %v12276_v27 = vpop.eup %12275  ;;  %v5145_v44 = vmul.f32 1.442695, %v5132_v3  ;;  %v5155_v32 = vsel %vm3690_vm7, %v14719_v49, 0.0 }
 0x535   : > { %11468 = vmatmul.mubr.msk.bf16.gmra.mxu1 %vm3690_vm7, %v4129_v58  ;;  %v4418_v62 = vpop.xlane.xlu0 %4417  ;;  %v5118_v5 = vpop.xlane.xlu1 %5117  ;;  %v4125_v1 = vmul.f32 %v12276_v27, %v16359_v34  ;;  %v16363_v27 = vld [vmem:[#allocation14_spill] sm:$0xff]  ;;  %v16366_v34 = vld [vmem:[#allocation12_spill] sm:$0xff] }
 0x536   : > { %12287 = vpow2.f32 %v5145_v44  ;;  %v5133_v36 = vsub.f32 %v16358_v42, %v5118_v5  ;;  %5156 = vadd.xlane.f32.xlu0 %v5155_v32  ;;  %11471 = vmatprep.mubr.msk.bf16.mxu1 %vm12569_vm4, %v16243_v2  ;;  %v16365_v42 = vld [vmem:[#allocation8_spill] sm:$0xff] }
 0x537   : > { %v14727_v35 = vpop.eup %12277  ;;  %12289 = vrcp.f32 %v4418_v62  ;;  %v4130_v24 = vpack.c.bf16 %v4125_v1, %v4125_v1  ;;  %v16364_v62 = vld [vmem:[#allocation68_spill] sm:$0xff] }
 0x538   : > { %v5147_v47 = vmul.f32 1.442695, %v5133_v36  ;;  %v5158_v48 = vsel %vm3690_vm7, %v14727_v35, 0.0  ;;  %v4612_v5 = vpack.c.bf16 %v16364_v62, %v16364_v62 }
 0x539   : > { %v4421_v9 = vpop.xlane.xlu1 %4420  ;;  %v5121_v54 = vpop.xlane.xlu0 %5120  ;;  %5159 = vadd.xlane.f32.xlu1 %v5158_v48 }
 0x53a   : > { %12291 = vpow2.f32 %v5147_v47  ;;  %v5134_v59 = vsub.f32 %v16361_v30, %v5121_v54  ;;  %6183 = vmax.xlane.f32.xlu0 %v6182_v50 }
 0x53b   : > { %v14735_v13 = vpop.eup %12279  ;;  %12293 = vrcp.f32 %v4421_v9  ;;  %v16367_v9 = vld [vmem:[#allocation23_spill] sm:$0xff] }
 0x53c   : > { %v14737_v6 = vpop.eup %12281  ;;  %v5149_v10 = vmul.f32 1.442695, %v5134_v59  ;;  %v5161_v4 = vsel %vm3690_vm7, %v14735_v13, 0.0  ;;  %v6188_v54 = vsel %vm3690_vm7, %v16367_v9, -inf  ;;  %v4805_v59 = vand.u32 %v4612_v5, %v16331_v17  ;;  %v16371_v5 = vld [vmem:[#allocation43_spill] sm:$0xff] }
 0x53d   : > { %v12284_v3 = vpop.eup %12283  ;;  %11472 = vmatmul.mubr.msk.bf16.gmra.mxu1 %vm3690_vm7, %v4130_v24  ;;  %v5124_v58 = vpop.xlane.xlu1 %5123  ;;  %6186 = vmax.xlane.f32.xlu1 %v6185_v20  ;;  %v5164_v48 = vsel %vm3690_vm7, %v14737_v6, 0.0 }
 0x53e   : > { %12295 = vpow2.f32 %v5149_v10  ;;  %v5135_v44 = vsub.f32 %v16363_v27, %v5124_v58  ;;  %5162 = vadd.xlane.f32.xlu0 %v5161_v4  ;;  %11515 = vmatprep.mubr.msk.bf16.mxu1 %vm12569_vm4, %v16243_v2  ;;  %v4446_v36 = vmul.f32 %v12284_v3, %v16365_v42  ;;  %v16368_v10 = vld [vmem:[#allocation28_spill] sm:$0xff]  ;;  %v6194_v42 = vsel %vm3715_vm8, %v16371_v5, -inf }
 0x53f   : > { %v12286_v32 = vpop.eup %12285  ;;  %v6191_v4 = vsel %vm3690_vm7, %v16368_v10, -inf  ;;  %v16369_v27 = vld [vmem:[#allocation64_spill] sm:$0xff] }
 0x540   : > { %v4447_v1 = vmul.f32 %v12286_v32, %v16366_v34  ;;  %v5151_v47 = vmul.f32 1.442695, %v5135_v44  ;;  %v16370_v44 = vld [vmem:[#allocation66_spill] sm:$0xff] }
 0x541   : > { %5165 = vadd.xlane.f32.xlu1 %v5164_v48  ;;  %v4611_v32 = vpack.c.bf16 %v16370_v44, %v16369_v27  ;;  %v16377_v27 = vld [vmem:[#allocation58_spill] sm:$0xff] }
 0x542   : > { %v4455_v50 = vpack.c.bf16 %v4447_v1, %v4446_v36  ;;  %12297 = vpow2.f32 %v5151_v47  ;;  %6189 = vmax.xlane.f32.xlu0 %v6188_v54  ;;  %v16372_v36 = vld [vmem:[#allocation20_spill] sm:$0xff] }
 0x543   : > { %v14755_v30 = vpop.eup %12287  ;;  %v16373_v1 = vld [vmem:[#allocation16_spill] sm:$0xff] }
 0x544   : > { %v5167_v24 = vsel %vm3690_vm7, %v14755_v30, 0.0  ;;  %v12290_v20 = vpop.eup %12289 }
 0x545   : > { %11516 = vmatmul.mubr.msk.bf16.vlgmr.msra.gmra.mxu1 %vm3690_vm7, %v4455_v50  ;;  %6192 = vmax.xlane.f32.xlu1 %v6191_v4  ;;  %v4448_v34 = vmul.f32 %v12290_v20, %v16372_v36  ;;  %v16374_v50 = vld [vmem:[#allocation60_spill] sm:$0xff]  ;;  %v12040_v36 = vld [vmem:[%s12690_s23 + $0x38] sm:$0xff]  }
 0x546   : > { %11566 = vmatpush3.bf16.msra.mxu1 %v4805_v59  ;;  %5168 = vadd.xlane.f32.xlu0 %v5167_v24  ;;  %v16375_v59 = vld [vmem:[#allocation62_spill] sm:$0xff] }
 0x547   : > { %v14763_v3 = vpop.eup %12291  ;;  %11567 = vmatprep.subr.bf16.mxu1 %v16243_v2  ;;  %11519 = vmatprep.mubr.msk.bf16.mxu1 %vm12569_vm4, %v16243_v2  ;;  %v4610_v24 = vpack.c.bf16 %v16375_v59, %v16374_v50  ;;  %v6705_v50 = vsel %vm3690_vm7, %v14531_v40, -inf  ;;  %v12042_v59 = vld [vmem:[%s12690_s23 + $0x30] sm:$0xff]  }
 0x548   : > { %v12294_v58 = vpop.eup %12293  ;;  %v5170_v62 = vsel %vm3690_vm7, %v14763_v3, 0.0 }
 0x549   : > { %5171 = vadd.xlane.f32.xlu1 %v5170_v62  ;;  %v4449_v47 = vmul.f32 %v12294_v58, %v16373_v1  ;;  %v16376_v58 = vld [vmem:[#allocation56_spill] sm:$0xff]  ;;  %v6702_v62 = vsel %vm3690_vm7, %v14524_v28, -inf  ;;  %v16378_v1 = vld [vmem:[#allocation51_spill] sm:$0xff] }
 0x54a   : > { %11568 = vmatpush3.bf16.msra.mxu1 %v4611_v32  ;;  %6195 = vmax.xlane.f32.xlu0 %v6194_v42  ;;  %v4609_v44 = vpack.c.bf16 %v16377_v27, %v16376_v58  ;;  %v12039_v42 = vld [vmem:[%s12690_s23 + $0x78] sm:$0xff]   ;;  %v12044_v58 = vld [vmem:[%s12690_s23 + $0x28] sm:$0xff]   ;;  %v12045_v27 = vld [vmem:[%s12690_s23 + $0x60] sm:$0xff]  }
 0x54b   : > { %v14776_v48 = vpop.eup %12295  ;;  %11569 = vmatprep.subr.bf16.mxu1 %v16243_v2  ;;  %v4456_v54 = vpack.c.bf16 %v4449_v47, %v4448_v34  ;;  %11176 = vmatprep.subr.bf16.mxu0 %v12039_v42  ;;  %v12041_v34 = vld [vmem:[%s12690_s23 + $0x70] sm:$0xff]   ;;  %v12048_v42 = vld [vmem:[%s12690_s23 + $0x18] sm:$0xff]  }
 0x54c   : > { %v5173_v4 = vsel %vm3690_vm7, %v14776_v48, 0.0  ;;  %v16379_v47 = vld [vmem:[#allocation54_spill] sm:$0xff]  ;;  %11177 = vmatpush3.bf16.msra.mxu0 %v12040_v36 }
 0x54d   : > { %11520 = vmatmul.mubr.msk.bf16.gmra.mxu1 %vm3690_vm7, %v4456_v54  ;;  %5174 = vadd.xlane.f32.xlu1 %v5173_v4  ;;  %v4608_v54 = vpack.c.bf16 %v16379_v47, %v16378_v1  ;;  %v12043_v4 = vld [vmem:[%s12690_s23 + $0x68] sm:$0xff]   ;;  %v12049_v36 = vld [vmem:[%s12690_s23 + $0x50] sm:$0xff]  }
 0x54e   : > { %11570 = vmatpush3.bf16.msra.mxu1 %v4610_v24  ;;  %11523 = vmatprep.mubr.msk.bf16.mxu1 %vm12569_vm4, %v16243_v2  ;;  %v6708_v24 = vsel %vm3690_vm7, %v14537_v61, -inf }
 0x54f   : > { %v14786_v20 = vpop.eup %12297  ;;  %11571 = vmatprep.subr.bf16.mxu1 %v16243_v2  ;;  %11178 = vmatprep.subr.bf16.mxu0 %v12041_v34 }
 0x550   : > { %v5176_v32 = vsel %vm3690_vm7, %v14786_v20, 0.0  ;;  %11179 = vmatpush3.bf16.msra.mxu0 %v12042_v59 }
 0x551   : > { %5177 = vadd.xlane.f32.xlu0 %v5176_v32  ;;  %6703 = vmax.xlane.f32.xlu1 %v6702_v62  ;;  %v12047_v32 = vld [vmem:[%s12690_s23 + $0x58] sm:$0xff]  }
 0x552   : > { %11572 = vmatpush3.bf16.msra.mxu1 %v4609_v44  ;;  %11180 = vmatprep.subr.bf16.mxu0 %v12043_v4  ;;  %v12046_v44 = vld [vmem:[%s12690_s23 + $0x20] sm:$0xff]   ;;  %v12052_v4 = vld [vmem:[%s12690_s23 + $0x8] sm:$0xff]  }
 0x553   : > { %11573 = vmatprep.subr.bf16.mxu1 %v16243_v2 }
 0x554   : > { %11181 = vmatpush3.bf16.msra.mxu0 %v12044_v58 }
 0x555   : > { %6706 = vmax.xlane.f32.xlu0 %v6705_v50  ;;  %11182 = vmatprep.subr.bf16.mxu0 %v12045_v27 }
 0x556   : > { %11574 = vmatpush3.bf16.msra.mxu1 %v4608_v54  ;;  %v12050_v54 = vld [vmem:[%s12690_s23 + $0x10] sm:$0xff]  }
 0x557   : > { %11625 = vmatprep.subr.bf16.mxu1 %v16243_v2 }
 0x558   : > { %11183 = vmatpush3.bf16.msra.mxu0 %v12046_v44  ;;  %v12053_v44 = vld [vmem:[%s12690_s23 + $0x40] sm:$0xff]  }
 0x559   : > { %6709 = vmax.xlane.f32.xlu0 %v6708_v24  ;;  %11184 = vmatprep.subr.bf16.mxu0 %v12047_v32  ;;  %v12051_v24 = vld [vmem:[%s12690_s23 + $0x48] sm:$0xff]   ;;  %v12054_v32 = vld [vmem:[%s12690_s23] sm:$0xff]  }
 0x55c   : > { %11185 = vmatpush3.bf16.msra.mxu0 %v12048_v42 }
 0x55d   : > { %11186 = vmatprep.subr.bf16.mxu0 %v12049_v36 }
 0x560   : > { %v4424_v62 = vpop.xlane.xlu0 %4423  ;;  %11187 = vmatpush3.bf16.msra.mxu0 %v12050_v54 }
 0x561   : > { %12299 = vrcp.f32 %v4424_v62  ;;  %11188 = vmatprep.subr.bf16.mxu0 %v12051_v24 }
 0x564   : > { %v4427_v34 = vpop.xlane.xlu1 %4426  ;;  %11189 = vmatpush3.bf16.msra.mxu0 %v12052_v4 }
 0x565   : > { %12301 = vrcp.f32 %v4427_v34  ;;  %v5127_v1 = vpop.xlane.xlu0 %5126  ;;  %11190 = vmatprep.subr.bf16.mxu0 %v12053_v44 }
 0x566   : > { %v5136_v47 = vsub.f32 %v14396_v56, %v5127_v1 }
 0x568   : > { %v5153_v50 = vmul.f32 1.442695, %v5136_v47  ;;  %v4430_v59 = vpop.xlane.xlu1 %4429  ;;  %11191 = vmatpush3.bf16.msra.mxu0 %v12054_v32 }
 0x569   : > { %11835 = vmatprep.subr.bf16.mxu0 %v16243_v2 }
 0x56a   : > { %12303 = vpow2.f32 %v5153_v50 }
 0x56b   : > { %12305 = vrcp.f32 %v4430_v59 }
 0x56c   : > { %v4433_v58 = vpop.xlane.xlu0 %4432  ;;  %v5640_v27 = vpop.xlane.xlu1 %5639 }
 0x56d   : > { %12307 = vrcp.f32 %v4433_v58  ;;  %v5665_v62 = vsub.f32 %v14404_v19, %v5640_v27 }
 0x56e   : > { %v12300_v56 = vpop.eup %12299 }
 0x56f   : > { %v5674_v42 = vmul.f32 1.442695, %v5665_v62  ;;  %v4450_v54 = vmul.f32 %v12300_v56, %v14534_v37 }
 0x570   : > { %v4436_v36 = vpop.xlane.xlu1 %4435 }
 0x571   : > { %12309 = vpow2.f32 %v5674_v42  ;;  %v5643_v34 = vpop.xlane.xlu0 %5642 }
 0x572   : > { %v12302_v1 = vpop.eup %12301  ;;  %12311 = vrcp.f32 %v4436_v36  ;;  %v5666_v47 = vsub.f32 %v14413_v22, %v5643_v34  ;;  %v16380_v36 = vld [vmem:[#allocation19_spill] sm:$0xff] }
 0x573   : > { %v4451_v50 = vmul.f32 %v12302_v1, %v14545_v14  ;;  %v6711_v34 = vsel %vm3690_vm7, %v16380_v36, -inf }
 0x574   : > { %v5676_v59 = vmul.f32 1.442695, %v5666_v47  ;;  %v5649_v24 = vpop.xlane.xlu1 %5648 }
 0x575   : > { %v5646_v19 = vpop.xlane.xlu0 %5645  ;;  %v5668_v4 = vsub.f32 %v14431_v26, %v5649_v24  ;;  %v4457_v58 = vpack.c.bf16 %v4451_v50, %v4450_v54 }
 0x576   : > { %12313 = vpow2.f32 %v5676_v59  ;;  %v5667_v27 = vsub.f32 %v14422_v38, %v5646_v19 }
 0x577   : > { %v14827_v44 = vpop.eup %12303  ;;  %11524 = vmatmul.mubr.msk.bf16.gmra.mxu1 %vm3690_vm7, %v4457_v58  ;;  %v5680_v22 = vmul.f32 1.442695, %v5668_v4 }
 0x578   : > { %v12306_v32 = vpop.eup %12305  ;;  %v5678_v62 = vmul.f32 1.442695, %v5667_v27  ;;  %v5179_v37 = vsel %vm3715_vm8, %v14827_v44, 0.0  ;;  %11527 = vmatprep.mubr.msk.bf16.mxu1 %vm12569_vm4, %v16243_v2 }
 0x579   : > { %v4741_v14 = vpop.xlane.xlu0 %4740  ;;  %5180 = vadd.xlane.f32.xlu1 %v5179_v37  ;;  %v4452_v38 = vmul.f32 %v12306_v32, %v14559_v8  ;;  %v16381_v32 = vld [vmem:[#allocation40_spill] sm:$0xff] }
 0x57a   : > { %v12308_v26 = vpop.eup %12307  ;;  %12315 = vpow2.f32 %v5678_v62  ;;  %v6714_v62 = vsel %vm3690_vm7, %v16381_v32, -inf }
 0x57b   : > { %12317 = vrcp.f32 %v4741_v14  ;;  %v4453_v42 = vmul.f32 %v12308_v26, %v14571_v29 }
 0x57c   : > { %12319 = vpow2.f32 %v5680_v22  ;;  %v4744_v56 = vpop.xlane.xlu1 %4743 }
 0x57d   : > { %12321 = vrcp.f32 %v4744_v56  ;;  %v5652_v1 = vpop.xlane.xlu0 %5651  ;;  %6712 = vmax.xlane.f32.xlu1 %v6711_v34  ;;  %v4458_v47 = vpack.c.bf16 %v4453_v42, %v4452_v38 }
 0x57e   : > { %v14838_v54 = vpop.eup %12309  ;;  %v5669_v50 = vsub.f32 %v14439_v18, %v5652_v1  ;;  %v16382_v1 = vld [vmem:[#allocation39_spill] sm:$0xff] }
 0x57f   : > { %v12312_v59 = vpop.eup %12311  ;;  %11528 = vmatmul.mubr.msk.bf16.gmra.mxu1 %vm3690_vm7, %v4458_v47  ;;  %v5692_v8 = vsel %vm3690_vm7, %v14838_v54, 0.0  ;;  %v6717_v47 = vsel %vm3690_vm7, %v16382_v1, -inf }
 0x580   : > { %v5682_v29 = vmul.f32 1.442695, %v5669_v50  ;;  %v5655_v24 = vpop.xlane.xlu1 %5654  ;;  %5693 = vadd.xlane.f32.xlu0 %v5692_v8  ;;  %11531 = vmatprep.mubr.msk.bf16.mxu1 %vm12569_vm4, %v16243_v2  ;;  %v4454_v58 = vmul.f32 %v12312_v59, %v14586_v15  ;;  %v16383_v8 = vld [vmem:[#allocation17_spill] sm:$0xff] }
 0x581   : > { %v4747_v19 = vpop.xlane.xlu0 %4746  ;;  %v5670_v4 = vsub.f32 %v14448_v23, %v5655_v24 }
 0x582   : > { %12323 = vpow2.f32 %v5682_v29  ;;  %v4459_v26 = vpack.c.bf16 %v4454_v58, %v4454_v58  ;;  %v5241_v29 = vshrl.u32 %v16383_v8, 16 }
 0x583   : > { %v14848_v27 = vpop.eup %12313  ;;  %v5684_v18 = vmul.f32 1.442695, %v5670_v4  ;;  %12325 = vrcp.f32 %v4747_v19 }
 0x584   : > { %v4750_v22 = vpop.xlane.xlu1 %4749  ;;  %v5695_v37 = vsel %vm3690_vm7, %v14848_v27, 0.0  ;;  %6715 = vmax.xlane.f32.xlu0 %v6714_v62 }
 0x585   : > { %12327 = vpow2.f32 %v5684_v18  ;;  %v5658_v14 = vpop.xlane.xlu0 %5657  ;;  %5696 = vadd.xlane.f32.xlu1 %v5695_v37  ;;  %v6720_v18 = vsel %vm3690_vm7, %v14591_v39, -inf }
 0x586   : > { %12329 = vrcp.f32 %v4750_v22  ;;  %v5671_v23 = vsub.f32 %v14455_v57, %v5658_v14 }
 0x587   : > { %v14855_v15 = vpop.eup %12315  ;;  %11532 = vmatmul.mubr.msk.bf16.gmra.mxu1 %vm3690_vm7, %v4459_v26 }
 0x588   : > { %v12318_v38 = vpop.eup %12317  ;;  %v5686_v42 = vmul.f32 1.442695, %v5671_v23  ;;  %v5661_v56 = vpop.xlane.xlu1 %5660  ;;  %v5698_v34 = vsel %vm3690_vm7, %v14855_v15, 0.0  ;;  %11575 = vmatprep.mubr.msk.bf16.mxu1 %vm12569_vm4, %v16243_v2 }
 0x589   : > { %v14864_v50 = vpop.eup %12319  ;;  %v5672_v57 = vsub.f32 %v14464_v45, %v5661_v56  ;;  %5699 = vadd.xlane.f32.xlu0 %v5698_v34  ;;  %6718 = vmax.xlane.f32.xlu1 %v6717_v47  ;;  %v4775_v24 = vmul.f32 %v12318_v38, %v14609_v53  ;;  %v5263_v45 = vand.u32 %v5241_v29, %v16331_v17  ;;  %v16384_v38 = vld [vmem:[#allocation24_spill] sm:$0xff] }
 0x58a   : > { %v12322_v59 = vpop.eup %12321  ;;  %12331 = vpow2.f32 %v5686_v42  ;;  %v5701_v58 = vsel %vm3690_vm7, %v14864_v50, 0.0 }
 0x58b   : > { %v4776_v19 = vmul.f32 %v12322_v59, %v14618_v31  ;;  %v5688_v4 = vmul.f32 1.442695, %v5672_v57  ;;  %v6723_v31 = vsel %vm3690_vm7, %v14601_v63, -inf }
 0x58d   : > { %v4784_v62 = vpack.c.bf16 %v4776_v19, %v4775_v24  ;;  %12333 = vpow2.f32 %v5688_v4  ;;  %5702 = vadd.xlane.f32.xlu1 %v5701_v58  ;;  %6721 = vmax.xlane.f32.xlu0 %v6720_v18  ;;  %v16385_v24 = vld [vmem:[#allocation25_spill] sm:$0xff] }
 0x58e   : > { %v16386_v18 = vld [vmem:[#allocation13_spill] sm:$0xff] }
 0x58f   : > { %v14875_v22 = vpop.eup %12323  ;;  %11576 = vmatmul.mubr.msk.bf16.vlgmr.msra.gmra.mxu1 %vm3690_vm7, %v4784_v62 }
 0x590   : > { %11626 = vmatpush3.bf16.msra.mxu1 %v5263_v45  ;;  %v5704_v53 = vsel %vm3690_vm7, %v14875_v22, 0.0  ;;  %11579 = vmatprep.mubr.msk.bf16.mxu1 %vm12569_vm4, %v16243_v2  ;;  %v12326_v37 = vpop.eup %12325  ;;  %v6726_v45 = vsel %vm3715_vm8, %v14611_v46, -inf }
 0x591   : > { %5705 = vadd.xlane.f32.xlu0 %v5704_v53  ;;  %6724 = vmax.xlane.f32.xlu1 %v6723_v31  ;;  %v4777_v42 = vmul.f32 %v12326_v37, %v14625_v25  ;;  %v16387_v31 = vld [vmem:[#allocation9_spill] sm:$0xff] }
 0x592   : > { %v14884_v14 = vpop.eup %12327  ;;  %11627 = vmatprep.subr.bf16.mxu1 %v16243_v2 }
 0x593   : > { %v12330_v26 = vpop.eup %12329  ;;  %v5707_v23 = vsel %vm3690_vm7, %v14884_v14, 0.0 }
 0x594   : > { %11628 = vmatpush3.bf16.msra.mxu1 %v16384_v38  ;;  %v4778_v56 = vmul.f32 %v12330_v26, %v14631_v43 }
 0x595   : > { %5708 = vadd.xlane.f32.xlu1 %v5707_v23  ;;  %11629 = vmatprep.subr.bf16.mxu1 %v16243_v2 }
 0x596   : > { %v3851_v34 = vpop.f32.mrf.mxu1  ;;  %v4785_v47 = vpack.c.bf16 %v4778_v56, %v4777_v42 }
 0x597   : > { %v14893_v57 = vpop.eup %12331  ;;  %v10944_v59 = vpack.c.bf16 %v3851_v34, %v3851_v34 }
 0x598   : > { %11580 = vmatmul.mubr.msk.bf16.gmra.mxu1 %vm3690_vm7, %v4785_v47  ;;  %v11397_v8 = vpop.f32.mrf.mxu1  ;;  %v5710_v29 = vsel %vm3690_vm7, %v14893_v57, 0.0 }
 0x599   : > { %3926 = vst [vmem:[#allocation3] sm:$0xf] %v10944_v59  ;;  %11630 = vmatpush3.bf16.msra.mxu1 %v16385_v24  ;;  %5711 = vadd.xlane.f32.xlu0 %v5710_v29 }
 0x59a   : > { %v14899_v25 = vpop.eup %12333  ;;  %v3854_v43 = vpop.f32.mrf.mxu1  ;;  %11631 = vmatprep.subr.bf16.mxu1 %v16243_v2  ;;  %11583 = vmatprep.mubr.msk.bf16.mxu1 %vm12569_vm4, %v16243_v2 }
 0x59b   : > { %v10945_v19 = vpack.c.bf16 %v3854_v43, %v3854_v43  ;;  %v5713_v4 = vsel %vm3690_vm7, %v14899_v25, 0.0 }
 0x59c   : > { %v11398_v58 = vpop.f32.mrf.mxu1  ;;  %5714 = vadd.xlane.f32.xlu1 %v5713_v4 }
 0x59d   : > { %3927 = vst [vmem:[#allocation3 + $0x10] sm:$0xf] %v10945_v19  ;;  %11632 = vmatpush3.bf16.msra.mxu1 %v16386_v18 }
 0x59e   : > { %11633 = vmatprep.subr.bf16.mxu1 %v16243_v2 }
 0x59f   : > { %v3859_v62 = vpop.f32.mrf.mxu1 }
 0x5a0   : > { %v10946_v53 = vpack.c.bf16 %v3859_v62, %v3859_v62  ;;  %6727 = vmax.xlane.f32.xlu1 %v6726_v45 }
 0x5a1   : > { %11634 = vmatpush3.bf16.msra.mxu1 %v16387_v31  ;;  %v11401_v37 = vpop.f32.mrf.mxu1 }
 0x5a2   : > { %3928 = vst [vmem:[#allocation3 + $0x20] sm:$0xf] %v10946_v53  ;;  %11685 = vmatprep.subr.bf16.mxu1 %v16243_v2 }
 0x5a3   : > { %v3862_v26 = vpop.f32.mrf.mxu1 }
 0x5a4   : > { %v10947_v23 = vpack.c.bf16 %v3862_v26, %v3862_v26 }
 0x5a5   : > { %v11402_v38 = vpop.f32.mrf.mxu1 }
 0x5a6   : > { %3929 = vst [vmem:[#allocation3 + $0x30] sm:$0xf] %v10947_v23  ;;  %v4753_v42 = vpop.xlane.xlu0 %4752 }
 0x5a7   : > { %v3867_v56 = vpop.f32.mrf.mxu1  ;;  %12335 = vrcp.f32 %v4753_v42 }
 0x5a8   : > { %v10948_v34 = vpack.c.bf16 %v3867_v56, %v3867_v56 }
 0x5a9   : > { %v11405_v47 = vpop.f32.mrf.mxu1 }
 0x5aa   : > { %3930 = vst [vmem:[#allocation3 + $0x40] sm:$0xf] %v10948_v34  ;;  %v4756_v59 = vpop.xlane.xlu1 %4755 }
 0x5ab   : > { %v3870_v8 = vpop.f32.mrf.mxu1  ;;  %12337 = vrcp.f32 %v4756_v59  ;;  %v5664_v29 = vpop.xlane.xlu0 %5663  ;;  %v3937_v59 = vld [vmem:[#allocation3 + $0x80] sm:$0x1] }
 0x5ac   : > { %v10949_v24 = vpack.c.bf16 %v3870_v8, %v3870_v8  ;;  %v5673_v43 = vsub.f32 %v14473_v12, %v5664_v29 }
 0x5ad   : > { %v11406_v19 = vpop.f32.mrf.mxu1 }
 0x5ae   : > { %3931 = vst [vmem:[#allocation3 + $0x50] sm:$0xf] %v10949_v24  ;;  %v5690_v4 = vmul.f32 1.442695, %v5673_v43  ;;  %v4759_v58 = vpop.xlane.xlu1 %4758 }
 0x5af   : > { %v3875_v18 = vpop.f32.mrf.mxu1 }
 0x5b0   : > { %12339 = vpow2.f32 %v5690_v4  ;;  %v10950_v62 = vpack.c.bf16 %v3875_v18, %v3875_v18 }
 0x5b1   : > { %12341 = vrcp.f32 %v4759_v58  ;;  %v11409_v45 = vpop.f32.mrf.mxu1 }
 0x5b2   : > { %3932 = vst [vmem:[#allocation3 + $0x60] sm:$0xf] %v10950_v62  ;;  %v4762_v53 = vpop.xlane.xlu0 %4761  ;;  %v6172_v31 = vpop.xlane.xlu1 %6171 }
 0x5b3   : > { %v3878_v37 = vpop.f32.mrf.mxu1  ;;  %12343 = vrcp.f32 %v4762_v53  ;;  %v6197_v26 = vsub.f32 %v14483_v21, %v6172_v31 }
 0x5b4   : > { %v10951_v23 = vpack.c.bf16 %v3878_v37, %v3878_v37  ;;  %v12336_v42 = vpop.eup %12335 }
 0x5b5   : > { %v6206_v38 = vmul.f32 1.442695, %v6197_v26  ;;  %v11410_v12 = vpop.f32.mrf.mxu1  ;;  %v4779_v19 = vmul.f32 %v12336_v42, %v14651_v16 }
 0x5b6   : > { %3933 = vst [vmem:[#allocation3 + $0x70] sm:$0xf] %v10951_v23  ;;  %v4765_v56 = vpop.xlane.xlu1 %4764 }
 0x5b7   : > { %12345 = vpow2.f32 %v6206_v38  ;;  %v3883_v34 = vpop.f32.mrf.mxu1  ;;  %v6175_v8 = vpop.xlane.xlu0 %6174 }
 0x5b8   : > { %v12338_v29 = vpop.eup %12337  ;;  %v10952_v24 = vpack.c.bf16 %v3883_v34, %v3883_v34  ;;  %12347 = vrcp.f32 %v4765_v56  ;;  %v6198_v21 = vsub.f32 %v14491_v52, %v6175_v8 }
 0x5b9   : > { %v11413_v43 = vpop.f32.mrf.mxu1  ;;  %v4780_v4 = vmul.f32 %v12338_v29, %v14660_v51 }
 0x5ba   : > { %v3938_v58 = vsel %vm14916_vm10, %v10952_v24, %v3937_v59  ;;  %v6208_v18 = vmul.f32 1.442695, %v6198_v21  ;;  %v6181_v62 = vpop.xlane.xlu1 %6180 }
 0x5bb   : > { %3939 = vst [vmem:[#allocation3 + $0x80] sm:$0x1] %v3938_v58  ;;  %v3886_v45 = vpop.f32.mrf.mxu1  ;;  %v6178_v53 = vpop.xlane.xlu0 %6177  ;;  %v6200_v31 = vsub.f32 %v14507_v60, %v6181_v62  ;;  %v4786_v37 = vpack.c.bf16 %v4780_v4, %v4779_v19 }
 0x5bc   : > { %12349 = vpow2.f32 %v6208_v18  ;;  %v6199_v26 = vsub.f32 %v16356_v33, %v6178_v53 }
 0x5bd   : > { %v14927_v52 = vpop.eup %12339  ;;  %v6212_v23 = vmul.f32 1.442695, %v6200_v31  ;;  %v11414_v16 = vpop.f32.mrf.mxu1  ;;  %11584 = vmatmul.mubr.msk.bf16.gmra.mxu1 %vm3690_vm7, %v4786_v37 }
 0x5be   : > { %v12342_v51 = vpop.eup %12341  ;;  %v6210_v38 = vmul.f32 1.442695, %v6199_v26  ;;  %v5716_v12 = vsel %vm3715_vm8, %v14927_v52, 0.0  ;;  %11587 = vmatprep.mubr.msk.bf16.mxu1 %vm12569_vm4, %v16243_v2 }
 0x5bf   : > { %12351 = vpow2.f32 %v6212_v23  ;;  %v5157_v60 = vpop.xlane.xlu0 %5156  ;;  %5717 = vadd.xlane.f32.xlu0 %v5716_v12  ;;  %v4781_v33 = vmul.f32 %v12342_v51, %v14673_v41 }
 0x5c0   : > { %v12344_v42 = vpop.eup %12343  ;;  %12353 = vpow2.f32 %v6210_v38 }
 0x5c1   : > { %12355 = vrcp.f32 %v5157_v60  ;;  %v4782_v56 = vmul.f32 %v12344_v42, %v14684_v11  ;;  %v16390_v42 = vld [vmem:[#allocation46_spill] sm:$0xff] }
 0x5c2   : > { %v5160_v34 = vpop.xlane.xlu1 %5159 }
 0x5c3   : > { %12357 = vrcp.f32 %v5160_v34  ;;  %v6184_v59 = vpop.xlane.xlu0 %6183  ;;  %v4787_v8 = vpack.c.bf16 %v4782_v56, %v4781_v33  ;;  %v5778_v33 = vshrl.u32 %v16390_v42, 16 }
 0x5c4   : > { %v14936_v29 = vpop.eup %12345  ;;  %v6201_v24 = vsub.f32 %v16360_v55, %v6184_v59 }
 0x5c5   : > { %v12348_v21 = vpop.eup %12347  ;;  %11588 = vmatmul.mubr.msk.bf16.gmra.mxu1 %vm3690_vm7, %v4787_v8  ;;  %v6224_v43 = vsel %vm3690_vm7, %v14936_v29, 0.0 }
 0x5c6   : > { %v6214_v19 = vmul.f32 1.442695, %v6201_v24  ;;  %v6187_v4 = vpop.xlane.xlu1 %6186  ;;  %6225 = vadd.xlane.f32.xlu0 %v6224_v43  ;;  %11591 = vmatprep.mubr.msk.bf16.mxu1 %vm12569_vm4, %v16243_v2  ;;  %v4783_v58 = vmul.f32 %v12348_v21, %v14698_v7  ;;  %v5800_v43 = vand.u32 %v5778_v33, %v16331_v17 }
 0x5c7   : > { %v5163_v41 = vpop.xlane.xlu0 %5162  ;;  %v6202_v11 = vsub.f32 %v16362_v0, %v6187_v4 }
 0x5c8   : > { %12359 = vpow2.f32 %v6214_v19  ;;  %v4788_v31 = vpack.c.bf16 %v4783_v58, %v4783_v58 }
 0x5c9   : > { %v14946_v18 = vpop.eup %12349  ;;  %v6216_v55 = vmul.f32 1.442695, %v6202_v11  ;;  %12361 = vrcp.f32 %v5163_v41 }
 0x5ca   : > { %v5166_v62 = vpop.xlane.xlu1 %5165  ;;  %v6227_v45 = vsel %vm3690_vm7, %v14946_v18, 0.0 }
 0x5cb   : > { %12363 = vpow2.f32 %v6216_v55  ;;  %v6190_v53 = vpop.xlane.xlu0 %6189  ;;  %6228 = vadd.xlane.f32.xlu1 %v6227_v45  ;;  %v16391_v55 = vld [vmem:[#allocation52_spill] sm:$0xff] }
 0x5cc   : > { %v14950_v37 = vpop.eup %12351  ;;  %12365 = vrcp.f32 %v5166_v62  ;;  %v6203_v0 = vsub.f32 %v16367_v9, %v6190_v53 }
 0x5cd   : > { %v14953_v26 = vpop.eup %12353  ;;  %11592 = vmatmul.mubr.msk.bf16.gmra.mxu1 %vm3690_vm7, %v4788_v31  ;;  %v6233_v7 = vsel %vm3690_vm7, %v14950_v37, 0.0 }
 0x5ce   : > { %v12356_v23 = vpop.eup %12355  ;;  %v6218_v16 = vmul.f32 1.442695, %v6203_v0  ;;  %v6193_v51 = vpop.xlane.xlu1 %6192  ;;  %v6230_v38 = vsel %vm3690_vm7, %v14953_v26, 0.0  ;;  %11635 = vmatprep.mubr.msk.bf16.mxu1 %vm12569_vm4, %v16243_v2 }
 0x5cf   : > { %v5169_v12 = vpop.xlane.xlu0 %5168  ;;  %v6204_v60 = vsub.f32 %v16368_v10, %v6193_v51  ;;  %6231 = vadd.xlane.f32.xlu0 %v6230_v38  ;;  %6234 = vadd.xlane.f32.xlu1 %v6233_v7  ;;  %v5191_v56 = vmul.f32 %v12356_v23, %v14719_v49 }
 0x5d0   : > { %v12358_v9 = vpop.eup %12357  ;;  %12367 = vpow2.f32 %v6218_v16 }
 0x5d1   : > { %v5192_v34 = vmul.f32 %v12358_v9, %v14727_v35  ;;  %v6220_v59 = vmul.f32 1.442695, %v6204_v60  ;;  %12369 = vrcp.f32 %v5169_v12 }
 0x5d2   : > { %v5172_v8 = vpop.xlane.xlu1 %5171 }
 0x5d3   : > { %v5200_v24 = vpack.c.bf16 %v5192_v34, %v5191_v56  ;;  %12371 = vpow2.f32 %v6220_v59  ;;  %v6196_v21 = vpop.xlane.xlu0 %6195 }
 0x5d4   : > { %12373 = vrcp.f32 %v5172_v8  ;;  %v6205_v10 = vsub.f32 %v16371_v5, %v6196_v21 }
 0x5d5   : > { %v14968_v19 = vpop.eup %12359  ;;  %11636 = vmatmul.mubr.msk.bf16.vlgmr.msra.gmra.mxu1 %vm3690_vm7, %v5200_v24 }
 0x5d6   : > { %v6222_v4 = vmul.f32 1.442695, %v6205_v10  ;;  %11686 = vmatpush3.bf16.msra.mxu1 %v5800_v43  ;;  %v5175_v49 = vpop.xlane.xlu1 %5174  ;;  %v6236_v35 = vsel %vm3690_vm7, %v14968_v19, 0.0  ;;  %11639 = vmatprep.mubr.msk.bf16.mxu1 %vm12569_vm4, %v16243_v2  ;;  %v12362_v41 = vpop.eup %12361  ;;  %v16393_v10 = vld [vmem:[#allocation44_spill] sm:$0xff] }
 0x5d7   : > { %6237 = vadd.xlane.f32.xlu0 %v6236_v35  ;;  %11687 = vmatprep.subr.bf16.mxu1 %v16243_v2  ;;  %v5193_v53 = vmul.f32 %v12362_v41, %v14735_v13 }
 0x5d8   : > { %v14976_v11 = vpop.eup %12363  ;;  %12375 = vpow2.f32 %v6222_v4 }
 0x5d9   : > { %v12366_v5 = vpop.eup %12365  ;;  %12377 = vrcp.f32 %v5175_v49  ;;  %v6239_v58 = vsel %vm3690_vm7, %v14976_v11, 0.0 }
 0x5da   : > { %11688 = vmatpush3.bf16.msra.mxu1 %v16391_v55  ;;  %v5178_v62 = vpop.xlane.xlu0 %5177  ;;  %v6704_v45 = vpop.xlane.xlu1 %6703  ;;  %6240 = vadd.xlane.f32.xlu1 %v6239_v58  ;;  %v5194_v31 = vmul.f32 %v12366_v5, %v14737_v6  ;;  %v16392_v6 = vld [vmem:[#allocation50_spill] sm:$0xff] }
 0x5db   : > { %12379 = vrcp.f32 %v5178_v62  ;;  %v6729_v0 = vsub.f32 %v14524_v28, %v6704_v45  ;;  %11689 = vmatprep.subr.bf16.mxu1 %v16243_v2 }
 0x5dc   : > { %v4183_v7 = vpop.f32.mrf.mxu1  ;;  %v5201_v23 = vpack.c.bf16 %v5194_v31, %v5193_v53 }
 0x5dd   : > { %v14985_v16 = vpop.eup %12367  ;;  %v6738_v51 = vmul.f32 1.442695, %v6729_v0  ;;  %v10953_v38 = vpack.c.bf16 %v4183_v7, %v4183_v7  ;;  %v12055_v7 = vld [vmem:[#allocation3] ss:$16 sps:$4 sm:$0xff]  }
 0x5de   : > { %11640 = vmatmul.mubr.msk.bf16.gmra.mxu1 %vm3690_vm7, %v5201_v23  ;;  %v11457_v12 = vpop.f32.mrf.mxu1  ;;  %v6707_v60 = vpop.xlane.xlu0 %6706  ;;  %v6242_v13 = vsel %vm3690_vm7, %v14985_v16, 0.0 }
 0x5df   : > { %v12370_v9 = vpop.eup %12369  ;;  %12381 = vpow2.f32 %v6738_v51  ;;  %4258 = vst [vmem:[#allocation3 + $0x4] sm:$0xf] %v10953_v38  ;;  %11690 = vmatpush3.bf16.msra.mxu1 %v16392_v6  ;;  %v6730_v28 = vsub.f32 %v14531_v40, %v6707_v60  ;;  %6243 = vadd.xlane.f32.xlu0 %v6242_v13 }
 0x5e0   : > { %v14992_v42 = vpop.eup %12371  ;;  %v4186_v33 = vpop.f32.mrf.mxu1  ;;  %11691 = vmatprep.subr.bf16.mxu1 %v16243_v2  ;;  %11643 = vmatprep.mubr.msk.bf16.mxu1 %vm12569_vm4, %v16243_v2  ;;  %v5195_v40 = vmul.f32 %v12370_v9, %v14755_v30 }
 0x5e1   : > { %v12374_v56 = vpop.eup %12373  ;;  %v6740_v34 = vmul.f32 1.442695, %v6730_v28  ;;  %v10954_v59 = vpack.c.bf16 %v4186_v33, %v4186_v33  ;;  %v6245_v8 = vsel %vm3690_vm7, %v14992_v42, 0.0 }
 0x5e2   : > { %v11458_v24 = vpop.f32.mrf.mxu1  ;;  %v6710_v21 = vpop.xlane.xlu0 %6709  ;;  %6246 = vadd.xlane.f32.xlu1 %v6245_v8  ;;  %v5196_v43 = vmul.f32 %v12374_v56, %v14763_v3  ;;  %v16394_v3 = vld [vmem:[#allocation41_spill] sm:$0xff] }
 0x5e3   : > { %12383 = vpow2.f32 %v6740_v34  ;;  %4259 = vst [vmem:[#allocation3 + $0x14] sm:$0xf] %v10954_v59  ;;  %11692 = vmatpush3.bf16.msra.mxu1 %v16393_v10  ;;  %v6731_v4 = vsub.f32 %v14537_v61, %v6710_v21  ;;  %v12058_v34 = vld [vmem:[#allocation3 + $0x20] ss:$16 sps:$4 sm:$0xff]  }
 0x5e4   : > { %11693 = vmatprep.subr.bf16.mxu1 %v16243_v2  ;;  %v5202_v49 = vpack.c.bf16 %v5196_v43, %v5195_v40 }
 0x5e5   : > { %v15004_v35 = vpop.eup %12375  ;;  %v6742_v41 = vmul.f32 1.442695, %v6731_v4  ;;  %v4191_v5 = vpop.f32.mrf.mxu1 }
 0x5e6   : > { %v12378_v58 = vpop.eup %12377  ;;  %v10955_v55 = vpack.c.bf16 %v4191_v5, %v4191_v5  ;;  %11644 = vmatmul.mubr.msk.bf16.gmra.mxu1 %vm3690_vm7, %v5202_v49  ;;  %v6248_v30 = vsel %vm3715_vm8, %v15004_v35, 0.0 }
 0x5e7   : > { %12385 = vpow2.f32 %v6742_v41  ;;  %11694 = vmatpush3.bf16.msra.mxu1 %v16394_v3  ;;  %v11461_v62 = vpop.f32.mrf.mxu1  ;;  %6249 = vadd.xlane.f32.xlu0 %v6248_v30  ;;  %v5197_v53 = vmul.f32 %v12378_v58, %v14776_v48  ;;  %v12061_v41 = vld [vmem:[#allocation3 + $0x40] ss:$16 sps:$4 sm:$0xff]  }
 0x5e8   : > { %v12380_v61 = vpop.eup %12379  ;;  %4260 = vst [vmem:[#allocation3 + $0x24] sm:$0xf] %v10955_v55  ;;  %11647 = vmatprep.mubr.msk.bf16.mxu1 %vm12569_vm4, %v16243_v2  ;;  %11745 = vmatprep.subr.bf16.mxu1 %v16243_v2  ;;  %v4266_v55 = vld [vmem:[#allocation3 + $0x84] sm:$0x1] }
 0x5e9   : > { %v4194_v45 = vpop.f32.mrf.mxu1  ;;  %v5198_v31 = vmul.f32 %v12380_v61, %v14786_v20 }
 0x5ea   : > { %v10956_v0 = vpack.c.bf16 %v4194_v45, %v4194_v45  ;;  %v12057_v23 = vld [vmem:[#allocation3 + $0x4] ss:$16 sps:$4 sm:$0xff]  }
 0x5eb   : > { %v11462_v51 = vpop.f32.mrf.mxu1  ;;  %v5203_v38 = vpack.c.bf16 %v5198_v31, %v5197_v53  ;;  %7557 = vmatprep.mubr.bf16.mxu0 %v12057_v23  ;;  %v12064_v31 = vld [vmem:[#allocation3 + $0x60] ss:$16 sps:$4 sm:$0xff]  }
 0x5ec   : > { %v15015_v12 = vpop.eup %12381  ;;  %4261 = vst [vmem:[#allocation3 + $0x34] sm:$0xf] %v10956_v0  ;;  %7558 = vmatmul.mubr.bf16.vlgmr.msra.gmra.mxu0 %v12055_v7 }
 0x5ed   : > { %v4199_v60 = vpop.f32.mrf.mxu1  ;;  %v6756_v13 = vsel %vm3690_vm7, %v15015_v12, 0.0 }
 0x5ee   : > { %v10957_v9 = vpack.c.bf16 %v4199_v60, %v4199_v60  ;;  %11648 = vmatmul.mubr.msk.bf16.gmra.mxu1 %vm3690_vm7, %v5203_v38  ;;  %6757 = vadd.xlane.f32.xlu1 %v6756_v13 }
 0x5ef   : > { %v11465_v48 = vpop.f32.mrf.mxu1  ;;  %11651 = vmatprep.mubr.msk.bf16.mxu1 %vm12569_vm4, %v16243_v2 }
 0x5f0   : > { %v15022_v20 = vpop.eup %12383  ;;  %4262 = vst [vmem:[#allocation3 + $0x44] sm:$0xf] %v10957_v9 }
 0x5f1   : > { %v4202_v6 = vpop.f32.mrf.mxu1  ;;  %v6759_v28 = vsel %vm3690_vm7, %v15022_v20, 0.0 }
 0x5f2   : > { %v10958_v33 = vpack.c.bf16 %v4202_v6, %v4202_v6  ;;  %6760 = vadd.xlane.f32.xlu0 %v6759_v28 }
 0x5f3   : > { %v11466_v56 = vpop.f32.mrf.mxu1  ;;  %v12060_v59 = vld [vmem:[#allocation3 + $0x24] ss:$16 sps:$4 sm:$0xff]  }
 0x5f4   : > { %v15026_v8 = vpop.eup %12385  ;;  %4263 = vst [vmem:[#allocation3 + $0x54] sm:$0xf] %v10958_v33  ;;  %7565 = vmatprep.mubr.bf16.mxu0 %v12060_v59 }
 0x5f5   : > { %v4207_v24 = vpop.f32.mrf.mxu1  ;;  %v6762_v21 = vsel %vm3690_vm7, %v15026_v8, 0.0  ;;  %7566 = vmatmul.mubr.bf16.gmra.mxu0 %v12058_v34 }
 0x5f6   : > { %v10959_v40 = vpack.c.bf16 %v4207_v24, %v4207_v24  ;;  %6763 = vadd.xlane.f32.xlu1 %v6762_v21 }
 0x5f7   : > { %v11469_v43 = vpop.f32.mrf.mxu1 }
 0x5f8   : > { %4264 = vst [vmem:[#allocation3 + $0x64] sm:$0xf] %v10959_v40 }
 0x5f9   : > { %v4210_v10 = vpop.f32.mrf.mxu1 }
 0x5fa   : > { %v10960_v4 = vpack.c.bf16 %v4210_v10, %v4210_v10 }
 0x5fb   : > { %v11470_v49 = vpop.f32.mrf.mxu1  ;;  %v12063_v5 = vld [vmem:[#allocation3 + $0x44] ss:$16 sps:$4 sm:$0xff]  }
 0x5fc   : > { %4265 = vst [vmem:[#allocation3 + $0x74] sm:$0xf] %v10960_v4  ;;  %7573 = vmatprep.mubr.bf16.mxu0 %v12063_v5 }
 0x5fd   : > { %v4215_v58 = vpop.f32.mrf.mxu1  ;;  %7574 = vmatmul.mubr.bf16.gmra.mxu0 %v12061_v41 }
 0x5fe   : > { %v10961_v30 = vpack.c.bf16 %v4215_v58, %v4215_v58 }
 0x5ff   : > { %v11473_v3 = vpop.f32.mrf.mxu1 }
 0x600   : > { %v4267_v62 = vsel %vm14916_vm10, %v10961_v30, %v4266_v55 }
 0x601   : > { %4268 = vst [vmem:[#allocation3 + $0x84] sm:$0x1] %v4267_v62  ;;  %v4218_v61 = vpop.f32.mrf.mxu1 }
 0x602   : > { %v5181_v45 = vpop.xlane.xlu1 %5180 }
 0x603   : > { %12387 = vrcp.f32 %v5181_v45  ;;  %v11474_v53 = vpop.f32.mrf.mxu1  ;;  %v12066_v0 = vld [vmem:[#allocation3 + $0x64] ss:$16 sps:$4 sm:$0xff]  }
 0x604   : > { %7581 = vmatprep.mubr.bf16.mxu0 %v12066_v0 }
 0x605   : > { %v4512_v7 = vpop.f32.mrf.mxu1  ;;  %7582 = vmatmul.mubr.bf16.gmra.mxu0 %v12064_v31 }
 0x606   : > { %v10962_v23 = vpack.c.bf16 %v4512_v7, %v4512_v7  ;;  %v6713_v51 = vpop.xlane.xlu1 %6712 }
 0x607   : > { %v6732_v38 = vsub.f32 %v16380_v36, %v6713_v51  ;;  %v11517_v60 = vpop.f32.mrf.mxu1 }
 0x608   : > { %4587 = vst [vmem:[#allocation3 + $0x8] sm:$0xf] %v10962_v23  ;;  %v16395_v23 = vld [vmem:[#allocation73_spill] sm:$0xff] }
 0x609   : > { %v6744_v13 = vmul.f32 1.442695, %v6732_v38  ;;  %v4515_v9 = vpop.f32.mrf.mxu1  ;;  %v5694_v48 = vpop.xlane.xlu0 %5693  ;;  %v6310_v51 = vshrl.u32 %v16395_v23, 16 }
 0x60a   : > { %v10963_v6 = vpack.c.bf16 %v4515_v9, %v4515_v9 }
 0x60b   : > { %12389 = vpow2.f32 %v6744_v13  ;;  %v11518_v28 = vpop.f32.mrf.mxu1 }
 0x60c   : > { %4588 = vst [vmem:[#allocation3 + $0x18] sm:$0xf] %v10963_v6  ;;  %12391 = vrcp.f32 %v5694_v48  ;;  %v6332_v6 = vand.u32 %v6310_v51, %v16331_v17 }
 0x60d   : > { %v4520_v33 = vpop.f32.mrf.mxu1  ;;  %v6716_v56 = vpop.xlane.xlu0 %6715 }
 0x60e   : > { %v10964_v34 = vpack.c.bf16 %v4520_v33, %v4520_v33  ;;  %v5697_v59 = vpop.xlane.xlu1 %5696  ;;  %v6733_v24 = vsub.f32 %v16381_v32, %v6716_v56 }
 0x60f   : > { %12393 = vrcp.f32 %v5697_v59  ;;  %v11521_v21 = vpop.f32.mrf.mxu1  ;;  %v16396_v59 = vld [vmem:[#allocation34_spill] sm:$0xff] }
 0x610   : > { %v12388_v40 = vpop.eup %12387  ;;  %4589 = vst [vmem:[#allocation3 + $0x28] sm:$0xf] %v10964_v34  ;;  %v6746_v36 = vmul.f32 1.442695, %v6733_v24 }
 0x611   : > { %v4523_v43 = vpop.f32.mrf.mxu1  ;;  %v5199_v10 = vmul.f32 %v12388_v40, %v14827_v44 }
 0x612   : > { %12395 = vpow2.f32 %v6746_v36  ;;  %v10965_v4 = vpack.c.bf16 %v4523_v43, %v4523_v43  ;;  %v5700_v49 = vpop.xlane.xlu0 %5699  ;;  %v6719_v41 = vpop.xlane.xlu1 %6718 }
 0x613   : > { %v6734_v5 = vsub.f32 %v16382_v1, %v6719_v41  ;;  %v11522_v58 = vpop.f32.mrf.mxu1  ;;  %v5204_v55 = vpack.c.bf16 %v5199_v10, %v5199_v10  ;;  %12397 = vrcp.f32 %v5700_v49  ;;  %v16397_v41 = vld [vmem:[#allocation74_spill] sm:$0xff] }
 0x614   : > { %4590 = vst [vmem:[#allocation3 + $0x38] sm:$0xf] %v10965_v4 }
 0x615   : > { %v6748_v30 = vmul.f32 1.442695, %v6734_v5  ;;  %11652 = vmatmul.mubr.msk.bf16.gmra.mxu1 %vm3690_vm7, %v5204_v55 }
 0x616   : > { %v5703_v32 = vpop.xlane.xlu1 %5702  ;;  %v6722_v3 = vpop.xlane.xlu0 %6721  ;;  %11695 = vmatprep.mubr.msk.bf16.mxu1 %vm12569_vm4, %v16243_v2 }
 0x617   : > { %12399 = vpow2.f32 %v6748_v30  ;;  %v6735_v44 = vsub.f32 %v14591_v39, %v6722_v3  ;;  %v16398_v30 = vld [vmem:[#allocation71_spill] sm:$0xff] }
 0x618   : > { %v15040_v62 = vpop.eup %12389  ;;  %12401 = vrcp.f32 %v5703_v32 }
 0x619   : > { %v6750_v61 = vmul.f32 1.442695, %v6735_v44  ;;  %v6765_v1 = vsel %vm3690_vm7, %v15040_v62, 0.0  ;;  %v12392_v45 = vpop.eup %12391 }
 0x61a   : > { %6766 = vadd.xlane.f32.xlu0 %v6765_v1  ;;  %v6725_v53 = vpop.xlane.xlu1 %6724  ;;  %v5706_v31 = vpop.xlane.xlu0 %5705  ;;  %v5728_v38 = vmul.f32 %v12392_v45, %v14838_v54 }
 0x61b   : > { %12403 = vpow2.f32 %v6750_v61  ;;  %v6736_v0 = vsub.f32 %v14601_v63, %v6725_v53  ;;  %v16399_v61 = vld [vmem:[#allocation69_spill] sm:$0xff] }
 0x61c   : > { %v12394_v7 = vpop.eup %12393  ;;  %12405 = vrcp.f32 %v5706_v31 }
 0x61d   : > { %v5729_v39 = vmul.f32 %v12394_v7, %v14848_v27  ;;  %v6752_v60 = vmul.f32 1.442695, %v6736_v0 }
 0x61e   : > { %v5709_v13 = vpop.xlane.xlu1 %5708 }
 0x61f   : > { %v15048_v9 = vpop.eup %12395  ;;  %v5737_v48 = vpack.c.bf16 %v5729_v39, %v5728_v38  ;;  %12407 = vpow2.f32 %v6752_v60 }
 0x620   : > { %12409 = vrcp.f32 %v5709_v13  ;;  %v6768_v63 = vsel %vm3690_vm7, %v15048_v9, 0.0  ;;  %v12398_v27 = vpop.eup %12397 }
 0x621   : > { %11696 = vmatmul.mubr.msk.bf16.vlgmr.msra.gmra.mxu1 %vm3690_vm7, %v5737_v48  ;;  %6769 = vadd.xlane.f32.xlu1 %v6768_v63  ;;  %v5730_v24 = vmul.f32 %v12398_v27, %v14855_v15  ;;  %v4595_v63 = vld [vmem:[#allocation3 + $0x88] sm:$0x1] }
 0x622   : > { %11746 = vmatpush3.bf16.msra.mxu1 %v6332_v6  ;;  %v5712_v54 = vpop.xlane.xlu0 %5711  ;;  %11699 = vmatprep.mubr.msk.bf16.mxu1 %vm12569_vm4, %v16243_v2 }
 0x623   : > { %11747 = vmatprep.subr.bf16.mxu1 %v16243_v2  ;;  %12411 = vrcp.f32 %v5712_v54 }
 0x624   : > { %v15057_v28 = vpop.eup %12399 }
 0x625   : > { %v12402_v33 = vpop.eup %12401  ;;  %v6771_v56 = vsel %vm3690_vm7, %v15057_v28, 0.0  ;;  %v5715_v34 = vpop.xlane.xlu1 %5714 }
 0x626   : > { %11748 = vmatpush3.bf16.msra.mxu1 %v16396_v59  ;;  %6772 = vadd.xlane.f32.xlu0 %v6771_v56  ;;  %12413 = vrcp.f32 %v5715_v34  ;;  %v5731_v21 = vmul.f32 %v12402_v33, %v14864_v50 }
 0x627   : > { %11749 = vmatprep.subr.bf16.mxu1 %v16243_v2 }
 0x628   : > { %v15065_v40 = vpop.eup %12403  ;;  %v5738_v36 = vpack.c.bf16 %v5731_v21, %v5730_v24 }
 0x629   : > { %v6774_v43 = vsel %vm3690_vm7, %v15065_v40, 0.0  ;;  %v6728_v10 = vpop.xlane.xlu1 %6727  ;;  %v12406_v49 = vpop.eup %12405 }
 0x62a   : > { %11700 = vmatmul.mubr.msk.bf16.gmra.mxu1 %vm3690_vm7, %v5738_v36  ;;  %6775 = vadd.xlane.f32.xlu1 %v6774_v43  ;;  %v6737_v4 = vsub.f32 %v14611_v46, %v6728_v10  ;;  %v5732_v55 = vmul.f32 %v12406_v49, %v14875_v22 }
 0x62b   : > { %11750 = vmatpush3.bf16.msra.mxu1 %v16397_v41  ;;  %11703 = vmatprep.mubr.msk.bf16.mxu1 %vm12569_vm4, %v16243_v2 }
 0x62c   : > { %v15074_v15 = vpop.eup %12407  ;;  %v6754_v50 = vmul.f32 1.442695, %v6737_v4  ;;  %11751 = vmatprep.subr.bf16.mxu1 %v16243_v2 }
 0x62d   : > { %v12410_v5 = vpop.eup %12409  ;;  %v6777_v58 = vsel %vm3690_vm7, %v15074_v15, 0.0 }
 0x62e   : > { %12415 = vpow2.f32 %v6754_v50  ;;  %6778 = vadd.xlane.f32.xlu0 %v6777_v58  ;;  %v5733_v46 = vmul.f32 %v12410_v5, %v14884_v14 }
 0x62f   : > { %11752 = vmatpush3.bf16.msra.mxu1 %v16398_v30 }
 0x630   : > { %11753 = vmatprep.subr.bf16.mxu1 %v16243_v2  ;;  %v5739_v32 = vpack.c.bf16 %v5733_v46, %v5732_v55  ;;  %v12412_v3 = vpop.eup %12411 }
 0x631   : > { %v5734_v1 = vmul.f32 %v12412_v3, %v14893_v57 }
 0x632   : > { %11704 = vmatmul.mubr.msk.bf16.gmra.mxu1 %vm3690_vm7, %v5739_v32 }
 0x633   : > { %v12414_v44 = vpop.eup %12413  ;;  %11754 = vmatpush3.bf16.msra.mxu1 %v16399_v61  ;;  %11707 = vmatprep.mubr.msk.bf16.mxu1 %vm12569_vm4, %v16243_v2 }
 0x634   : > { %v5735_v22 = vmul.f32 %v12414_v44, %v14899_v25  ;;  %11805 = vmatprep.subr.bf16.mxu1 %v16243_v2 }
 0x636   : > { %v5740_v14 = vpack.c.bf16 %v5735_v22, %v5734_v1 }
 0x637   : > { %v4528_v45 = vpop.f32.mrf.mxu1 }
 0x638   : > { %v10966_v53 = vpack.c.bf16 %v4528_v45, %v4528_v45  ;;  %v16400_v45 = vld [vmem:[#allocation36_spill] sm:$0xff] }
 0x639   : > { %v11525_v31 = vpop.f32.mrf.mxu1 }
 0x63a   : > { %4591 = vst [vmem:[#allocation3 + $0x48] sm:$0xf] %v10966_v53  ;;  %11708 = vmatmul.mubr.msk.bf16.gmra.mxu1 %vm3690_vm7, %v5740_v14  ;;  %v6842_v53 = vshrl.u32 %v16400_v45, 16 }
 0x63b   : > { %v15091_v0 = vpop.eup %12415  ;;  %v4531_v7 = vpop.f32.mrf.mxu1  ;;  %11711 = vmatprep.mubr.msk.bf16.mxu1 %vm12569_vm4, %v16243_v2 }
 0x63c   : > { %v10967_v23 = vpack.c.bf16 %v4531_v7, %v4531_v7  ;;  %v6780_v57 = vsel %vm3715_vm8, %v15091_v0, 0.0 }
 0x63d   : > { %v11526_v25 = vpop.f32.mrf.mxu1  ;;  %6781 = vadd.xlane.f32.xlu1 %v6780_v57 }
 0x63e   : > { %4592 = vst [vmem:[#allocation3 + $0x58] sm:$0xf] %v10967_v23 }
 0x63f   : > { %v4536_v51 = vpop.f32.mrf.mxu1 }
 0x640   : > { %v10968_v38 = vpack.c.bf16 %v4536_v51, %v4536_v51  ;;  %v6864_v51 = vand.u32 %v6842_v53, %v16331_v17  ;;  %v4924_v53 = vld [vmem:[#allocation3 + $0x8c] sm:$0x1] }
 0x641   : > { %v11529_v39 = vpop.f32.mrf.mxu1 }
 0x642   : > { %4593 = vst [vmem:[#allocation3 + $0x68] sm:$0xf] %v10968_v38 }
 0x643   : > { %v4539_v60 = vpop.f32.mrf.mxu1 }
 0x644   : > { %v10969_v13 = vpack.c.bf16 %v4539_v60, %v4539_v60 }
 0x645   : > { %v11530_v48 = vpop.f32.mrf.mxu1 }
 0x646   : > { %4594 = vst [vmem:[#allocation3 + $0x78] sm:$0xf] %v10969_v13  ;;  %v16401_v13 = vld [vmem:[#allocation76_spill] sm:$0xff] }
 0x647   : > { %v4544_v6 = vpop.f32.mrf.mxu1 }
 0x648   : > { %v10970_v54 = vpack.c.bf16 %v4544_v6, %v4544_v6  ;;  %v5718_v27 = vpop.xlane.xlu0 %5717  ;;  %v16402_v6 = vld [vmem:[#allocation75_spill] sm:$0xff] }
 0x649   : > { %12417 = vrcp.f32 %v5718_v27  ;;  %v11533_v33 = vpop.f32.mrf.mxu1  ;;  %v16403_v27 = vld [vmem:[#allocation72_spill] sm:$0xff] }
 0x64a   : > { %v4596_v56 = vsel %vm14916_vm10, %v10970_v54, %v4595_v63 }
 0x64b   : > { %4597 = vst [vmem:[#allocation3 + $0x88] sm:$0x1] %v4596_v56  ;;  %v4547_v34 = vpop.f32.mrf.mxu1  ;;  %v12067_v56 = vld [vmem:[%s12690_s23 + $0xf8] sm:$0xff]  }
 0x64d   : > { %v11534_v59 = vpop.f32.mrf.mxu1 }
 0x64f   : > { %v4841_v24 = vpop.f32.mrf.mxu1  ;;  %v6226_v36 = vpop.xlane.xlu0 %6225 }
 0x650   : > { %v10971_v21 = vpack.c.bf16 %v4841_v24, %v4841_v24  ;;  %12419 = vrcp.f32 %v6226_v36  ;;  %v16404_v24 = vld [vmem:[#allocation70_spill] sm:$0xff] }
 0x651   : > { %v11577_v43 = vpop.f32.mrf.mxu1 }
 0x652   : > { %4916 = vst [vmem:[#allocation3 + $0xc] sm:$0xf] %v10971_v21 }
 0x653   : > { %v4844_v10 = vpop.f32.mrf.mxu1 }
 0x654   : > { %v10972_v4 = vpack.c.bf16 %v4844_v10, %v4844_v10  ;;  %v6229_v49 = vpop.xlane.xlu1 %6228 }
 0x655   : > { %12421 = vrcp.f32 %v6229_v49  ;;  %v11578_v41 = vpop.f32.mrf.mxu1 }
 0x656   : > { %v12418_v50 = vpop.eup %12417  ;;  %4917 = vst [vmem:[#allocation3 + $0x1c] sm:$0xf] %v10972_v4 }
 0x657   : > { %v5736_v5 = vmul.f32 %v12418_v50, %v14927_v52 }
 0x658   : > { %v4849_v58 = vpop.f32.mrf.mxu1  ;;  %v6232_v55 = vpop.xlane.xlu0 %6231 }
 0x659   : > { %v10973_v46 = vpack.c.bf16 %v4849_v58, %v4849_v58  ;;  %12423 = vrcp.f32 %v6232_v55  ;;  %v6235_v30 = vpop.xlane.xlu1 %6234  ;;  %v5741_v32 = vpack.c.bf16 %v5736_v5, %v5736_v5 }
 0x65a   : > { %12425 = vrcp.f32 %v6235_v30  ;;  %v11581_v3 = vpop.f32.mrf.mxu1 }
 0x65b   : > { %4918 = vst [vmem:[#allocation3 + $0x2c] sm:$0xf] %v10973_v46  ;;  %11712 = vmatmul.mubr.msk.bf16.gmra.mxu1 %vm3690_vm7, %v5741_v32 }
 0x65c   : > { %v4852_v44 = vpop.f32.mrf.mxu1  ;;  %11755 = vmatprep.mubr.msk.bf16.mxu1 %vm12569_vm4, %v16243_v2 }
 0x65d   : > { %v10974_v61 = vpack.c.bf16 %v4852_v44, %v4852_v44  ;;  %v12420_v22 = vpop.eup %12419 }
 0x65e   : > { %v11582_v1 = vpop.f32.mrf.mxu1  ;;  %v6260_v31 = vmul.f32 %v12420_v22, %v14936_v29 }
 0x65f   : > { %4919 = vst [vmem:[#allocation3 + $0x3c] sm:$0xf] %v10974_v61 }
 0x660   : > { %v6238_v52 = vpop.xlane.xlu0 %6237 }
 0x661   : > { %12427 = vrcp.f32 %v6238_v52 }
 0x662   : > { %v12422_v14 = vpop.eup %12421 }
 0x663   : > { %v6261_v7 = vmul.f32 %v12422_v14, %v14946_v18  ;;  %v6241_v23 = vpop.xlane.xlu1 %6240  ;;  %v12068_v14 = vld [vmem:[%s12690_s23 + $0xb8] sm:$0xff]  }
 0x664   : > { %12429 = vrcp.f32 %v6241_v23 }
 0x665   : > { %v6269_v57 = vpack.c.bf16 %v6261_v7, %v6260_v31  ;;  %v12069_v31 = vld [vmem:[%s12690_s23 + $0xf0] sm:$0xff]  }
 0x666   : > { %v12424_v25 = vpop.eup %12423 }
 0x667   : > { %v12426_v38 = vpop.eup %12425  ;;  %11756 = vmatmul.mubr.msk.bf16.vlgmr.msra.gmra.mxu1 %vm3690_vm7, %v6269_v57  ;;  %v6262_v29 = vmul.f32 %v12424_v25, %v14953_v26  ;;  %v12071_v25 = vld [vmem:[%s12690_s23 + $0xe8] sm:$0xff]  }
 0x668   : > { %11806 = vmatpush3.bf16.msra.mxu1 %v6864_v51  ;;  %v6244_v39 = vpop.xlane.xlu0 %6243  ;;  %11759 = vmatprep.mubr.msk.bf16.mxu1 %vm12569_vm4, %v16243_v2  ;;  %v6263_v18 = vmul.f32 %v12426_v38, %v14950_v37  ;;  %v12072_v38 = vld [vmem:[%s12690_s23 + $0xa8] sm:$0xff]  }
 0x669   : > { %11807 = vmatprep.subr.bf16.mxu1 %v16243_v2  ;;  %12431 = vrcp.f32 %v6244_v39 }
 0x66a   : > { %v6270_v17 = vpack.c.bf16 %v6263_v18, %v6262_v29  ;;  %v12073_v29 = vld [vmem:[%s12690_s23 + $0xe0] sm:$0xff]  }
 0x66b   : > { %v6247_v60 = vpop.xlane.xlu1 %6246 }
 0x66c   : > { %11808 = vmatpush3.bf16.msra.mxu1 %v16401_v13  ;;  %12433 = vrcp.f32 %v6247_v60  ;;  %v12074_v13 = vld [vmem:[%s12690_s23 + $0xa0] sm:$0xff]  }
 0x66d   : > { %11809 = vmatprep.subr.bf16.mxu1 %v16243_v2 }
 0x66e   : > { %v12428_v48 = vpop.eup %12427 }
 0x66f   : > { %11760 = vmatmul.mubr.msk.bf16.gmra.mxu1 %vm3690_vm7, %v6270_v17  ;;  %v6264_v37 = vmul.f32 %v12428_v48, %v14968_v19  ;;  %v12075_v48 = vld [vmem:[%s12690_s23 + $0xd8] sm:$0xff]  }
 0x670   : > { %11810 = vmatpush3.bf16.msra.mxu1 %v16402_v6  ;;  %v6250_v63 = vpop.xlane.xlu0 %6249  ;;  %11763 = vmatprep.mubr.msk.bf16.mxu1 %vm12569_vm4, %v16243_v2 }
 0x671   : > { %v12430_v26 = vpop.eup %12429  ;;  %12435 = vrcp.f32 %v6250_v63  ;;  %11811 = vmatprep.subr.bf16.mxu1 %v16243_v2 }
 0x672   : > { %v6265_v54 = vmul.f32 %v12430_v26, %v14976_v11 }
 0x674   : > { %11812 = vmatpush3.bf16.msra.mxu1 %v16403_v27  ;;  %v6271_v33 = vpack.c.bf16 %v6265_v54, %v6264_v37 }
 0x675   : > { %11813 = vmatprep.subr.bf16.mxu1 %v16243_v2 }
 0x676   : > { %v12432_v34 = vpop.eup %12431 }
 0x677   : > { %11764 = vmatmul.mubr.msk.bf16.gmra.mxu1 %vm3690_vm7, %v6271_v33  ;;  %v6758_v59 = vpop.xlane.xlu1 %6757  ;;  %v6266_v19 = vmul.f32 %v12432_v34, %v14985_v16  ;;  %v5454_v34 = vld [vmem:[#allocation3 + $0x80] sm:$0xf] }
 0x678   : > { %11814 = vmatpush3.bf16.msra.mxu1 %v16404_v24  ;;  %11767 = vmatprep.mubr.msk.bf16.mxu1 %vm12569_vm4, %v16243_v2  ;;  %12437 = vrcp.f32 %v6758_v59  ;;  %v12077_v59 = vld [vmem:[%s12690_s23 + $0xd0] sm:$0xff]  }
 0x679   : > { %v12434_v21 = vpop.eup %12433  ;;  %11246 = vmatprep.subr.bf16.mxu1 %v12067_v56  ;;  %v12076_v56 = vld [vmem:[%s12690_s23 + $0x98] sm:$0xff]  }
 0x67a   : > { %v6267_v11 = vmul.f32 %v12434_v21, %v14992_v42 }
 0x67b   : > { %v6761_v36 = vpop.xlane.xlu0 %6760 }
 0x67c   : > { %12439 = vrcp.f32 %v6761_v36  ;;  %v6272_v43 = vpack.c.bf16 %v6267_v11, %v6266_v19 }
 0x67d   : > { %v4857_v10 = vpop.f32.mrf.mxu1 }
 0x67e   : > { %v12436_v4 = vpop.eup %12435  ;;  %v10975_v49 = vpack.c.bf16 %v4857_v10, %v4857_v10 }
 0x67f   : > { %11768 = vmatmul.mubr.msk.bf16.gmra.mxu1 %vm3690_vm7, %v6272_v43  ;;  %v11585_v41 = vpop.f32.mrf.mxu1  ;;  %v6268_v5 = vmul.f32 %v12436_v4, %v15004_v35  ;;  %v6764_v43 = vpop.xlane.xlu1 %6763 }
 0x680   : > { %4920 = vst [vmem:[#allocation3 + $0x4c] sm:$0xf] %v10975_v49  ;;  %11771 = vmatprep.mubr.msk.bf16.mxu1 %vm12569_vm4, %v16243_v2  ;;  %12441 = vrcp.f32 %v6764_v43 }
 0x681   : > { %v4860_v50 = vpop.f32.mrf.mxu1  ;;  %v6273_v55 = vpack.c.bf16 %v6268_v5, %v6268_v5 }
 0x682   : > { %v10976_v58 = vpack.c.bf16 %v4860_v50, %v4860_v50  ;;  %v12078_v50 = vld [vmem:[%s12690_s23 + $0x90] sm:$0xff]  }
 0x683   : > { %v11586_v16 = vpop.f32.mrf.mxu1 }
 0x684   : > { %4921 = vst [vmem:[#allocation3 + $0x5c] sm:$0xf] %v10976_v58  ;;  %v12079_v58 = vld [vmem:[%s12690_s23 + $0xc8] sm:$0xff]  }
 0x685   : > { %v4865_v42 = vpop.f32.mrf.mxu1  ;;  %v12438_v30 = vpop.eup %12437 }
 0x686   : > { %v10977_v46 = vpack.c.bf16 %v4865_v42, %v4865_v42  ;;  %v6792_v35 = vmul.f32 %v12438_v30, %v15015_v12 }
 0x687   : > { %11772 = vmatmul.mubr.msk.bf16.gmra.mxu1 %vm3690_vm7, %v6273_v55  ;;  %v11589_v32 = vpop.f32.mrf.mxu1 }
 0x688   : > { %4922 = vst [vmem:[#allocation3 + $0x6c] sm:$0xf] %v10977_v46  ;;  %11815 = vmatprep.mubr.msk.bf16.mxu1 %vm12569_vm4, %v16243_v2 }
 0x689   : > { %v12440_v3 = vpop.eup %12439  ;;  %v4868_v44 = vpop.f32.mrf.mxu1 }
 0x68a   : > { %v6793_v61 = vmul.f32 %v12440_v3, %v15022_v20  ;;  %v10978_v1 = vpack.c.bf16 %v4868_v44, %v4868_v44  ;;  %v12070_v20 = vld [vmem:[%s12690_s23 + $0xb0] sm:$0xff]   ;;  %v12080_v44 = vld [vmem:[%s12690_s23 + $0x88] sm:$0xff]  }
 0x68b   : > { %v11590_v22 = vpop.f32.mrf.mxu1 }
 0x68c   : > { %v6801_v52 = vpack.c.bf16 %v6793_v61, %v6792_v35  ;;  %4923 = vst [vmem:[#allocation3 + $0x7c] sm:$0xf] %v10978_v1  ;;  %v12084_v22 = vld [vmem:[%s12690_s23 + $0xc0] sm:$0xff]  }
 0x68d   : > { %v4873_v45 = vpop.f32.mrf.mxu1 }
 0x68e   : > { %v10979_v7 = vpack.c.bf16 %v4873_v45, %v4873_v45 }
 0x68f   : > { %11816 = vmatmul.mubr.msk.bf16.vlgmr.msra.gmra.mxu1 %vm3690_vm7, %v6801_v52  ;;  %v11593_v23 = vpop.f32.mrf.mxu1 }
 0x690   : > { %v4925_v12 = vsel %vm14916_vm10, %v10979_v7, %v4924_v53  ;;  %11819 = vmatprep.mubr.msk.bf16.mxu1 %vm12569_vm4, %v16243_v2  ;;  %11247 = vmatpush3.bf16.msra.mxu1 %v12068_v14  ;;  %v12085_v23 = vld [vmem:[%s12690_s23 + $0x80] sm:$0xff]  }
 0x691   : > { %4926 = vst [vmem:[#allocation3 + $0x8c] sm:$0x1] %v4925_v12  ;;  %v4876_v57 = vpop.f32.mrf.mxu1  ;;  %11248 = vmatprep.subr.bf16.mxu1 %v12069_v31 }
 0x693   : > { %v11594_v51 = vpop.f32.mrf.mxu1 }
 0x694   : > { %11249 = vmatpush3.bf16.msra.mxu1 %v12070_v20 }
 0x695   : > { %v5299_v39 = vpop.f32.mrf.mxu1  ;;  %11250 = vmatprep.subr.bf16.mxu1 %v12071_v25 }
 0x696   : > { %v10980_v18 = vpack.c.bf16 %v5299_v39, %v5299_v39 }
 0x697   : > { %v11637_v47 = vpop.f32.mrf.mxu1 }
 0x698   : > { %v5368_v60 = vshrl.u32 %v10980_v18, 16  ;;  %11251 = vmatpush3.bf16.msra.mxu1 %v12072_v38  ;;  %v5371_v63 = vshll.u32 %v10980_v18, 16 }
 0x699   : > { %v5302_v17 = vpop.f32.mrf.mxu1  ;;  %11252 = vmatprep.subr.bf16.mxu1 %v12073_v29 }
 0x69a   : > { %v5370_v6 = vrot.slane %v5368_v60, 7  ;;  %v10981_v26 = vpack.c.bf16 %v5302_v17, %v5302_v17 }
 0x69b   : > { %v11638_v54 = vpop.f32.mrf.mxu1 }
 0x69c   : > { %v5373_v27 = vor.u32 %v5371_v63, %v5370_v6  ;;  %v5376_v33 = vshrl.u32 %v10981_v26, 16  ;;  %11253 = vmatpush3.bf16.msra.mxu1 %v12074_v13  ;;  %v5379_v19 = vshll.u32 %v10981_v26, 16  ;;  %v5374_v4 = vrot.slane %v5370_v6, 4  ;;  %v12442_v6 = vpop.eup %12441 }
 0x69d   : > { %11254 = vmatprep.subr.bf16.mxu1 %v12075_v48 }
 0x69e   : > { %v5455_v24 = vsel %vm15153_vm13, %v5373_v27, %v5454_v34  ;;  %v5378_v21 = vrot.slane %v5376_v33, 7  ;;  %v5307_v11 = vpop.f32.mrf.mxu1 }
 0x69f   : > { %5456 = vst [vmem:[#allocation3 + $0x80] sm:$0xf] %v5455_v24  ;;  %v10982_v10 = vpack.c.bf16 %v5307_v11, %v5307_v11  ;;  %v6794_v11 = vmul.f32 %v12442_v6, %v15026_v8 }
 0x6a0   : > { %v5381_v49 = vor.u32 %v5379_v19, %v5378_v21  ;;  %v11641_v41 = vpop.f32.mrf.mxu1  ;;  %11255 = vmatpush3.bf16.msra.mxu1 %v12076_v56  ;;  %v5383_v35 = vrot.slane %v5378_v21, 4 }
 0x6a1   : > { %v5385_v5 = vshrl.u32 %v10982_v10, 16  ;;  %11256 = vmatprep.subr.bf16.mxu1 %v12077_v59  ;;  %v5388_v46 = vshll.u32 %v10982_v10, 16 }
 0x6a2   : > { %v5382_v16 = vsel %vm15162_vm15, %v5374_v4, %v5381_v49  ;;  %v5310_v42 = vpop.f32.mrf.mxu1 }
 0x6a3   : > { %5457 = vst [vmem:[#allocation3 + $0x90] sm:$0xf] %v5382_v16  ;;  %v5387_v55 = vrot.slane %v5385_v5, 7  ;;  %v10983_v30 = vpack.c.bf16 %v5310_v42, %v5310_v42  ;;  %v6767_v32 = vpop.xlane.xlu0 %6766 }
 0x6a4   : > { %12443 = vrcp.f32 %v6767_v32  ;;  %v11642_v3 = vpop.f32.mrf.mxu1  ;;  %11257 = vmatpush3.bf16.msra.mxu1 %v12078_v50 }
 0x6a5   : > { %v5390_v61 = vor.u32 %v5388_v46, %v5387_v55  ;;  %v5394_v1 = vshrl.u32 %v10983_v30, 16  ;;  %11258 = vmatprep.subr.bf16.mxu1 %v12079_v58  ;;  %v5397_v53 = vshll.u32 %v10983_v30, 16  ;;  %v5392_v12 = vrot.slane %v5387_v55, 4 }
 0x6a6   : > { %v5315_v52 = vpop.f32.mrf.mxu1 }
 0x6a7   : > { %v5391_v14 = vsel %vm15162_vm15, %v5383_v35, %v5390_v61  ;;  %v5396_v45 = vrot.slane %v5394_v1, 7  ;;  %v10984_v31 = vpack.c.bf16 %v5315_v52, %v5315_v52 }
 0x6a8   : > { %5458 = vst [vmem:[#allocation3 + $0xa0] sm:$0xf] %v5391_v14  ;;  %v11645_v7 = vpop.f32.mrf.mxu1  ;;  %11259 = vmatpush3.bf16.msra.mxu1 %v12080_v44 }
 0x6a9   : > { %v5399_v20 = vor.u32 %v5397_v53, %v5396_v45  ;;  %v5403_v57 = vshrl.u32 %v10984_v31, 16  ;;  %11260 = vmatprep.subr.bf16.mxu1 %v12084_v22  ;;  %v5406_v39 = vshll.u32 %v10984_v31, 16  ;;  %v5401_v60 = vrot.slane %v5396_v45, 4 }
 0x6aa   : > { %v5318_v25 = vpop.f32.mrf.mxu1  ;;  %v6770_v18 = vpop.xlane.xlu1 %6769 }
 0x6ab   : > { %v5400_v51 = vsel %vm15162_vm15, %v5392_v12, %v5399_v20  ;;  %v5405_v38 = vrot.slane %v5403_v57, 7  ;;  %v10985_v29 = vpack.c.bf16 %v5318_v25, %v5318_v25  ;;  %12445 = vrcp.f32 %v6770_v18  ;;  %v12081_v18 = vld [vmem:[#allocation3 + $0x8] ss:$16 sps:$4 sm:$0xff]  }
 0x6ac   : > { %5459 = vst [vmem:[#allocation3 + $0xb0] sm:$0xf] %v5400_v51  ;;  %v11646_v47 = vpop.f32.mrf.mxu1  ;;  %11261 = vmatpush3.bf16.msra.mxu1 %v12085_v23  ;;  %v15247_v37 = vpop.f32.mrf.mxu0 }
 0x6ad   : > { %v5408_v13 = vor.u32 %v5406_v39, %v5405_v38  ;;  %v5412_v17 = vshrl.u32 %v10985_v29, 16  ;;  %11875 = vmatprep.subr.bf16.mxu1 %v16243_v2  ;;  %v5415_v54 = vshll.u32 %v10985_v29, 16  ;;  %v5410_v59 = vrot.slane %v5405_v38, 4  ;;  %v12083_v39 = vld [vmem:[#allocation3 + $0xc] ss:$16 sps:$4 sm:$0xff]  }
 0x6ae   : > { %v5323_v48 = vpop.f32.mrf.mxu1  ;;  %v12088_v47 = vld [vmem:[#allocation3 + $0x2c] ss:$16 sps:$4 sm:$0xff]  }
 0x6af   : > { %v5409_v63 = vsel %vm15162_vm15, %v5401_v60, %v5408_v13  ;;  %v5414_v26 = vrot.slane %v5412_v17, 7  ;;  %v10986_v27 = vpack.c.bf16 %v5323_v48, %v5323_v48  ;;  %v6773_v33 = vpop.xlane.xlu0 %6772 }
 0x6b0   : > { %5460 = vst [vmem:[#allocation3 + $0xc0] sm:$0xf] %v5409_v63  ;;  %12447 = vrcp.f32 %v6773_v33  ;;  %v11649_v56 = vpop.f32.mrf.mxu1 }
 0x6b1   : > { %v12444_v34 = vpop.eup %12443  ;;  %v5417_v24 = vor.u32 %v5415_v54, %v5414_v26  ;;  %v5421_v21 = vshrl.u32 %v10986_v27, 16  ;;  %v5424_v49 = vshll.u32 %v10986_v27, 16  ;;  %v5419_v16 = vrot.slane %v5414_v26, 4  ;;  %v12086_v54 = vld [vmem:[#allocation3 + $0x28] ss:$16 sps:$4 sm:$0xff]  }
 0x6b2   : > { %v5326_v19 = vpop.f32.mrf.mxu1  ;;  %v6795_v43 = vmul.f32 %v12444_v34, %v15040_v62  ;;  %v12091_v34 = vld [vmem:[#allocation3 + $0x4c] ss:$16 sps:$4 sm:$0xff]  }
 0x6b3   : > { %v5418_v10 = vsel %vm15162_vm15, %v5410_v59, %v5417_v24  ;;  %v5423_v4 = vrot.slane %v5421_v21, 7  ;;  %v10987_v41 = vpack.c.bf16 %v5326_v19, %v5326_v19  ;;  %v6776_v50 = vpop.xlane.xlu1 %6775  ;;  %v5986_v59 = vld [vmem:[#allocation3 + $0x84] sm:$0xf] }
 0x6b4   : > { %5461 = vst [vmem:[#allocation3 + $0xd0] sm:$0xf] %v5418_v10  ;;  %v11650_v5 = vpop.f32.mrf.mxu1  ;;  %v6802_v58 = vpack.c.bf16 %v6795_v43, %v6794_v11  ;;  %12449 = vrcp.f32 %v6776_v50 }
 0x6b5   : > { %v5426_v42 = vor.u32 %v5424_v49, %v5423_v4  ;;  %v5430_v55 = vshrl.u32 %v10987_v41, 16  ;;  %v5433_v46 = vshll.u32 %v10987_v41, 16  ;;  %v5428_v32 = vrot.slane %v5423_v4, 4 }
 0x6b6   : > { %11820 = vmatmul.mubr.msk.bf16.gmra.mxu1 %vm3690_vm7, %v6802_v58 }
 0x6b7   : > { %v5427_v8 = vsel %vm15162_vm15, %v5419_v16, %v5426_v42  ;;  %v5432_v62 = vrot.slane %v5430_v55, 7  ;;  %v6779_v30 = vpop.xlane.xlu0 %6778  ;;  %11823 = vmatprep.mubr.msk.bf16.mxu1 %vm12569_vm4, %v16243_v2  ;;  %v12089_v42 = vld [vmem:[#allocation3 + $0x48] ss:$16 sps:$4 sm:$0xff]  }
 0x6b8   : > { %5462 = vst [vmem:[#allocation3 + $0xe0] sm:$0xf] %v5427_v8  ;;  %12451 = vrcp.f32 %v6779_v30  ;;  %v12446_v44 = vpop.eup %12445 }
 0x6b9   : > { %v5435_v3 = vor.u32 %v5433_v46, %v5432_v62  ;;  %v6796_v1 = vmul.f32 %v12446_v44, %v15048_v9  ;;  %v5437_v51 = vrot.slane %v5432_v62, 4  ;;  %v12094_v62 = vld [vmem:[#allocation3 + $0x6c] ss:$16 sps:$4 sm:$0xff]  }
 0x6bb   : > { %v5436_v35 = vsel %vm15162_vm15, %v5428_v32, %v5435_v3 }
 0x6bc   : > { %5463 = vst [vmem:[#allocation3 + $0xf0] sm:$0xf] %v5436_v35 }
 0x6bd   : > { %v12448_v61 = vpop.eup %12447 }
 0x6be   : > { %v6797_v22 = vmul.f32 %v12448_v61, %v15057_v28 }
 0x6c0   : > { %v6803_v52 = vpack.c.bf16 %v6797_v22, %v6796_v1 }
 0x6c1   : > { %v12450_v14 = vpop.eup %12449 }
 0x6c2   : > { %11824 = vmatmul.mubr.msk.bf16.gmra.mxu1 %vm3690_vm7, %v6803_v52  ;;  %v6798_v31 = vmul.f32 %v12450_v14, %v15065_v40 }
 0x6c3   : > { %11827 = vmatprep.mubr.msk.bf16.mxu1 %vm12569_vm4, %v16243_v2 }
 0x6c5   : > { %v12452_v45 = vpop.eup %12451 }
 0x6c6   : > { %v6782_v53 = vpop.xlane.xlu1 %6781  ;;  %v6799_v7 = vmul.f32 %v12452_v45, %v15074_v15 }
 0x6c7   : > { %12453 = vrcp.f32 %v6782_v53 }
 0x6c8   : > { %v6804_v23 = vpack.c.bf16 %v6799_v7, %v6798_v31  ;;  %v12095_v31 = vld [vmem:[#allocation3 + $0x80] ss:$16 sps:$4 sm:$0xff]  }
 0x6ca   : > { %11828 = vmatmul.mubr.msk.bf16.gmra.mxu1 %vm3690_vm7, %v6804_v23 }
 0x6cb   : > { %11831 = vmatprep.mubr.msk.bf16.mxu1 %vm12569_vm4, %v16243_v2 }
 0x6d4   : > { %v12454_v9 = vpop.eup %12453 }
 0x6d5   : > { %v5331_v28 = vpop.f32.mrf.mxu1  ;;  %v6800_v12 = vmul.f32 %v12454_v9, %v15091_v0 }
 0x6d6   : > { %v10988_v20 = vpack.c.bf16 %v5331_v28, %v5331_v28 }
 0x6d7   : > { %v11653_v57 = vpop.f32.mrf.mxu1  ;;  %v6805_v25 = vpack.c.bf16 %v6800_v12, %v6800_v12  ;;  %v12092_v12 = vld [vmem:[#allocation3 + $0x68] ss:$16 sps:$4 sm:$0xff]  }
 0x6d8   : > { %v5439_v38 = vshll.u32 %v10988_v20, 16 }
 0x6d9   : > { %v5334_v40 = vpop.f32.mrf.mxu1  ;;  %11832 = vmatmul.mubr.msk.bf16.gmra.mxu1 %vm3690_vm7, %v6805_v25 }
 0x6da   : > { %v5441_v15 = vsel %vm15162_vm15, %v5437_v51, %v5439_v38  ;;  %7661 = vmatprep.mubr.bf16.mxu1 %v12083_v39 }
 0x6db   : > { %5464 = vst [vmem:[#allocation3 + $0x100] sm:$0x1] %v5441_v15  ;;  %v11654_v29 = vpop.f32.mrf.mxu1 }
 0x6e1   : > { %v5836_v60 = vpop.f32.mrf.mxu1  ;;  %7662 = vmatmul.mubr.bf16.vlgmr.msra.gmra.mxu1 %v12081_v18 }
 0x6e2   : > { %v10989_v0 = vpack.c.bf16 %v5836_v60, %v5836_v60  ;;  %7669 = vmatprep.mubr.bf16.mxu1 %v12088_v47 }
 0x6e3   : > { %v11697_v13 = vpop.f32.mrf.mxu1 }
 0x6e4   : > { %v5903_v17 = vshrl.u32 %v10989_v0, 16  ;;  %v5906_v63 = vshll.u32 %v10989_v0, 16 }
 0x6e5   : > { %v5839_v48 = vpop.f32.mrf.mxu1 }
 0x6e6   : > { %v5905_v6 = vrot.slane %v5903_v17, 7  ;;  %v10990_v26 = vpack.c.bf16 %v5839_v48, %v5839_v48 }
 0x6e7   : > { %v11698_v27 = vpop.f32.mrf.mxu1 }
 0x6e8   : > { %v5908_v33 = vor.u32 %v5906_v63, %v5905_v6  ;;  %v5911_v56 = vshrl.u32 %v10990_v26, 16  ;;  %v5914_v19 = vshll.u32 %v10990_v26, 16  ;;  %v5909_v10 = vrot.slane %v5905_v6, 4 }
 0x6e9   : > { %7670 = vmatmul.mubr.bf16.gmra.mxu1 %v12086_v54  ;;  %v12098_v54 = vld [vmem:[#allocation3 + $0xa0] ss:$16 sps:$4 sm:$0xff]  }
 0x6ea   : > { %v5987_v24 = vsel %vm15153_vm13, %v5908_v33, %v5986_v59  ;;  %v5913_v21 = vrot.slane %v5911_v56, 7  ;;  %v5844_v11 = vpop.f32.mrf.mxu1  ;;  %7677 = vmatprep.mubr.bf16.mxu1 %v12091_v34 }
 0x6eb   : > { %5988 = vst [vmem:[#allocation3 + $0x84] sm:$0xf] %v5987_v24  ;;  %v10991_v43 = vpack.c.bf16 %v5844_v11, %v5844_v11 }
 0x6ec   : > { %v5916_v4 = vor.u32 %v5914_v19, %v5913_v21  ;;  %v11701_v49 = vpop.f32.mrf.mxu1  ;;  %v5918_v46 = vrot.slane %v5913_v21, 4 }
 0x6ed   : > { %v5920_v41 = vshrl.u32 %v10991_v43, 16  ;;  %v5923_v16 = vshll.u32 %v10991_v43, 16 }
 0x6ee   : > { %v5917_v50 = vsel %vm15162_vm15, %v5909_v10, %v5916_v4  ;;  %v5847_v5 = vpop.f32.mrf.mxu1  ;;  %v12101_v4 = vld [vmem:[#allocation3 + $0xc0] ss:$16 sps:$4 sm:$0xff]  }
 0x6ef   : > { %5989 = vst [vmem:[#allocation3 + $0x94] sm:$0xf] %v5917_v50  ;;  %v5922_v58 = vrot.slane %v5920_v41, 7  ;;  %v10992_v55 = vpack.c.bf16 %v5847_v5, %v5847_v5  ;;  %v12104_v41 = vld [vmem:[#allocation3 + $0xe0] ss:$16 sps:$4 sm:$0xff]  }
 0x6f0   : > { %v11702_v8 = vpop.f32.mrf.mxu1 }
 0x6f1   : > { %v5925_v30 = vor.u32 %v5923_v16, %v5922_v58  ;;  %v5929_v32 = vshrl.u32 %v10992_v55, 16  ;;  %7678 = vmatmul.mubr.bf16.gmra.mxu1 %v12089_v42  ;;  %v5932_v61 = vshll.u32 %v10992_v55, 16  ;;  %v5927_v52 = vrot.slane %v5922_v58, 4 }
 0x6f2   : > { %v5852_v3 = vpop.f32.mrf.mxu1  ;;  %7685 = vmatprep.mubr.bf16.mxu1 %v12094_v62 }
 0x6f3   : > { %v5926_v44 = vsel %vm15162_vm15, %v5918_v46, %v5925_v30  ;;  %v5931_v35 = vrot.slane %v5929_v32, 7  ;;  %v10993_v1 = vpack.c.bf16 %v5852_v3, %v5852_v3 }
 0x6f4   : > { %5990 = vst [vmem:[#allocation3 + $0xa4] sm:$0xf] %v5926_v44  ;;  %v11705_v22 = vpop.f32.mrf.mxu1 }
 0x6f5   : > { %v5934_v14 = vor.u32 %v5932_v61, %v5931_v35  ;;  %v5938_v45 = vshrl.u32 %v10993_v1, 16  ;;  %v5941_v28 = vshll.u32 %v10993_v1, 16  ;;  %v5936_v25 = vrot.slane %v5931_v35, 4 }
 0x6f6   : > { %v5855_v53 = vpop.f32.mrf.mxu1  ;;  %v12097_v7 = vld [vmem:[#allocation3 + $0x84] ss:$16 sps:$4 sm:$0xff]  }
 0x6f7   : > { %v5935_v23 = vsel %vm15162_vm15, %v5927_v52, %v5934_v14  ;;  %v5940_v9 = vrot.slane %v5938_v45, 7  ;;  %v10994_v20 = vpack.c.bf16 %v5855_v53, %v5855_v53  ;;  %7589 = vmatprep.mubr.bf16.mxu0 %v12097_v7 }
 0x6f8   : > { %5991 = vst [vmem:[#allocation3 + $0xb4] sm:$0xf] %v5935_v23  ;;  %v11706_v57 = vpop.f32.mrf.mxu1  ;;  %7590 = vmatmul.mubr.bf16.gmra.mxu0 %v12095_v31  ;;  %v6518_v23 = vld [vmem:[#allocation3 + $0x88] sm:$0xf] }
 0x6f9   : > { %v5943_v51 = vor.u32 %v5941_v28, %v5940_v9  ;;  %v5947_v38 = vshrl.u32 %v10994_v20, 16  ;;  %7686 = vmatmul.mubr.bf16.gmra.mxu1 %v12092_v12  ;;  %v5950_v29 = vshll.u32 %v10994_v20, 16  ;;  %v5945_v60 = vrot.slane %v5940_v9, 4 }
 0x6fa   : > { %v5860_v39 = vpop.f32.mrf.mxu1 }
 0x6fb   : > { %v5944_v40 = vsel %vm15162_vm15, %v5936_v25, %v5943_v51  ;;  %v5949_v15 = vrot.slane %v5947_v38, 7  ;;  %v10995_v18 = vpack.c.bf16 %v5860_v39, %v5860_v39 }
 0x6fc   : > { %5992 = vst [vmem:[#allocation3 + $0xc4] sm:$0xf] %v5944_v40  ;;  %v11709_v47 = vpop.f32.mrf.mxu1 }
 0x6fd   : > { %v5952_v0 = vor.u32 %v5950_v29, %v5949_v15  ;;  %v5956_v13 = vshrl.u32 %v10995_v18, 16  ;;  %v5959_v17 = vshll.u32 %v10995_v18, 16  ;;  %v5954_v56 = vrot.slane %v5949_v15, 4 }
 0x6fe   : > { %v5863_v48 = vpop.f32.mrf.mxu1 }
 0x6ff   : > { %v5953_v6 = vsel %vm15162_vm15, %v5945_v60, %v5952_v0  ;;  %v5958_v63 = vrot.slane %v5956_v13, 7  ;;  %v10996_v26 = vpack.c.bf16 %v5863_v48, %v5863_v48  ;;  %v12100_v27 = vld [vmem:[#allocation3 + $0xa4] ss:$16 sps:$4 sm:$0xff]  }
 0x700   : > { %5993 = vst [vmem:[#allocation3 + $0xd4] sm:$0xf] %v5953_v6  ;;  %v11710_v33 = vpop.f32.mrf.mxu1  ;;  %7597 = vmatprep.mubr.bf16.mxu0 %v12100_v27 }
 0x701   : > { %v5961_v34 = vor.u32 %v5959_v17, %v5958_v63  ;;  %v5965_v59 = vshrl.u32 %v10996_v26, 16  ;;  %7598 = vmatmul.mubr.bf16.gmra.mxu0 %v12098_v54  ;;  %v5968_v19 = vshll.u32 %v10996_v26, 16  ;;  %v5963_v11 = vrot.slane %v5958_v63, 4 }
 0x703   : > { %v5962_v24 = vsel %vm15162_vm15, %v5954_v56, %v5961_v34  ;;  %v5967_v21 = vrot.slane %v5965_v59, 7 }
 0x704   : > { %5994 = vst [vmem:[#allocation3 + $0xe4] sm:$0xf] %v5962_v24 }
 0x705   : > { %v5970_v43 = vor.u32 %v5968_v19, %v5967_v21  ;;  %v5972_v42 = vrot.slane %v5967_v21, 4 }
 0x707   : > { %v5971_v10 = vsel %vm15162_vm15, %v5963_v11, %v5970_v43  ;;  %v12103_v49 = vld [vmem:[#allocation3 + $0xc4] ss:$16 sps:$4 sm:$0xff]  }
 0x708   : > { %5995 = vst [vmem:[#allocation3 + $0xf4] sm:$0xf] %v5971_v10  ;;  %7605 = vmatprep.mubr.bf16.mxu0 %v12103_v49 }
 0x709   : > { %7606 = vmatmul.mubr.bf16.gmra.mxu0 %v12101_v4 }
 0x70f   : > { %v12106_v50 = vld [vmem:[#allocation3 + $0xe4] ss:$16 sps:$4 sm:$0xff]  }
 0x710   : > { %7613 = vmatprep.mubr.bf16.mxu0 %v12106_v50 }
 0x711   : > { %7614 = vmatmul.mubr.bf16.gmra.mxu0 %v12104_v41 }
 0x71b   : > { %v5868_v5 = vpop.f32.mrf.mxu1 }
 0x71c   : > { %v10997_v58 = vpack.c.bf16 %v5868_v5, %v5868_v5 }
 0x71d   : > { %v11713_v16 = vpop.f32.mrf.mxu1 }
 0x71e   : > { %v5974_v55 = vshll.u32 %v10997_v58, 16 }
 0x71f   : > { %v5871_v8 = vpop.f32.mrf.mxu1 }
 0x720   : > { %v5976_v62 = vsel %vm15162_vm15, %v5972_v42, %v5974_v55 }
 0x721   : > { %5996 = vst [vmem:[#allocation3 + $0x104] sm:$0x1] %v5976_v62  ;;  %v11714_v46 = vpop.f32.mrf.mxu1 }
 0x727   : > { %v6368_v30 = vpop.f32.mrf.mxu1 }
 0x728   : > { %v10998_v32 = vpack.c.bf16 %v6368_v30, %v6368_v30  ;;  %v7093_v3 = vld [vmem:[#allocation3 + $0x100] sm:$0x11] }
 0x729   : > { %v11757_v44 = vpop.f32.mrf.mxu1  ;;  %v10846_v35 = vcombine.low %v7093_v3, %v7093_v3  ;;  %v10847_v61 = vcombine.high %v7093_v3, %v7093_v3 }
 0x72a   : > { %v6435_v1 = vshrl.u32 %v10998_v32, 16  ;;  %v6438_v14 = vshll.u32 %v10998_v32, 16 }
 0x72b   : > { %v6371_v22 = vpop.f32.mrf.mxu1  ;;  %7621 = vmatprep.mubr.bf16.mxu0 %v10847_v61 }
 0x72c   : > { %v6437_v52 = vrot.slane %v6435_v1, 7  ;;  %v10999_v45 = vpack.c.bf16 %v6371_v22, %v6371_v22  ;;  %7622 = vmatmul.mubr.bf16.gmra.mxu0 %v10846_v35 }
 0x72d   : > { %v11758_v53 = vpop.f32.mrf.mxu1  ;;  %11839 = vmatprep.mubr.msk.bf16.mxu0 %vm12569_vm4, %v16243_v2 }
 0x72e   : > { %v6440_v31 = vor.u32 %v6438_v14, %v6437_v52  ;;  %v6443_v7 = vshrl.u32 %v10999_v45, 16  ;;  %v6446_v20 = vshll.u32 %v10999_v45, 16  ;;  %v6441_v51 = vrot.slane %v6437_v52, 4 }
 0x72f   : > { %v6376_v9 = vpop.f32.mrf.mxu1 }
 0x730   : > { %v6519_v28 = vsel %vm15153_vm13, %v6440_v31, %v6518_v23  ;;  %v6445_v12 = vrot.slane %v6443_v7, 7  ;;  %v11000_v57 = vpack.c.bf16 %v6376_v9, %v6376_v9 }
 0x731   : > { %6520 = vst [vmem:[#allocation3 + $0x88] sm:$0xf] %v6519_v28  ;;  %v11761_v25 = vpop.f32.mrf.mxu1 }
 0x732   : > { %v6448_v38 = vor.u32 %v6446_v20, %v6445_v12  ;;  %v6452_v39 = vshrl.u32 %v11000_v57, 16  ;;  %v6455_v18 = vshll.u32 %v11000_v57, 16  ;;  %v6450_v0 = vrot.slane %v6445_v12, 4 }
 0x733   : > { %v6379_v40 = vpop.f32.mrf.mxu1 }
 0x734   : > { %v6449_v15 = vsel %vm15162_vm15, %v6441_v51, %v6448_v38  ;;  %v6454_v29 = vrot.slane %v6452_v39, 7  ;;  %v11001_v47 = vpack.c.bf16 %v6379_v40, %v6379_v40 }
 0x735   : > { %6521 = vst [vmem:[#allocation3 + $0x98] sm:$0xf] %v6449_v15  ;;  %v11762_v60 = vpop.f32.mrf.mxu1 }
 0x736   : > { %v6457_v13 = vor.u32 %v6455_v18, %v6454_v29  ;;  %v6461_v17 = vshrl.u32 %v11001_v47, 16  ;;  %v6464_v26 = vshll.u32 %v11001_v47, 16  ;;  %v6459_v33 = vrot.slane %v6454_v29, 4 }
 0x737   : > { %v6384_v48 = vpop.f32.mrf.mxu1 }
 0x738   : > { %v6458_v6 = vsel %vm15162_vm15, %v6450_v0, %v6457_v13  ;;  %v6463_v63 = vrot.slane %v6461_v17, 7  ;;  %v11002_v54 = vpack.c.bf16 %v6384_v48, %v6384_v48  ;;  %v7050_v48 = vld [vmem:[#allocation3 + $0x8c] sm:$0xf] }
 0x739   : > { %6522 = vst [vmem:[#allocation3 + $0xa8] sm:$0xf] %v6458_v6  ;;  %v11765_v27 = vpop.f32.mrf.mxu1 }
 0x73a   : > { %v6466_v56 = vor.u32 %v6464_v26, %v6463_v63  ;;  %v6470_v34 = vshrl.u32 %v11002_v54, 16  ;;  %v6473_v19 = vshll.u32 %v11002_v54, 16  ;;  %v6468_v10 = vrot.slane %v6463_v63, 4 }
 0x73b   : > { %v6387_v59 = vpop.f32.mrf.mxu1 }
 0x73c   : > { %v6467_v24 = vsel %vm15162_vm15, %v6459_v33, %v6466_v56  ;;  %v6472_v21 = vrot.slane %v6470_v34, 7  ;;  %v11003_v11 = vpack.c.bf16 %v6387_v59, %v6387_v59  ;;  %v12109_v56 = vld [vmem:[#allocation3 + $0x88] ss:$16 sps:$4 sm:$0xff]  }
 0x73d   : > { %6523 = vst [vmem:[#allocation3 + $0xb8] sm:$0xf] %v6467_v24  ;;  %v11766_v43 = vpop.f32.mrf.mxu1 }
 0x73e   : > { %v6475_v4 = vor.u32 %v6473_v19, %v6472_v21  ;;  %v6479_v49 = vshrl.u32 %v11003_v11, 16  ;;  %v6482_v58 = vshll.u32 %v11003_v11, 16  ;;  %v6477_v55 = vrot.slane %v6472_v21, 4 }
 0x73f   : > { %v6392_v41 = vpop.f32.mrf.mxu1 }
 0x740   : > { %v6476_v50 = vsel %vm15162_vm15, %v6468_v10, %v6475_v4  ;;  %v6481_v5 = vrot.slane %v6479_v49, 7  ;;  %v11004_v16 = vpack.c.bf16 %v6392_v41, %v6392_v41 }
 0x741   : > { %6524 = vst [vmem:[#allocation3 + $0xc8] sm:$0xf] %v6476_v50  ;;  %v11769_v42 = vpop.f32.mrf.mxu1 }
 0x742   : > { %v6484_v8 = vor.u32 %v6482_v58, %v6481_v5  ;;  %v6488_v62 = vshrl.u32 %v11004_v16, 16  ;;  %v6491_v3 = vshll.u32 %v11004_v16, 16  ;;  %v6486_v61 = vrot.slane %v6481_v5, 4  ;;  %v15249_v58 = vpop.f32.mrf.mxu0 }
 0x743   : > { %v6395_v46 = vpop.f32.mrf.mxu1 }
 0x744   : > { %v6485_v30 = vsel %vm15162_vm15, %v6477_v55, %v6484_v8  ;;  %v6490_v32 = vrot.slane %v6488_v62, 7  ;;  %v11005_v44 = vpack.c.bf16 %v6395_v46, %v6395_v46 }
 0x745   : > { %6525 = vst [vmem:[#allocation3 + $0xd8] sm:$0xf] %v6485_v30  ;;  %v11770_v35 = vpop.f32.mrf.mxu1  ;;  %v15253_v30 = vpop.f32.mrf.mxu0 }
 0x746   : > { %v6493_v1 = vor.u32 %v6491_v3, %v6490_v32  ;;  %v6497_v22 = vshrl.u32 %v11005_v44, 16  ;;  %v6500_v53 = vshll.u32 %v11005_v44, 16  ;;  %v6495_v23 = vrot.slane %v6490_v32, 4 }
 0x747   : > { %v6400_v52 = vpop.f32.mrf.mxu1 }
 0x748   : > { %v6494_v14 = vsel %vm15162_vm15, %v6486_v61, %v6493_v1  ;;  %v6499_v45 = vrot.slane %v6497_v22, 7  ;;  %v11006_v31 = vpack.c.bf16 %v6400_v52, %v6400_v52  ;;  %v15257_v1 = vpop.f32.mrf.mxu0 }
 0x749   : > { %6526 = vst [vmem:[#allocation3 + $0xe8] sm:$0xf] %v6494_v14  ;;  %v11773_v7 = vpop.f32.mrf.mxu1 }
 0x74a   : > { %v6502_v9 = vor.u32 %v6500_v53, %v6499_v45  ;;  %v6504_v28 = vrot.slane %v6499_v45, 4  ;;  %v6506_v12 = vshll.u32 %v11006_v31, 16 }
 0x74b   : > { %v6403_v20 = vpop.f32.mrf.mxu1 }
 0x74c   : > { %v6503_v57 = vsel %vm15162_vm15, %v6495_v23, %v6502_v9  ;;  %v6508_v25 = vsel %vm15162_vm15, %v6504_v28, %v6506_v12  ;;  %v15259_v28 = vpop.f32.mrf.mxu0 }
 0x74d   : > { %6527 = vst [vmem:[#allocation3 + $0xf8] sm:$0xf] %v6503_v57  ;;  %6528 = vst [vmem:[#allocation3 + $0x108] sm:$0x1] %v6508_v25  ;;  %v11774_v51 = vpop.f32.mrf.mxu1  ;;  %v12112_v25 = vld [vmem:[#allocation3 + $0xa8] ss:$16 sps:$4 sm:$0xff]  }
 0x74f   : > { %v6900_v38 = vpop.f32.mrf.mxu1 }
 0x750   : > { %v11007_v39 = vpack.c.bf16 %v6900_v38, %v6900_v38 }
 0x751   : > { %v11817_v40 = vpop.f32.mrf.mxu1 }
 0x752   : > { %v6967_v15 = vshrl.u32 %v11007_v39, 16  ;;  %v6970_v47 = vshll.u32 %v11007_v39, 16 }
 0x753   : > { %v6903_v29 = vpop.f32.mrf.mxu1 }
 0x754   : > { %v6969_v18 = vrot.slane %v6967_v15, 7  ;;  %v11008_v60 = vpack.c.bf16 %v6903_v29, %v6903_v29 }
 0x755   : > { %v11818_v0 = vpop.f32.mrf.mxu1 }
 0x756   : > { %v6972_v13 = vor.u32 %v6970_v47, %v6969_v18  ;;  %v6975_v17 = vshrl.u32 %v11008_v60, 16  ;;  %v6978_v26 = vshll.u32 %v11008_v60, 16  ;;  %v6973_v54 = vrot.slane %v6969_v18, 4  ;;  %v15263_v18 = vpop.f32.mrf.mxu0 }
 0x758   : > { %v7051_v6 = vsel %vm15153_vm13, %v6972_v13, %v7050_v48  ;;  %v6977_v63 = vrot.slane %v6975_v17, 7 }
 0x759   : > { %7052 = vst [vmem:[#allocation3 + $0x8c] sm:$0xf] %v7051_v6 }
 0x75a   : > { %v6980_v27 = vor.u32 %v6978_v26, %v6977_v63  ;;  %v6982_v41 = vrot.slane %v6977_v63, 4  ;;  %v15267_v26 = vpop.f32.mrf.mxu0 }
 0x75c   : > { %v6981_v33 = vsel %vm15162_vm15, %v6973_v54, %v6980_v27 }
 0x75d   : > { %7053 = vst [vmem:[#allocation3 + $0x9c] sm:$0xf] %v6981_v33 }
 0x764   : > { %v12111_v34 = vld [vmem:[#allocation3 + $0x8c] ss:$16 sps:$4 sm:$0xff]  }
 0x765   : > { %7693 = vmatprep.mubr.bf16.mxu1 %v12111_v34 }
 0x766   : > { %7694 = vmatmul.mubr.bf16.gmra.mxu1 %v12109_v56 }
 0x776   : > { %v6908_v59 = vpop.f32.mrf.mxu1 }
 0x777   : > { %v11009_v24 = vpack.c.bf16 %v6908_v59, %v6908_v59  ;;  %v11202_v59 = vpop.f32.mrf.mxu0 }
 0x778   : > { %v11821_v21 = vpop.f32.mrf.mxu1 }
 0x779   : > { %v6984_v19 = vshrl.u32 %v11009_v24, 16  ;;  %v6987_v10 = vshll.u32 %v11009_v24, 16  ;;  %v12115_v21 = vld [vmem:[#allocation3 + $0xc8] ss:$16 sps:$4 sm:$0xff]  }
 0x77a   : > { %v6911_v11 = vpop.f32.mrf.mxu1 }
 0x77b   : > { %v6986_v43 = vrot.slane %v6984_v19, 7  ;;  %v11010_v4 = vpack.c.bf16 %v6911_v11, %v6911_v11 }
 0x77c   : > { %v11822_v49 = vpop.f32.mrf.mxu1 }
 0x77d   : > { %v6989_v50 = vor.u32 %v6987_v10, %v6986_v43  ;;  %v6993_v5 = vshrl.u32 %v11010_v4, 16  ;;  %v6996_v55 = vshll.u32 %v11010_v4, 16  ;;  %v6991_v8 = vrot.slane %v6986_v43, 4  ;;  %v11204_v10 = vpop.f32.mrf.mxu0 }
 0x77f   : > { %v6990_v16 = vsel %vm15162_vm15, %v6982_v41, %v6989_v50  ;;  %v6995_v42 = vrot.slane %v6993_v5, 7 }
 0x780   : > { %7054 = vst [vmem:[#allocation3 + $0xac] sm:$0xf] %v6990_v16  ;;  %v11205_v16 = vpop.f32.mrf.mxu0 }
 0x781   : > { %v6998_v62 = vor.u32 %v6996_v55, %v6995_v42  ;;  %v7000_v53 = vrot.slane %v6995_v42, 4  ;;  %v12118_v55 = vld [vmem:[#allocation3 + $0xe8] ss:$16 sps:$4 sm:$0xff]  }
 0x782   : > { %v6916_v46 = vpop.f32.mrf.mxu1 }
 0x783   : > { %v6999_v32 = vsel %vm15162_vm15, %v6991_v8, %v6998_v62  ;;  %v11011_v3 = vpack.c.bf16 %v6916_v46, %v6916_v46  ;;  %v11207_v46 = vpop.f32.mrf.mxu0 }
 0x784   : > { %7055 = vst [vmem:[#allocation3 + $0xbc] sm:$0xf] %v6999_v32  ;;  %v11825_v44 = vpop.f32.mrf.mxu1 }
 0x785   : > { %v7002_v35 = vshrl.u32 %v11011_v3, 16  ;;  %v7005_v52 = vshll.u32 %v11011_v3, 16  ;;  %v11194_v3 = vadd.f32 %v15249_v58, %v15247_v37  ;;  %v11208_v36 = vpop.f32.mrf.mxu0 }
 0x786   : > { %v6919_v61 = vpop.f32.mrf.mxu1 }
 0x787   : > { %v7004_v22 = vrot.slane %v7002_v35, 7  ;;  %v11012_v14 = vpack.c.bf16 %v6919_v61, %v6919_v61 }
 0x788   : > { %v11826_v45 = vpop.f32.mrf.mxu1 }
 0x789   : > { %v7007_v31 = vor.u32 %v7005_v52, %v7004_v22  ;;  %v7011_v7 = vshrl.u32 %v11012_v14, 16  ;;  %v7014_v23 = vshll.u32 %v11012_v14, 16  ;;  %v7009_v39 = vrot.slane %v7004_v22, 4 }
 0x78a   : > { %v6924_v9 = vpop.f32.mrf.mxu1 }
 0x78b   : > { %v7008_v12 = vsel %vm15162_vm15, %v7000_v53, %v7007_v31  ;;  %v7013_v20 = vrot.slane %v7011_v7, 7  ;;  %v11013_v57 = vpack.c.bf16 %v6924_v9, %v6924_v9  ;;  %v12114_v51 = vld [vmem:[#allocation3 + $0xac] ss:$16 sps:$4 sm:$0xff]   ;;  %v15282_v53 = vld [vmem:[%s16409_s26] ss:$0 sm:$0xff]  ;;  %v11197_v31 = vadd.f32 %v15257_v1, %v15253_v30  ;;  %s16413_s26 = sld [smem:[#allocation81_spill]] (!%p10906_p6) }
 0x78c   : > { %7056 = vst [vmem:[#allocation3 + $0xcc] sm:$0xf] %v7008_v12  ;;  %v11829_v38 = vpop.f32.mrf.mxu1  ;;  %7701 = vmatprep.mubr.bf16.mxu1 %v12114_v51  ;;  %v12523_v7 = vld [vmem:[#allocation2] sm:$0xff]  ;;  %v12524_v51 = vld [vmem:[#allocation2 + $0x8] sm:$0xff] }
 0x78d   : > { %v7016_v40 = vor.u32 %v7014_v23, %v7013_v20  ;;  %v7020_v15 = vshrl.u32 %v11013_v57, 16  ;;  %7702 = vmatmul.mubr.bf16.gmra.mxu1 %v12112_v25  ;;  %v7023_v0 = vshll.u32 %v11013_v57, 16  ;;  %v7018_v48 = vrot.slane %v7013_v20, 4  ;;  %v11210_v20 = vpop.f32.mrf.mxu0 }
 0x78e   : > { %v6927_v29 = vpop.f32.mrf.mxu1  ;;  %v11200_v25 = vadd.f32 %v15263_v18, %v15259_v28 }
 0x78f   : > { %v7017_v47 = vsel %vm15162_vm15, %v7009_v39, %v7016_v40  ;;  %v7022_v60 = vrot.slane %v7020_v15, 7  ;;  %v11014_v13 = vpack.c.bf16 %v6927_v29, %v6927_v29  ;;  %v11211_v29 = vpop.f32.mrf.mxu0 }
 0x790   : > { %7057 = vst [vmem:[#allocation3 + $0xdc] sm:$0xf] %v7017_v47  ;;  %v11830_v17 = vpop.f32.mrf.mxu1 }
 0x791   : > { %v7025_v6 = vor.u32 %v7023_v0, %v7022_v60  ;;  %v7029_v63 = vshrl.u32 %v11014_v13, 16  ;;  %v7032_v33 = vshll.u32 %v11014_v13, 16  ;;  %v7027_v56 = vrot.slane %v7022_v60, 4  ;;  %v12525_v0 = vld [vmem:[#allocation2 + $0x10] sm:$0xff] }
 0x792   : > { %v11203_v60 = vadd.f32 %v11202_v59, %v15267_v26 }
 0x793   : > { %v7026_v54 = vsel %vm15162_vm15, %v7018_v48, %v7025_v6  ;;  %v7031_v27 = vrot.slane %v7029_v63, 7  ;;  %v11213_v63 = vpop.f32.mrf.mxu0 }
 0x794   : > { %7058 = vst [vmem:[#allocation3 + $0xec] sm:$0xf] %v7026_v54 }
 0x795   : > { %v7034_v34 = vor.u32 %v7032_v33, %v7031_v27  ;;  %v7036_v49 = vrot.slane %v7031_v27, 4  ;;  %v11206_v27 = vadd.f32 %v11205_v16, %v11204_v10  ;;  %v12526_v33 = vld [vmem:[#allocation2 + $0x18] sm:$0xff] }
 0x797   : > { %v7035_v24 = vsel %vm15162_vm15, %v7027_v56, %v7034_v34  ;;  %v12117_v19 = vld [vmem:[#allocation3 + $0xcc] ss:$16 sps:$4 sm:$0xff]  }
 0x798   : > { %7059 = vst [vmem:[#allocation3 + $0xfc] sm:$0xf] %v7035_v24  ;;  %7709 = vmatprep.mubr.bf16.mxu1 %v12117_v19  ;;  %v11214_v19 = vpop.f32.mrf.mxu0 }
 0x799   : > { %v6932_v11 = vpop.f32.mrf.mxu1  ;;  %7710 = vmatmul.mubr.bf16.gmra.mxu1 %v12115_v21 }
 0x79a   : > { %v11015_v43 = vpack.c.bf16 %v6932_v11, %v6932_v11 }
 0x79b   : > { %v11833_v4 = vpop.f32.mrf.mxu1 }
 0x79c   : > { %v7038_v41 = vshll.u32 %v11015_v43, 16  ;;  %v11209_v43 = vadd.f32 %v11208_v36, %v11207_v46  ;;  %v12527_v4 = vld [vmem:[#allocation2 + $0x20] sm:$0xff] }
 0x79d   : > { %v6935_v50 = vpop.f32.mrf.mxu1 }
 0x79e   : > { %v7040_v5 = vsel %vm15162_vm15, %v7036_v49, %v7038_v41 }
 0x79f   : > { %7060 = vst [vmem:[#allocation3 + $0x10c] sm:$0x1] %v7040_v5  ;;  %v11834_v42 = vpop.f32.mrf.mxu1  ;;  %v12120_v8 = vld [vmem:[#allocation3 + $0xec] ss:$16 sps:$4 sm:$0xff]  }
 0x7a0   : > { %7717 = vmatprep.mubr.bf16.mxu1 %v12120_v8 }
 0x7a1   : > { %v11262_v62 = vpop.f32.mrf.mxu1  ;;  %7718 = vmatmul.mubr.bf16.gmra.mxu1 %v12118_v55  ;;  %v11212_v55 = vadd.f32 %v11211_v29, %v11210_v20 }
 0x7a3   : > { %v11263_v32 = vpop.f32.mrf.mxu1 }
 0x7a4   : > { %v11264_v44 = vadd.f32 %v11263_v32, %v11262_v62  ;;  %v12528_v32 = vld [vmem:[#allocation2 + $0x28] sm:$0xff] }
 0x7a5   : > { %v11265_v35 = vpop.f32.mrf.mxu1 }
 0x7a6   : > { %v7664_v61 = vadd.f32 %v11264_v44, %v11194_v3  ;;  %v7094_v22 = vld [vmem:[#allocation3 + $0x108] sm:$0x11] }
 0x7a7   : > { %v11266_v52 = vpop.f32.mrf.mxu1  ;;  %v10848_v14 = vcombine.low %v7094_v22, %v7094_v22  ;;  %v10849_v45 = vcombine.high %v7094_v22, %v7094_v22 }
 0x7a8   : > { %v7733_v23 = vadd.f32 %v12523_v7, %v7664_v61  ;;  %v11267_v37 = vadd.f32 %v11266_v52, %v11265_v35  ;;  %v12529_v7 = vld [vmem:[#allocation2 + $0x30] sm:$0xff] }
 0x7a9   : > { %v11268_v58 = vpop.f32.mrf.mxu1  ;;  %7725 = vmatprep.mubr.bf16.mxu1 %v10849_v45 }
 0x7aa   : > { %v7667_v9 = vadd.f32 %v11267_v37, %v11197_v31  ;;  %7726 = vmatmul.mubr.bf16.gmra.mxu1 %v10848_v14  ;;  %v15287_v12 = vadd.f32 %v15282_v53, %v7733_v23  ;;  %v11215_v14 = vadd.f32 %v11214_v19, %v11213_v63 }
 0x7ab   : > { %v11269_v57 = vpop.f32.mrf.mxu1  ;;  %11891 = vmatprep.mubr.msk.bf16.mxu1 %vm12569_vm4, %v16243_v2 }
 0x7ac   : > { %v7734_v30 = vadd.f32 %v12524_v51, %v7667_v9  ;;  %v11270_v1 = vadd.f32 %v11269_v57, %v11268_v58  ;;  %v7774_v38 = vsel %vm2425_vm2, %v15287_v12, 0.0  ;;  %v12530_v51 = vld [vmem:[#allocation2 + $0x38] sm:$0xff] }
 0x7ad   : > { %v11271_v39 = vpop.f32.mrf.mxu1  ;;  %7775 = vadd.xlane.f32.xlu0 %v7774_v38 }
 0x7ae   : > { %v7672_v40 = vadd.f32 %v11270_v1, %v11200_v25  ;;  %v15296_v15 = vadd.f32 %v15282_v53, %v7734_v30 }
 0x7af   : > { %v11272_v47 = vpop.f32.mrf.mxu1 }
 0x7b0   : > { %v7735_v13 = vadd.f32 %v12525_v0, %v7672_v40  ;;  %v11273_v17 = vadd.f32 %v11272_v47, %v11271_v39  ;;  %v7777_v28 = vsel %vm2425_vm2, %v15296_v15, 0.0 }
 0x7b1   : > { %v11274_v18 = vpop.f32.mrf.mxu1  ;;  %7778 = vadd.xlane.f32.xlu1 %v7777_v28 }
 0x7b2   : > { %v7675_v48 = vadd.f32 %v11273_v17, %v11203_v60  ;;  %v15302_v6 = vadd.f32 %v15282_v53, %v7735_v13 }
 0x7b3   : > { %v11275_v54 = vpop.f32.mrf.mxu1 }
 0x7b4   : > { %v7736_v56 = vadd.f32 %v12526_v33, %v7675_v48  ;;  %v11276_v34 = vadd.f32 %v11275_v54, %v11274_v18  ;;  %v7780_v26 = vsel %vm2425_vm2, %v15302_v6, 0.0 }
 0x7b5   : > { %v11277_v59 = vpop.f32.mrf.mxu1  ;;  %7781 = vadd.xlane.f32.xlu0 %v7780_v26 }
 0x7b6   : > { %v7680_v24 = vadd.f32 %v11276_v34, %v11206_v27  ;;  %v15307_v21 = vadd.f32 %v15282_v53, %v7736_v56 }
 0x7b7   : > { %v11278_v11 = vpop.f32.mrf.mxu1 }
 0x7b8   : > { %v7737_v49 = vadd.f32 %v12527_v4, %v7680_v24  ;;  %v11279_v41 = vadd.f32 %v11278_v11, %v11277_v59  ;;  %v7783_v10 = vsel %vm2425_vm2, %v15307_v21, 0.0  ;;  %v11216_v50 = vpop.f32.mrf.mxu0 }
 0x7b9   : > { %v11280_v5 = vpop.f32.mrf.mxu1  ;;  %7784 = vadd.xlane.f32.xlu1 %v7783_v10 }
 0x7ba   : > { %v7683_v16 = vadd.f32 %v11279_v41, %v11209_v43  ;;  %v15312_v42 = vadd.f32 %v15282_v53, %v7737_v49  ;;  %v11217_v8 = vpop.f32.mrf.mxu0 }
 0x7bb   : > { %v11281_v62 = vpop.f32.mrf.mxu1  ;;  %v11218_v44 = vadd.f32 %v11217_v8, %v11216_v50 }
 0x7bc   : > { %v7738_v3 = vadd.f32 %v12528_v32, %v7683_v16  ;;  %v11282_v46 = vadd.f32 %v11281_v62, %v11280_v5  ;;  %v7786_v35 = vsel %vm2425_vm2, %v15312_v42, 0.0  ;;  %v11219_v61 = vpop.f32.mrf.mxu0  ;;  %v12531_v16 = vld [vmem:[#allocation2 + $0x40] sm:$0xff] }
 0x7bd   : > { %v11283_v22 = vpop.f32.mrf.mxu1  ;;  %7787 = vadd.xlane.f32.xlu0 %v7786_v35 }
 0x7be   : > { %v7688_v36 = vadd.f32 %v11282_v46, %v11212_v55  ;;  %v15317_v52 = vadd.f32 %v15282_v53, %v7738_v3  ;;  %v11220_v45 = vpop.f32.mrf.mxu0  ;;  %v12532_v3 = vld [vmem:[#allocation2 + $0x48] sm:$0xff] }
 0x7bf   : > { %v11284_v31 = vpop.f32.mrf.mxu1  ;;  %v11221_v37 = vadd.f32 %v11220_v45, %v11219_v61 }
 0x7c0   : > { %v7739_v23 = vadd.f32 %v12529_v7, %v7688_v36  ;;  %v11285_v58 = vadd.f32 %v11284_v31, %v11283_v22  ;;  %v7789_v9 = vsel %vm2425_vm2, %v15317_v52, 0.0 }
 0x7c1   : > { %7790 = vadd.xlane.f32.xlu1 %v7789_v9  ;;  %v11222_v57 = vpop.f32.mrf.mxu0 }
 0x7c2   : > { %v7691_v20 = vadd.f32 %v11285_v58, %v11215_v14  ;;  %v15322_v25 = vadd.f32 %v15282_v53, %v7739_v23  ;;  %v12533_v23 = vld [vmem:[#allocation2 + $0x50] sm:$0xff] }
 0x7c3   : > { %v11223_v1 = vpop.f32.mrf.mxu0 }
 0x7c4   : > { %v7740_v30 = vadd.f32 %v12530_v51, %v7691_v20  ;;  %v7792_v38 = vsel %vm2425_vm2, %v15322_v25, 0.0  ;;  %v11224_v39 = vadd.f32 %v11223_v1, %v11222_v57  ;;  %v12534_v57 = vld [vmem:[#allocation2 + $0x58] sm:$0xff] }
 0x7c5   : > { %7793 = vadd.xlane.f32.xlu0 %v7792_v38  ;;  %v11225_v40 = vpop.f32.mrf.mxu0 }
 0x7c6   : > { %v15327_v29 = vadd.f32 %v15282_v53, %v7740_v30 }
 0x7c7   : > { %v11226_v47 = vpop.f32.mrf.mxu0 }
 0x7c8   : > { %v7795_v60 = vsel %vm2425_vm2, %v15327_v29, 0.0  ;;  %v11227_v0 = vadd.f32 %v11226_v47, %v11225_v40 }
 0x7c9   : > { %7796 = vadd.xlane.f32.xlu1 %v7795_v60  ;;  %v11228_v13 = vpop.f32.mrf.mxu0 }
 0x7cb   : > { %v11229_v17 = vpop.f32.mrf.mxu0 }
 0x7cc   : > { %v11230_v28 = vadd.f32 %v11229_v17, %v11228_v13  ;;  %v12535_v17 = vld [vmem:[#allocation2 + $0x60] sm:$0xff] }
 0x7cd   : > { %v11231_v18 = vpop.f32.mrf.mxu0 }
 0x7cf   : > { %v11232_v48 = vpop.f32.mrf.mxu0 }
 0x7d0   : > { %v11233_v63 = vadd.f32 %v11232_v48, %v11231_v18 }
 0x7d1   : > { %v11234_v54 = vpop.f32.mrf.mxu0 }
 0x7d3   : > { %v11235_v27 = vpop.f32.mrf.mxu0 }
 0x7d4   : > { %v15331_v33 = vadd.f32 %v11235_v27, %v11234_v54 }
 0x7d5   : > { %v11237_v56 = vpop.f32.mrf.mxu0 }
 0x7d7   : > { %v11238_v34 = vpop.f32.mrf.mxu0 }
 0x7d8   : > { %v15333_v26 = vadd.f32 %v11238_v34, %v11237_v56 }
 0x7ec   : > { %v11240_v59 = vpop.f32.mrf.mxu0 }
 0x7ee   : > { %v11241_v24 = vpop.f32.mrf.mxu0 }
 0x7ef   : > { %v15335_v19 = vadd.f32 %v11241_v24, %v11240_v59  ;;  %v12536_v24 = vld [vmem:[#allocation2 + $0x68] sm:$0xff] }
 0x7f0   : > { %v11243_v11 = vpop.f32.mrf.mxu0 }
 0x7f2   : > { %v11244_v43 = vpop.f32.mrf.mxu0 }
 0x826   : > { %v11286_v4 = vpop.f32.mrf.mxu1 }
 0x828   : > { %v11287_v49 = vpop.f32.mrf.mxu1 }
 0x829   : > { %v11288_v41 = vadd.f32 %v11287_v49, %v11286_v4 }
 0x82a   : > { %v11289_v10 = vpop.f32.mrf.mxu1 }
 0x82b   : > { %v7696_v50 = vadd.f32 %v11288_v41, %v11218_v44 }
 0x82c   : > { %v11290_v5 = vpop.f32.mrf.mxu1 }
 0x82d   : > { %v7741_v55 = vadd.f32 %v12531_v16, %v7696_v50  ;;  %v11291_v8 = vadd.f32 %v11290_v5, %v11289_v10  ;;  %v12537_v16 = vld [vmem:[#allocation2 + $0x70] sm:$0xff] }
 0x82f   : > { %v7699_v62 = vadd.f32 %v11291_v8, %v11221_v37  ;;  %v15338_v32 = vadd.f32 %v15282_v53, %v7741_v55 }
 0x831   : > { %v7742_v46 = vadd.f32 %v12532_v3, %v7699_v62  ;;  %v7798_v35 = vsel %vm2425_vm2, %v15338_v32, 0.0 }
 0x832   : > { %7799 = vadd.xlane.f32.xlu0 %v7798_v35 }
 0x833   : > { %v15343_v61 = vadd.f32 %v15282_v53, %v7742_v46 }
 0x835   : > { %v7801_v44 = vsel %vm2425_vm2, %v15343_v61, 0.0 }
 0x836   : > { %7802 = vadd.xlane.f32.xlu1 %v7801_v44  ;;  %v7776_v59 = vpop.xlane.xlu0 %7775 }
 0x837   : > { %v7825_v10 = vmul.f32 0.03125, %v7776_v59 }
 0x83a   : > { %v7779_v50 = vpop.xlane.xlu1 %7778 }
 0x83b   : > { %v7826_v44 = vmul.f32 0.03125, %v7779_v50 }
 0x83e   : > { %v7782_v5 = vpop.xlane.xlu0 %7781 }
 0x84d   : > { %v11292_v22 = vpop.f32.mrf.mxu1 }
 0x84f   : > { %v11293_v36 = vpop.f32.mrf.mxu1 }
 0x850   : > { %v11294_v14 = vadd.f32 %v11293_v36, %v11292_v22  ;;  %v7827_v22 = vmul.f32 0.03125, %v7782_v5 }
 0x851   : > { %v11295_v45 = vpop.f32.mrf.mxu1 }
 0x852   : > { %v7704_v31 = vadd.f32 %v11294_v14, %v11224_v39  ;;  %v7785_v14 = vpop.xlane.xlu1 %7784 }
 0x853   : > { %v11296_v7 = vpop.f32.mrf.mxu1 }
 0x854   : > { %v7743_v37 = vadd.f32 %v12533_v23, %v7704_v31  ;;  %v11297_v58 = vadd.f32 %v11296_v7, %v11295_v45  ;;  %v12538_v45 = vld [vmem:[#allocation2 + $0x78] sm:$0xff] }
 0x856   : > { %v7707_v9 = vadd.f32 %v11297_v58, %v11227_v0  ;;  %v15348_v20 = vadd.f32 %v15282_v53, %v7743_v37  ;;  %v7788_v37 = vpop.xlane.xlu0 %7787 }
 0x858   : > { %v7744_v51 = vadd.f32 %v12534_v57, %v7707_v9  ;;  %v7804_v30 = vsel %vm2425_vm2, %v15348_v20, 0.0  ;;  %v15382_v57 = vsub.f32 %v15296_v15, %v7826_v44 }
 0x859   : > { %v11298_v1 = vpop.f32.mrf.mxu1  ;;  %7805 = vadd.xlane.f32.xlu0 %v7804_v30  ;;  %v7828_v30 = vmul.f32 0.03125, %v7785_v14  ;;  %v12124_v14 = vld [vmem:[%s12713_s5] sm:$0xff]  }
 0x85a   : > { %v15353_v38 = vadd.f32 %v15282_v53, %v7744_v51  ;;  %v15385_v51 = vsub.f32 %v15302_v6, %v7827_v22 }
 0x85b   : > { %v11299_v40 = vpop.f32.mrf.mxu1 }
 0x85c   : > { %v11300_v39 = vadd.f32 %v11299_v40, %v11298_v1  ;;  %v7807_v47 = vsel %vm2425_vm2, %v15353_v38, 0.0 }
 0x85d   : > { %v11301_v60 = vpop.f32.mrf.mxu1  ;;  %7808 = vadd.xlane.f32.xlu1 %v7807_v47  ;;  %v12539_v47 = vld [vmem:[#allocation2 + $0x80] sm:$0x3] }
 0x85e   : > { %v7712_v0 = vadd.f32 %v11300_v39, %v11230_v28  ;;  %v7829_v39 = vmul.f32 0.03125, %v7788_v37 }
 0x85f   : > { %v11302_v13 = vpop.f32.mrf.mxu1 }
 0x860   : > { %v7745_v18 = vadd.f32 %v12535_v17, %v7712_v0  ;;  %v11303_v48 = vadd.f32 %v11302_v13, %v11301_v60  ;;  %v7791_v0 = vpop.xlane.xlu1 %7790  ;;  %v7794_v13 = vpop.xlane.xlu0 %7793 }
 0x861   : > { %v11304_v54 = vpop.f32.mrf.mxu1  ;;  %v7830_v59 = vmul.f32 0.03125, %v7791_v0 }
 0x862   : > { %v7715_v27 = vadd.f32 %v11303_v48, %v11233_v63  ;;  %v15358_v56 = vadd.f32 %v15282_v53, %v7745_v18  ;;  %v15395_v18 = vsub.f32 %v15307_v21, %v7828_v30 }
 0x863   : > { %v11305_v34 = vpop.f32.mrf.mxu1 }
 0x864   : > { %v7746_v11 = vadd.f32 %v12536_v24, %v7715_v27  ;;  %v11306_v43 = vadd.f32 %v11305_v34, %v11304_v54  ;;  %v7810_v4 = vsel %vm2425_vm2, %v15358_v56, 0.0  ;;  %v7860_v54 = vmul.f32 %v15382_v57, %v15382_v57 }
 0x865   : > { %v11307_v49 = vpop.f32.mrf.mxu1  ;;  %7811 = vadd.xlane.f32.xlu0 %v7810_v4  ;;  %v7861_v27 = vmul.f32 %v15385_v51, %v15385_v51  ;;  %v15403_v34 = vsub.f32 %v15312_v42, %v7829_v39  ;;  %v7831_v24 = vmul.f32 0.03125, %v7794_v13 }
 0x866   : > { %v7720_v28 = vadd.f32 %v11306_v43, %v15331_v33  ;;  %v15364_v41 = vadd.f32 %v15282_v53, %v7746_v11  ;;  %v15373_v33 = vsub.f32 %v15287_v12, %v7825_v10  ;;  %v7797_v11 = vpop.xlane.xlu1 %7796  ;;  %v7879_v43 = vsel %vm2425_vm2, %v7860_v54, 0.0 }
 0x867   : > { %v11308_v63 = vpop.f32.mrf.mxu1  ;;  %v7882_v4 = vsel %vm2425_vm2, %v7861_v27, 0.0  ;;  %v15415_v10 = vsub.f32 %v15322_v25, %v7831_v24  ;;  %v7863_v50 = vmul.f32 %v15403_v34, %v15403_v34 }
 0x868   : > { %v7747_v55 = vadd.f32 %v12537_v16, %v7720_v28  ;;  %v11309_v8 = vadd.f32 %v11308_v63, %v11307_v49  ;;  %v7813_v62 = vsel %vm2425_vm2, %v15364_v41, 0.0  ;;  %v7859_v40 = vmul.f32 %v15373_v33, %v15373_v33 }
 0x869   : > { %7814 = vadd.xlane.f32.xlu1 %v7813_v62  ;;  %v7862_v49 = vmul.f32 %v15395_v18, %v15395_v18  ;;  %v15412_v28 = vsub.f32 %v15317_v52, %v7830_v59  ;;  %v7832_v63 = vmul.f32 0.03125, %v7797_v11  ;;  %v7865_v62 = vmul.f32 %v15415_v10, %v15415_v10 }
 0x86a   : > { %v11310_v3 = vpop.f32.mrf.mxu1  ;;  %v7723_v46 = vadd.f32 %v11309_v8, %v15333_v26  ;;  %v15370_v35 = vadd.f32 %v15282_v53, %v7747_v55  ;;  %v7876_v48 = vsel %vm2425_vm2, %v7859_v40, 0.0  ;;  %v7888_v55 = vsel %vm2425_vm2, %v7863_v50, 0.0 }
 0x86b   : > { %v7885_v5 = vsel %vm2425_vm2, %v7862_v49, 0.0  ;;  %v15421_v16 = vsub.f32 %v15327_v29, %v7832_v63  ;;  %v7864_v8 = vmul.f32 %v15412_v28, %v15412_v28 }
 0x86c   : > { %v11311_v36 = vpop.f32.mrf.mxu1  ;;  %v7748_v31 = vadd.f32 %v12538_v45, %v7723_v46  ;;  %v7816_v23 = vsel %vm2425_vm2, %v15370_v35, 0.0  ;;  %v7894_v46 = vsel %vm2425_vm2, %v7865_v62, 0.0 }
 0x86d   : > { %v11312_v7 = vadd.f32 %v11311_v36, %v11310_v3  ;;  %7817 = vadd.xlane.f32.xlu0 %v7816_v23  ;;  %v7891_v3 = vsel %vm2425_vm2, %v7864_v8, 0.0  ;;  %v7866_v44 = vmul.f32 %v15421_v16, %v15421_v16  ;;  %v12123_v36 = vld [vmem:[%s12713_s5 + $0x8] sm:$0xff]  }
 0x86e   : > { %v11313_v58 = vpop.f32.mrf.mxu1  ;;  %v15379_v9 = vadd.f32 %v15282_v53, %v7748_v31  ;;  %11836 = vmatpush3.bf16.msra.mxu0 %v12123_v36 }
 0x86f   : > { %v7728_v26 = vadd.f32 %v11312_v7, %v15335_v19  ;;  %v7897_v22 = vsel %vm2425_vm2, %v7866_v44, 0.0  ;;  %11837 = vmatprep.subr.bf16.mxu0 %v16243_v2 }
 0x870   : > { %v11314_v1 = vpop.f32.mrf.mxu1  ;;  %v7819_v19 = vsel %vm2425_vm2, %v15379_v9, 0.0 }
 0x871   : > { %v7749_v60 = vadd.f32 %v12539_v47, %v7728_v26  ;;  %7820 = vadd.xlane.f32.xlu1 %v7819_v19 }
 0x872   : > { %11838 = vmatpush3.bf16.msra.mxu0 %v12124_v14 }
 0x873   : > { %v15392_v17 = vadd.f32 %v15282_v53, %v7749_v60 }
 0x875   : > { %v7822_v53 = vsel %vm2474_vm3, %v15392_v17, 0.0  ;;  %7877 = vadd.xlane.f32.xlu1 %v7876_v48 }
 0x876   : > { %7823 = vadd.xlane.f32.xlu0 %v7822_v53 }
 0x879   : > { %7883 = vadd.xlane.f32.xlu1 %v7882_v4 }
 0x87a   : > { %7880 = vadd.xlane.f32.xlu0 %v7879_v43 }
 0x87d   : > { %7889 = vadd.xlane.f32.xlu1 %v7888_v55 }
 0x87e   : > { %7886 = vadd.xlane.f32.xlu0 %v7885_v5 }
 0x881   : > { %7895 = vadd.xlane.f32.xlu1 %v7894_v46 }
 0x882   : > { %7892 = vadd.xlane.f32.xlu0 %v7891_v3 }
 0x886   : > { %7898 = vadd.xlane.f32.xlu0 %v7897_v22 }
 0x8bb   : > { %v7800_v45 = vpop.xlane.xlu0 %7799 }
 0x8bc   : > { %v7833_v31 = vmul.f32 0.03125, %v7800_v45 }
 0x8be   : > { %v15437_v7 = vsub.f32 %v15338_v32, %v7833_v31 }
 0x8bf   : > { %v7803_v23 = vpop.xlane.xlu1 %7802 }
 0x8c0   : > { %v7834_v37 = vmul.f32 0.03125, %v7803_v23  ;;  %v7867_v58 = vmul.f32 %v15437_v7, %v15437_v7 }
 0x8c2   : > { %v15442_v26 = vsub.f32 %v15343_v61, %v7834_v37  ;;  %v7900_v30 = vsel %vm2425_vm2, %v7867_v58, 0.0 }
 0x8c3   : > { %7901 = vadd.xlane.f32.xlu1 %v7900_v30 }
 0x8c4   : > { %v7868_v1 = vmul.f32 %v15442_v26, %v15442_v26 }
 0x8c6   : > { %v7903_v40 = vsel %vm2425_vm2, %v7868_v1, 0.0 }
 0x8c7   : > { %7904 = vadd.xlane.f32.xlu0 %v7903_v40 }
 0x8e2   : > { %v7806_v39 = vpop.xlane.xlu0 %7805 }
 0x8e3   : > { %v7835_v47 = vmul.f32 0.03125, %v7806_v39 }
 0x8e5   : > { %v15449_v60 = vsub.f32 %v15348_v20, %v7835_v47 }
 0x8e6   : > { %v7809_v19 = vpop.xlane.xlu1 %7808 }
 0x8e7   : > { %v7836_v0 = vmul.f32 0.03125, %v7809_v19  ;;  %v7869_v13 = vmul.f32 %v15449_v60, %v15449_v60 }
 0x8e9   : > { %v15454_v48 = vsub.f32 %v15353_v38, %v7836_v0  ;;  %v7906_v54 = vsel %vm2425_vm2, %v7869_v13, 0.0 }
 0x8ea   : > { %7907 = vadd.xlane.f32.xlu1 %v7906_v54 }
 0x8eb   : > { %v7870_v27 = vmul.f32 %v15454_v48, %v15454_v48 }
 0x8ed   : > { %v7909_v59 = vsel %vm2425_vm2, %v7870_v27, 0.0 }
 0x8ee   : > { %7910 = vadd.xlane.f32.xlu0 %v7909_v59  ;;  %v7812_v24 = vpop.xlane.xlu0 %7811 }
 0x8ef   : > { %v7837_v53 = vmul.f32 0.03125, %v7812_v24 }
 0x8f1   : > { %v15461_v11 = vsub.f32 %v15358_v56, %v7837_v53 }
 0x8f2   : > { %v7815_v43 = vpop.xlane.xlu1 %7814 }
 0x8f3   : > { %v7838_v4 = vmul.f32 0.03125, %v7815_v43  ;;  %v7871_v49 = vmul.f32 %v15461_v11, %v15461_v11 }
 0x8f5   : > { %v15466_v63 = vsub.f32 %v15364_v41, %v7838_v4  ;;  %v7912_v50 = vsel %vm2425_vm2, %v7871_v49, 0.0 }
 0x8f6   : > { %7913 = vadd.xlane.f32.xlu1 %v7912_v50  ;;  %v7818_v5 = vpop.xlane.xlu0 %7817 }
 0x8f7   : > { %v7839_v55 = vmul.f32 0.03125, %v7818_v5  ;;  %v7872_v8 = vmul.f32 %v15466_v63, %v15466_v63 }
 0x8f9   : > { %v15472_v62 = vsub.f32 %v15370_v35, %v7839_v55  ;;  %v7915_v3 = vsel %vm2425_vm2, %v7872_v8, 0.0 }
 0x8fa   : > { %v7821_v46 = vpop.xlane.xlu1 %7820  ;;  %7916 = vadd.xlane.f32.xlu0 %v7915_v3 }
 0x8fb   : > { %v7840_v44 = vmul.f32 0.03125, %v7821_v46  ;;  %v7873_v22 = vmul.f32 %v15472_v62, %v15472_v62 }
 0x8fd   : > { %v15478_v36 = vsub.f32 %v15379_v9, %v7840_v44  ;;  %v7918_v14 = vsel %vm2425_vm2, %v7873_v22, 0.0 }
 0x8fe   : > { %v7878_v45 = vpop.xlane.xlu1 %7877  ;;  %7919 = vadd.xlane.f32.xlu1 %v7918_v14 }
 0x8ff   : > { %v7824_v31 = vpop.xlane.xlu0 %7823  ;;  %v7927_v23 = vmul.f32 0.03125, %v7878_v45  ;;  %v7874_v58 = vmul.f32 %v15478_v36, %v15478_v36 }
 0x900   : > { %v7841_v37 = vmul.f32 0.03125, %v7824_v31  ;;  %v15496_v31 = vld [vmem:[%s16410_s20] ss:$0 sm:$0xff] }
 0x901   : > { %v7944_v30 = vadd.f32 1e-05, %v7927_v23  ;;  %v7921_v40 = vsel %vm2425_vm2, %v7874_v58, 0.0 }
 0x902   : > { %v15484_v1 = vsub.f32 %v15392_v17, %v7841_v37  ;;  %7922 = vadd.xlane.f32.xlu0 %v7921_v40  ;;  %v7884_v39 = vpop.xlane.xlu1 %7883 }
 0x903   : > { %v7881_v47 = vpop.xlane.xlu0 %7880  ;;  %12455 = vrsqrt.f32 %v7944_v30  ;;  %v7929_v19 = vmul.f32 0.03125, %v7884_v39 }
 0x904   : > { %v7928_v0 = vmul.f32 0.03125, %v7881_v47  ;;  %v7875_v13 = vmul.f32 %v15484_v1, %v15484_v1 }
 0x905   : > { %v7946_v59 = vadd.f32 1e-05, %v7929_v19 }
 0x906   : > { %v7945_v54 = vadd.f32 1e-05, %v7928_v0  ;;  %v7924_v27 = vsel %vm2474_vm3, %v7875_v13, 0.0  ;;  %v7890_v53 = vpop.xlane.xlu1 %7889 }
 0x907   : > { %7925 = vadd.xlane.f32.xlu1 %v7924_v27  ;;  %v7887_v24 = vpop.xlane.xlu0 %7886  ;;  %v7931_v49 = vmul.f32 0.03125, %v7890_v53 }
 0x908   : > { %v7930_v43 = vmul.f32 0.03125, %v7887_v24  ;;  %12457 = vrsqrt.f32 %v7945_v54 }
 0x909   : > { %12459 = vrsqrt.f32 %v7946_v59  ;;  %v7948_v8 = vadd.f32 1e-05, %v7931_v49 }
 0x90a   : > { %v7947_v4 = vadd.f32 1e-05, %v7930_v43  ;;  %v7896_v3 = vpop.xlane.xlu1 %7895 }
 0x90b   : > { %v7893_v50 = vpop.xlane.xlu0 %7892  ;;  %v7933_v14 = vmul.f32 0.03125, %v7896_v3 }
 0x90c   : > { %v7932_v5 = vmul.f32 0.03125, %v7893_v50  ;;  %12461 = vrsqrt.f32 %v7947_v4 }
 0x90d   : > { %v7950_v58 = vadd.f32 1e-05, %v7933_v14 }
 0x90e   : > { %v7949_v55 = vadd.f32 1e-05, %v7932_v5 }
 0x90f   : > { %v7899_v46 = vpop.xlane.xlu0 %7898 }
 0x910   : > { %v12456_v44 = vpop.eup %12455  ;;  %12463 = vrsqrt.f32 %v7949_v55  ;;  %v7934_v22 = vmul.f32 0.03125, %v7899_v46 }
 0x911   : > { %v7978_v45 = vmul.f32 %v12456_v44, %v15373_v33  ;;  %12465 = vrsqrt.f32 %v7948_v8  ;;  %v15505_v33 = vld [vmem:[%s669_s3] ss:$0 sm:$0xff] }
 0x912   : > { %v7951_v23 = vadd.f32 1e-05, %v7934_v22 }
 0x913   : > { %v8002_v30 = vmul.f32 %v15496_v31, %v7978_v45 }
 0x914   : > { %12467 = vrsqrt.f32 %v7951_v23 }
 0x915   : > { %v12458_v37 = vpop.eup %12457  ;;  %12469 = vrsqrt.f32 %v7950_v58  ;;  %v8026_v0 = vadd.f32 %v15505_v33, %v8002_v30 }
 0x916   : > { %v7979_v40 = vmul.f32 %v12458_v37, %v15382_v57  ;;  %v12460_v39 = vpop.eup %12459 }
 0x917   : > { %v7980_v13 = vmul.f32 %v12460_v39, %v15385_v51 }
 0x918   : > { %v8003_v47 = vmul.f32 %v15496_v31, %v7979_v40 }
 0x919   : > { %v12462_v19 = vpop.eup %12461  ;;  %v8004_v53 = vmul.f32 %v15496_v31, %v7980_v13 }
 0x91a   : > { %v8027_v54 = vadd.f32 %v15505_v33, %v8003_v47  ;;  %v7981_v57 = vmul.f32 %v12462_v19, %v15395_v18 }
 0x91b   : > { %v8028_v18 = vadd.f32 %v15505_v33, %v8004_v53  ;;  %v12125_v53 = vld [vmem:[%s12727_s28 + $0x38] sm:$0xff]  }
 0x91c   : > { %v8043_v27 = vpack.c.bf16 %v8027_v54, %v8026_v0  ;;  %v8005_v59 = vmul.f32 %v15496_v31, %v7981_v57  ;;  %11876 = vmatpush3.bf16.msra.mxu1 %v12125_v53 }
 0x91d   : > { %v12464_v24 = vpop.eup %12463  ;;  %11877 = vmatprep.subr.bf16.mxu1 %v16243_v2 }
 0x91e   : > { %11840 = vmatmul.mubr.msk.bf16.vlgmr.msra.gmra.mxu0 %vm2425_vm2, %v8043_v27  ;;  %v12466_v43 = vpop.eup %12465  ;;  %v7983_v4 = vmul.f32 %v12464_v24, %v15412_v28  ;;  %v8029_v51 = vadd.f32 %v15505_v33, %v8005_v59 }
 0x91f   : > { %11843 = vmatprep.mubr.msk.bf16.mxu0 %vm12569_vm4, %v16243_v2  ;;  %v7982_v49 = vmul.f32 %v12466_v43, %v15403_v34 }
 0x920   : > { %v8044_v50 = vpack.c.bf16 %v8029_v51, %v8028_v18  ;;  %v8007_v5 = vmul.f32 %v15496_v31, %v7983_v4  ;;  %v12128_v51 = vld [vmem:[%s12727_s28 + $0x20] sm:$0xff]  }
 0x921   : > { %v12468_v55 = vpop.eup %12467  ;;  %v8006_v3 = vmul.f32 %v15496_v31, %v7982_v49 }
 0x922   : > { %v12470_v8 = vpop.eup %12469  ;;  %v7985_v28 = vmul.f32 %v12468_v55, %v15421_v16  ;;  %v8031_v46 = vadd.f32 %v15505_v33, %v8007_v5  ;;  %v12129_v5 = vld [vmem:[%s12727_s28 + $0x18] sm:$0xff]  }
 0x923   : > { %v7984_v34 = vmul.f32 %v12470_v8, %v15415_v10  ;;  %v8030_v44 = vadd.f32 %v15505_v33, %v8006_v3  ;;  %v12130_v3 = vld [vmem:[%s12727_s28 + $0x10] sm:$0xff]  }
 0x924   : > { %v8009_v14 = vmul.f32 %v15496_v31, %v7985_v28 }
 0x925   : > { %v8045_v22 = vpack.c.bf16 %v8031_v46, %v8030_v44  ;;  %v8008_v45 = vmul.f32 %v15496_v31, %v7984_v34  ;;  %v12131_v46 = vld [vmem:[%s12727_s28 + $0x8] sm:$0xff]  }
 0x926   : > { %11844 = vmatmul.mubr.msk.bf16.gmra.mxu0 %vm2425_vm2, %v8044_v50  ;;  %v8033_v23 = vadd.f32 %v15505_v33, %v8009_v14  ;;  %v12132_v14 = vld [vmem:[%s12727_s28] sm:$0xff]  }
 0x927   : > { %11847 = vmatprep.mubr.msk.bf16.mxu0 %vm12569_vm4, %v16243_v2  ;;  %v8032_v16 = vadd.f32 %v15505_v33, %v8008_v45 }
 0x929   : > { %v8046_v37 = vpack.c.bf16 %v8033_v23, %v8032_v16 }
 0x92e   : > { %11848 = vmatmul.mubr.msk.bf16.gmra.mxu0 %vm2425_vm2, %v8045_v22 }
 0x92f   : > { %11851 = vmatprep.mubr.msk.bf16.mxu0 %vm12569_vm4, %v16243_v2 }
 0x936   : > { %11852 = vmatmul.mubr.msk.bf16.gmra.mxu0 %vm2425_vm2, %v8046_v37 }
 0x937   : > { %11855 = vmatprep.mubr.msk.bf16.mxu0 %vm12569_vm4, %v16243_v2 }
 0x94c   : > { %v7902_v10 = vpop.xlane.xlu1 %7901 }
 0x94d   : > { %v7935_v58 = vmul.f32 0.03125, %v7902_v10 }
 0x94f   : > { %v7952_v30 = vadd.f32 1e-05, %v7935_v58 }
 0x950   : > { %v7905_v40 = vpop.xlane.xlu0 %7904 }
 0x951   : > { %12471 = vrsqrt.f32 %v7952_v30  ;;  %v7936_v39 = vmul.f32 0.03125, %v7905_v40 }
 0x953   : > { %v7953_v47 = vadd.f32 1e-05, %v7936_v39 }
 0x955   : > { %12473 = vrsqrt.f32 %v7953_v47 }
 0x95e   : > { %v12472_v19 = vpop.eup %12471 }
 0x95f   : > { %v7986_v0 = vmul.f32 %v12472_v19, %v15437_v7  ;;  %v12126_v7 = vld [vmem:[%s12727_s28 + $0x30] sm:$0xff]  }
 0x960   : > { %11878 = vmatpush3.bf16.msra.mxu1 %v12126_v7 }
 0x961   : > { %v8010_v57 = vmul.f32 %v15496_v31, %v7986_v0  ;;  %11879 = vmatprep.subr.bf16.mxu1 %v16243_v2 }
 0x962   : > { %v12474_v13 = vpop.eup %12473 }
 0x963   : > { %v7987_v54 = vmul.f32 %v12474_v13, %v15442_v26  ;;  %v8034_v59 = vadd.f32 %v15505_v33, %v8010_v57  ;;  %v12127_v26 = vld [vmem:[%s12727_s28 + $0x28] sm:$0xff]  }
 0x964   : > { %11880 = vmatpush3.bf16.msra.mxu1 %v12127_v26 }
 0x965   : > { %v8011_v27 = vmul.f32 %v15496_v31, %v7987_v54  ;;  %11881 = vmatprep.subr.bf16.mxu1 %v16243_v2 }
 0x967   : > { %v8035_v24 = vadd.f32 %v15505_v33, %v8011_v27 }
 0x968   : > { %11882 = vmatpush3.bf16.msra.mxu1 %v12128_v51 }
 0x969   : > { %v8047_v43 = vpack.c.bf16 %v8035_v24, %v8034_v59  ;;  %11883 = vmatprep.subr.bf16.mxu1 %v16243_v2 }
 0x96b   : > { %11856 = vmatmul.mubr.msk.bf16.gmra.mxu0 %vm2425_vm2, %v8047_v43 }
 0x96c   : > { %11859 = vmatprep.mubr.msk.bf16.mxu0 %vm12569_vm4, %v16243_v2  ;;  %11884 = vmatpush3.bf16.msra.mxu1 %v12129_v5 }
 0x96d   : > { %11885 = vmatprep.subr.bf16.mxu1 %v16243_v2 }
 0x970   : > { %11886 = vmatpush3.bf16.msra.mxu1 %v12130_v3 }
 0x971   : > { %11887 = vmatprep.subr.bf16.mxu1 %v16243_v2 }
 0x973   : > { %v7908_v4 = vpop.xlane.xlu1 %7907 }
 0x974   : > { %v7937_v49 = vmul.f32 0.03125, %v7908_v4  ;;  %11888 = vmatpush3.bf16.msra.mxu1 %v12131_v46 }
 0x975   : > { %11889 = vmatprep.subr.bf16.mxu1 %v16243_v2 }
 0x976   : > { %v7954_v18 = vadd.f32 1e-05, %v7937_v49 }
 0x977   : > { %v7911_v50 = vpop.xlane.xlu0 %7910 }
 0x978   : > { %12475 = vrsqrt.f32 %v7954_v18  ;;  %v7938_v55 = vmul.f32 0.03125, %v7911_v50  ;;  %11890 = vmatpush3.bf16.msra.mxu1 %v12132_v14 }
 0x97a   : > { %v7955_v8 = vadd.f32 1e-05, %v7938_v55 }
 0x97c   : > { %12477 = vrsqrt.f32 %v7955_v8 }
 0x97f   : > { %v7914_v28 = vpop.xlane.xlu1 %7913 }
 0x980   : > { %v7939_v34 = vmul.f32 0.03125, %v7914_v28 }
 0x982   : > { %v7956_v44 = vadd.f32 1e-05, %v7939_v34 }
 0x983   : > { %v7917_v22 = vpop.xlane.xlu0 %7916 }
 0x984   : > { %12479 = vrsqrt.f32 %v7956_v44  ;;  %v7940_v45 = vmul.f32 0.03125, %v7917_v22 }
 0x985   : > { %v12476_v23 = vpop.eup %12475 }
 0x986   : > { %v7988_v16 = vmul.f32 %v12476_v23, %v15449_v60  ;;  %v7957_v37 = vadd.f32 1e-05, %v7940_v45 }
 0x987   : > { %v7920_v10 = vpop.xlane.xlu1 %7919 }
 0x988   : > { %12481 = vrsqrt.f32 %v7957_v37  ;;  %v7941_v58 = vmul.f32 0.03125, %v7920_v10  ;;  %v8012_v47 = vmul.f32 %v15496_v31, %v7988_v16 }
 0x989   : > { %v12478_v30 = vpop.eup %12477 }
 0x98a   : > { %v7989_v40 = vmul.f32 %v12478_v30, %v15454_v48  ;;  %v7958_v39 = vadd.f32 1e-05, %v7941_v58  ;;  %v8036_v57 = vadd.f32 %v15505_v33, %v8012_v47 }
 0x98b   : > { %v7923_v19 = vpop.xlane.xlu0 %7922 }
 0x98c   : > { %12483 = vrsqrt.f32 %v7958_v39  ;;  %v7942_v0 = vmul.f32 0.03125, %v7923_v19  ;;  %v8013_v13 = vmul.f32 %v15496_v31, %v7989_v40 }
 0x98e   : > { %v7959_v54 = vadd.f32 1e-05, %v7942_v0  ;;  %v8037_v60 = vadd.f32 %v15505_v33, %v8013_v13 }
 0x990   : > { %v7926_v27 = vpop.xlane.xlu1 %7925  ;;  %12485 = vrsqrt.f32 %v7959_v54  ;;  %v8048_v24 = vpack.c.bf16 %v8037_v60, %v8036_v57 }
 0x991   : > { %v7943_v59 = vmul.f32 0.03125, %v7926_v27  ;;  %v12480_v53 = vpop.eup %12479 }
 0x992   : > { %v7990_v48 = vmul.f32 %v12480_v53, %v15461_v11  ;;  %11860 = vmatmul.mubr.msk.bf16.gmra.mxu0 %vm2425_vm2, %v8048_v24 }
 0x993   : > { %v7960_v43 = vadd.f32 1e-05, %v7943_v59  ;;  %11863 = vmatprep.mubr.msk.bf16.mxu0 %vm12569_vm4, %v16243_v2 }
 0x994   : > { %v8014_v4 = vmul.f32 %v15496_v31, %v7990_v48 }
 0x995   : > { %12487 = vrsqrt.f32 %v7960_v43  ;;  %v12482_v7 = vpop.eup %12481 }
 0x996   : > { %v7991_v26 = vmul.f32 %v12482_v7, %v15466_v63  ;;  %v8038_v50 = vadd.f32 %v15505_v33, %v8014_v4 }
 0x998   : > { %v8015_v51 = vmul.f32 %v15496_v31, %v7991_v26 }
 0x999   : > { %v12484_v49 = vpop.eup %12483 }
 0x99a   : > { %v7992_v18 = vmul.f32 %v12484_v49, %v15472_v62  ;;  %v8039_v11 = vadd.f32 %v15505_v33, %v8015_v51 }
 0x99c   : > { %v8049_v5 = vpack.c.bf16 %v8039_v11, %v8038_v50  ;;  %v8016_v63 = vmul.f32 %v15496_v31, %v7992_v18 }
 0x99d   : > { %v12486_v55 = vpop.eup %12485 }
 0x99e   : > { %v7993_v8 = vmul.f32 %v12486_v55, %v15478_v36  ;;  %11864 = vmatmul.mubr.msk.bf16.gmra.mxu0 %vm2425_vm2, %v8049_v5  ;;  %v8040_v46 = vadd.f32 %v15505_v33, %v8016_v63 }
 0x99f   : > { %11867 = vmatprep.mubr.msk.bf16.mxu0 %vm12569_vm4, %v16243_v2 }
 0x9a0   : > { %v8017_v3 = vmul.f32 %v15496_v31, %v7993_v8 }
 0x9a2   : > { %v12488_v28 = vpop.eup %12487  ;;  %v8041_v34 = vadd.f32 %v15505_v33, %v8017_v3 }
 0x9a3   : > { %v7994_v62 = vmul.f32 %v12488_v28, %v15484_v1  ;;  %v15600_v1 = vld [vmem:[%s677_s15] ss:$0 sm:$0xff] }
 0x9a4   : > { %v8050_v44 = vpack.c.bf16 %v8041_v34, %v8040_v46 }
 0x9a5   : > { %v8018_v36 = vmul.f32 %v15496_v31, %v7994_v62 }
 0x9a6   : > { %11868 = vmatmul.mubr.msk.bf16.gmra.mxu0 %vm2425_vm2, %v8050_v44 }
 0x9a7   : > { %11871 = vmatprep.mubr.msk.bf16.mxu0 %vm12569_vm4, %v16243_v2  ;;  %v8042_v22 = vadd.f32 %v15505_v33, %v8018_v36 }
 0x9a9   : > { %v8051_v14 = vpack.c.bf16 %v8042_v22, %v8042_v22 }
 0x9ae   : > { %11872 = vmatmul.mubr.msk.bf16.gmra.mxu0 %vm2425_vm2, %v8051_v14 }
 0x9de   : > { %v8136_v45 = vpop.f32.mrf.mxu0 }
 0x9df   : > { %v8137_v23 = vadd.f32 %v15600_v1, %v8136_v45 }
 0x9e0   : > { %v11841_v31 = vpop.f32.mrf.mxu0 }
 0x9e1   : > { %v8223_v16 = vmul.f32 0.044715, %v8137_v23 }
 0x9e2   : > { %v8139_v37 = vpop.f32.mrf.mxu0 }
 0x9e3   : > { %v8240_v10 = vmul.f32 %v8223_v16, %v8137_v23  ;;  %v8140_v58 = vadd.f32 %v15600_v1, %v8139_v37 }
 0x9e4   : > { %v11842_v30 = vpop.f32.mrf.mxu0 }
 0x9e5   : > { %v8257_v33 = vmul.f32 %v8240_v10, %v8137_v23  ;;  %v8224_v40 = vmul.f32 0.044715, %v8140_v58 }
 0x9e6   : > { %v8144_v39 = vpop.f32.mrf.mxu0 }
 0x9e7   : > { %v8274_v47 = vadd.f32 %v8257_v33, %v8137_v23  ;;  %v8241_v19 = vmul.f32 %v8224_v40, %v8140_v58  ;;  %v15605_v0 = vadd.f32 %v15600_v1, %v8144_v39 }
 0x9e8   : > { %v11845_v13 = vpop.f32.mrf.mxu0 }
 0x9e9   : > { %v8291_v54 = vmul.f32 0.7978846, %v8274_v47  ;;  %v8258_v57 = vmul.f32 %v8241_v19, %v8140_v58  ;;  %v8225_v60 = vmul.f32 0.044715, %v15605_v0  ;;  %v8206_v13 = vmul.f32 0.5, %v8137_v23 }
 0x9ea   : > { %v8147_v27 = vpop.f32.mrf.mxu0 }
 0x9eb   : > { %12489 = vtanh.f32 %v8291_v54  ;;  %v8275_v59 = vadd.f32 %v8258_v57, %v8140_v58  ;;  %v8242_v24 = vmul.f32 %v8225_v60, %v15605_v0  ;;  %v8148_v53 = vadd.f32 %v15600_v1, %v8147_v27 }
 0x9ec   : > { %v11846_v48 = vpop.f32.mrf.mxu0  ;;  %v8207_v60 = vmul.f32 0.5, %v8140_v58  ;;  %v8208_v58 = vmul.f32 0.5, %v15605_v0 }
 0x9ed   : > { %v8292_v43 = vmul.f32 0.7978846, %v8275_v59  ;;  %v8259_v7 = vmul.f32 %v8242_v24, %v15605_v0  ;;  %v8226_v26 = vmul.f32 0.044715, %v8148_v53 }
 0x9ee   : > { %v8152_v4 = vpop.f32.mrf.mxu0 }
 0x9ef   : > { %12491 = vtanh.f32 %v8292_v43  ;;  %v8276_v51 = vadd.f32 %v8259_v7, %v15605_v0  ;;  %v8243_v49 = vmul.f32 %v8226_v26, %v8148_v53  ;;  %v15613_v18 = vadd.f32 %v15600_v1, %v8152_v4 }
 0x9f0   : > { %v11849_v50 = vpop.f32.mrf.mxu0 }
 0x9f1   : > { %v8293_v11 = vmul.f32 0.7978846, %v8276_v51  ;;  %v8260_v5 = vmul.f32 %v8243_v49, %v8148_v53  ;;  %v8227_v55 = vmul.f32 0.044715, %v15613_v18 }
 0x9f2   : > { %v8155_v8 = vpop.f32.mrf.mxu0 }
 0x9f3   : > { %12493 = vtanh.f32 %v8293_v11  ;;  %v8277_v63 = vadd.f32 %v8260_v5, %v8148_v53  ;;  %v8244_v3 = vmul.f32 %v8227_v55, %v15613_v18  ;;  %v8156_v28 = vadd.f32 %v15600_v1, %v8155_v8 }
 0x9f4   : > { %v11850_v62 = vpop.f32.mrf.mxu0  ;;  %v8209_v8 = vmul.f32 0.5, %v8148_v53 }
 0x9f5   : > { %v8294_v46 = vmul.f32 0.7978846, %v8277_v63  ;;  %v8261_v34 = vmul.f32 %v8244_v3, %v15613_v18  ;;  %v8228_v44 = vmul.f32 0.044715, %v8156_v28 }
 0x9f6   : > { %v8160_v36 = vpop.f32.mrf.mxu0 }
 0x9f7   : > { %12495 = vtanh.f32 %v8294_v46  ;;  %v8278_v22 = vadd.f32 %v8261_v34, %v15613_v18  ;;  %v8245_v14 = vmul.f32 %v8228_v44, %v8156_v28  ;;  %v8161_v45 = vadd.f32 %v15600_v1, %v8160_v36 }
 0x9f8   : > { %v12490_v31 = vpop.eup %12489  ;;  %v11853_v16 = vpop.f32.mrf.mxu0 }
 0x9f9   : > { %v8295_v37 = vmul.f32 0.7978846, %v8278_v22  ;;  %v8262_v10 = vmul.f32 %v8245_v14, %v8156_v28  ;;  %v8229_v30 = vmul.f32 0.044715, %v8161_v45  ;;  %v8325_v40 = vadd.f32 1.0, %v12490_v31 }
 0x9fa   : > { %v8163_v33 = vpop.f32.mrf.mxu0  ;;  %v8210_v14 = vmul.f32 0.5, %v15613_v18  ;;  %v8211_v31 = vmul.f32 0.5, %v8156_v28 }
 0x9fb   : > { %12497 = vtanh.f32 %v8295_v37  ;;  %v8279_v39 = vadd.f32 %v8262_v10, %v8156_v28  ;;  %v8246_v47 = vmul.f32 %v8229_v30, %v8161_v45  ;;  %v8164_v54 = vadd.f32 %v15600_v1, %v8163_v33 }
 0x9fc   : > { %v12492_v19 = vpop.eup %12491  ;;  %v11854_v57 = vpop.f32.mrf.mxu0  ;;  %v8342_v43 = vmul.f32 %v8325_v40, %v8206_v13  ;;  %v8212_v40 = vmul.f32 0.5, %v8161_v45 }
 0x9fd   : > { %v8326_v27 = vadd.f32 1.0, %v12492_v19  ;;  %v8296_v59 = vmul.f32 0.7978846, %v8279_v39  ;;  %v8263_v24 = vmul.f32 %v8246_v47, %v8161_v45  ;;  %v8230_v48 = vmul.f32 0.044715, %v8164_v54 }
 0x9fe   : > { %v8213_v39 = vmul.f32 0.5, %v8164_v54 }
 0x9ff   : > { %v8343_v7 = vmul.f32 %v8326_v27, %v8207_v60  ;;  %12499 = vtanh.f32 %v8296_v59  ;;  %v8280_v26 = vadd.f32 %v8263_v24, %v8161_v45  ;;  %v8247_v51 = vmul.f32 %v8230_v48, %v8164_v54 }
 0xa00   : > { %v12494_v4 = vpop.eup %12493 }
 0xa01   : > { %v8359_v49 = vpack.c.bf16 %v8343_v7, %v8342_v43  ;;  %v8297_v50 = vmul.f32 0.7978846, %v8280_v26  ;;  %v8264_v11 = vmul.f32 %v8247_v51, %v8164_v54  ;;  %v8327_v5 = vadd.f32 1.0, %v12494_v4 }
 0xa03   : > { %11892 = vmatmul.mubr.bf16.vlgmr.msra.gmra.mxu1 %v8359_v49  ;;  %12501 = vtanh.f32 %v8297_v50  ;;  %v8281_v55 = vadd.f32 %v8264_v11, %v8164_v54  ;;  %v8344_v62 = vmul.f32 %v8327_v5, %v8208_v58 }
 0xa04   : > { %v12496_v23 = vpop.eup %12495  ;;  %11895 = vmatprep.mubr.msk.bf16.mxu1 %vm12569_vm4, %v16243_v2 }
 0xa05   : > { %v8328_v63 = vadd.f32 1.0, %v12496_v23  ;;  %v8298_v3 = vmul.f32 0.7978846, %v8281_v55 }
 0xa07   : > { %v8345_v46 = vmul.f32 %v8328_v63, %v8209_v8  ;;  %12503 = vtanh.f32 %v8298_v3 }
 0xa08   : > { %v12498_v34 = vpop.eup %12497 }
 0xa09   : > { %v8360_v44 = vpack.c.bf16 %v8345_v46, %v8344_v62  ;;  %v8329_v36 = vadd.f32 1.0, %v12498_v34 }
 0xa0b   : > { %11896 = vmatmul.mubr.bf16.gmra.mxu1 %v8360_v44  ;;  %v8346_v37 = vmul.f32 %v8329_v36, %v8210_v14 }
 0xa0c   : > { %v12500_v22 = vpop.eup %12499  ;;  %11899 = vmatprep.mubr.msk.bf16.mxu1 %vm12569_vm4, %v16243_v2 }
 0xa0d   : > { %v8330_v16 = vadd.f32 1.0, %v12500_v22 }
 0xa0f   : > { %v8347_v0 = vmul.f32 %v8330_v16, %v8211_v31 }
 0xa10   : > { %v12502_v53 = vpop.eup %12501 }
 0xa11   : > { %v8361_v10 = vpack.c.bf16 %v8347_v0, %v8346_v37  ;;  %v8331_v30 = vadd.f32 1.0, %v12502_v53 }
 0xa13   : > { %11900 = vmatmul.mubr.bf16.gmra.mxu1 %v8361_v10  ;;  %v8348_v19 = vmul.f32 %v8331_v30, %v8212_v40 }
 0xa14   : > { %11903 = vmatprep.mubr.msk.bf16.mxu1 %vm12569_vm4, %v16243_v2  ;;  %v12504_v33 = vpop.eup %12503 }
 0xa15   : > { %v8332_v47 = vadd.f32 1.0, %v12504_v33 }
 0xa17   : > { %v8349_v13 = vmul.f32 %v8332_v47, %v8213_v39 }
 0xa19   : > { %v8362_v57 = vpack.c.bf16 %v8349_v13, %v8348_v19 }
 0xa1b   : > { %11904 = vmatmul.mubr.bf16.gmra.mxu1 %v8362_v57 }
 0xa1c   : > { %11907 = vmatprep.mubr.msk.bf16.mxu1 %vm12569_vm4, %v16243_v2 }
 0xa2b   : > { %v8168_v18 = vpop.f32.mrf.mxu0 }
 0xa2c   : > { %v8169_v28 = vadd.f32 %v15600_v1, %v8168_v18 }
 0xa2d   : > { %v11857_v60 = vpop.f32.mrf.mxu0 }
 0xa2e   : > { %v8231_v27 = vmul.f32 0.044715, %v8169_v28  ;;  %v8214_v55 = vmul.f32 0.5, %v8169_v28 }
 0xa2f   : > { %v8171_v59 = vpop.f32.mrf.mxu0 }
 0xa30   : > { %v8248_v24 = vmul.f32 %v8231_v27, %v8169_v28  ;;  %v8172_v48 = vadd.f32 %v15600_v1, %v8171_v59 }
 0xa31   : > { %v11858_v43 = vpop.f32.mrf.mxu0 }
 0xa32   : > { %v8265_v45 = vmul.f32 %v8248_v24, %v8169_v28  ;;  %v8232_v54 = vmul.f32 0.044715, %v8172_v48  ;;  %v8215_v58 = vmul.f32 0.5, %v8172_v48 }
 0xa34   : > { %v8282_v7 = vadd.f32 %v8265_v45, %v8169_v28  ;;  %v8249_v26 = vmul.f32 %v8232_v54, %v8172_v48 }
 0xa36   : > { %v8299_v4 = vmul.f32 0.7978846, %v8282_v7  ;;  %v8266_v51 = vmul.f32 %v8249_v26, %v8172_v48 }
 0xa38   : > { %12505 = vtanh.f32 %v8299_v4  ;;  %v8283_v49 = vadd.f32 %v8266_v51, %v8172_v48 }
 0xa3a   : > { %v8300_v50 = vmul.f32 0.7978846, %v8283_v49 }
 0xa3c   : > { %12507 = vtanh.f32 %v8300_v50 }
 0xa45   : > { %v12506_v11 = vpop.eup %12505 }
 0xa46   : > { %v8333_v5 = vadd.f32 1.0, %v12506_v11 }
 0xa48   : > { %v8350_v63 = vmul.f32 %v8333_v5, %v8214_v55 }
 0xa49   : > { %v12508_v23 = vpop.eup %12507 }
 0xa4a   : > { %v8334_v8 = vadd.f32 1.0, %v12508_v23 }
 0xa4c   : > { %v8351_v3 = vmul.f32 %v8334_v8, %v8215_v58 }
 0xa4e   : > { %v8363_v62 = vpack.c.bf16 %v8351_v3, %v8350_v63 }
 0xa50   : > { %11908 = vmatmul.mubr.bf16.gmra.mxu1 %v8363_v62 }
 0xa51   : > { %11911 = vmatprep.mubr.msk.bf16.mxu1 %vm12569_vm4, %v16243_v2 }
 0xa52   : > { %v8176_v46 = vpop.f32.mrf.mxu0 }
 0xa53   : > { %v8177_v34 = vadd.f32 %v15600_v1, %v8176_v46 }
 0xa54   : > { %v11861_v44 = vpop.f32.mrf.mxu0 }
 0xa55   : > { %v8233_v36 = vmul.f32 0.044715, %v8177_v34 }
 0xa56   : > { %v8179_v22 = vpop.f32.mrf.mxu0 }
 0xa57   : > { %v8250_v14 = vmul.f32 %v8233_v36, %v8177_v34  ;;  %v8180_v31 = vadd.f32 %v15600_v1, %v8179_v22 }
 0xa58   : > { %v11862_v16 = vpop.f32.mrf.mxu0 }
 0xa59   : > { %v8267_v37 = vmul.f32 %v8250_v14, %v8177_v34  ;;  %v8234_v0 = vmul.f32 0.044715, %v8180_v31  ;;  %v8216_v16 = vmul.f32 0.5, %v8177_v34 }
 0xa5b   : > { %v8284_v53 = vadd.f32 %v8267_v37, %v8177_v34  ;;  %v8251_v10 = vmul.f32 %v8234_v0, %v8180_v31  ;;  %v8217_v37 = vmul.f32 0.5, %v8180_v31 }
 0xa5d   : > { %v8301_v30 = vmul.f32 0.7978846, %v8284_v53  ;;  %v8268_v33 = vmul.f32 %v8251_v10, %v8180_v31 }
 0xa5e   : > { %v8184_v40 = vpop.f32.mrf.mxu0 }
 0xa5f   : > { %12509 = vtanh.f32 %v8301_v30  ;;  %v8285_v39 = vadd.f32 %v8268_v33, %v8180_v31  ;;  %v8185_v47 = vadd.f32 %v15600_v1, %v8184_v40 }
 0xa60   : > { %v11865_v19 = vpop.f32.mrf.mxu0 }
 0xa61   : > { %v8302_v13 = vmul.f32 0.7978846, %v8285_v39  ;;  %v8235_v57 = vmul.f32 0.044715, %v8185_v47 }
 0xa62   : > { %v8187_v18 = vpop.f32.mrf.mxu0 }
 0xa63   : > { %12511 = vtanh.f32 %v8302_v13  ;;  %v8252_v28 = vmul.f32 %v8235_v57, %v8185_v47  ;;  %v8188_v60 = vadd.f32 %v15600_v1, %v8187_v18 }
 0xa64   : > { %v11866_v27 = vpop.f32.mrf.mxu0 }
 0xa65   : > { %v8269_v59 = vmul.f32 %v8252_v28, %v8185_v47  ;;  %v8236_v24 = vmul.f32 0.044715, %v8188_v60 }
 0xa66   : > { %v8192_v48 = vpop.f32.mrf.mxu0 }
 0xa67   : > { %v8286_v43 = vadd.f32 %v8269_v59, %v8185_v47  ;;  %v8253_v45 = vmul.f32 %v8236_v24, %v8188_v60  ;;  %v8193_v54 = vadd.f32 %v15600_v1, %v8192_v48  ;;  %v8218_v48 = vmul.f32 0.5, %v8185_v47 }
 0xa68   : > { %v11869_v7 = vpop.f32.mrf.mxu0 }
 0xa69   : > { %v8303_v26 = vmul.f32 0.7978846, %v8286_v43  ;;  %v8270_v4 = vmul.f32 %v8253_v45, %v8188_v60  ;;  %v8237_v51 = vmul.f32 0.044715, %v8193_v54  ;;  %v8219_v43 = vmul.f32 0.5, %v8188_v60 }
 0xa6a   : > { %v8195_v49 = vpop.f32.mrf.mxu0 }
 0xa6b   : > { %12513 = vtanh.f32 %v8303_v26  ;;  %v8287_v50 = vadd.f32 %v8270_v4, %v8188_v60  ;;  %v8254_v11 = vmul.f32 %v8237_v51, %v8193_v54  ;;  %v8196_v5 = vadd.f32 %v15600_v1, %v8195_v49 }
 0xa6c   : > { %v12510_v23 = vpop.eup %12509  ;;  %v11870_v55 = vpop.f32.mrf.mxu0 }
 0xa6d   : > { %v8304_v58 = vmul.f32 0.7978846, %v8287_v50  ;;  %v8271_v8 = vmul.f32 %v8254_v11, %v8193_v54  ;;  %v8238_v63 = vmul.f32 0.044715, %v8196_v5  ;;  %v8335_v62 = vadd.f32 1.0, %v12510_v23 }
 0xa6e   : > { %v8200_v3 = vpop.f32.mrf.mxu0  ;;  %v8220_v11 = vmul.f32 0.5, %v8193_v54  ;;  %v8221_v23 = vmul.f32 0.5, %v8196_v5 }
 0xa6f   : > { %12515 = vtanh.f32 %v8304_v58  ;;  %v8288_v46 = vadd.f32 %v8271_v8, %v8193_v54  ;;  %v8255_v44 = vmul.f32 %v8238_v63, %v8196_v5  ;;  %v8201_v36 = vadd.f32 %v15600_v1, %v8200_v3  ;;  %v15654_v54 = vld [vmem:[%s685_s13] ss:$0 sm:$0xff] }
 0xa70   : > { %v12512_v22 = vpop.eup %12511  ;;  %v11873_v14 = vpop.f32.mrf.mxu0  ;;  %v8352_v40 = vmul.f32 %v8335_v62, %v8216_v16 }
 0xa71   : > { %v8305_v0 = vmul.f32 0.7978846, %v8288_v46  ;;  %v8272_v53 = vmul.f32 %v8255_v44, %v8196_v5  ;;  %v8239_v10 = vmul.f32 0.044715, %v8201_v36  ;;  %v8336_v30 = vadd.f32 1.0, %v12512_v22 }
 0xa72   : > { %v8203_v33 = vpop.f32.mrf.mxu0  ;;  %v8222_v3 = vmul.f32 0.5, %v8201_v36 }
 0xa73   : > { %12517 = vtanh.f32 %v8305_v0  ;;  %v8289_v39 = vadd.f32 %v8272_v53, %v8196_v5  ;;  %v8256_v19 = vmul.f32 %v8239_v10, %v8201_v36  ;;  %v8353_v13 = vmul.f32 %v8336_v30, %v8217_v37 }
 0xa74   : > { %v11874_v57 = vpop.f32.mrf.mxu0 }
 0xa75   : > { %v8306_v18 = vmul.f32 0.7978846, %v8289_v39  ;;  %v8273_v28 = vmul.f32 %v8256_v19, %v8201_v36  ;;  %v8364_v27 = vpack.c.bf16 %v8353_v13, %v8352_v40 }
 0xa77   : > { %12519 = vtanh.f32 %v8306_v18  ;;  %v8290_v1 = vadd.f32 %v8273_v28, %v8201_v36  ;;  %11912 = vmatmul.mubr.bf16.gmra.mxu1 %v8364_v27 }
 0xa78   : > { %v12514_v59 = vpop.eup %12513  ;;  %11915 = vmatprep.mubr.msk.bf16.mxu1 %vm12569_vm4, %v16243_v2 }
 0xa79   : > { %v8307_v34 = vmul.f32 0.7978846, %v8290_v1  ;;  %v8337_v31 = vadd.f32 1.0, %v12514_v59 }
 0xa7b   : > { %12521 = vtanh.f32 %v8307_v34  ;;  %v8354_v7 = vmul.f32 %v8337_v31, %v8218_v48 }
 0xa7c   : > { %v12516_v24 = vpop.eup %12515 }
 0xa7d   : > { %v8338_v45 = vadd.f32 1.0, %v12516_v24 }
 0xa7f   : > { %v8355_v26 = vmul.f32 %v8338_v45, %v8219_v43 }
 0xa80   : > { %v12518_v4 = vpop.eup %12517 }
 0xa81   : > { %v8365_v51 = vpack.c.bf16 %v8355_v26, %v8354_v7  ;;  %v8339_v49 = vadd.f32 1.0, %v12518_v4 }
 0xa83   : > { %11916 = vmatmul.mubr.bf16.gmra.mxu1 %v8365_v51  ;;  %v8356_v58 = vmul.f32 %v8339_v49, %v8220_v11 }
 0xa84   : > { %v12520_v50 = vpop.eup %12519  ;;  %11919 = vmatprep.mubr.msk.bf16.mxu1 %vm12569_vm4, %v16243_v2 }
 0xa85   : > { %v8340_v55 = vadd.f32 1.0, %v12520_v50 }
 0xa87   : > { %v8357_v8 = vmul.f32 %v8340_v55, %v8221_v23 }
 0xa88   : > { %v12522_v63 = vpop.eup %12521 }
 0xa89   : > { %v8366_v47 = vpack.c.bf16 %v8357_v8, %v8356_v58  ;;  %v8341_v60 = vadd.f32 1.0, %v12522_v63 }
 0xa8b   : > { %11920 = vmatmul.mubr.bf16.gmra.mxu1 %v8366_v47  ;;  %v8358_v62 = vmul.f32 %v8341_v60, %v8222_v3 }
 0xa8c   : > { %11923 = vmatprep.mubr.msk.bf16.mxu1 %vm12569_vm4, %v16243_v2 }
 0xa8d   : > { %v8367_v46 = vpack.c.bf16 %v8358_v62, %v8358_v62 }
 0xa93   : > { %11924 = vmatmul.mubr.bf16.gmra.mxu1 %v8367_v46 }
 0xac3   : > { %v8473_v5 = vpop.f32.mrf.mxu1 }
 0xac4   : > { %v8474_v44 = vadd.f32 %v15654_v54, %v8473_v5 }
 0xac5   : > { %v11893_v22 = vpop.f32.mrf.mxu1 }
 0xac6   : > { %v15658_v14 = vadd.f32 %v8474_v44, %v15287_v12 }
 0xac7   : > { %v8476_v36 = vpop.f32.mrf.mxu1 }
 0xac8   : > { %8560 = vst.msk [vmem:[#allocation2] sm:$0xff] %vm2425_vm2, %v15658_v14  ;;  %v8477_v2 = vadd.f32 %v15654_v54, %v8476_v36 }
 0xac9   : > { %v11894_v16 = vpop.f32.mrf.mxu1 }
 0xaca   : > { %v15664_v37 = vadd.f32 %v8477_v2, %v15296_v15 }
 0xacb   : > { %v8481_v0 = vpop.f32.mrf.mxu1 }
 0xacc   : > { %8561 = vst.msk [vmem:[#allocation2 + $0x8] sm:$0xff] %vm2425_vm2, %v15664_v37  ;;  %v8482_v53 = vadd.f32 %v15654_v54, %v8481_v0 }
 0xacd   : > { %v11897_v10 = vpop.f32.mrf.mxu1 }
 0xace   : > { %v15670_v12 = vadd.f32 %v8482_v53, %v15302_v6 }
 0xacf   : > { %v8484_v30 = vpop.f32.mrf.mxu1 }
 0xad0   : > { %8562 = vst.msk [vmem:[#allocation2 + $0x10] sm:$0xff] %vm2425_vm2, %v15670_v12  ;;  %v8485_v33 = vadd.f32 %v15654_v54, %v8484_v30 }
 0xad1   : > { %v11898_v40 = vpop.f32.mrf.mxu1 }
 0xad2   : > { %v15676_v15 = vadd.f32 %v8485_v33, %v15307_v21 }
 0xad3   : > { %v8489_v39 = vpop.f32.mrf.mxu1 }
 0xad4   : > { %8563 = vst.msk [vmem:[#allocation2 + $0x18] sm:$0xff] %vm2425_vm2, %v15676_v15  ;;  %v8490_v19 = vadd.f32 %v15654_v54, %v8489_v39 }
 0xad5   : > { %v11901_v13 = vpop.f32.mrf.mxu1 }
 0xad6   : > { %v15682_v6 = vadd.f32 %v8490_v19, %v15312_v42 }
 0xad7   : > { %v8492_v57 = vpop.f32.mrf.mxu1 }
 0xad8   : > { %8564 = vst.msk [vmem:[#allocation2 + $0x20] sm:$0xff] %vm2425_vm2, %v15682_v6  ;;  %v8493_v18 = vadd.f32 %v15654_v54, %v8492_v57 }
 0xad9   : > { %v11902_v28 = vpop.f32.mrf.mxu1 }
 0xada   : > { %v15688_v21 = vadd.f32 %v8493_v18, %v15317_v52 }
 0xadb   : > { %v8497_v27 = vpop.f32.mrf.mxu1 }
 0xadc   : > { %8565 = vst.msk [vmem:[#allocation2 + $0x28] sm:$0xff] %vm2425_vm2, %v15688_v21  ;;  %v8498_v1 = vadd.f32 %v15654_v54, %v8497_v27 }
 0xadd   : > { %v11905_v59 = vpop.f32.mrf.mxu1 }
 0xade   : > { %v15694_v42 = vadd.f32 %v8498_v1, %v15322_v25 }
 0xadf   : > { %v8500_v34 = vpop.f32.mrf.mxu1 }
 0xae0   : > { %8566 = vst.msk [vmem:[#allocation2 + $0x30] sm:$0xff] %vm2425_vm2, %v15694_v42  ;;  %v8501_v31 = vadd.f32 %v15654_v54, %v8500_v34 }
 0xae1   : > { %v11906_v24 = vpop.f32.mrf.mxu1 }
 0xae2   : > { %v15700_v52 = vadd.f32 %v8501_v31, %v15327_v29 }
 0xae4   : > { %8567 = vst.msk [vmem:[#allocation2 + $0x38] sm:$0xff] %vm2425_vm2, %v15700_v52 }
 0xb10   : > { %v8505_v48 = vpop.f32.mrf.mxu1 }
 0xb11   : > { %v8506_v43 = vadd.f32 %v15654_v54, %v8505_v48 }
 0xb12   : > { %v11909_v45 = vpop.f32.mrf.mxu1 }
 0xb13   : > { %v15706_v25 = vadd.f32 %v8506_v43, %v15338_v32 }
 0xb14   : > { %v8508_v7 = vpop.f32.mrf.mxu1 }
 0xb15   : > { %8568 = vst.msk [vmem:[#allocation2 + $0x40] sm:$0xff] %vm2425_vm2, %v15706_v25  ;;  %v8509_v26 = vadd.f32 %v15654_v54, %v8508_v7 }
 0xb16   : > { %v11910_v4 = vpop.f32.mrf.mxu1 }
 0xb17   : > { %v15712_v29 = vadd.f32 %v8509_v26, %v15343_v61 }
 0xb19   : > { %8569 = vst.msk [vmem:[#allocation2 + $0x48] sm:$0xff] %vm2425_vm2, %v15712_v29 }
 0xb37   : > { %v8513_v51 = vpop.f32.mrf.mxu1 }
 0xb38   : > { %v8514_v49 = vadd.f32 %v15654_v54, %v8513_v51 }
 0xb39   : > { %v11913_v50 = vpop.f32.mrf.mxu1 }
 0xb3a   : > { %v8553_v32 = vadd.f32 %v8514_v49, %v15348_v20 }
 0xb3b   : > { %v8516_v11 = vpop.f32.mrf.mxu1 }
 0xb3c   : > { %8570 = vst.msk [vmem:[#allocation2 + $0x50] sm:$0xff] %vm2425_vm2, %v8553_v32  ;;  %v8517_v23 = vadd.f32 %v15654_v54, %v8516_v11 }
 0xb3d   : > { %v11914_v55 = vpop.f32.mrf.mxu1 }
 0xb3e   : > { %v8554_v58 = vadd.f32 %v8517_v23, %v15353_v38 }
 0xb40   : > { %8571 = vst.msk [vmem:[#allocation2 + $0x58] sm:$0xff] %vm2425_vm2, %v8554_v58 }
 0xb43   : > { %v8521_v61 = vpop.f32.mrf.mxu1 }
 0xb44   : > { %v8522_v8 = vadd.f32 %v15654_v54, %v8521_v61 }
 0xb45   : > { %v11917_v63 = vpop.f32.mrf.mxu1 }
 0xb46   : > { %v8555_v47 = vadd.f32 %v8522_v8, %v15358_v56 }
 0xb47   : > { %v8524_v60 = vpop.f32.mrf.mxu1 }
 0xb48   : > { %8572 = vst.msk [vmem:[#allocation2 + $0x60] sm:$0xff] %vm2425_vm2, %v8555_v47  ;;  %v8525_v20 = vadd.f32 %v15654_v54, %v8524_v60 }
 0xb49   : > { %v11918_v3 = vpop.f32.mrf.mxu1 }
 0xb4a   : > { %v8556_v62 = vadd.f32 %v8525_v20, %v15364_v41 }
 0xb4b   : > { %v8529_v46 = vpop.f32.mrf.mxu1 }
 0xb4c   : > { %8573 = vst.msk [vmem:[#allocation2 + $0x68] sm:$0xff] %vm2425_vm2, %v8556_v62  ;;  %v8530_v38 = vadd.f32 %v15654_v54, %v8529_v46 }
 0xb4d   : > { %v11921_v5 = vpop.f32.mrf.mxu1 }
 0xb4e   : > { %v8557_v44 = vadd.f32 %v8530_v38, %v15370_v35 }
 0xb4f   : > { %v8532_v22 = vpop.f32.mrf.mxu1 }
 0xb50   : > { %8574 = vst.msk [vmem:[#allocation2 + $0x70] sm:$0xff] %vm2425_vm2, %v8557_v44  ;;  %v8533_v56 = vadd.f32 %v15654_v54, %v8532_v22 }
 0xb51   : > { %v11922_v36 = vpop.f32.mrf.mxu1 }
 0xb52   : > { %v8558_v2 = vadd.f32 %v8533_v56, %v15379_v9 }
 0xb53   : > { %v8537_v16 = vpop.f32.mrf.mxu1 }
 0xb54   : > { %8575 = vst.msk [vmem:[#allocation2 + $0x78] sm:$0xff] %vm2425_vm2, %v8558_v2  ;;  %v8538_v41 = vadd.f32 %v15654_v54, %v8537_v16 }
 0xb55   : > { %v11925_v0 = vpop.f32.mrf.mxu1  ;;  %8580 = sbr.rel (%p10906_p6) target bundleno = 3222 (0xc96), region = 88 }
 0xb56   : > { %v8559_v53 = vadd.f32 %v8538_v41, %v15392_v17 }
 0xb57   : > { %v8540_v10 = vpop.f32.mrf.mxu1 }
 0xb58   : > { %8576 = vst.msk [vmem:[#allocation2 + $0x80] sm:$0x3] %vm2474_vm3, %v8559_v53 }
 0xb59   : > { %v11926_v35 = vpop.f32.mrf.mxu1 }
 0xb5a   : > { %v12540_v30 = vld [vmem:[%s16411_s16 + $0x8] sm:$0xff]   ;;  %v12570_v9 = vmov 0.0   ;;  %v12541_v54 = vld [vmem:[%s16411_s16] sm:$0xff]   ;;  %vm12571_vm0 = vmmov 0   ;;  %v8581_v17 = vpack.c.bf16 %v15664_v37, %v15658_v14  ;;  %v8586_v33 = vpack.c.bf16 %v8554_v58, %v8553_v32 }
 0xb5b   : > { %11927 = vmatprep.subr.bf16.mxu0 %v12570_v9  ;;  %11967 = vmatprep.subr.bf16.mxu1 %v12570_v9  ;;  %v8582_v40 = vpack.c.bf16 %v15676_v15, %v15670_v12  ;;  %v8587_v39 = vpack.c.bf16 %v8556_v62, %v8555_v47  ;;  %v8583_v14 = vpack.c.bf16 %v15688_v21, %v15682_v6  ;;  %v12572_v13 = vmov 1966171168   ;;  %v15775_v21 = vld [vmem:[%s16412_s19] ss:$0 sm:$0xff] }
 0xb5c   : > { %11928 = vmatpush3.bf16.msra.mxu0 %v12540_v30  ;;  %11931 = vmatprep.mubr.msk.bf16.mxu0 %vm12571_vm0, %v12570_v9  ;;  %v8588_v37 = vpack.c.bf16 %v8558_v2, %v8557_v44  ;;  %v8584_v12 = vpack.c.bf16 %v15700_v52, %v15694_v42  ;;  %v8589_v15 = vpack.c.bf16 %v8559_v53, %v8559_v53  ;;  %v8763_v6 = vunpack.c.l.s4 %v12572_v13 }
 0xb5d   : > { %11929 = vmatprep.subr.bf16.mxu0 %v12570_v9  ;;  %11969 = vmatpush3.bf16.msra.mxu1 %v12540_v30  ;;  %v8585_v19 = vpack.c.bf16 %v15712_v29, %v15706_v25  ;;  %v8765_v57 = vlaneseq }
 0xb5e   : > { %11968 = vmatprep.subr.bf16.mxu1 %v12570_v9  ;;  %11951 = vmatprep.mubr.msk.bf16.mxu1 %vm12571_vm0, %v12570_v9  ;;  %v8764_v18 = vunpack.c.0.s8 %v8763_v6 }
 0xb5f   : > { %v8766_v28 = vshrl.u32 %v8765_v57, 7 }
 0xb60   : > { %11930 = vmatpush3.bf16.msra.mxu0 %v12541_v54 }
 0xb61   : > { %11970 = vmatpush3.bf16.msra.mxu1 %v12541_v54  ;;  %v15777_v27 = vsub.s32 %v8764_v18, %v8766_v28 }
 0xb63   : > { %11932 = vmatmul.mubr.msk.bf16.vlgmr.msra.gmra.mxu0 %vm2425_vm2, %v8581_v17 }
 0xb64   : > { %11935 = vmatprep.mubr.msk.bf16.mxu0 %vm12571_vm0, %v12570_v9  ;;  %11952 = vmatmul.mubr.msk.bf16.vlgmr.msra.gmra.mxu1 %vm2425_vm2, %v8586_v33 }
 0xb65   : > { %11955 = vmatprep.mubr.msk.bf16.mxu1 %vm12571_vm0, %v12570_v9 }
 0xb6b   : > { %11936 = vmatmul.mubr.msk.bf16.gmra.mxu0 %vm2425_vm2, %v8582_v40 }
 0xb6c   : > { %11939 = vmatprep.mubr.msk.bf16.mxu0 %vm12571_vm0, %v12570_v9  ;;  %11956 = vmatmul.mubr.msk.bf16.gmra.mxu1 %vm2425_vm2, %v8587_v39 }
 0xb6d   : > { %11959 = vmatprep.mubr.msk.bf16.mxu1 %vm12571_vm0, %v12570_v9 }
 0xb73   : > { %11940 = vmatmul.mubr.msk.bf16.gmra.mxu0 %vm2425_vm2, %v8583_v14 }
 0xb74   : > { %11943 = vmatprep.mubr.msk.bf16.mxu0 %vm12571_vm0, %v12570_v9  ;;  %11960 = vmatmul.mubr.msk.bf16.gmra.mxu1 %vm2425_vm2, %v8588_v37 }
 0xb75   : > { %11963 = vmatprep.mubr.msk.bf16.mxu1 %vm12571_vm0, %v12570_v9 }
 0xb7b   : > { %11944 = vmatmul.mubr.msk.bf16.gmra.mxu0 %vm2425_vm2, %v8584_v12 }
 0xb7c   : > { %11947 = vmatprep.mubr.msk.bf16.mxu0 %vm12571_vm0, %v12570_v9  ;;  %11964 = vmatmul.mubr.msk.bf16.gmra.mxu1 %vm2425_vm2, %v8589_v15 }
 0xb83   : > { %11948 = vmatmul.mubr.msk.bf16.gmra.mxu0 %vm2425_vm2, %v8585_v19 }
 0xc23   : > { %v8674_v1 = vpop.f32.mrf.mxu0 }
 0xc24   : > { %v8675_v59 = vadd.f32 %v15775_v21, %v8674_v1  ;;  %v8714_v42 = vpop.f32.mrf.mxu1 }
 0xc25   : > { %v11933_v34 = vpop.f32.mrf.mxu0  ;;  %v8715_v31 = vadd.f32 %v15775_v21, %v8714_v42 }
 0xc26   : > { %v8761_v24 = vcombine.high %v8675_v59, %v8675_v59  ;;  %v8768_v52 = vrot.slane %v8675_v59, %v15777_v27  ;;  %v11953_v48 = vpop.f32.mrf.mxu1 }
 0xc27   : > { %v8677_v43 = vpop.f32.mrf.mxu0  ;;  %v9251_v45 = vcombine.high %v8715_v31, %v8715_v31  ;;  %v9258_v25 = vrot.slane %v8715_v31, %v15777_v27 }
 0xc28   : > { %v8775_v7 = vrot.slane %v8761_v24, %v15777_v27  ;;  %v8776_v26 = vcombine.high %v8768_v52, %v8768_v52  ;;  %v8784_v4 = vrot.slane %v8768_v52, %v15777_v27  ;;  %v8678_v29 = vadd.f32 %v15775_v21, %v8677_v43  ;;  %v8717_v51 = vpop.f32.mrf.mxu1 }
 0xc29   : > { %v11934_v49 = vpop.f32.mrf.mxu0  ;;  %v9265_v50 = vrot.slane %v9251_v45, %v15777_v27  ;;  %v9266_v32 = vcombine.high %v9258_v25, %v9258_v25  ;;  %v15788_v11 = vrot.slane %v9258_v25, %v15777_v27  ;;  %v15791_v23 = vadd.f32 %v15775_v21, %v8717_v51 }
 0xc2a   : > { %v8777_v55 = vcombine.high %v8775_v7, %v8775_v7  ;;  %v8791_v58 = vrot.slane %v8775_v7, %v15777_v27  ;;  %v8798_v61 = vrot.slane %v8776_v26, %v15777_v27  ;;  %v8810_v8 = vcombine.high %v8678_v29, %v8678_v29  ;;  %v11954_v63 = vpop.f32.mrf.mxu1 }
 0xc2b   : > { %v8817_v47 = vrot.slane %v8678_v29, %v15777_v27  ;;  %v8682_v60 = vpop.f32.mrf.mxu0  ;;  %v9267_v20 = vcombine.high %v9265_v50, %v9265_v50  ;;  %v15797_v3 = vrot.slane %v9265_v50, %v15777_v27  ;;  %v15800_v62 = vrot.slane %v9266_v32, %v15777_v27 }
 0xc2c   : > { %v8805_v46 = vrot.slane %v8777_v55, %v15777_v27  ;;  %v9567_v38 = vcombine.low %v8784_v4, %v8798_v61  ;;  %v10919_v5 = vcombine.high %v8784_v4, %v8798_v61  ;;  %v8824_v44 = vrot.slane %v8810_v8, %v15777_v27  ;;  %v15804_v22 = vpop.f32.mrf.mxu1 }
 0xc2d   : > { %v8825_v56 = vcombine.high %v8817_v47, %v8817_v47  ;;  %v8833_v36 = vrot.slane %v8817_v47, %v15777_v27  ;;  %v8683_v2 = vadd.f32 %v15775_v21, %v8682_v60  ;;  %v15809_v16 = vrot.slane %v9267_v20, %v15777_v27  ;;  %v11937_v41 = vpop.f32.mrf.mxu0 }
 0xc2e   : > { %v9569_v0 = vcombine.low %v8791_v58, %v8805_v46  ;;  %v10920_v53 = vcombine.high %v8791_v58, %v8805_v46  ;;  %v9577_v10 = vrot.slane %v9567_v38, %v15777_v27  ;;  %v9584_v35 = vrot.slane %v10919_v5, %v15777_v27  ;;  %v11957_v30 = vpop.f32.mrf.mxu1 }
 0xc2f   : > { %v8826_v9 = vcombine.high %v8824_v44, %v8824_v44  ;;  %v8840_v54 = vrot.slane %v8824_v44, %v15777_v27  ;;  %v8847_v17 = vrot.slane %v8825_v56, %v15777_v27  ;;  %v8859_v33 = vcombine.high %v8683_v2, %v8683_v2  ;;  %v8685_v40 = vpop.f32.mrf.mxu0 }
 0xc30   : > { %v9591_v39 = vrot.slane %v9569_v0, %v15777_v27  ;;  %v9598_v14 = vrot.slane %v10920_v53, %v15777_v27  ;;  %v9599_v37 = vcombine.low %v9577_v10, %v9584_v35  ;;  %v8866_v12 = vrot.slane %v8683_v2, %v15777_v27  ;;  %v15818_v15 = vpop.f32.mrf.mxu1 }
 0xc31   : > { %v8854_v19 = vrot.slane %v8826_v9, %v15777_v27  ;;  %v9616_v13 = vcombine.low %v8833_v36, %v8847_v17  ;;  %v10921_v6 = vcombine.high %v8833_v36, %v8847_v17  ;;  %v8873_v57 = vrot.slane %v8859_v33, %v15777_v27  ;;  %v11938_v18 = vpop.f32.mrf.mxu0 }
 0xc32   : > { %v9600_v28 = vcombine.low %v9591_v39, %v9598_v14  ;;  %v9607_v1 = vrot.slane %v9599_v37, %v15777_v27  ;;  %v8874_v59 = vcombine.high %v8866_v12, %v8866_v12  ;;  %v8882_v42 = vrot.slane %v8866_v12, %v15777_v27  ;;  %v11958_v34 = vpop.f32.mrf.mxu1 }
 0xc33   : > { %v9618_v31 = vcombine.low %v8840_v54, %v8854_v19  ;;  %v10922_v24 = vcombine.high %v8840_v54, %v8854_v19  ;;  %v9626_v52 = vrot.slane %v9616_v13, %v15777_v27  ;;  %v9633_v48 = vrot.slane %v10921_v6, %v15777_v27  ;;  %v15826_v43 = vpop.f32.mrf.mxu0 }
 0xc34   : > { %v9614_v45 = vrot.slane %v9600_v28, %v15777_v27  ;;  %v8875_v25 = vcombine.high %v8873_v57, %v8873_v57  ;;  %v8889_v7 = vrot.slane %v8873_v57, %v15777_v27  ;;  %v8896_v26 = vrot.slane %v8874_v59, %v15777_v27  ;;  %v15831_v4 = vpop.f32.mrf.mxu1 }
 0xc35   : > { %v9640_v29 = vrot.slane %v9618_v31, %v15777_v27  ;;  %v9647_v51 = vrot.slane %v10922_v24, %v15777_v27  ;;  %v9648_v49 = vcombine.low %v9626_v52, %v9633_v48  ;;  %v9296_v50 = vcombine.high %v15788_v11, %v15788_v11  ;;  %v11941_v32 = vpop.f32.mrf.mxu0 }
 0xc36   : > { %v9615_v55 = vcombine.low %v9607_v1, %v9614_v45  ;;  %v8903_v58 = vrot.slane %v8875_v25, %v15777_v27  ;;  %v9665_v61 = vcombine.low %v8882_v42, %v8896_v26  ;;  %v10923_v8 = vcombine.high %v8882_v42, %v8896_v26  ;;  %v11961_v63 = vpop.f32.mrf.mxu1 }
 0xc37   : > { %v9649_v47 = vcombine.low %v9640_v29, %v9647_v51  ;;  %v9656_v60 = vrot.slane %v9648_v49, %v15777_v27  ;;  %v9297_v20 = vcombine.high %v15797_v3, %v15797_v3  ;;  %v9298_v46 = vcombine.high %v15800_v62, %v15800_v62  ;;  %v15843_v38 = vpop.f32.mrf.mxu0 }
 0xc38   : > { %10397 = vst [vmem:[%s16413_s26] sm:$0xff] %v9615_v55  ;;  %v9667_v5 = vcombine.low %v8889_v7, %v8903_v58  ;;  %v10924_v44 = vcombine.high %v8889_v7, %v8903_v58  ;;  %v9675_v56 = vrot.slane %v9665_v61, %v15777_v27  ;;  %v9682_v36 = vrot.slane %v10923_v8, %v15777_v27  ;;  %v15850_v2 = vpop.f32.mrf.mxu1 }
 0xc39   : > { %v9663_v41 = vrot.slane %v9649_v47, %v15777_v27  ;;  %v10071_v0 = vcombine.low %v15800_v62, %v9296_v50  ;;  %v10072_v53 = vcombine.low %v9298_v46, %v15797_v3  ;;  %v15856_v10 = vcombine.low %v15809_v16, %v9297_v20  ;;  %v11942_v35 = vpop.f32.mrf.mxu0 }
 0xc3a   : > { %v9689_v30 = vrot.slane %v9667_v5, %v15777_v27  ;;  %v9696_v9 = vrot.slane %v10924_v44, %v15777_v27  ;;  %v9697_v54 = vcombine.low %v9675_v56, %v9682_v36  ;;  %v8686_v17 = vadd.f32 %v15775_v21, %v8685_v40  ;;  %v11962_v33 = vpop.f32.mrf.mxu1 }
 0xc3b   : > { %v9664_v39 = vcombine.low %v9656_v60, %v9663_v41  ;;  %v10081_v14 = vrot.slane %v10071_v0, %v15777_v27  ;;  %v10088_v37 = vrot.slane %v10072_v53, %v15777_v27  ;;  %v9299_v3 = vcombine.high %v15809_v16, %v15809_v16  ;;  %v15865_v62 = vpop.f32.mrf.mxu0 }
 0xc3c   : > { %v9698_v12 = vcombine.low %v9689_v30, %v9696_v9  ;;  %v9705_v19 = vrot.slane %v9697_v54, %v15777_v27  ;;  %v8908_v13 = vcombine.high %v8686_v17, %v8686_v17  ;;  %v8915_v6 = vrot.slane %v8686_v17, %v15777_v27  ;;  %v15869_v57 = vpop.f32.mrf.mxu1 }
 0xc3d   : > { %10398 = vst [vmem:[%s16413_s26 + $0x8] sm:$0xff] %v9664_v39  ;;  %v15874_v40 = vcombine.low %v10081_v14, %v10088_v37  ;;  %v9300_v18 = vcombine.high %v15791_v23, %v15791_v23  ;;  %v9307_v16 = vrot.slane %v15791_v23, %v15777_v27  ;;  %v10095_v28 = vrot.slane %v15856_v10, %v15777_v27  ;;  %v11945_v1 = vpop.f32.mrf.mxu0 }
 0xc3e   : > { %v9712_v59 = vrot.slane %v9698_v12, %v15777_v27  ;;  %v8922_v42 = vrot.slane %v8908_v13, %v15777_v27  ;;  %v8923_v34 = vcombine.high %v8915_v6, %v8915_v6  ;;  %v8931_v31 = vrot.slane %v8915_v6, %v15777_v27  ;;  %v11965_v24 = vpop.f32.mrf.mxu1 }
 0xc3f   : > { %v10111_v52 = vrot.slane %v15874_v40, %v15777_v27  ;;  %v9314_v48 = vrot.slane %v9300_v18, %v15777_v27  ;;  %v9315_v45 = vcombine.high %v9307_v16, %v9307_v16  ;;  %v9323_v23 = vrot.slane %v9307_v16, %v15777_v27  ;;  %v15889_v25 = vpop.f32.mrf.mxu0 }
 0xc40   : > { %v9713_v7 = vcombine.low %v9705_v19, %v9712_v59  ;;  %v8924_v26 = vcombine.high %v8922_v42, %v8922_v42  ;;  %v8938_v29 = vrot.slane %v8922_v42, %v15777_v27  ;;  %v8945_v51 = vrot.slane %v8923_v34, %v15777_v27  ;;  %v8741_v49 = vpop.f32.mrf.mxu1 }
 0xc41   : > { %v9316_v50 = vcombine.high %v9314_v48, %v9314_v48  ;;  %v9330_v32 = vrot.slane %v9314_v48, %v15777_v27  ;;  %v9337_v55 = vrot.slane %v9315_v45, %v15777_v27  ;;  %v9345_v58 = vcombine.high %v9323_v23, %v9323_v23  ;;  %v11946_v61 = vpop.f32.mrf.mxu0 }
 0xc42   : > { %10399 = vst [vmem:[%s16413_s26 + $0x10] sm:$0xff] %v9713_v7  ;;  %v8952_v8 = vrot.slane %v8924_v26, %v15777_v27  ;;  %v9714_v63 = vcombine.low %v8931_v31, %v8945_v51  ;;  %v10925_v47 = vcombine.high %v8931_v31, %v8945_v51  ;;  %v10074_v60 = vcombine.low %v9299_v3, %v9323_v23  ;;  %v11966_v20 = vpop.f32.mrf.mxu1 }
 0xc43   : > { %v15900_v46 = vrot.slane %v9316_v50, %v15777_v27  ;;  %v9346_v5 = vcombine.high %v9330_v32, %v9330_v32  ;;  %v9347_v44 = vcombine.high %v9337_v55, %v9337_v55  ;;  %v10120_v56 = vcombine.low %v9337_v55, %v9345_v58  ;;  %v15902_v36 = vpop.f32.mrf.mxu0 }
 0xc44   : > { %v9716_v41 = vcombine.low %v8938_v29, %v8952_v8  ;;  %v10926_v0 = vcombine.high %v8938_v29, %v8952_v8  ;;  %v9724_v53 = vrot.slane %v9714_v63, %v15777_v27  ;;  %v9731_v10 = vrot.slane %v10925_v47, %v15777_v27 }
 0xc45   : > { %v10102_v35 = vrot.slane %v10074_v60, %v15777_v27  ;;  %v10121_v30 = vcombine.low %v9347_v44, %v9330_v32  ;;  %v15908_v9 = vcombine.low %v15900_v46, %v9346_v5  ;;  %v10130_v54 = vrot.slane %v10120_v56, %v15777_v27  ;;  %v11949_v17 = vpop.f32.mrf.mxu0 }
 0xc46   : > { %v9738_v33 = vrot.slane %v9716_v41, %v15777_v27  ;;  %v9745_v39 = vrot.slane %v10926_v0, %v15777_v27  ;;  %v9746_v14 = vcombine.low %v9724_v53, %v9731_v10  ;;  %v8691_v37 = vadd.f32 %v15775_v21, %v15826_v43 }
 0xc47   : > { %v10104_v3 = vcombine.low %v10095_v28, %v10102_v35  ;;  %v10137_v12 = vrot.slane %v10121_v30, %v15777_v27  ;;  %v8723_v19 = vadd.f32 %v15775_v21, %v15804_v22  ;;  %v9348_v13 = vcombine.high %v15900_v46, %v15900_v46  ;;  %v15920_v6 = vpop.f32.mrf.mxu0 }
 0xc48   : > { %v9747_v40 = vcombine.low %v9738_v33, %v9745_v39  ;;  %v9754_v18 = vrot.slane %v9746_v14, %v15777_v27  ;;  %v8957_v16 = vcombine.high %v8691_v37, %v8691_v37  ;;  %v8964_v1 = vrot.slane %v8691_v37, %v15777_v27 }
 0xc49   : > { %v10118_v59 = vrot.slane %v10104_v3, %v15777_v27  ;;  %v15925_v43 = vcombine.low %v10130_v54, %v10137_v12  ;;  %v9349_v28 = vcombine.high %v8723_v19, %v8723_v19  ;;  %v9356_v42 = vrot.slane %v8723_v19, %v15777_v27  ;;  %v11950_v34 = vpop.f32.mrf.mxu0 }
 0xc4a   : > { %v9761_v22 = vrot.slane %v9747_v40, %v15777_v27  ;;  %v8971_v31 = vrot.slane %v8957_v16, %v15777_v27  ;;  %v8972_v24 = vcombine.high %v8964_v1, %v8964_v1  ;;  %v8980_v48 = vrot.slane %v8964_v1, %v15777_v27 }
 0xc4b   : > { %v10119_v45 = vcombine.low %v10111_v52, %v10118_v59  ;;  %v10160_v23 = vrot.slane %v15925_v43, %v15777_v27  ;;  %v9363_v7 = vrot.slane %v9349_v28, %v15777_v27  ;;  %v9364_v26 = vcombine.high %v9356_v42, %v9356_v42 }
 0xc4c   : > { %v9762_v29 = vcombine.low %v9754_v18, %v9761_v22  ;;  %v8973_v51 = vcombine.high %v8971_v31, %v8971_v31  ;;  %v8987_v49 = vrot.slane %v8971_v31, %v15777_v27  ;;  %v8994_v50 = vrot.slane %v8972_v24, %v15777_v27 }
 0xc4d   : > { %10408 = vst [vmem:[%s16413_s26 + $0x58] sm:$0xff] %v10119_v45  ;;  %v9365_v32 = vcombine.high %v9363_v7, %v9363_v7  ;;  %v9372_v55 = vrot.slane %v9356_v42, %v15777_v27  ;;  %v9379_v52 = vrot.slane %v9363_v7, %v15777_v27  ;;  %v9386_v58 = vrot.slane %v9364_v26, %v15777_v27 }
 0xc4e   : > { %10400 = vst [vmem:[%s16413_s26 + $0x18] sm:$0xff] %v9762_v29  ;;  %v9001_v61 = vrot.slane %v8973_v51, %v15777_v27  ;;  %v9763_v8 = vcombine.low %v8980_v48, %v8994_v50  ;;  %v10927_v63 = vcombine.high %v8980_v48, %v8994_v50  ;;  %v10144_v47 = vrot.slane %v15908_v9, %v15777_v27 }
 0xc4f   : > { %v9393_v60 = vrot.slane %v9365_v32, %v15777_v27  ;;  %v9394_v20 = vcombine.high %v9372_v55, %v9372_v55  ;;  %v9395_v46 = vcombine.high %v9379_v52, %v9379_v52  ;;  %v9396_v5 = vcombine.high %v9386_v58, %v9386_v58 }
 0xc50   : > { %v9765_v44 = vcombine.low %v8987_v49, %v9001_v61  ;;  %v10928_v56 = vcombine.high %v8987_v49, %v9001_v61  ;;  %v9773_v41 = vrot.slane %v9763_v8, %v15777_v27  ;;  %v9780_v0 = vrot.slane %v10927_v63, %v15777_v27 }
 0xc51   : > { %v10123_v53 = vcombine.low %v9348_v13, %v9372_v55  ;;  %v10169_v10 = vcombine.low %v9386_v58, %v9394_v20  ;;  %v10170_v35 = vcombine.low %v9396_v5, %v9379_v52  ;;  %v10171_v30 = vcombine.low %v9393_v60, %v9395_v46 }
 0xc52   : > { %v9787_v54 = vrot.slane %v9765_v44, %v15777_v27  ;;  %v9794_v17 = vrot.slane %v10928_v56, %v15777_v27  ;;  %v9795_v9 = vcombine.low %v9773_v41, %v9780_v0  ;;  %v8694_v33 = vadd.f32 %v15775_v21, %v15843_v38 }
 0xc53   : > { %v10151_v39 = vrot.slane %v10123_v53, %v15777_v27  ;;  %v10179_v14 = vrot.slane %v10169_v10, %v15777_v27  ;;  %v10186_v37 = vrot.slane %v10170_v35, %v15777_v27  ;;  %v8726_v3 = vadd.f32 %v15775_v21, %v15818_v15 }
 0xc54   : > { %v9796_v12 = vcombine.low %v9787_v54, %v9794_v17  ;;  %v9803_v19 = vrot.slane %v9795_v9, %v15777_v27  ;;  %v9006_v13 = vcombine.high %v8694_v33, %v8694_v33  ;;  %v9013_v40 = vrot.slane %v8694_v33, %v15777_v27 }
 0xc55   : > { %v10153_v18 = vcombine.low %v10144_v47, %v10151_v39  ;;  %v10201_v16 = vcombine.low %v10179_v14, %v10186_v37  ;;  %v9397_v1 = vcombine.high %v9393_v60, %v9393_v60  ;;  %v9398_v59 = vcombine.high %v8726_v3, %v8726_v3 }
 0xc56   : > { %v9810_v38 = vrot.slane %v9796_v12, %v15777_v27  ;;  %v9020_v43 = vrot.slane %v9006_v13, %v15777_v27  ;;  %v9021_v28 = vcombine.high %v9013_v40, %v9013_v40  ;;  %v9029_v42 = vrot.slane %v9013_v40, %v15777_v27 }
 0xc57   : > { %v10167_v34 = vrot.slane %v10153_v18, %v15777_v27  ;;  %v10209_v15 = vrot.slane %v10201_v16, %v15777_v27  ;;  %v9405_v22 = vrot.slane %v8726_v3, %v15777_v27  ;;  %v9412_v31 = vrot.slane %v9398_v59, %v15777_v27 }
 0xc58   : > { %v9811_v24 = vcombine.low %v9803_v19, %v9810_v38  ;;  %v9022_v48 = vcombine.high %v9020_v43, %v9020_v43  ;;  %v9036_v45 = vrot.slane %v9020_v43, %v15777_v27  ;;  %v9043_v7 = vrot.slane %v9021_v28, %v15777_v27 }
 0xc59   : > { %v10168_v26 = vcombine.low %v10160_v23, %v10167_v34  ;;  %v9413_v29 = vcombine.high %v9405_v22, %v9405_v22  ;;  %v9414_v51 = vcombine.high %v9412_v31, %v9412_v31  ;;  %v9421_v49 = vrot.slane %v9405_v22, %v15777_v27 }
 0xc5a   : > { %10401 = vst [vmem:[%s16413_s26 + $0x20] sm:$0xff] %v9811_v24  ;;  %v9050_v50 = vrot.slane %v9022_v48, %v15777_v27  ;;  %v9812_v32 = vcombine.low %v9029_v42, %v9043_v7  ;;  %v10929_v55 = vcombine.high %v9029_v42, %v9043_v7  ;;  %v9428_v52 = vrot.slane %v9412_v31, %v15777_v27 }
 0xc5b   : > { %10409 = vst [vmem:[%s16413_s26 + $0x60] sm:$0xff] %v10168_v26  ;;  %v9435_v23 = vrot.slane %v9413_v29, %v15777_v27  ;;  %v9442_v58 = vrot.slane %v9414_v51, %v15777_v27  ;;  %v9443_v61 = vcombine.high %v9421_v49, %v9421_v49  ;;  %v10172_v8 = vcombine.low %v9397_v1, %v9421_v49 }
 0xc5c   : > { %v9814_v63 = vcombine.low %v9036_v45, %v9050_v50  ;;  %v10930_v47 = vcombine.high %v9036_v45, %v9050_v50  ;;  %v9822_v60 = vrot.slane %v9812_v32, %v15777_v27  ;;  %v9829_v20 = vrot.slane %v10929_v55, %v15777_v27 }
 0xc5d   : > { %v9444_v46 = vcombine.high %v9428_v52, %v9428_v52  ;;  %v9445_v5 = vcombine.high %v9435_v23, %v9435_v23  ;;  %v10193_v44 = vrot.slane %v10171_v30, %v15777_v27  ;;  %v10200_v56 = vrot.slane %v10172_v8, %v15777_v27 }
 0xc5e   : > { %v9836_v41 = vrot.slane %v9814_v63, %v15777_v27  ;;  %v9843_v0 = vrot.slane %v10930_v47, %v15777_v27  ;;  %v9844_v53 = vcombine.low %v9822_v60, %v9829_v20  ;;  %v10218_v10 = vcombine.low %v9435_v23, %v9443_v61 }
 0xc5f   : > { %v10202_v35 = vcombine.low %v10193_v44, %v10200_v56  ;;  %v10219_v54 = vcombine.low %v9445_v5, %v9428_v52  ;;  %v10220_v17 = vcombine.low %v9442_v58, %v9444_v46  ;;  %v8699_v9 = vadd.f32 %v15775_v21, %v15865_v62 }
 0xc60   : > { %v9845_v33 = vcombine.low %v9836_v41, %v9843_v0  ;;  %v9852_v39 = vrot.slane %v9844_v53, %v15777_v27  ;;  %v10228_v14 = vrot.slane %v10218_v10, %v15777_v27  ;;  %v8731_v30 = vadd.f32 %v15775_v21, %v15831_v4 }
 0xc61   : > { %v10216_v37 = vrot.slane %v10202_v35, %v15777_v27  ;;  %v10235_v3 = vrot.slane %v10219_v54, %v15777_v27  ;;  %v9055_v12 = vcombine.high %v8699_v9, %v8699_v9  ;;  %v9062_v19 = vrot.slane %v8699_v9, %v15777_v27 }
 0xc62   : > { %v9859_v13 = vrot.slane %v9845_v33, %v15777_v27  ;;  %v9446_v40 = vcombine.high %v9442_v58, %v9442_v58  ;;  %v9447_v18 = vcombine.high %v8731_v30, %v8731_v30  ;;  %v9454_v62 = vrot.slane %v8731_v30, %v15777_v27 }
 0xc63   : > { %v10217_v16 = vcombine.low %v10209_v15, %v10216_v37  ;;  %v10250_v1 = vcombine.low %v10228_v14, %v10235_v3  ;;  %v9069_v59 = vrot.slane %v9055_v12, %v15777_v27  ;;  %v9070_v38 = vcombine.high %v9062_v19, %v9062_v19 }
 0xc64   : > { %v9860_v43 = vcombine.low %v9852_v39, %v9859_v13  ;;  %v9078_v4 = vrot.slane %v9062_v19, %v15777_v27  ;;  %v9461_v28 = vrot.slane %v9447_v18, %v15777_v27  ;;  %v9462_v42 = vcombine.high %v9454_v62, %v9454_v62 }
 0xc65   : > { %v10258_v34 = vrot.slane %v10250_v1, %v15777_v27  ;;  %10410 = vst [vmem:[%s16413_s26 + $0x68] sm:$0xff] %v10217_v16  ;;  %v9071_v22 = vcombine.high %v9069_v59, %v9069_v59  ;;  %v9085_v31 = vrot.slane %v9069_v59, %v15777_v27  ;;  %v9092_v15 = vrot.slane %v9070_v38, %v15777_v27 }
 0xc66   : > { %10402 = vst [vmem:[%s16413_s26 + $0x28] sm:$0xff] %v9860_v43  ;;  %v9463_v24 = vcombine.high %v9461_v28, %v9461_v28  ;;  %v9470_v48 = vrot.slane %v9454_v62, %v15777_v27  ;;  %v9477_v45 = vrot.slane %v9461_v28, %v15777_v27  ;;  %v9484_v7 = vrot.slane %v9462_v42, %v15777_v27 }
 0xc67   : > { %v9099_v26 = vrot.slane %v9071_v22, %v15777_v27  ;;  %v9861_v29 = vcombine.low %v9078_v4, %v9092_v15  ;;  %v10931_v51 = vcombine.high %v9078_v4, %v9092_v15  ;;  %v10242_v49 = vrot.slane %v10220_v17, %v15777_v27 }
 0xc68   : > { %v9491_v50 = vrot.slane %v9463_v24, %v15777_v27  ;;  %v9492_v32 = vcombine.high %v9470_v48, %v9470_v48  ;;  %v9493_v55 = vcombine.high %v9477_v45, %v9477_v45  ;;  %v9494_v52 = vcombine.high %v9484_v7, %v9484_v7 }
 0xc69   : > { %v9863_v23 = vcombine.low %v9085_v31, %v9099_v26  ;;  %v10932_v58 = vcombine.high %v9085_v31, %v9099_v26  ;;  %v9871_v61 = vrot.slane %v9861_v29, %v15777_v27  ;;  %v9878_v8 = vrot.slane %v10931_v51, %v15777_v27 }
 0xc6a   : > { %v10221_v63 = vcombine.low %v9446_v40, %v9470_v48  ;;  %v10267_v47 = vcombine.low %v9484_v7, %v9492_v32  ;;  %v10268_v60 = vcombine.low %v9494_v52, %v9477_v45  ;;  %v10269_v20 = vcombine.low %v9491_v50, %v9493_v55 }
 0xc6b   : > { %v9885_v46 = vrot.slane %v9863_v23, %v15777_v27  ;;  %v9892_v5 = vrot.slane %v10932_v58, %v15777_v27  ;;  %v9893_v44 = vcombine.low %v9871_v61, %v9878_v8  ;;  %v8702_v56 = vadd.f32 %v15775_v21, %v15889_v25 }
 0xc6c   : > { %v10249_v41 = vrot.slane %v10221_v63, %v15777_v27  ;;  %v10277_v0 = vrot.slane %v10267_v47, %v15777_v27  ;;  %v10284_v53 = vrot.slane %v10268_v60, %v15777_v27  ;;  %v8734_v10 = vadd.f32 %v15775_v21, %v15850_v2 }
 0xc6d   : > { %v9894_v35 = vcombine.low %v9885_v46, %v9892_v5  ;;  %v9901_v54 = vrot.slane %v9893_v44, %v15777_v27  ;;  %v9104_v17 = vcombine.high %v8702_v56, %v8702_v56  ;;  %v9111_v9 = vrot.slane %v8702_v56, %v15777_v27 }
 0xc6e   : > { %v10251_v33 = vcombine.low %v10242_v49, %v10249_v41  ;;  %v10299_v39 = vcombine.low %v10277_v0, %v10284_v53  ;;  %v9495_v14 = vcombine.high %v9491_v50, %v9491_v50  ;;  %v9496_v30 = vcombine.high %v8734_v10, %v8734_v10 }
 0xc6f   : > { %v9908_v25 = vrot.slane %v9894_v35, %v15777_v27  ;;  %v9118_v37 = vrot.slane %v9104_v17, %v15777_v27  ;;  %v9119_v3 = vcombine.high %v9111_v9, %v9111_v9  ;;  %v9127_v12 = vrot.slane %v9111_v9, %v15777_v27 }
 0xc70   : > { %v10265_v19 = vrot.slane %v10251_v33, %v15777_v27  ;;  %v10307_v2 = vrot.slane %v10299_v39, %v15777_v27  ;;  %v9503_v13 = vrot.slane %v8734_v10, %v15777_v27  ;;  %v9510_v40 = vrot.slane %v9496_v30, %v15777_v27 }
 0xc71   : > { %v9909_v18 = vcombine.low %v9901_v54, %v9908_v25  ;;  %v9120_v62 = vcombine.high %v9118_v37, %v9118_v37  ;;  %v9134_v16 = vrot.slane %v9118_v37, %v15777_v27  ;;  %v9141_v1 = vrot.slane %v9119_v3, %v15777_v27 }
 0xc72   : > { %v10266_v59 = vcombine.low %v10258_v34, %v10265_v19  ;;  %v9511_v38 = vcombine.high %v9503_v13, %v9503_v13  ;;  %v9512_v43 = vcombine.high %v9510_v40, %v9510_v40  ;;  %v9519_v4 = vrot.slane %v9503_v13, %v15777_v27 }
 0xc73   : > { %10403 = vst [vmem:[%s16413_s26 + $0x30] sm:$0xff] %v9909_v18  ;;  %v9148_v28 = vrot.slane %v9120_v62, %v15777_v27  ;;  %v9910_v42 = vcombine.low %v9127_v12, %v9141_v1  ;;  %v10933_v22 = vcombine.high %v9127_v12, %v9141_v1  ;;  %v9526_v31 = vrot.slane %v9510_v40, %v15777_v27 }
 0xc74   : > { %10411 = vst [vmem:[%s16413_s26 + $0x70] sm:$0xff] %v10266_v59  ;;  %v9533_v34 = vrot.slane %v9511_v38, %v15777_v27  ;;  %v9540_v15 = vrot.slane %v9512_v43, %v15777_v27  ;;  %v9541_v24 = vcombine.high %v9519_v4, %v9519_v4  ;;  %v10270_v48 = vcombine.low %v9495_v14, %v9519_v4 }
 0xc75   : > { %v9912_v45 = vcombine.low %v9134_v16, %v9148_v28  ;;  %v10934_v7 = vcombine.high %v9134_v16, %v9148_v28  ;;  %v9920_v26 = vrot.slane %v9910_v42, %v15777_v27  ;;  %v9927_v29 = vrot.slane %v10933_v22, %v15777_v27 }
 0xc76   : > { %v9542_v51 = vcombine.high %v9526_v31, %v9526_v31  ;;  %v9543_v49 = vcombine.high %v9533_v34, %v9533_v34  ;;  %v10291_v50 = vrot.slane %v10269_v20, %v15777_v27  ;;  %v10298_v32 = vrot.slane %v10270_v48, %v15777_v27 }
 0xc77   : > { %v9934_v55 = vrot.slane %v9912_v45, %v15777_v27  ;;  %v9941_v52 = vrot.slane %v10934_v7, %v15777_v27  ;;  %v9942_v23 = vcombine.low %v9920_v26, %v9927_v29  ;;  %v10316_v58 = vcombine.low %v9533_v34, %v9541_v24 }
 0xc78   : > { %v10300_v61 = vcombine.low %v10291_v50, %v10298_v32  ;;  %v10317_v8 = vcombine.low %v9543_v49, %v9526_v31  ;;  %v10318_v63 = vcombine.low %v9540_v15, %v9542_v51  ;;  %v8707_v47 = vadd.f32 %v15775_v21, %v15902_v36 }
 0xc79   : > { %v9943_v60 = vcombine.low %v9934_v55, %v9941_v52  ;;  %v10326_v46 = vrot.slane %v10316_v58, %v15777_v27  ;;  %v8739_v20 = vadd.f32 %v15775_v21, %v15869_v57  ;;  %v9950_v0 = vrot.slane %v9942_v23, %v15777_v27 }
 0xc7a   : > { %v10314_v5 = vrot.slane %v10300_v61, %v15777_v27  ;;  %v10333_v44 = vrot.slane %v10317_v8, %v15777_v27  ;;  %v9153_v56 = vcombine.high %v8707_v47, %v8707_v47  ;;  %v9160_v41 = vrot.slane %v8707_v47, %v15777_v27 }
 0xc7b   : > { %v9957_v53 = vrot.slane %v9943_v60, %v15777_v27  ;;  %v9544_v10 = vcombine.high %v9540_v15, %v9540_v15  ;;  %v9551_v36 = vrot.slane %v8739_v20, %v15777_v27  ;;  %v10340_v57 = vrot.slane %v10318_v63, %v15777_v27 }
 0xc7c   : > { %v10315_v35 = vcombine.low %v10307_v2, %v10314_v5  ;;  %v9167_v54 = vrot.slane %v9153_v56, %v15777_v27  ;;  %v9168_v17 = vcombine.high %v9160_v41, %v9160_v41  ;;  %v9176_v33 = vrot.slane %v9160_v41, %v15777_v27 }
 0xc7d   : > { %v9958_v9 = vcombine.low %v9950_v0, %v9957_v53  ;;  %v9552_v39 = vcombine.high %v9551_v36, %v9551_v36  ;;  %v9559_v14 = vrot.slane %v9551_v36, %v15777_v27  ;;  %v10348_v30 = vcombine.low %v10326_v46, %v10333_v44 }
 0xc7e   : > { %10412 = vst [vmem:[%s16413_s26 + $0x78] sm:$0xff] %v10315_v35  ;;  %v9169_v25 = vcombine.high %v9167_v54, %v9167_v54  ;;  %v9183_v37 = vrot.slane %v9167_v54, %v15777_v27  ;;  %v9190_v3 = vrot.slane %v9168_v17, %v15777_v27  ;;  %v9198_v12 = vcombine.high %v9176_v33, %v9176_v33 }
 0xc7f   : > { %10404 = vst [vmem:[%s16413_s26 + $0x38] sm:$0xff] %v9958_v9  ;;  %v9965_v19 = vrot.slane %v9176_v33, %v15777_v27  ;;  %v9566_v2 = vrot.slane %v9552_v39, %v15777_v27  ;;  %v10319_v13 = vcombine.low %v9544_v10, %v9559_v14  ;;  %v8710_v16 = vadd.f32 %v15775_v21, %v15920_v6 }
 0xc80   : > { %v9197_v40 = vrot.slane %v9169_v25, %v15777_v27  ;;  %v9199_v18 = vcombine.high %v9183_v37, %v9183_v37  ;;  %v9200_v62 = vcombine.high %v9190_v3, %v9190_v3  ;;  %v9973_v38 = vcombine.low %v9190_v3, %v9198_v12 }
 0xc81   : > { %10935 = vst.sshfl [vmem:[%s16413_s26 + $0x40] sm:$0x1 pattern:$0x73625140] %v9965_v19  ;;  %v10347_v1 = vrot.slane %v10319_v13, %v15777_v27  ;;  %v10371_v59 = vrot.slane %v9566_v2, %v15777_v27  ;;  %v9202_v4 = vcombine.high %v8710_v16, %v8710_v16  ;;  %v10356_v28 = vrot.slane %v10348_v30, %v15777_v27 }
 0xc82   : > { %v9974_v43 = vcombine.low %v9200_v62, %v9183_v37  ;;  %v9201_v22 = vcombine.high %v9197_v40, %v9197_v40  ;;  %v9209_v21 = vrot.slane %v8710_v16, %v15777_v27  ;;  %v9975_v6 = vcombine.low %v9197_v40, %v9199_v18 }
 0xc83   : > { %v10349_v42 = vcombine.low %v10340_v57, %v10347_v1  ;;  %10936 = vst.sshfl [vmem:[%s16413_s26 + $0x88] sm:$0x1 pattern:$0x73625140] %v10371_v59  ;;  %v9216_v31 = vrot.slane %v9202_v4, %v15777_v27  ;;  %v9983_v45 = vrot.slane %v9973_v38, %v15777_v27 }
 0xc84   : > { %v9990_v34 = vrot.slane %v9974_v43, %v15777_v27  ;;  %v9217_v24 = vcombine.high %v9209_v21, %v9209_v21  ;;  %v9225_v48 = vrot.slane %v9209_v21, %v15777_v27  ;;  %v9997_v52 = vrot.slane %v9975_v6, %v15777_v27 }
 0xc85   : > { %v10363_v15 = vrot.slane %v10349_v42, %v15777_v27  ;;  %v9218_v7 = vcombine.high %v9216_v31, %v9216_v31  ;;  %v9232_v26 = vrot.slane %v9216_v31, %v15777_v27 }
 0xc86   : > { %v9239_v51 = vrot.slane %v9217_v24, %v15777_v27  ;;  %v9247_v49 = vcombine.high %v9225_v48, %v9225_v48  ;;  %v9976_v50 = vcombine.low %v9201_v22, %v9225_v48  ;;  %v10005_v23 = vcombine.low %v9983_v45, %v9990_v34 }
 0xc87   : > { %v10364_v29 = vcombine.low %v10356_v28, %v10363_v15  ;;  %v9246_v32 = vrot.slane %v9218_v7, %v15777_v27  ;;  %v9248_v55 = vcombine.high %v9232_v26, %v9232_v26 }
 0xc88   : > { %v9249_v58 = vcombine.high %v9239_v51, %v9239_v51  ;;  %v10004_v61 = vrot.slane %v9976_v50, %v15777_v27  ;;  %v10022_v8 = vcombine.low %v9239_v51, %v9247_v49  ;;  %v10013_v5 = vrot.slane %v10005_v23, %v15777_v27 }
 0xc89   : > { %10413 = vst [vmem:[%s16413_s26 + $0x80] sm:$0xff] %v10364_v29  ;;  %v9250_v63 = vcombine.high %v9246_v32, %v9246_v32  ;;  %v10024_v47 = vcombine.low %v9246_v32, %v9248_v55 }
 0xc8a   : > { %v10006_v60 = vcombine.low %v9997_v52, %v10004_v61  ;;  %v10023_v46 = vcombine.low %v9249_v58, %v9232_v26  ;;  %v10032_v56 = vrot.slane %v10022_v8, %v15777_v27 }
 0xc8b   : > { %v10025_v20 = vcombine.low %v9250_v63, %v15788_v11  ;;  %v10046_v0 = vrot.slane %v10024_v47, %v15777_v27 }
 0xc8c   : > { %v10020_v44 = vrot.slane %v10006_v60, %v15777_v27  ;;  %v10039_v41 = vrot.slane %v10023_v46, %v15777_v27 }
 0xc8d   : > { %v10053_v53 = vrot.slane %v10025_v20, %v15777_v27 }
 0xc8e   : > { %v10021_v10 = vcombine.low %v10013_v5, %v10020_v44  ;;  %v10054_v36 = vcombine.low %v10032_v56, %v10039_v41 }
 0xc8f   : > { %v10055_v35 = vcombine.low %v10046_v0, %v10053_v53 }
 0xc90   : > { %10406 = vst [vmem:[%s16413_s26 + $0x48] sm:$0xff] %v10021_v10  ;;  %v10062_v11 = vrot.slane %v10054_v36, %v15777_v27 }
 0xc91   : > { %v10069_v54 = vrot.slane %v10055_v35, %v15777_v27 }
 0xc93   : > { %v10070_v17 = vcombine.low %v10062_v11, %v10069_v54 }
 0xc95   : > { %10407 = vst [vmem:[%s16413_s26 + $0x50] sm:$0xff] %v10070_v17 }
 0xc96 PF: > { %s16414_s14 = sld [smem:[#allocation5_spill]] }
 0xc97   : > { %s16415_s18 = sld [smem:[#allocation4_spill]] }
 0xc98   : > { %s16416_s19 = sld [smem:[#allocation6_spill]] }
 0xc9c   : > { %s25_s20 = sadd.s32 1, %s16414_s14  }
 0xc9d   : > { %p22_p7 = scmp.ge.s32.totalorder %s25_s20, 4  }
 0xc9f   :  { %24 = sbr.rel (!%p22_p7) target bundleno = 6 (0x6), region = 151 }

</bundles_post_ra>
